<compile_context>
chip_gen: v6e
topology: v6e:2x2x1
jax: 0.10.0
libtpu: 0.0.40
codegen_flags: <defaults>
</compile_context>

<pallas_src>
import math

import numpy as np

import jax
import jax.numpy as jnp
from jax.experimental import pallas as pl
from jax.experimental.pallas import tpu as pltpu


# ------------------------------ fused kernel ------------------------------- #

def lenet5_fused_kernel(x_ref, m1_ref, p1c_ref, m2_ref, p2c_ref,
                        fw1_ref, fw2_ref, fw3_ref, b_ref,
                        o_ref, h1_scr, h2_scr, g1_scr, g2_scr):
    """Whole LeNet5 forward for one batch tile, entirely in VMEM.

    Layouts:
      x_ref  : (TB, 32, 32)        bf16, image rows on sublanes, width on lanes
      h/g    : (TB, rows, C*width) activations, channel-major lanes, rows kept
                                   "stretched" after pooling (valid rows at
                                   stride 2 after pool1, stride 4 after pool2)
      o_ref  : (TB, 1, ncls_pad)   f32, lane-dense (padded to 128)
    """
    f32 = jnp.float32
    bf16 = jnp.bfloat16

    def mm(a, w):
        # (TB, rows, K) @ (K, N) -> (TB, rows, N); batch*rows fold into MXU M.
        return jax.lax.dot_general(
            a, w, dimension_numbers=(((a.ndim - 1,), (0,)), ((), ())),
            preferred_element_type=f32)

    w_img = x_ref.shape[2]
    k1 = m1_ref.shape[0] // w_img                 # conv1 kernel height (5)
    k2 = m2_ref.shape[0] // p1c_ref.shape[1]      # conv2 kernel height (5)
    r1 = h1_scr.shape[1]                          # 28 conv1 output rows
    r1s = h2_scr.shape[1]                         # 27 stretched pool1 rows
    r2 = g1_scr.shape[1]                          # 19 stretched conv2 rows
    r2s = g2_scr.shape[1]                         # 17 stretched pool2 rows
    n1 = p1c_ref.shape[1]                         # c1*14
    n2 = p2c_ref.shape[1]                         # c2*5
    f1 = fw1_ref.shape[1]                         # 120
    f2 = fw2_ref.shape[1]                         # 84
    f3 = fw3_ref.shape[1]                         # ncls_pad (128)
    h2p = fw1_ref.shape[0] // n2                  # 5 spatial rows into fc1

    # packed bias slab: [bn1_shift | bn2_shift | fc1_b | fc2_b | fc3_b(padded)]
    o2 = n1
    o3 = o2 + n2
    o4 = o3 + f1
    o5 = o4 + f2
    t1 = b_ref[:, :, 0:n1]
    t2 = b_ref[:, :, o2:o3]
    fb1 = b_ref[:, :, o3:o4]
    fb2 = b_ref[:, :, o4:o5]
    fb3 = b_ref[:, :, o5:o5 + f3]

    # ---- conv1: im2row (lane concat of k offset row-windows of the Ref) then
    #      one deep-K MXU matmul; ReLU in f32; store bf16 to scratch ----------
    xcat = jnp.concatenate(
        [x_ref[:, pl.ds(ki, r1), :] for ki in range(k1)], axis=2)   # (TB,28,k*32)
    h1_scr[...] = jnp.maximum(mm(xcat, m1_ref[...]), 0.0).astype(bf16)

    # ---- pool1: adjacent-row add (VPU) + column-pool matmul with the 0.25 and
    #      BN1 per-channel scale folded in, then the BN1 shift.  Pooled row p
    #      lives at stretched index 2p (odd rows hold never-read garbage). -----
    s1 = h1_scr[:, pl.ds(0, r1s), :] + h1_scr[:, pl.ds(1, r1s), :]  # (TB,27,c1*28)
    h2_scr[...] = (mm(s1, p1c_ref[...]) + t1).astype(bf16)          # (TB,27,c1*14)

    # ---- conv2 on stretched rows: windows at offsets 0,2,4,6,8 --------------
    gcat = jnp.concatenate(
        [h2_scr[:, pl.ds(2 * ki, r2), :] for ki in range(k2)], axis=2)  # (TB,19,k*c1*14)
    g1_scr[...] = jnp.maximum(mm(gcat, m2_ref[...]), 0.0).astype(bf16)  # (TB,19,c2*10)

    # ---- pool2: valid conv2 rows sit at stride 2, so the pair add is (r, r+2);
    #      pooled spatial row p lives at stretched index 4p --------------------
    s2 = g1_scr[:, pl.ds(0, r2s), :] + g1_scr[:, pl.ds(2, r2s), :]      # (TB,17,c2*10)
    g2_scr[...] = (mm(s2, p2c_ref[...]) + t2).astype(bf16)              # (TB,17,c2*5)

    # ---- classifier: NCHW flatten folded into fc1's weight layout; gather the
    #      h2p valid spatial rows (stretched index 4*i) by lane concat ---------
    zcat = jnp.concatenate(
        [g2_scr[:, pl.ds(4 * i, 1), :] for i in range(h2p)], axis=2)    # (TB,1,c2*25)
    z = jnp.maximum(mm(zcat, fw1_ref[...]) + fb1, 0.0).astype(bf16)     # (TB,1,120)
    z = jnp.maximum(mm(z, fw2_ref[...]) + fb2, 0.0).astype(bf16)        # (TB,1,84)
    o_ref[...] = mm(z, fw3_ref[...]) + fb3                              # (TB,1,ncls_pad)


# ------------------------- derived-parameter helpers ------------------------ #

def _conv_row_toeplitz(w, w_in):
    """Conv weights (Cout, Cin, k, k) -> one deep-K matrix (k*Cin*w_in, Cout*w_out).

    M[ki*Cin*w_in + ci*w_in + j, co*w_out + jo] = w[co, ci, ki, j - jo] for
    0 <= j - jo < k, so  out_row[r] = concat_ki(act_row[r + ki]) @ M.
    """
    cout, cin, k, _ = w.shape
    w_out = w_in - k + 1
    j = jnp.arange(w_in)[:, None]
    jo = jnp.arange(w_out)[None, :]
    kj = j - jo
    valid = (kj >= 0) & (kj < k)
    g = w[:, :, :, jnp.clip(kj, 0, k - 1)]          # (Cout, Cin, k, w_in, w_out)
    g = jnp.where(valid[None, None, None], g, 0.0)
    g = g.transpose(2, 1, 3, 0, 4)                  # (k, Cin, w_in, Cout, w_out)
    return g.reshape(k * cin * w_in, cout * w_out)


def _colpool_base(w_in, channels):
    """Column half of AvgPool2d(2,2) for the (rows, C*W) lane layout.

    Entries are 0.25 because the row half is an unnormalized adjacent-row add
    in the kernel (sum of 4 window elements * 0.25 = average)."""
    w_out = w_in // 2
    pc = np.zeros((channels * w_in, channels * w_out), np.float32)
    for c in range(channels):
        for wo in range(w_out):
            pc[c * w_in + 2 * wo, c * w_out + wo] = 0.25
            pc[c * w_in + 2 * wo + 1, c * w_out + wo] = 0.25
    return pc


# -------------------------------- forward ----------------------------------- #

def lenet5_forward(x, params, *, batch_tile=None, eps=1e-5):
    """x: (N, 1, 32, 32) float32 NCHW -> logits (N, num_classes)."""
    n = x.shape[0]
    h_img = x.shape[2]
    assert x.shape[1] == 1 and x.shape[3] == h_img
    w1c = params["conv1_w"]                         # (c1, 1, 5, 5)
    w2c = params["conv2_w"]                         # (c2, c1, 5, 5)
    c1, _, k, _ = w1c.shape
    c2 = w2c.shape[0]

    r1 = h_img - k + 1                              # 28 conv1 output rows/cols
    p1 = r1 // 2                                    # 14 after pool1
    r2 = p1 - k + 1                                 # 10 conv2 output rows/cols
    p2 = r2 // 2                                    # 5  after pool2
    # stretched (un-downsampled) row counts used by the kernel
    r1s = r1 - 1                                    # 27
    r2v = r1s - 2 * (k - 1)                         # 19
    r2s = r2v - 2                                   # 17

    bf16 = jnp.bfloat16

    # conv weights -> deep-K row-Toeplitz matrices (one MXU matmul per conv)
    m1 = _conv_row_toeplitz(w1c, h_img).astype(bf16)        # (k*32,     c1*28)
    m2 = _conv_row_toeplitz(w2c, p1).astype(bf16)           # (k*c1*14,  c2*10)

    # Inference-mode BN folded: per-channel scale into the column-pool matrices,
    # shift added after pooling (affine commutes with average pooling).
    g1, b1, mu1, v1 = params["bn1"]
    g2_, b2, mu2, v2 = params["bn2"]
    sc1 = g1 / jnp.sqrt(v1 + eps)
    sh1 = b1 - mu1 * sc1
    sc2 = g2_ / jnp.sqrt(v2 + eps)
    sh2 = b2 - mu2 * sc2
    p1c = (jnp.asarray(_colpool_base(r1, c1)) * jnp.repeat(sc1, p1)[None, :]).astype(bf16)
    p2c = (jnp.asarray(_colpool_base(r2, c2)) * jnp.repeat(sc2, p2)[None, :]).astype(bf16)
    t1 = jnp.repeat(sh1, p1)                        # (c1*14,)
    t2 = jnp.repeat(sh2, p2)                        # (c2*5,)

    # classifier weights; fold the PyTorch NCHW flatten (c*25 + i*5 + j) into fc1
    fc1_w, fc1_b = params["fc1"]                    # (120, c2*5*5)
    assert fc1_w.shape[1] == c2 * p2 * p2
    fw1 = (fc1_w.reshape(-1, c2, p2, p2)
                 .transpose(2, 1, 3, 0)
                 .reshape(p2 * c2 * p2, -1)).astype(bf16)   # (c2*25, 120)
    fw2 = params["fc2"][0].T.astype(bf16)                   # (120, 84)
    fw3_full = params["fc3"][0].T                           # (84, ncls)
    ncls = fw3_full.shape[1]
    ncls_pad = ((ncls + 127) // 128) * 128                  # lane-dense output
    fw3 = jnp.pad(fw3_full, ((0, 0), (0, ncls_pad - ncls))).astype(bf16)
    fb3 = jnp.pad(params["fc3"][1], (0, ncls_pad - ncls))
    biases = jnp.concatenate(
        [t1, t2, fc1_b, params["fc2"][1], fb3]).astype(jnp.float32).reshape(1, 1, -1)

    # batch tiling: big tiles amortize per-step overhead and fill the MXU M dim;
    # keep >=2 grid steps when N allows so the 'parallel' axis can use both v7x TCs.
    if batch_tile is None:
        batch_tile = min(128, max(8, 8 * pl.cdiv(pl.cdiv(n, 2), 8)))
    n_pad = pl.cdiv(n, batch_tile) * batch_tile
    xs = x.reshape(n, h_img, h_img).astype(bf16)    # Cin == 1; bf16 matmul operand
    if n_pad != n:
        xs = jnp.pad(xs, ((0, n_pad - n), (0, 0), (0, 0)))

    def wspec(a):
        return pl.BlockSpec(a.shape, lambda i: (0, 0))

    out = pl.pallas_call(
        lenet5_fused_kernel,
        out_shape=jax.ShapeDtypeStruct((n_pad, 1, ncls_pad), jnp.float32),
        grid=(n_pad // batch_tile,),
        in_specs=[
            pl.BlockSpec((batch_tile, h_img, h_img), lambda i: (i, 0, 0)),   # x
            wspec(m1), wspec(p1c), wspec(m2), wspec(p2c),
            wspec(fw1), wspec(fw2), wspec(fw3),
            pl.BlockSpec(biases.shape, lambda i: (0, 0, 0)),
        ],
        out_specs=pl.BlockSpec((batch_tile, 1, ncls_pad), lambda i: (i, 0, 0)),
        scratch_shapes=[
            pltpu.VMEM((batch_tile, r1, c1 * r1), bf16),    # conv1 relu out
            pltpu.VMEM((batch_tile, r1s, c1 * p1), bf16),   # pool1 out (stretched)
            pltpu.VMEM((batch_tile, r2v, c2 * r2), bf16),   # conv2 relu out
            pltpu.VMEM((batch_tile, r2s, c2 * p2), bf16),   # pool2 out (stretched)
        ],
        compiler_params=pltpu.CompilerParams(
            dimension_semantics=("parallel",),
            vmem_limit_bytes=48 * 1024 * 1024),
    )(xs, m1, p1c, m2, p2c, fw1, fw2, fw3, biases)
    return out.reshape(n_pad, ncls_pad)[:n, :ncls]


# ------------------------------ parameters ---------------------------------- #

def init_lenet5_params(key, cfg=(6, 16), num_classes=10, bn_init_value=1.0):
    """Deterministic init matching LeNet5._initialize_weights shapes/distributions."""
    k = 5
    c1, c2 = cfg
    out_dim = c2 * 5 * 5                            # 32 -> 28 -> 14 -> 10 -> 5
    keys = jax.random.split(key, 5)

    def conv_init(kk, out_ch, in_ch):
        std = math.sqrt(2.0 / (k * k * out_ch))
        return std * jax.random.normal(kk, (out_ch, in_ch, k, k), jnp.float32)

    def bn_init(ch):
        return (jnp.full((ch,), bn_init_value, jnp.float32),   # gamma
                jnp.zeros((ch,), jnp.float32),                 # beta
                jnp.zeros((ch,), jnp.float32),                 # running_mean
                jnp.ones((ch,), jnp.float32))                  # running_var

    def lin_init(kk, out_f, in_f):
        return (0.01 * jax.random.normal(kk, (out_f, in_f), jnp.float32),
                jnp.zeros((out_f,), jnp.float32))

    return {
        "conv1_w": conv_init(keys[0], c1, 1),
        "bn1": bn_init(c1),
        "conv2_w": conv_init(keys[1], c2, c1),
        "bn2": bn_init(c2),
        "fc1": lin_init(keys[2], 120, out_dim),
        "fc2": lin_init(keys[3], 84, 120),
        "fc3": lin_init(keys[4], num_classes, 84),
    }


def _random_check_params(key, cfg=(6, 16), num_classes=10):
    """Well-conditioned random params (non-identity BN, non-zero biases) for the
    numerical check of the fused kernel against the XLA reference."""
    c1, c2 = cfg
    ks = jax.random.split(key, 16)

    def nrm(kk, shape, scale):
        return scale * jax.random.normal(kk, shape, jnp.float32)

    return {
        "conv1_w": nrm(ks[0], (c1, 1, 5, 5), 0.3),
        "bn1": (1.0 + nrm(ks[1], (c1,), 0.2), nrm(ks[2], (c1,), 0.2),
                nrm(ks[3], (c1,), 0.2),
                1.0 + jax.random.uniform(ks[4], (c1,), jnp.float32)),
        "conv2_w": nrm(ks[5], (c2, c1, 5, 5), 0.15),
        "bn2": (1.0 + nrm(ks[6], (c2,), 0.2), nrm(ks[7], (c2,), 0.2),
                nrm(ks[8], (c2,), 0.2),
                1.0 + jax.random.uniform(ks[9], (c2,), jnp.float32)),
        "fc1": (nrm(ks[10], (120, c2 * 25), 0.05), nrm(ks[11], (120,), 0.1)),
        "fc2": (nrm(ks[12], (84, 120), 0.05), nrm(ks[13], (84,), 0.1)),
        "fc3": (nrm(ks[14], (num_classes, 84), 0.05), nrm(ks[15], (num_classes,), 0.1)),
    }


# -------------------------- pure-JAX (XLA) reference ------------------------ #

def lenet5_reference(x, params, eps=1e-5):
    """Reference forward (same semantics) used only to validate the kernel."""
    hi = jax.lax.Precision.HIGHEST

    def conv_block(y, w, bn):
        gamma, beta, mean, var = bn
        y = jax.lax.conv_general_dilated(
            y, w, window_strides=(1, 1), padding="VALID",
            dimension_numbers=("NCHW", "OIHW", "NCHW"), precision=hi)
        y = jnp.maximum(y, 0.0)                       # conv -> ReLU -> BN
        scale = gamma / jnp.sqrt(var + eps)
        shift = beta - mean * scale
        return y * scale[None, :, None, None] + shift[None, :, None, None]

    def avg_pool(y):
        n, c, h, w = y.shape
        return y.reshape(n, c, h // 2, 2, w // 2, 2).mean(axis=(3, 5))

    y = avg_pool(conv_block(x, params["conv1_w"], params["bn1"]))
    y = avg_pool(conv_block(y, params["conv2_w"], params["bn2"]))
    y = y.reshape(y.shape[0], -1)                     # NCHW flatten
    w, b = params["fc1"]
    y = jnp.maximum(jnp.dot(y, w.T, precision=hi) + b, 0.0)
    w, b = params["fc2"]
    y = jnp.maximum(jnp.dot(y, w.T, precision=hi) + b, 0.0)
    w, b = params["fc3"]
    return jnp.dot(y, w.T, precision=hi) + b


# ----------------------------------- main ------------------------------------ #

if __name__ == "__main__":
    key = jax.random.PRNGKey(0)
    k_x, k_p, k_c = jax.random.split(key, 3)

    # Spatial size is fixed at 32x32 by the architecture (flatten dim = 16*5*5 = 400).
    x = jax.random.normal(k_x, (2, 1, 32, 32), dtype=jnp.float32)
    params = init_lenet5_params(k_p)

    fwd = jax.jit(lenet5_forward)
    logits = jax.block_until_ready(fwd(x, params))
    assert logits.shape == (2, 10), logits.shape
    assert logits.dtype == jnp.float32

    # Validate the fused kernel against the XLA reference with well-conditioned
    # random parameters (exercises BN stats, biases and all layout folds).
    # Tolerance accounts for bf16 matmul operands (f32 accumulation).
    cparams = _random_check_params(k_c)
    got = jax.block_until_ready(fwd(x, cparams))
    ref = jax.block_until_ready(jax.jit(lenet5_reference)(x, cparams))
    diff = float(jnp.max(jnp.abs(got - ref)))
    tol = float(5e-2 * (1.0 + jnp.max(jnp.abs(ref))))
    assert diff <= tol, f"kernel/reference mismatch: max|diff|={diff} > tol={tol}"

    print("KERNEL_OK")
</pallas_src>

<mosaic_0001>
module attributes {stable_mosaic.version = 11 : i64} {
  func.func @lenet5_fused_kernel(%arg0: i32, %arg1: memref<8x32x32xbf16, #tpu.memory_space<vmem>>, %arg2: memref<160x168xbf16, #tpu.memory_space<vmem>>, %arg3: memref<168x84xbf16, #tpu.memory_space<vmem>>, %arg4: memref<420x160xbf16, #tpu.memory_space<vmem>>, %arg5: memref<160x80xbf16, #tpu.memory_space<vmem>>, %arg6: memref<400x120xbf16, #tpu.memory_space<vmem>>, %arg7: memref<120x84xbf16, #tpu.memory_space<vmem>>, %arg8: memref<84x128xbf16, #tpu.memory_space<vmem>>, %arg9: memref<1x1x496xf32, #tpu.memory_space<vmem>>, %arg10: memref<8x1x128xf32, #tpu.memory_space<vmem>>, %arg11: memref<8x28x168xbf16, #tpu.memory_space<vmem>>, %arg12: memref<8x27x84xbf16, #tpu.memory_space<vmem>>, %arg13: memref<8x19x160xbf16, #tpu.memory_space<vmem>>, %arg14: memref<8x17x80xbf16, #tpu.memory_space<vmem>>) attributes {dimension_semantics = [#tpu.dimension_semantics<parallel>], iteration_bounds = array<i64: 1>, scalar_prefetch = 0 : i64, scratch_operands = 4 : i64, tpu.core_type = #tpu.core_type<tc>, window_params = [{transform_indices = @transform_0, window_bounds = array<i64: 8, 32, 32>}, {pipeline_mode = #tpu.pipeline_mode<synchronous>, transform_indices = @transform_1, window_bounds = array<i64: 160, 168>}, {pipeline_mode = #tpu.pipeline_mode<synchronous>, transform_indices = @transform_2, window_bounds = array<i64: 168, 84>}, {pipeline_mode = #tpu.pipeline_mode<synchronous>, transform_indices = @transform_3, window_bounds = array<i64: 420, 160>}, {pipeline_mode = #tpu.pipeline_mode<synchronous>, transform_indices = @transform_4, window_bounds = array<i64: 160, 80>}, {pipeline_mode = #tpu.pipeline_mode<synchronous>, transform_indices = @transform_5, window_bounds = array<i64: 400, 120>}, {pipeline_mode = #tpu.pipeline_mode<synchronous>, transform_indices = @transform_6, window_bounds = array<i64: 120, 84>}, {pipeline_mode = #tpu.pipeline_mode<synchronous>, transform_indices = @transform_7, window_bounds = array<i64: 84, 128>}, {pipeline_mode = #tpu.pipeline_mode<synchronous>, transform_indices = @transform_8, window_bounds = array<i64: 1, 1, 496>}, {transform_indices = @transform_9, window_bounds = array<i64: 8, 1, 128>}]} {
    %c0 = arith.constant 0 : index
    %c0_0 = arith.constant 0 : index
    %c0_1 = arith.constant 0 : index
    %0 = vector.load %arg9[%c0, %c0_0, %c0_1] : memref<1x1x496xf32, #tpu.memory_space<vmem>>, vector<1x1x84xf32>
    %c0_2 = arith.constant 0 : index
    %c0_3 = arith.constant 0 : index
    %c84 = arith.constant 84 : index
    %1 = vector.load %arg9[%c0_2, %c0_3, %c84] : memref<1x1x496xf32, #tpu.memory_space<vmem>>, vector<1x1x80xf32>
    %c0_4 = arith.constant 0 : index
    %c0_5 = arith.constant 0 : index
    %c164 = arith.constant 164 : index
    %2 = vector.load %arg9[%c0_4, %c0_5, %c164] : memref<1x1x496xf32, #tpu.memory_space<vmem>>, vector<1x1x120xf32>
    %c0_6 = arith.constant 0 : index
    %c0_7 = arith.constant 0 : index
    %c284 = arith.constant 284 : index
    %3 = vector.load %arg9[%c0_6, %c0_7, %c284] : memref<1x1x496xf32, #tpu.memory_space<vmem>>, vector<1x1x84xf32>
    %c0_8 = arith.constant 0 : index
    %c0_9 = arith.constant 0 : index
    %c368 = arith.constant 368 : index
    %4 = vector.load %arg9[%c0_8, %c0_9, %c368] : memref<1x1x496xf32, #tpu.memory_space<vmem>>, vector<1x1x128xf32>
    %c0_10 = arith.constant 0 : index
    %c0_11 = arith.constant 0 : index
    %c0_12 = arith.constant 0 : index
    %5 = vector.load %arg1[%c0_10, %c0_11, %c0_12] : memref<8x32x32xbf16, #tpu.memory_space<vmem>>, vector<8x28x32xbf16>
    %c0_13 = arith.constant 0 : index
    %c1 = arith.constant 1 : index
    %c0_14 = arith.constant 0 : index
    %6 = vector.load %arg1[%c0_13, %c1, %c0_14] : memref<8x32x32xbf16, #tpu.memory_space<vmem>>, vector<8x28x32xbf16>
    %c0_15 = arith.constant 0 : index
    %c2 = arith.constant 2 : index
    %c0_16 = arith.constant 0 : index
    %7 = vector.load %arg1[%c0_15, %c2, %c0_16] : memref<8x32x32xbf16, #tpu.memory_space<vmem>>, vector<8x28x32xbf16>
    %c0_17 = arith.constant 0 : index
    %c3 = arith.constant 3 : index
    %c0_18 = arith.constant 0 : index
    %8 = vector.load %arg1[%c0_17, %c3, %c0_18] : memref<8x32x32xbf16, #tpu.memory_space<vmem>>, vector<8x28x32xbf16>
    %c0_19 = arith.constant 0 : index
    %c4 = arith.constant 4 : index
    %c0_20 = arith.constant 0 : index
    %9 = vector.load %arg1[%c0_19, %c4, %c0_20] : memref<8x32x32xbf16, #tpu.memory_space<vmem>>, vector<8x28x32xbf16>
    %10 = tpu.concatenate %5, %6, %7, %8, %9 in 2 : vector<8x28x32xbf16>, vector<8x28x32xbf16>, vector<8x28x32xbf16>, vector<8x28x32xbf16>, vector<8x28x32xbf16> -> vector<8x28x160xbf16>
    %c0_21 = arith.constant 0 : index
    %c0_22 = arith.constant 0 : index
    %11 = vector.load %arg2[%c0_21, %c0_22] : memref<160x168xbf16, #tpu.memory_space<vmem>>, vector<160x168xbf16>
    %cst = arith.constant dense<0.000000e+00> : vector<8x28x168xf32>
    %12 = tpu.matmul %10, %11, %cst {dimension_numbers = #tpu.dot_dimension_numbers<[2], [0], [0, 1], [1], [0, 0, 0, 1, 1, 1], [], []>} : vector<8x28x160xbf16>, vector<160x168xbf16>, vector<8x28x168xf32> -> vector<8x28x168xf32>
    %cst_23 = arith.constant 0.000000e+00 : f32
    %13 = vector.broadcast %cst_23 : f32 to vector<8x28x168xf32>
    %14 = arith.maximumf %12, %13 : vector<8x28x168xf32>
    %15 = arith.truncf %14 : vector<8x28x168xf32> to vector<8x28x168xbf16>
    %c0_24 = arith.constant 0 : index
    %c0_25 = arith.constant 0 : index
    %c0_26 = arith.constant 0 : index
    %16 = vector.load %arg11[%c0_24, %c0_25, %c0_26] : memref<8x28x168xbf16, #tpu.memory_space<vmem>>, vector<8x28x168xbf16>
    tpu.vector_store %arg11[%c0_24, %c0_25, %c0_26], %15 {strides = array<i32>} : memref<8x28x168xbf16, #tpu.memory_space<vmem>>, vector<8x28x168xbf16>,
    %c0_27 = arith.constant 0 : index
    %c0_28 = arith.constant 0 : index
    %c0_29 = arith.constant 0 : index
    %17 = vector.load %arg11[%c0_27, %c0_28, %c0_29] : memref<8x28x168xbf16, #tpu.memory_space<vmem>>, vector<8x27x168xbf16>
    %c0_30 = arith.constant 0 : index
    %c1_31 = arith.constant 1 : index
    %c0_32 = arith.constant 0 : index
    %18 = vector.load %arg11[%c0_30, %c1_31, %c0_32] : memref<8x28x168xbf16, #tpu.memory_space<vmem>>, vector<8x27x168xbf16>
    %19 = arith.addf %17, %18 : vector<8x27x168xbf16>
    %c0_33 = arith.constant 0 : index
    %c0_34 = arith.constant 0 : index
    %20 = vector.load %arg3[%c0_33, %c0_34] : memref<168x84xbf16, #tpu.memory_space<vmem>>, vector<168x84xbf16>
    %cst_35 = arith.constant dense<0.000000e+00> : vector<8x27x84xf32>
    %21 = tpu.matmul %19, %20, %cst_35 {dimension_numbers = #tpu.dot_dimension_numbers<[2], [0], [0, 1], [1], [0, 0, 0, 1, 1, 1], [], []>} : vector<8x27x168xbf16>, vector<168x84xbf16>, vector<8x27x84xf32> -> vector<8x27x84xf32>
    %22 = vector.broadcast %0 : vector<1x1x84xf32> to vector<8x27x84xf32>
    %23 = arith.addf %21, %22 : vector<8x27x84xf32>
    %24 = arith.truncf %23 : vector<8x27x84xf32> to vector<8x27x84xbf16>
    %c0_36 = arith.constant 0 : index
    %c0_37 = arith.constant 0 : index
    %c0_38 = arith.constant 0 : index
    %25 = vector.load %arg12[%c0_36, %c0_37, %c0_38] : memref<8x27x84xbf16, #tpu.memory_space<vmem>>, vector<8x27x84xbf16>
    tpu.vector_store %arg12[%c0_36, %c0_37, %c0_38], %24 {strides = array<i32>} : memref<8x27x84xbf16, #tpu.memory_space<vmem>>, vector<8x27x84xbf16>,
    %c0_39 = arith.constant 0 : index
    %c0_40 = arith.constant 0 : index
    %c0_41 = arith.constant 0 : index
    %26 = vector.load %arg12[%c0_39, %c0_40, %c0_41] : memref<8x27x84xbf16, #tpu.memory_space<vmem>>, vector<8x19x84xbf16>
    %c0_42 = arith.constant 0 : index
    %c2_43 = arith.constant 2 : index
    %c0_44 = arith.constant 0 : index
    %27 = vector.load %arg12[%c0_42, %c2_43, %c0_44] : memref<8x27x84xbf16, #tpu.memory_space<vmem>>, vector<8x19x84xbf16>
    %c0_45 = arith.constant 0 : index
    %c4_46 = arith.constant 4 : index
    %c0_47 = arith.constant 0 : index
    %28 = vector.load %arg12[%c0_45, %c4_46, %c0_47] : memref<8x27x84xbf16, #tpu.memory_space<vmem>>, vector<8x19x84xbf16>
    %c0_48 = arith.constant 0 : index
    %c6 = arith.constant 6 : index
    %c0_49 = arith.constant 0 : index
    %29 = vector.load %arg12[%c0_48, %c6, %c0_49] : memref<8x27x84xbf16, #tpu.memory_space<vmem>>, vector<8x19x84xbf16>
    %c0_50 = arith.constant 0 : index
    %c8 = arith.constant 8 : index
    %c0_51 = arith.constant 0 : index
    %30 = vector.load %arg12[%c0_50, %c8, %c0_51] : memref<8x27x84xbf16, #tpu.memory_space<vmem>>, vector<8x19x84xbf16>
    %31 = tpu.concatenate %26, %27, %28, %29, %30 in 2 : vector<8x19x84xbf16>, vector<8x19x84xbf16>, vector<8x19x84xbf16>, vector<8x19x84xbf16>, vector<8x19x84xbf16> -> vector<8x19x420xbf16>
    %c0_52 = arith.constant 0 : index
    %c0_53 = arith.constant 0 : index
    %32 = vector.load %arg4[%c0_52, %c0_53] : memref<420x160xbf16, #tpu.memory_space<vmem>>, vector<420x160xbf16>
    %cst_54 = arith.constant dense<0.000000e+00> : vector<8x19x160xf32>
    %33 = tpu.matmul %31, %32, %cst_54 {dimension_numbers = #tpu.dot_dimension_numbers<[2], [0], [0, 1], [1], [0, 0, 0, 1, 1, 1], [], []>} : vector<8x19x420xbf16>, vector<420x160xbf16>, vector<8x19x160xf32> -> vector<8x19x160xf32>
    %cst_55 = arith.constant 0.000000e+00 : f32
    %34 = vector.broadcast %cst_55 : f32 to vector<8x19x160xf32>
    %35 = arith.maximumf %33, %34 : vector<8x19x160xf32>
    %36 = arith.truncf %35 : vector<8x19x160xf32> to vector<8x19x160xbf16>
    %c0_56 = arith.constant 0 : index
    %c0_57 = arith.constant 0 : index
    %c0_58 = arith.constant 0 : index
    %37 = vector.load %arg13[%c0_56, %c0_57, %c0_58] : memref<8x19x160xbf16, #tpu.memory_space<vmem>>, vector<8x19x160xbf16>
    tpu.vector_store %arg13[%c0_56, %c0_57, %c0_58], %36 {strides = array<i32>} : memref<8x19x160xbf16, #tpu.memory_space<vmem>>, vector<8x19x160xbf16>,
    %c0_59 = arith.constant 0 : index
    %c0_60 = arith.constant 0 : index
    %c0_61 = arith.constant 0 : index
    %38 = vector.load %arg13[%c0_59, %c0_60, %c0_61] : memref<8x19x160xbf16, #tpu.memory_space<vmem>>, vector<8x17x160xbf16>
    %c0_62 = arith.constant 0 : index
    %c2_63 = arith.constant 2 : index
    %c0_64 = arith.constant 0 : index
    %39 = vector.load %arg13[%c0_62, %c2_63, %c0_64] : memref<8x19x160xbf16, #tpu.memory_space<vmem>>, vector<8x17x160xbf16>
    %40 = arith.addf %38, %39 : vector<8x17x160xbf16>
    %c0_65 = arith.constant 0 : index
    %c0_66 = arith.constant 0 : index
    %41 = vector.load %arg5[%c0_65, %c0_66] : memref<160x80xbf16, #tpu.memory_space<vmem>>, vector<160x80xbf16>
    %cst_67 = arith.constant dense<0.000000e+00> : vector<8x17x80xf32>
    %42 = tpu.matmul %40, %41, %cst_67 {dimension_numbers = #tpu.dot_dimension_numbers<[2], [0], [0, 1], [1], [0, 0, 0, 1, 1, 1], [], []>} : vector<8x17x160xbf16>, vector<160x80xbf16>, vector<8x17x80xf32> -> vector<8x17x80xf32>
    %43 = vector.broadcast %1 : vector<1x1x80xf32> to vector<8x17x80xf32>
    %44 = arith.addf %42, %43 : vector<8x17x80xf32>
    %45 = arith.truncf %44 : vector<8x17x80xf32> to vector<8x17x80xbf16>
    %c0_68 = arith.constant 0 : index
    %c0_69 = arith.constant 0 : index
    %c0_70 = arith.constant 0 : index
    %46 = vector.load %arg14[%c0_68, %c0_69, %c0_70] : memref<8x17x80xbf16, #tpu.memory_space<vmem>>, vector<8x17x80xbf16>
    tpu.vector_store %arg14[%c0_68, %c0_69, %c0_70], %45 {strides = array<i32>} : memref<8x17x80xbf16, #tpu.memory_space<vmem>>, vector<8x17x80xbf16>,
    %c0_71 = arith.constant 0 : index
    %c0_72 = arith.constant 0 : index
    %c0_73 = arith.constant 0 : index
    %47 = vector.load %arg14[%c0_71, %c0_72, %c0_73] : memref<8x17x80xbf16, #tpu.memory_space<vmem>>, vector<8x1x80xbf16>
    %c0_74 = arith.constant 0 : index
    %c4_75 = arith.constant 4 : index
    %c0_76 = arith.constant 0 : index
    %48 = vector.load %arg14[%c0_74, %c4_75, %c0_76] : memref<8x17x80xbf16, #tpu.memory_space<vmem>>, vector<8x1x80xbf16>
    %c0_77 = arith.constant 0 : index
    %c8_78 = arith.constant 8 : index
    %c0_79 = arith.constant 0 : index
    %49 = vector.load %arg14[%c0_77, %c8_78, %c0_79] : memref<8x17x80xbf16, #tpu.memory_space<vmem>>, vector<8x1x80xbf16>
    %c0_80 = arith.constant 0 : index
    %c12 = arith.constant 12 : index
    %c0_81 = arith.constant 0 : index
    %50 = vector.load %arg14[%c0_80, %c12, %c0_81] : memref<8x17x80xbf16, #tpu.memory_space<vmem>>, vector<8x1x80xbf16>
    %c0_82 = arith.constant 0 : index
    %c16 = arith.constant 16 : index
    %c0_83 = arith.constant 0 : index
    %51 = vector.load %arg14[%c0_82, %c16, %c0_83] : memref<8x17x80xbf16, #tpu.memory_space<vmem>>, vector<8x1x80xbf16>
    %52 = tpu.concatenate %47, %48, %49, %50, %51 in 2 : vector<8x1x80xbf16>, vector<8x1x80xbf16>, vector<8x1x80xbf16>, vector<8x1x80xbf16>, vector<8x1x80xbf16> -> vector<8x1x400xbf16>
    %c0_84 = arith.constant 0 : index
    %c0_85 = arith.constant 0 : index
    %53 = vector.load %arg6[%c0_84, %c0_85] : memref<400x120xbf16, #tpu.memory_space<vmem>>, vector<400x120xbf16>
    %cst_86 = arith.constant dense<0.000000e+00> : vector<8x1x120xf32>
    %54 = tpu.matmul %52, %53, %cst_86 {dimension_numbers = #tpu.dot_dimension_numbers<[2], [0], [0, 1], [1], [0, 0, 0, 1, 1, 1], [], []>} : vector<8x1x400xbf16>, vector<400x120xbf16>, vector<8x1x120xf32> -> vector<8x1x120xf32>
    %55 = vector.broadcast %2 : vector<1x1x120xf32> to vector<8x1x120xf32>
    %56 = arith.addf %54, %55 : vector<8x1x120xf32>
    %cst_87 = arith.constant 0.000000e+00 : f32
    %57 = vector.broadcast %cst_87 : f32 to vector<8x1x120xf32>
    %58 = arith.maximumf %56, %57 : vector<8x1x120xf32>
    %59 = arith.truncf %58 : vector<8x1x120xf32> to vector<8x1x120xbf16>
    %c0_88 = arith.constant 0 : index
    %c0_89 = arith.constant 0 : index
    %60 = vector.load %arg7[%c0_88, %c0_89] : memref<120x84xbf16, #tpu.memory_space<vmem>>, vector<120x84xbf16>
    %cst_90 = arith.constant dense<0.000000e+00> : vector<8x1x84xf32>
    %61 = tpu.matmul %59, %60, %cst_90 {dimension_numbers = #tpu.dot_dimension_numbers<[2], [0], [0, 1], [1], [0, 0, 0, 1, 1, 1], [], []>} : vector<8x1x120xbf16>, vector<120x84xbf16>, vector<8x1x84xf32> -> vector<8x1x84xf32>
    %62 = vector.broadcast %3 : vector<1x1x84xf32> to vector<8x1x84xf32>
    %63 = arith.addf %61, %62 : vector<8x1x84xf32>
    %cst_91 = arith.constant 0.000000e+00 : f32
    %64 = vector.broadcast %cst_91 : f32 to vector<8x1x84xf32>
    %65 = arith.maximumf %63, %64 : vector<8x1x84xf32>
    %66 = arith.truncf %65 : vector<8x1x84xf32> to vector<8x1x84xbf16>
    %c0_92 = arith.constant 0 : index
    %c0_93 = arith.constant 0 : index
    %67 = vector.load %arg8[%c0_92, %c0_93] : memref<84x128xbf16, #tpu.memory_space<vmem>>, vector<84x128xbf16>
    %cst_94 = arith.constant dense<0.000000e+00> : vector<8x1x128xf32>
    %68 = tpu.matmul %66, %67, %cst_94 {dimension_numbers = #tpu.dot_dimension_numbers<[2], [0], [0, 1], [1], [0, 0, 0, 1, 1, 1], [], []>} : vector<8x1x84xbf16>, vector<84x128xbf16>, vector<8x1x128xf32> -> vector<8x1x128xf32>
    %69 = vector.broadcast %4 : vector<1x1x128xf32> to vector<8x1x128xf32>
    %70 = arith.addf %68, %69 : vector<8x1x128xf32>
    %c0_95 = arith.constant 0 : index
    %c0_96 = arith.constant 0 : index
    %c0_97 = arith.constant 0 : index
    %71 = vector.load %arg10[%c0_95, %c0_96, %c0_97] : memref<8x1x128xf32, #tpu.memory_space<vmem>>, vector<8x1x128xf32>
    tpu.vector_store %arg10[%c0_95, %c0_96, %c0_97], %70 {strides = array<i32>} : memref<8x1x128xf32, #tpu.memory_space<vmem>>, vector<8x1x128xf32>,
    return
  }
  func.func @transform_0(%arg0: i32) -> (i32, i32, i32) {
    %c0_i32 = arith.constant 0 : i32
    %c0_i32_0 = arith.constant 0 : i32
    %c0_i32_1 = arith.constant 0 : i32
    return %arg0, %c0_i32, %c0_i32_0 : i32, i32, i32
  }
  func.func @transform_1(%arg0: i32) -> (i32, i32) {
    %c0_i32 = arith.constant 0 : i32
    %c0_i32_0 = arith.constant 0 : i32
    %c0_i32_1 = arith.constant 0 : i32
    return %c0_i32, %c0_i32_0 : i32, i32
  }
  func.func @transform_2(%arg0: i32) -> (i32, i32) {
    %c0_i32 = arith.constant 0 : i32
    %c0_i32_0 = arith.constant 0 : i32
    %c0_i32_1 = arith.constant 0 : i32
    return %c0_i32, %c0_i32_0 : i32, i32
  }
  func.func @transform_3(%arg0: i32) -> (i32, i32) {
    %c0_i32 = arith.constant 0 : i32
    %c0_i32_0 = arith.constant 0 : i32
    %c0_i32_1 = arith.constant 0 : i32
    return %c0_i32, %c0_i32_0 : i32, i32
  }
  func.func @transform_4(%arg0: i32) -> (i32, i32) {
    %c0_i32 = arith.constant 0 : i32
    %c0_i32_0 = arith.constant 0 : i32
    %c0_i32_1 = arith.constant 0 : i32
    return %c0_i32, %c0_i32_0 : i32, i32
  }
  func.func @transform_5(%arg0: i32) -> (i32, i32) {
    %c0_i32 = arith.constant 0 : i32
    %c0_i32_0 = arith.constant 0 : i32
    %c0_i32_1 = arith.constant 0 : i32
    return %c0_i32, %c0_i32_0 : i32, i32
  }
  func.func @transform_6(%arg0: i32) -> (i32, i32) {
    %c0_i32 = arith.constant 0 : i32
    %c0_i32_0 = arith.constant 0 : i32
    %c0_i32_1 = arith.constant 0 : i32
    return %c0_i32, %c0_i32_0 : i32, i32
  }
  func.func @transform_7(%arg0: i32) -> (i32, i32) {
    %c0_i32 = arith.constant 0 : i32
    %c0_i32_0 = arith.constant 0 : i32
    %c0_i32_1 = arith.constant 0 : i32
    return %c0_i32, %c0_i32_0 : i32, i32
  }
  func.func @transform_8(%arg0: i32) -> (i32, i32, i32) {
    %c0_i32 = arith.constant 0 : i32
    %c0_i32_0 = arith.constant 0 : i32
    %c0_i32_1 = arith.constant 0 : i32
    %c0_i32_2 = arith.constant 0 : i32
    return %c0_i32, %c0_i32_0, %c0_i32_1 : i32, i32, i32
  }
  func.func @transform_9(%arg0: i32) -> (i32, i32, i32) {
    %c0_i32 = arith.constant 0 : i32
    %c0_i32_0 = arith.constant 0 : i32
    %c0_i32_1 = arith.constant 0 : i32
    return %arg0, %c0_i32, %c0_i32_0 : i32, i32, i32
  }
}

</mosaic_0001>

<bundles_post_ra>
// kernel: lenet5_forward.1
= control target key start
LH: loop header
LB: loop body
LE: loop exit
PB: predicated region body
PF: predicated region fallthrough
CT: control target
= control target key end

     0   :  { %vm383_vm0 = vcmask 1046528   ;;  %vm464_vm1 = vsmask.f32 6400  ;;  %vm206_vm2 = vsmask.f32 7424  ;;  %s20678_s10 = smov 64   ;;  %s25471_s0 = inlined_call_operand.vmem [shape: bf16[8,32,32], index: 0, kind: input, shape index: {}]   ;;  %s25472_s1 = inlined_call_operand.vmem [shape: bf16[160,168], index: 1, kind: input, shape index: {}]   ;;  %s25473_s2 = inlined_call_operand.vmem [shape: bf16[168,84], index: 2, kind: input, shape index: {}]   ;;  %s25474_s8 = inlined_call_operand.vmem [shape: f32[1,1,496], index: 8, kind: input, shape index: {}]   ;;  %s25475_s3 = inlined_call_operand.vmem [shape: bf16[420,160], index: 3, kind: input, shape index: {}]   ;;  %s25476_s4 = inlined_call_operand.vmem [shape: bf16[160,80], index: 4, kind: input, shape index: {}]   ;;  %s25477_s5 = inlined_call_operand.vmem [shape: bf16[400,120], index: 5, kind: input, shape index: {}]   ;;  %s25478_s6 = inlined_call_operand.vmem [shape: bf16[120,84], index: 6, kind: input, shape index: {}]   ;;  %s25479_s7 = inlined_call_operand.vmem [shape: bf16[84,128], index: 7, kind: input, shape index: {}]   ;;  %s25480_s9 = inlined_call_operand.vmem [shape: f32[8,1,128], index: 9, kind: output, shape index: {}]  }
   0x1   :  { %v20748_v0 = vld [vmem:[%s25471_s0 + $0x4] sm:$0xf]  ;;  %v20753_v1 = vld [vmem:[%s25471_s0 + $0x8] sm:$0xf]  ;;  %v70_v2 = vld [vmem:[%s25471_s0 + $0xc] sm:$0x7] }
   0x2   :  { %v78_v3 = vld [vmem:[%s25471_s0] sm:$0xe]  ;;  %v20762_v4 = vcombine.low %v20753_v1, %v70_v2  ;;  %v86_v5 = vld [vmem:[%s25471_s0 + $0xc] sm:$0xf]  ;;  %v42_v10 = vld [vmem:[%s25471_s0 + $0x10] sm:$0xf] }
   0x3   :  { %v38_v6 = vld [vmem:[%s25471_s0] sm:$0xf]  ;;  %v19529_v7 = vcombine.low %v78_v3, %v20748_v0  ;;  %v20772_v8 = vcombine.low %v20753_v1, %v86_v5  ;;  %v20785_v13 = vld [vmem:[%s25471_s0 + $0x14] sm:$0xf]  ;;  %v20791_v18 = vld [vmem:[%s25471_s0 + $0x18] sm:$0xf] }
   0x4   :  { %v20775_v9 = vcombine.low %v38_v6, %v20748_v0  ;;  %v385_v11 = vrot.slane %v20762_v4, 1  ;;  %v215_v12 = vshll.u32 %v20762_v4, 16  ;;  %v219_v22 = vshrl.u32 %v20762_v4, 16  ;;  %v71_v23 = vld [vmem:[%s25471_s0 + $0x1c] sm:$0x7]  ;;  %s20679_s19 = smov 96  }
   0x5   :  { %v384_v14 = vrot.slane %v19529_v7, 1  ;;  %v466_v15 = vshrl.u32 %v19529_v7, 16  ;;  %v469_v16 = vshll.u32 %v19529_v7, 16  ;;  %v474_v17 = vshrl.u32 %v20772_v8, 16  ;;  %v79_v28 = vld [vmem:[%s25471_s0 + $0x10] sm:$0xe] }
   0x6   :  { %v477_v19 = vshll.u32 %v20772_v8, 16  ;;  %v208_v20 = vshrl.u32 %v20775_v9, 16  ;;  %v210_v21 = vshll.u32 %v20775_v9, 16  ;;  %v217_v31 = vrot.slane %v215_v12, 1  ;;  %v87_v33 = vld [vmem:[%s25471_s0 + $0x1c] sm:$0xf] }
   0x7   :  { %v386_v24 = vsel %vm383_vm0, %v384_v14, %v385_v11  ;;  %v468_v25 = vrot.slane %v466_v15, 1  ;;  %v471_v26 = vrot.slane %v469_v16, 2  ;;  %v476_v27 = vrot.slane %v474_v17, 1  ;;  %v46_v44 = vld [vmem:[%s25471_s0 + $0x20] sm:$0xf]  ;;  %s20680_s20 = smov 32  }
   0x8   :  { %408 = vrot.lane.b32.xlu0 %v386_v24, %s20678_s10  ;;  %v479_v29 = vrot.slane %v477_v19, 2  ;;  %v212_v30 = vrot.slane %v210_v21, 1  ;;  %v20806_v32 = vcombine.low %v42_v10, %v20785_v13  ;;  %v20812_v35 = vcombine.low %v20791_v18, %v71_v23  ;;  %v20829_v49 = vld [vmem:[%s25471_s0 + $0x24] sm:$0xf]  ;;  %v20834_v50 = vld [vmem:[%s25471_s0 + $0x28] sm:$0xf] }
   0x9   :  { %v472_v34 = vor.u32 %v471_v26, %v468_v25  ;;  %v19530_v36 = vcombine.low %v79_v28, %v20785_v13  ;;  %v20816_v37 = vcombine.low %v20791_v18, %v87_v33  ;;  %v221_v51 = vor.u32 %v219_v22, %v217_v31  ;;  %v72_v54 = vld [vmem:[%s25471_s0 + $0x2c] sm:$0x7]  ;;  %v80_v59 = vld [vmem:[%s25471_s0 + $0x20] sm:$0xe]  ;;  %v50_v25 = vld [vmem:[%s25471_s0 + $0x30] sm:$0xf] }
   0xa   :  { %v480_v38 = vor.u32 %v479_v29, %v476_v27  ;;  %v213_v39 = vor.u32 %v212_v30, %v208_v20  ;;  %v223_v40 = vshrl.u32 %v20806_v32, 16  ;;  %v225_v41 = vshll.u32 %v20806_v32, 16  ;;  %v88_v62 = vld [vmem:[%s25471_s0 + $0x2c] sm:$0xf]  ;;  %v20879_v26 = vld [vmem:[%s25471_s0 + $0x34] sm:$0xf] }
   0xb   :  { %v230_v42 = vshll.u32 %v20812_v35, 16  ;;  %v483_v43 = vshrl.u32 %v19530_v36, 16  ;;  %v486_v48 = vshll.u32 %v19530_v36, 16  ;;  %v491_v53 = vshrl.u32 %v20816_v37, 16  ;;  %v20884_v27 = vld [vmem:[%s25471_s0 + $0x38] sm:$0xf] }
   0xc   :  { %v481_v45 = vsel %vm464_vm1, %v472_v34, %v480_v38  ;;  %v218_v46 = vsel %vm206_vm2, %v213_v39, %v217_v31  ;;  %v227_v47 = vrot.slane %v225_v41, 1  ;;  %v494_v58 = vshll.u32 %v20816_v37, 16  ;;  %v73_v33 = vld [vmem:[%s25471_s0 + $0x3c] sm:$0x7]  ;;  %v81_v39 = vld [vmem:[%s25471_s0 + $0x30] sm:$0xe] }
   0xd   :  { %601 = vrot.lane.b32.xlu1 %v481_v45, %s20679_s19  ;;  %327 = vrot.lane.b32.xlu0 %v218_v46, %s20680_s20  ;;  %v232_v52 = vrot.slane %v230_v42, 1  ;;  %v485_v56 = vrot.slane %v483_v43, 1  ;;  %v488_v57 = vrot.slane %v486_v48, 2  ;;  %v493_v60 = vrot.slane %v491_v53, 1  ;;  %v20398_v41 = vld [vmem:[%s25472_s1 + $0x74] ss:$8 sps:$4 sm:$0xff]  }
   0xe   :  { %v228_v55 = vor.u32 %v227_v47, %v223_v40  ;;  %v20847_v61 = vcombine.low %v46_v44, %v20829_v49  ;;  %v387_v63 = vrot.slane %v19530_v36, 1  ;;  %v388_v2 = vrot.slane %v20812_v35, 1  ;;  %v89_v40 = vld [vmem:[%s25471_s0 + $0x3c] sm:$0xf]  ;;  %v20400_v42 = vld [vmem:[%s25472_s1 + $0x70] ss:$8 sps:$4 sm:$0xff]   ;;  %1513 = vmatprep.subr.bf16.mxu0 %v20398_v41 }
   0xf   :  { %v496_v3 = vrot.slane %v494_v58, 2  ;;  %v20856_v4 = vcombine.low %v20834_v50, %v72_v54  ;;  %v19531_v6 = vcombine.low %v80_v59, %v20829_v49  ;;  %v489_v10 = vor.u32 %v488_v57, %v485_v56  ;;  %v20403_v54 = vld [vmem:[%s25472_s1 + $0x64] ss:$8 sps:$4 sm:$0xff]   ;;  %1514 = vmatpush1.bf16.msra.mxu0 %v20400_v42  ;;  %v20408_v58 = vld [vmem:[%s25472_s1 + $0x54] ss:$8 sps:$4 sm:$0xff]   ;;  %s20684_s11 = smov 80  }
  0x10   :  { %v240_v5 = vshll.u32 %v20847_v61, 16  ;;  %v233_v7 = vsel %vm206_vm2, %v228_v55, %v232_v52  ;;  %v20862_v14 = vcombine.low %v20834_v50, %v88_v62  ;;  %v389_v15 = vsel %vm383_vm0, %v387_v63, %v388_v2  ;;  %v20406_v55 = vld [vmem:[%s25472_s1 + $0x60] ss:$8 sps:$4 sm:$0xff]   ;;  %1515 = vmatprep.subr.bf16.mxu0 %v20403_v54  ;;  %v20417_v54 = vld [vmem:[%s25472_s1 + $0x24] ss:$8 sps:$4 sm:$0xff]   ;;  %s20685_s12 = smov 84  }
  0x11   :  { %329 = vrot.lane.b32.xlu1 %v221_v51, %s20680_s20  ;;  %410 = vrot.lane.b32.xlu0 %v385_v11, %s20678_s10  ;;  %v497_v12 = vor.u32 %v496_v3, %v493_v60  ;;  %v234_v16 = vshrl.u32 %v20812_v35, 16  ;;  %v238_v11 = vshrl.u32 %v20847_v61, 16  ;;  %v245_v19 = vshll.u32 %v20856_v4, 16  ;;  %s20686_s13 = smov 40   ;;  %s20687_s14 = smov 124  }
  0x12   :  { %v242_v17 = vrot.slane %v240_v5, 1  ;;  %v500_v20 = vshrl.u32 %v19531_v6, 16  ;;  %v503_v22 = vshll.u32 %v19531_v6, 16  ;;  %v508_v23 = vshrl.u32 %v20862_v14, 16  ;;  %s20693_s28 = smov 100  }
  0x13   :  { %v498_v21 = vsel %vm464_vm1, %v489_v10, %v497_v12  ;;  %v511_v24 = vshll.u32 %v20862_v14, 16  ;;  %v236_v28 = vor.u32 %v234_v16, %v232_v52  ;;  %v247_v30 = vrot.slane %v245_v19, 1  ;;  %1516 = vmatpush1.bf16.msra.mxu0 %v20406_v55  ;;  %v20410_v10 = vld [vmem:[%s25472_s1 + $0x50] ss:$8 sps:$4 sm:$0xff]   ;;  %v74_v19 = vld [vmem:[%s25471_s0 + $0x4c] sm:$0x7] }
  0x14   :  { %v243_v29 = vor.u32 %v242_v17, %v238_v11  ;;  %v502_v31 = vrot.slane %v500_v20, 1  ;;  %v505_v34 = vrot.slane %v503_v22, 2  ;;  %v510_v35 = vrot.slane %v508_v23, 1  ;;  %1517 = vmatprep.subr.bf16.mxu0 %v20408_v58  ;;  %v20962_v17 = vld [vmem:[%s25471_s0 + $0x48] sm:$0xf] }
  0x15   :  { %331 = vrot.lane.b32.xlu1 %v233_v7, %s20680_s20  ;;  %603 = vrot.lane.b32.xlu0 %v480_v38, %s20679_s19  ;;  %v513_v36 = vrot.slane %v511_v24, 2  ;;  %v20892_v38 = vcombine.low %v50_v25, %v20879_v26  ;;  %v390_v43 = vrot.slane %v19531_v6, 1  ;;  %v391_v44 = vrot.slane %v20856_v4, 1  ;;  %v20949_v7 = vld [vmem:[%s25471_s0 + $0x44] sm:$0xf] }
  0x16   :  { %v248_v45 = vsel %vm206_vm2, %v243_v29, %v247_v30  ;;  %v20911_v46 = vcombine.low %v20884_v27, %v73_v33  ;;  %v20914_v47 = vcombine.low %v81_v39, %v20879_v26  ;;  %v506_v48 = vor.u32 %v505_v34, %v502_v31  ;;  %v82_v25 = vld [vmem:[%s25471_s0 + $0x40] sm:$0xe]  ;;  %v20414_v33 = vld [vmem:[%s25472_s1 + $0x34] ss:$8 sps:$4 sm:$0xff]  }
  0x17   :  { %v20916_v51 = vor.u32 %v513_v36, %v510_v35  ;;  %v255_v52 = vshll.u32 %v20892_v38, 16  ;;  %v20920_v53 = vcombine.low %v20884_v27, %v89_v40  ;;  %v392_v56 = vsel %vm383_vm0, %v390_v43, %v391_v44  ;;  %1518 = vmatpush1.bf16.msra.mxu0 %v20410_v10  ;;  %v20413_v29 = vld [vmem:[%s25472_s1 + $0x40] ss:$8 sps:$4 sm:$0xff]   ;;  %v58_v43 = vld [vmem:[%s25471_s0 + $0x50] sm:$0xf] }
  0x18   :  { %v249_v57 = vshrl.u32 %v20856_v4, 16  ;;  %v253_v59 = vshrl.u32 %v20892_v38, 16  ;;  %v260_v60 = vshll.u32 %v20911_v46, 16  ;;  %v517_v62 = vshrl.u32 %v20914_v47, 16 }
  0x19   :  { %412 = vrot.lane.b32.xlu1 %v389_v15, %s20678_s10  ;;  %605 = vrot.lane.b32.xlu0 %v498_v21, %s20679_s19  ;;  %v520_v63 = vshll.u32 %v20914_v47, 16  ;;  %v515_v3 = vsel %vm464_vm1, %v506_v48, %v20916_v51  ;;  %v257_v4 = vrot.slane %v255_v52, 1  ;;  %v525_v5 = vshrl.u32 %v20920_v53, 16 }
  0x1a   :  { %v528_v6 = vshll.u32 %v20920_v53, 16  ;;  %v251_v15 = vor.u32 %v249_v57, %v247_v30  ;;  %v262_v16 = vrot.slane %v260_v60, 1  ;;  %v519_v11 = vrot.slane %v517_v62, 1 }
  0x1b   :  { %v258_v21 = vor.u32 %v257_v4, %v253_v59  ;;  %v522_v22 = vrot.slane %v520_v63, 2  ;;  %v527_v23 = vrot.slane %v525_v5, 1  ;;  %v393_v30 = vrot.slane %v20914_v47, 1  ;;  %v75_v63 = vld [vmem:[%s25471_s0 + $0x5c] sm:$0x7] }
  0x1c   :  { %v530_v24 = vrot.slane %v528_v6, 2  ;;  %v394_v31 = vrot.slane %v20911_v46, 1  ;;  %v20987_v34 = vcombine.low %v20962_v17, %v74_v19  ;;  %v20991_v36 = vcombine.low %v82_v25, %v20949_v7  ;;  %v83_v4 = vld [vmem:[%s25471_s0 + $0x50] sm:$0xe]  ;;  %v20421_v5 = vld [vmem:[%s25472_s1 + $0x14] ss:$8 sps:$4 sm:$0xff]  }
  0x1d   :  { %333 = vrot.lane.b32.xlu1 %v236_v28, %s20680_s20  ;;  %414 = vrot.lane.b32.xlu0 %v388_v2, %s20678_s10  ;;  %v54_v2 = vld [vmem:[%s25471_s0 + $0x40] sm:$0xf]  ;;  %v90_v28 = vld [vmem:[%s25471_s0 + $0x4c] sm:$0xf]  ;;  %v263_v39 = vsel %vm206_vm2, %v258_v21, %v262_v16  ;;  %v523_v40 = vor.u32 %v522_v22, %v519_v11  ;;  %v264_v48 = vshrl.u32 %v20911_v46, 16  ;;  %vm657_vm3 = vcmask 1045504  }
  0x1e   :  { %v20968_v20 = vcombine.low %v54_v2, %v20949_v7  ;;  %v20994_v41 = vor.u32 %v530_v24, %v527_v23  ;;  %v20997_v42 = vcombine.low %v20962_v17, %v90_v28  ;;  %v395_v47 = vsel %vm383_vm0, %v393_v30, %v394_v31  ;;  %v20419_v2 = vld [vmem:[%s25472_s1 + $0x20] ss:$8 sps:$4 sm:$0xff]   ;;  %v91_v22 = vld [vmem:[%s25471_s0 + $0x5c] sm:$0xf]  ;;  %v20423_v24 = vld [vmem:[%s25472_s1 + $0x10] ss:$8 sps:$4 sm:$0xff]  }
  0x1f   :  { %v534_v57 = vshrl.u32 %v20991_v36, 16  ;;  %v537_v58 = vshll.u32 %v20991_v36, 16  ;;  %v396_v25 = vrot.slane %v20991_v36, 1  ;;  %v397_v28 = vrot.slane %v20987_v34, 1  ;;  %v20425_v30 = vld [vmem:[%s25472_s1 + $0x4] ss:$8 sps:$4 sm:$0xff]  }
  0x20   :  { %v270_v35 = vshll.u32 %v20968_v20, 16  ;;  %v268_v52 = vshrl.u32 %v20968_v20, 16  ;;  %v532_v46 = vsel %vm464_vm1, %v523_v40, %v20994_v41  ;;  %v542_v59 = vshrl.u32 %v20997_v42, 16 }
  0x21   :  { %607 = vrot.lane.b32.xlu1 %v497_v12, %s20679_s19  ;;  %335 = vrot.lane.b32.xlu0 %v248_v45, %s20680_s20  ;;  %v20411_v12 = vld [vmem:[%s25472_s1 + $0x44] ss:$8 sps:$4 sm:$0xff]   ;;  %v20416_v45 = vld [vmem:[%s25472_s1 + $0x30] ss:$8 sps:$4 sm:$0xff]   ;;  %v545_v60 = vshll.u32 %v20997_v42, 16  ;;  %v279_v36 = vshrl.u32 %v20987_v34, 16 }
  0x22   :  { %1519 = vmatprep.subr.bf16.mxu0 %v20411_v12  ;;  %v272_v55 = vrot.slane %v270_v35, 1  ;;  %v536_v12 = vrot.slane %v534_v57, 1  ;;  %v544_v11 = vrot.slane %v542_v59, 1  ;;  %v21095_v57 = vld [vmem:[%s25471_s0 + $0x64] sm:$0xf]  ;;  %vm682_vm4 = vcmask 261120  }
  0x23   :  { %1520 = vmatpush1.bf16.msra.mxu0 %v20413_v29  ;;  %v547_v19 = vrot.slane %v545_v60, 2  ;;  %v94_v29 = vld [vmem:[%s25471_s0] sm:$0xc]  ;;  %v21114_v60 = vld [vmem:[%s25471_s0 + $0x68] sm:$0xf]  ;;  %vm723_vm5 = vcmask 523264  }
  0x24   :  { %1521 = vmatprep.subr.bf16.mxu0 %v20414_v33  ;;  %v273_v6 = vor.u32 %v272_v55, %v268_v52  ;;  %v21087_v55 = vrot.slane %v20772_v8, 2  ;;  %v398_v8 = vsel %vm383_vm0, %v396_v25, %v397_v28  ;;  %vm756_vm6 = vcmask 785408  }
  0x25   :  { %416 = vrot.lane.b32.xlu1 %v392_v56, %s20678_s10  ;;  %609 = vrot.lane.b32.xlu0 %v515_v3, %s20679_s19  ;;  %v275_v56 = vshll.u32 %v20987_v34, 16  ;;  %v266_v3 = vor.u32 %v264_v48, %v262_v16  ;;  %v21076_v40 = vor.u32 %v547_v19, %v544_v11  ;;  %v84_v11 = vld [vmem:[%s25471_s0 + $0x60] sm:$0xe]  ;;  %v20430_v19 = vld [vmem:[%s25472_s1 + $0x90] ss:$8 sps:$4 sm:$0xff]   ;;  %vm2270_vm7 = vcmask 1043456  }
  0x26   :  { %vm2271_vm8 = vcmask 326660   ;;  %vm2276_vm10 = vcmask 1041408   ;;  %vm2277_vm11 = vcmask 324612   ;;  %vm2340_vm13 = vsmask.f32 3328 }
  0x27   :  { %1522 = vmatpush1.bf16.msra.mxu0 %v20416_v45  ;;  %v277_v10 = vrot.slane %v275_v56, 1  ;;  %v20427_v56 = vld [vmem:[%s25472_s1] ss:$8 sps:$4 sm:$0xff]   ;;  %vm21551_vm9 = vmor %vm2271_vm8, %vm2270_vm7  ;;  %vm2341_vm14 = vsmask.f32 7440 }
  0x28   :  { %1523 = vmatprep.subr.bf16.mxu0 %v20417_v54  ;;  %v19545_v54 = vcombine.low %v94_v29, %v20748_v0  ;;  %v95_v0 = vld [vmem:[%s25471_s0 + $0x10] sm:$0xc]  ;;  %vm21562_vm12 = vmor %vm2277_vm11, %vm2276_vm10  ;;  %vm8124_vm8 = vsmask.f32 1280  ;;  %vm8571_vm11 = vcmask 1044480  }
  0x29   :  { %337 = vrot.lane.b32.xlu1 %v251_v15, %s20680_s20  ;;  %418 = vrot.lane.b32.xlu0 %v391_v44, %s20678_s10  ;;  %v21005_v44 = vld [vmem:[%s25471_s0 + $0x54] sm:$0xf]  ;;  %v539_v15 = vrot.slane %v537_v58, 2  ;;  %v278_v33 = vsel %vm206_vm2, %v273_v6, %v277_v10  ;;  %v96_v6 = vld [vmem:[%s25471_s0 + $0x20] sm:$0xc]  ;;  %vm21570_vm15 = vmor %vm2340_vm13, %vm2341_vm14  ;;  %vm8773_vm13 = vcmask 1014784  }
  0x2a   :  { %v21027_v62 = vcombine.low %v58_v43, %v21005_v44  ;;  %v21056_v23 = vcombine.low %v83_v4, %v21005_v44  ;;  %v20428_v58 = vld [vmem:[%s25472_s1 + $0x94] ss:$8 sps:$4 sm:$0xff]   ;;  %vm8806_vm14 = vcmask 654336  }
  0x2b   :  { %1524 = vmatpush1.bf16.msra.mxu0 %v20419_v2  ;;  %v540_v35 = vor.u32 %v539_v15, %v536_v12 }
  0x2c   :  { %v285_v21 = vshll.u32 %v21027_v62, 16  ;;  %1525 = vmatprep.subr.bf16.mxu0 %v20421_v5  ;;  %v283_v43 = vshrl.u32 %v21027_v62, 16  ;;  %v551_v48 = vshrl.u32 %v21056_v23, 16  ;;  %v554_v52 = vshll.u32 %v21056_v23, 16  ;;  %v76_v5 = vld [vmem:[%s25471_s0 + $0x6c] sm:$0x7] }
  0x2d   :  { %611 = vrot.lane.b32.xlu1 %v20916_v51, %s20679_s19  ;;  %339 = vrot.lane.b32.xlu0 %v263_v39, %s20680_s20  ;;  %v21032_v51 = vld [vmem:[%s25471_s0 + $0x58] sm:$0xf]  ;;  %v549_v2 = vsel %vm464_vm1, %v540_v35, %v21076_v40 }
  0x2e   :  { %v21049_v16 = vcombine.low %v21032_v51, %v75_v63  ;;  %v21074_v39 = vcombine.low %v21032_v51, %v91_v22  ;;  %v287_v45 = vrot.slane %v285_v21, 1  ;;  %v658_v63 = vrot.slane %v19545_v54, 2  ;;  %v97_v22 = vld [vmem:[%s25471_s0 + $0x30] sm:$0xc] }
  0x2f   :  { %1526 = vmatpush1.bf16.msra.mxu0 %v20423_v24  ;;  %v553_v12 = vrot.slane %v551_v48, 1  ;;  %v556_v15 = vrot.slane %v554_v52, 2  ;;  %v19546_v21 = vcombine.low %v95_v0, %v20785_v13  ;;  %v399_v24 = vrot.slane %v21056_v23, 1 }
  0x30   :  { %1527 = vmatprep.subr.bf16.mxu0 %v20425_v30  ;;  %v562_v59 = vshll.u32 %v21074_v39, 16  ;;  %v400_v25 = vrot.slane %v21049_v16, 1  ;;  %v20431_v30 = vld [vmem:[%s25472_s1 + $0x84] ss:$8 sps:$4 sm:$0xff]   ;;  %v19548_v48 = vcombine.low %v97_v22, %v20879_v26  ;;  %v21168_v52 = vrot.slane %v20920_v53, 2 }
  0x31   :  { %420 = vrot.lane.b32.xlu1 %v395_v47, %s20678_s10  ;;  %613 = vrot.lane.b32.xlu0 %v532_v46, %s20679_s19  ;;  %v290_v47 = vshll.u32 %v21049_v16, 16  ;;  %v559_v46 = vshrl.u32 %v21074_v39, 16  ;;  %v661_v23 = vrot.slane %v19546_v21, 2  ;;  %v99_v26 = vld [vmem:[%s25471_s0 + $0x50] sm:$0xc]  ;;  %v21183_v53 = vcombine.low %v84_v11, %v21095_v57 }
  0x32   :  { %v564_v35 = vrot.slane %v562_v59, 2  ;;  %v401_v34 = vsel %vm383_vm0, %v399_v24, %v400_v25 }
  0x33   :  { %v21118_v4 = vrot.slane %v290_v47, 1  ;;  %1528 = vmatpush1.bf16.msra.mxu0 %v20427_v56  ;;  %v561_v13 = vrot.slane %v559_v46, 1  ;;  %v21164_v47 = vrot.slane %v20862_v14, 2  ;;  %v20434_v56 = vld [vmem:[%s25472_s1 + $0x80] ss:$8 sps:$4 sm:$0xff]  }
  0x34   :  { %1541 = vmatprep.subr.bf16.mxu0 %v20428_v58  ;;  %v667_v58 = vrot.slane %v19548_v48, 2 }
  0x35   :  { %341 = vrot.lane.b32.xlu1 %v266_v3, %s20680_s20  ;;  %422 = vrot.lane.b32.xlu0 %v394_v31, %s20678_s10  ;;  %v62_v31 = vld [vmem:[%s25471_s0 + $0x60] sm:$0xf]  ;;  %v288_v3 = vor.u32 %v287_v45, %v283_v43  ;;  %v21158_v45 = vcombine.low %v21114_v60, %v76_v5  ;;  %v565_v46 = vor.u32 %v564_v35, %v561_v13 }
  0x36   :  { %v21143_v29 = vcombine.low %v62_v31, %v21095_v57  ;;  %v98_v43 = vld [vmem:[%s25471_s0 + $0x40] sm:$0xc]  ;;  %v557_v31 = vor.u32 %v556_v15, %v553_v12 }
  0x37   :  { %1542 = vmatpush2.bf16.msra.mxu0 %v20430_v19  ;;  %v19549_v0 = vcombine.low %v98_v43, %v20949_v7  ;;  %v21201_v7 = vsel %vm657_vm3, %v667_v58, %v21168_v52  ;;  %v305_v5 = vshll.u32 %v21158_v45, 16  ;;  %v100_v13 = vld [vmem:[%s25471_s0 + $0x60] sm:$0xc] }
  0x38   :  { %1543 = vmatprep.subr.bf16.mxu0 %v20431_v30  ;;  %v300_v59 = vshll.u32 %v21143_v29, 16  ;;  %v566_v19 = vsel %vm464_vm1, %v557_v31, %v565_v46  ;;  %v298_v21 = vshrl.u32 %v21143_v29, 16  ;;  %v66_v30 = vld [vmem:[%s25471_s0 + $0x70] sm:$0xf]  ;;  %v19551_v43 = vcombine.low %v100_v13, %v21095_v57 }
  0x39   :  { %615 = vrot.lane.b32.xlu1 %v20994_v41, %s20679_s19  ;;  %343 = vrot.lane.b32.xlu0 %v278_v33, %s20680_s20  ;;  %v281_v41 = vor.u32 %v279_v36, %v277_v10  ;;  %v21131_v10 = vsel %vm657_vm3, %v658_v63, %v21087_v55  ;;  %v21149_v33 = vrot.slane %v20816_v37, 2  ;;  %v19547_v36 = vcombine.low %v96_v6, %v20829_v49  ;;  %v92_v37 = vld [vmem:[%s25471_s0 + $0x6c] sm:$0xf]  ;;  %v85_v57 = vld [vmem:[%s25471_s0 + $0x70] sm:$0xe] }
  0x3a   :  { %v293_v49 = vsel %vm206_vm2, %v288_v3, %v21118_v4  ;;  %v19543_v63 = vcombine.low %v21114_v60, %v92_v37  ;;  %v21205_v3 = vrot.slane %v21074_v39, 2  ;;  %v571_v39 = vshll.u32 %v21183_v53, 16 }
  0x3b   :  { %v21174_v54 = vsel %vm657_vm3, %v661_v23, %v21149_v33  ;;  %v664_v14 = vrot.slane %v19547_v36, 2  ;;  %1544 = vmatpush2.bf16.msra.mxu0 %v20434_v56  ;;  %v302_v22 = vrot.slane %v300_v59, 1  ;;  %v307_v23 = vrot.slane %v305_v5, 1  ;;  %v21242_v36 = vld [vmem:[%s25471_s0 + $0x78] sm:$0xf] }
  0x3c   :  { %v576_v15 = vshrl.u32 %v19543_v63, 16  ;;  %v579_v11 = vshll.u32 %v19543_v63, 16  ;;  %v573_v48 = vrot.slane %v571_v39, 2  ;;  %v21256_v58 = vrot.slane %v19543_v63, 2 }
  0x3d   :  { %424 = vrot.lane.b32.xlu1 %v398_v8, %s20678_s10  ;;  %617 = vrot.lane.b32.xlu0 %v549_v2, %s20679_s19  ;;  %v21187_v8 = vrot.slane %v20997_v42, 2  ;;  %v21197_v2 = vsel %vm657_vm3, %v664_v14, %v21164_v47  ;;  %v670_v42 = vrot.slane %v19549_v0, 2  ;;  %v303_v56 = vor.u32 %v302_v22, %v298_v21  ;;  %v93_v0 = vld [vmem:[%s25471_s0 + $0x7c] sm:$0xf] }
  0x3e   :  { %v581_v31 = vrot.slane %v579_v11, 2  ;;  %v402_v59 = vrot.slane %v21183_v53, 1 }
  0x3f   :  { %v21214_v6 = vsel %vm657_vm3, %v670_v42, %v21187_v8  ;;  %v403_v42 = vrot.slane %v21158_v45, 1 }
  0x41   :  { %345 = vrot.lane.b32.xlu1 %v281_v41, %s20680_s20  ;;  %426 = vrot.lane.b32.xlu0 %v397_v28, %s20678_s10  ;;  %v19550_v41 = vcombine.low %v99_v26, %v21005_v44  ;;  %v294_v28 = vshrl.u32 %v21049_v16, 16  ;;  %v568_v44 = vshrl.u32 %v21183_v53, 16  ;;  %v676_v26 = vrot.slane %v19551_v43, 2 }
  0x42   :  { %v308_v53 = vsel %vm206_vm2, %v303_v56, %v307_v23  ;;  %v404_v39 = vsel %vm383_vm0, %v402_v59, %v403_v42 }
  0x43   :  { %v673_v12 = vrot.slane %v19550_v41, 2  ;;  %v296_v35 = vor.u32 %v294_v28, %v21118_v4  ;;  %v570_v37 = vrot.slane %v568_v44, 1  ;;  %v77_v4 = vld [vmem:[%s25471_s0 + $0x7c] sm:$0x7]  ;;  %v19544_v44 = vcombine.low %v21242_v36, %v93_v0 }
  0x44   :  { %v19528_v41 = vcombine.low %v21242_v36, %v77_v4 }
  0x45   :  { %347 = vrot.lane.b32.xlu1 %v293_v49, %s20680_s20  ;;  %619 = vrot.lane.b32.xlu0 %v21076_v40, %s20679_s19  ;;  %v21225_v24 = vsel %vm657_vm3, %v673_v12, %v21205_v3  ;;  %v21233_v40 = vld [vmem:[%s25471_s0 + $0x74] sm:$0xf]  ;;  %v578_v49 = vrot.slane %v576_v15, 1  ;;  %v574_v63 = vor.u32 %v573_v48, %v570_v37  ;;  %v309_v15 = vshrl.u32 %v21158_v45, 16 }
  0x46   :  { %v21251_v14 = vcombine.low %v66_v30, %v21233_v40  ;;  %v19536_v5 = vcombine.low %v85_v57, %v21233_v40  ;;  %v320_v11 = vshll.u32 %v19528_v41, 16  ;;  %v593_v30 = vshrl.u32 %v19544_v44, 16 }
  0x47   :  { %v582_v28 = vor.u32 %v581_v31, %v578_v49  ;;  %v596_v13 = vshll.u32 %v19544_v44, 16  ;;  %v406_v56 = vrot.slane %v19528_v41, 1  ;;  %v21291_v59 = vrot.slane %v19544_v44, 2 }
  0x48   :  { %v315_v12 = vshll.u32 %v21251_v14, 16  ;;  %v588_v22 = vshll.u32 %v19536_v5, 16  ;;  %v322_v45 = vrot.slane %v320_v11, 1  ;;  %v595_v48 = vrot.slane %v593_v30, 1 }
  0x49   :  { %428 = vrot.lane.b32.xlu1 %v401_v34, %s20678_s10  ;;  %621 = vrot.lane.b32.xlu0 %v566_v19, %s20679_s19  ;;  %v21266_v34 = vsel %vm657_vm3, %v676_v26, %v21256_v58  ;;  %v583_v16 = vsel %vm464_vm1, %v574_v63, %v582_v28  ;;  %v585_v19 = vshrl.u32 %v19536_v5, 16  ;;  %v598_v49 = vrot.slane %v596_v13, 2 }
  0x4a   :  { %v317_v21 = vrot.slane %v315_v12, 1  ;;  %v590_v37 = vrot.slane %v588_v22, 2  ;;  %v405_v31 = vrot.slane %v19536_v5, 1  ;;  %v324_v63 = vshrl.u32 %v19528_v41, 16 }
  0x4b   :  { %v587_v43 = vrot.slane %v585_v19, 1  ;;  %v599_v26 = vor.u32 %v598_v49, %v595_v48  ;;  %v20681_v41 = vmov 1983009808   ;;  %v830_v44 = vlaneseq }
  0x4c   :  { %v407_v5 = vsel %vm383_vm0, %v405_v31, %v406_v56 }
  0x4d   :  { %349 = vrot.lane.b32.xlu1 %v296_v35, %s20680_s20  ;;  %430 = vrot.lane.b32.xlu0 %v400_v25, %s20678_s10  ;;  %v313_v25 = vshrl.u32 %v21251_v14, 16  ;;  %v311_v35 = vor.u32 %v309_v15, %v307_v23  ;;  %v591_v57 = vor.u32 %v590_v37, %v587_v43  ;;  %v101_v23 = vld [vmem:[%s25471_s0 + $0x70] sm:$0xc]  ;;  %v41_v15 = vld [vmem:[%s25471_s0 + $0xc] sm:$0x3] }
  0x4e   :  { %v19552_v0 = vcombine.low %v101_v23, %v21233_v40  ;;  %v326_v40 = vor.u32 %v324_v63, %v322_v45  ;;  %v19506_v22 = vcombine.low %v20753_v1, %v41_v15 }
  0x51   :  { %623 = vrot.lane.b32.xlu1 %v565_v46, %s20679_s19  ;;  %351 = vrot.lane.b32.xlu0 %v308_v53, %s20680_s20  ;;  %v318_v46 = vor.u32 %v317_v21, %v313_v25  ;;  %v600_v53 = vsel %vm464_vm1, %v591_v57, %v599_v26  ;;  %v21309_v25 = vshrl.u32 %v830_v44, 7  ;;  %vm5059_vm1 = vcmask 326656  }
  0x53   :  { %v323_v4 = vsel %vm206_vm2, %v318_v46, %v322_v45  ;;  %vm8119_vm2 = vcmask 683008  }
  0x55   :  { %432 = vrot.lane.b32.xlu1 %v404_v39, %s20678_s10  ;;  %625 = vrot.lane.b32.xlu0 %v583_v16, %s20679_s19 }
  0x59   :  { %353 = vrot.lane.b32.xlu1 %v311_v35, %s20680_s20  ;;  %434 = vrot.lane.b32.xlu0 %v403_v42, %s20678_s10  ;;  %v679_v42 = vrot.slane %v19552_v0, 2  ;;  %v45_v0 = vld [vmem:[%s25471_s0 + $0x1c] sm:$0x3] }
  0x5b   :  { %v21299_v12 = vsel %vm657_vm3, %v679_v42, %v21291_v59 }
  0x5d   :  { %627 = vrot.lane.b32.xlu1 %v582_v28, %s20679_s19  ;;  %355 = vrot.lane.b32.xlu0 %v323_v4, %s20680_s20  ;;  %v828_v28 = vunpack.c.l.s4 %v20681_v41 }
  0x5f   :  { %v829_v16 = vunpack.c.0.s8 %v828_v28 }
  0x61   :  { %436 = vrot.lane.b32.xlu1 %v407_v5, %s20678_s10  ;;  %629 = vrot.lane.b32.xlu0 %v600_v53, %s20679_s19  ;;  %v21316_v13 = vsub.s32 %v829_v16, %v21309_v25 }
  0x65   :  { %357 = vrot.lane.b32.xlu1 %v326_v40, %s20680_s20  ;;  %438 = vrot.lane.b32.xlu0 %v406_v56, %s20678_s10 }
  0x69   :  { %631 = vrot.lane.b32.xlu1 %v599_v26, %s20679_s19 }
  0x7a   :  { %v409_v39 = vpop.permute.xlu0 %408 }
  0x7f   :  { %v602_v11 = vpop.permute.xlu1 %601  ;;  %v328_v19 = vpop.permute.xlu0 %327 }
  0x80   :  { %v684_v21 = vsel %vm682_vm4, %v20775_v9, %v328_v19 }
  0x81   :  { %v725_v30 = vsel %vm723_vm5, %v684_v21, %v409_v39 }
  0x82   :  { %v758_v35 = vsel %vm756_vm6, %v725_v30, %v602_v11 }
  0x83   :  { %v825_v45 = vcombine.low %v758_v35, %v21131_v10  ;;  %v826_v43 = vcombine.high %v758_v35, %v21131_v10  ;;  %v330_v46 = vpop.permute.xlu1 %329  ;;  %v411_v37 = vpop.permute.xlu0 %410 }
  0x84   :  { %v687_v48 = vsel %vm682_vm4, %v19506_v22, %v330_v46 }
  0x85   :  { %v833_v49 = vrot.slane %v825_v45, %v21316_v13  ;;  %v840_v9 = vrot.slane %v826_v43, %v21316_v13  ;;  %v727_v1 = vsel %vm723_vm5, %v687_v48, %v411_v37 }
  0x87   :  { %v332_v31 = vpop.permute.xlu1 %331  ;;  %v604_v4 = vpop.permute.xlu0 %603  ;;  %v841_v56 = vcombine.high %v833_v49, %v833_v49  ;;  %v842_v57 = vcombine.high %v840_v9, %v840_v9 }
  0x88   :  { %v760_v26 = vsel %vm756_vm6, %v727_v1, %v604_v4  ;;  %v689_v5 = vsel %vm682_vm4, %v20806_v32, %v332_v31 }
  0x89   :  { %v843_v23 = vcombine.low %v760_v26, %v21087_v55  ;;  %v844_v10 = vcombine.high %v760_v26, %v21087_v55  ;;  %v1105_v63 = vcombine.low %v833_v49, %v841_v56  ;;  %v1106_v42 = vcombine.low %v840_v9, %v842_v57 }
  0x8a   :  { %v19508_v55 = vcombine.low %v20791_v18, %v45_v0 }
  0x8b   :  { %v851_v53 = vrot.slane %v843_v23, %v21316_v13  ;;  %v413_v40 = vpop.permute.xlu1 %412  ;;  %v606_v41 = vpop.permute.xlu0 %605  ;;  %v1113_v28 = vrot.slane %v1105_v63, %v21316_v13  ;;  %v1120_v44 = vrot.slane %v1106_v42, %v21316_v13  ;;  %v858_v35 = vrot.slane %v844_v10, %v21316_v13  ;;  %v49_v23 = vld [vmem:[%s25471_s0 + $0x2c] sm:$0x3] }
  0x8c   :  { %v729_v39 = vsel %vm723_vm5, %v689_v5, %v413_v40 }
  0x8d   :  { %v859_v15 = vcombine.high %v851_v53, %v851_v53  ;;  %v762_v16 = vsel %vm756_vm6, %v729_v39, %v606_v41  ;;  %v1122_v11 = vcombine.high %v1113_v28, %v1120_v44  ;;  %v1121_v19 = vcombine.low %v1113_v28, %v1120_v44 }
  0x8e   :  { %v860_v21 = vcombine.low %v762_v16, %v21174_v54  ;;  %v861_v32 = vcombine.high %v762_v16, %v21174_v54 }
  0x8f   :  { %v334_v22 = vpop.permute.xlu1 %333  ;;  %19573 = vmatprep.mubr.msk.bf16.mxu0 %vm682_vm4, %v1122_v11  ;;  %v415_v30 = vpop.permute.xlu0 %414  ;;  %v1123_v45 = vcombine.low %v851_v53, %v859_v15 }
  0x90   :  { %v868_v43 = vrot.slane %v860_v21, %v21316_v13  ;;  %v692_v18 = vsel %vm682_vm4, %v19508_v55, %v334_v22  ;;  %1546 = vmatmul.mubr.bf16.vlgmr.msra.gmra.mxu0 %v1121_v19  ;;  %v875_v48 = vrot.slane %v861_v32, %v21316_v13 }
  0x91   :  { %v731_v46 = vsel %vm723_vm5, %v692_v18, %v415_v30  ;;  %v1131_v1 = vrot.slane %v1123_v45, %v21316_v13 }
  0x92   :  { %v1124_v37 = vcombine.low %v858_v35, %v868_v43  ;;  %v876_v49 = vcombine.high %v868_v43, %v868_v43  ;;  %v877_v63 = vcombine.high %v875_v48, %v875_v48 }
  0x93   :  { %v608_v9 = vpop.permute.xlu1 %607  ;;  %v336_v54 = vpop.permute.xlu0 %335 }
  0x94   :  { %v1138_v31 = vrot.slane %v1124_v37, %v21316_v13  ;;  %v764_v4 = vsel %vm756_vm6, %v731_v46, %v608_v9  ;;  %v694_v26 = vsel %vm682_vm4, %v20847_v61, %v336_v54  ;;  %v1141_v42 = vcombine.low %v876_v49, %v875_v48 }
  0x95   :  { %v878_v56 = vcombine.low %v764_v4, %v21149_v33  ;;  %v879_v57 = vcombine.high %v764_v4, %v21149_v33  ;;  %v19510_v33 = vcombine.low %v20834_v50, %v49_v23 }
  0x96   :  { %v1140_v10 = vcombine.high %v1131_v1, %v1138_v31  ;;  %v1139_v0 = vcombine.low %v1131_v1, %v1138_v31  ;;  %v1149_v16 = vrot.slane %v1141_v42, %v21316_v13  ;;  %v53_v31 = vld [vmem:[%s25471_s0 + $0x3c] sm:$0x3] }
  0x97   :  { %v886_v5 = vrot.slane %v878_v56, %v21316_v13  ;;  %v417_v53 = vpop.permute.xlu1 %416  ;;  %v610_v40 = vpop.permute.xlu0 %609  ;;  %v893_v61 = vrot.slane %v879_v57, %v21316_v13 }
  0x98   :  { %v733_v41 = vsel %vm723_vm5, %v694_v26, %v417_v53  ;;  %19574 = vmatprep.mubr.msk.bf16.mxu0 %vm682_vm4, %v1140_v10 }
  0x99   :  { %v894_v28 = vcombine.high %v886_v5, %v886_v5  ;;  %v1142_v44 = vcombine.low %v877_v63, %v886_v5  ;;  %v766_v39 = vsel %vm756_vm6, %v733_v41, %v610_v40  ;;  %1556 = vmatmul.mubr.bf16.gmra.mxu0 %v1139_v0 }
  0x9a   :  { %v895_v55 = vcombine.low %v766_v39, %v21197_v2  ;;  %v896_v15 = vcombine.high %v766_v39, %v21197_v2 }
  0x9b   :  { %v1156_v11 = vrot.slane %v1142_v44, %v21316_v13  ;;  %v1159_v19 = vcombine.low %v894_v28, %v893_v61  ;;  %v338_v21 = vpop.permute.xlu1 %337  ;;  %v419_v32 = vpop.permute.xlu0 %418 }
  0x9c   :  { %v903_v50 = vrot.slane %v895_v55, %v21316_v13  ;;  %v697_v22 = vsel %vm682_vm4, %v19510_v33, %v338_v21  ;;  %v910_v30 = vrot.slane %v896_v15, %v21316_v13 }
  0x9d   :  { %v735_v35 = vsel %vm723_vm5, %v697_v22, %v419_v32  ;;  %v1158_v45 = vcombine.high %v1149_v16, %v1156_v11  ;;  %v1157_v43 = vcombine.low %v1149_v16, %v1156_v11  ;;  %v1167_v4 = vrot.slane %v1159_v19, %v21316_v13 }
  0x9e   :  { %v911_v18 = vcombine.high %v903_v50, %v903_v50  ;;  %v912_v49 = vcombine.high %v910_v30, %v910_v30 }
  0x9f   :  { %v612_v46 = vpop.permute.xlu1 %611  ;;  %19575 = vmatprep.mubr.msk.bf16.mxu0 %vm682_vm4, %v1158_v45  ;;  %v340_v2 = vpop.permute.xlu0 %339 }
  0xa0   :  { %v1160_v37 = vcombine.low %v903_v50, %v911_v18  ;;  %v768_v48 = vsel %vm756_vm6, %v735_v35, %v612_v46  ;;  %v699_v1 = vsel %vm682_vm4, %v20892_v38, %v340_v2  ;;  %v1177_v38 = vcombine.low %v910_v30, %v912_v49  ;;  %v57_v46 = vld [vmem:[%s25471_s0 + $0x4c] sm:$0x3] }
  0xa1   :  { %v913_v9 = vcombine.low %v768_v48, %v21164_v47  ;;  %v914_v54 = vcombine.high %v768_v48, %v21164_v47  ;;  %1566 = vmatmul.mubr.bf16.gmra.mxu0 %v1157_v43  ;;  %v19512_v47 = vcombine.low %v20884_v27, %v53_v31  ;;  %v19514_v31 = vcombine.low %v20962_v17, %v57_v46 }
  0xa2   :  { %v1174_v56 = vrot.slane %v1160_v37, %v21316_v13  ;;  %v1185_v55 = vrot.slane %v1177_v38, %v21316_v13 }
  0xa3   :  { %v921_v57 = vrot.slane %v913_v9, %v21316_v13  ;;  %v421_v26 = vpop.permute.xlu1 %420  ;;  %v614_v23 = vpop.permute.xlu0 %613  ;;  %v928_v53 = vrot.slane %v914_v54, %v21316_v13 }
  0xa4   :  { %v737_v10 = vsel %vm723_vm5, %v699_v1, %v421_v26  ;;  %v1176_v0 = vcombine.high %v1167_v4, %v1174_v56  ;;  %v1175_v63 = vcombine.low %v1167_v4, %v1174_v56 }
  0xa5   :  { %v929_v42 = vcombine.high %v921_v57, %v921_v57  ;;  %v770_v5 = vsel %vm756_vm6, %v737_v10, %v614_v23 }
  0xa6   :  { %v930_v40 = vcombine.low %v770_v5, %v21201_v7  ;;  %v931_v41 = vcombine.high %v770_v5, %v21201_v7  ;;  %19576 = vmatprep.mubr.msk.bf16.mxu0 %vm682_vm4, %v1176_v0 }
  0xa7   :  { %v1178_v33 = vcombine.low %v921_v57, %v929_v42  ;;  %v342_v61 = vpop.permute.xlu1 %341  ;;  %v423_v28 = vpop.permute.xlu0 %422 }
  0xa8   :  { %v938_v44 = vrot.slane %v930_v40, %v21316_v13  ;;  %v945_v27 = vrot.slane %v931_v41, %v21316_v13  ;;  %v702_v39 = vsel %vm682_vm4, %v19512_v47, %v342_v61 }
  0xa9   :  { %v1192_v15 = vrot.slane %v1178_v33, %v21316_v13  ;;  %1576 = vmatmul.mubr.bf16.gmra.mxu0 %v1175_v63  ;;  %v739_v16 = vsel %vm723_vm5, %v702_v39, %v423_v28 }
  0xaa   :  { %v946_v11 = vcombine.high %v938_v44, %v938_v44  ;;  %v1195_v7 = vcombine.low %v928_v53, %v938_v44  ;;  %v947_v35 = vcombine.high %v945_v27, %v945_v27 }
  0xab   :  { %v616_v19 = vpop.permute.xlu1 %615  ;;  %v1194_v21 = vcombine.high %v1185_v55, %v1192_v15  ;;  %v344_v32 = vpop.permute.xlu0 %343  ;;  %v1193_v50 = vcombine.low %v1185_v55, %v1192_v15 }
  0xac   :  { %v1196_v22 = vcombine.low %v946_v11, %v945_v27  ;;  %v772_v30 = vsel %vm756_vm6, %v739_v16, %v616_v19  ;;  %v704_v18 = vsel %vm682_vm4, %v20968_v20, %v344_v32  ;;  %v1203_v2 = vrot.slane %v1195_v7, %v21316_v13  ;;  %v61_v11 = vld [vmem:[%s25471_s0 + $0x5c] sm:$0x3] }
  0xad   :  { %v948_v45 = vcombine.low %v772_v30, %v21168_v52  ;;  %v949_v43 = vcombine.high %v772_v30, %v21168_v52  ;;  %19577 = vmatprep.mubr.msk.bf16.mxu0 %vm682_vm4, %v1194_v21 }
  0xae   :  { %v1210_v37 = vrot.slane %v1196_v22, %v21316_v13  ;;  %v19516_v22 = vcombine.low %v21032_v51, %v61_v11 }
  0xaf   :  { %v956_v48 = vrot.slane %v948_v45, %v21316_v13  ;;  %v963_v49 = vrot.slane %v949_v43, %v21316_v13  ;;  %v425_v9 = vpop.permute.xlu1 %424  ;;  %v618_v54 = vpop.permute.xlu0 %617 }
  0xb0   :  { %v741_v52 = vsel %vm723_vm5, %v704_v18, %v425_v9  ;;  %v1212_v1 = vcombine.high %v1203_v2, %v1210_v37  ;;  %v1211_v20 = vcombine.low %v1203_v2, %v1210_v37 }
  0xb1   :  { %v964_v4 = vcombine.high %v956_v48, %v956_v48  ;;  %v1213_v56 = vcombine.low %v947_v35, %v956_v48  ;;  %1586 = vmatmul.mubr.bf16.gmra.mxu0 %v1193_v50  ;;  %v774_v57 = vsel %vm756_vm6, %v741_v52, %v618_v54 }
  0xb2   :  { %19578 = vmatprep.mubr.msk.bf16.mxu0 %vm682_vm4, %v1212_v1  ;;  %v965_v26 = vcombine.low %v774_v57, %v21214_v6  ;;  %v966_v23 = vcombine.high %v774_v57, %v21214_v6 }
  0xb3   :  { %v1214_v10 = vcombine.low %v964_v4, %v963_v49  ;;  %v1221_v0 = vrot.slane %v1213_v56, %v21316_v13  ;;  %v346_v47 = vpop.permute.xlu1 %345  ;;  %v427_v63 = vpop.permute.xlu0 %426 }
  0xb4   :  { %v973_v38 = vrot.slane %v965_v26, %v21316_v13  ;;  %v980_v17 = vrot.slane %v966_v23, %v21316_v13  ;;  %v707_v42 = vsel %vm682_vm4, %v19514_v31, %v346_v47 }
  0xb5   :  { %v1228_v5 = vrot.slane %v1214_v10, %v21316_v13  ;;  %v743_v53 = vsel %vm723_vm5, %v707_v42, %v427_v63 }
  0xb6   :  { %v981_v40 = vcombine.high %v973_v38, %v973_v38  ;;  %v982_v41 = vcombine.high %v980_v17, %v980_v17 }
  0xb7   :  { %v348_v33 = vpop.permute.xlu1 %347  ;;  %v1230_v61 = vcombine.high %v1221_v0, %v1228_v5  ;;  %v620_v6 = vpop.permute.xlu0 %619  ;;  %v1229_v28 = vcombine.low %v1221_v0, %v1228_v5  ;;  %v65_v0 = vld [vmem:[%s25471_s0 + $0x6c] sm:$0x3] }
  0xb8   :  { %v1231_v44 = vcombine.low %v973_v38, %v981_v40  ;;  %v1232_v27 = vcombine.low %v980_v17, %v982_v41  ;;  %v776_v39 = vsel %vm756_vm6, %v743_v53, %v620_v6  ;;  %v709_v55 = vsel %vm682_vm4, %v21027_v62, %v348_v33 }
  0xb9   :  { %1596 = vmatmul.mubr.bf16.gmra.mxu0 %v1211_v20  ;;  %v983_v15 = vcombine.low %v776_v39, %v21187_v8  ;;  %v984_v16 = vcombine.high %v776_v39, %v21187_v8 }
  0xba   :  { %v1239_v7 = vrot.slane %v1231_v44, %v21316_v13  ;;  %v1246_v19 = vrot.slane %v1232_v27, %v21316_v13  ;;  %19579 = vmatprep.mubr.msk.bf16.mxu0 %vm682_vm4, %v1230_v61 }
  0xbb   :  { %v991_v21 = vrot.slane %v983_v15, %v21316_v13  ;;  %v429_v32 = vpop.permute.xlu1 %428  ;;  %v622_v50 = vpop.permute.xlu0 %621  ;;  %v998_v35 = vrot.slane %v984_v16, %v21316_v13 }
  0xbc   :  { %v745_v62 = vsel %vm723_vm5, %v709_v55, %v429_v32  ;;  %v1248_v18 = vcombine.high %v1239_v7, %v1246_v19  ;;  %v1247_v42 = vcombine.low %v1239_v7, %v1246_v19 }
  0xbd   :  { %v999_v30 = vcombine.high %v991_v21, %v991_v21  ;;  %v778_v8 = vsel %vm756_vm6, %v745_v62, %v622_v50 }
  0xbe   :  { %v1000_v45 = vcombine.low %v778_v8, %v21225_v24  ;;  %v1001_v43 = vcombine.high %v778_v8, %v21225_v24 }
  0xbf   :  { %v1249_v46 = vcombine.low %v991_v21, %v999_v30  ;;  %v350_v2 = vpop.permute.xlu1 %349  ;;  %v431_v37 = vpop.permute.xlu0 %430 }
  0xc0   :  { %v1008_v48 = vrot.slane %v1000_v45, %v21316_v13  ;;  %v1015_v49 = vrot.slane %v1001_v43, %v21316_v13  ;;  %v712_v9 = vsel %vm682_vm4, %v19516_v22, %v350_v2  ;;  %v69_v43 = vld [vmem:[%s25471_s0 + $0x7c] sm:$0x3]  ;;  %s20688_s0 = smov 44  }
  0xc1   :  { %1606 = vmatmul.mubr.bf16.gmra.mxu0 %v1229_v28  ;;  %v747_v51 = vsel %vm723_vm5, %v712_v9, %v431_v37  ;;  %v1257_v54 = vrot.slane %v1249_v46, %v21316_v13 }
  0xc2   :  { %v1016_v52 = vcombine.high %v1008_v48, %v1008_v48  ;;  %v1250_v1 = vcombine.low %v998_v35, %v1008_v48  ;;  %19580 = vmatprep.mubr.msk.bf16.mxu0 %vm682_vm4, %v1248_v18  ;;  %v1017_v20 = vcombine.high %v1015_v49, %v1015_v49 }
  0xc3   :  { %v624_v24 = vpop.permute.xlu1 %623  ;;  %v352_v31 = vpop.permute.xlu0 %351 }
  0xc4   :  { %v1264_v4 = vrot.slane %v1250_v1, %v21316_v13  ;;  %v780_v56 = vsel %vm756_vm6, %v747_v51, %v624_v24  ;;  %v1267_v57 = vcombine.low %v1016_v52, %v1015_v49  ;;  %v714_v10 = vsel %vm682_vm4, %v21143_v29, %v352_v31 }
  0xc5   :  { %v1018_v26 = vcombine.low %v780_v56, %v21205_v3  ;;  %v1019_v23 = vcombine.high %v780_v56, %v21205_v3  ;;  %v19518_v3 = vcombine.low %v21114_v60, %v65_v0  ;;  %v19520_v51 = vcombine.low %v21242_v36, %v69_v43 }
  0xc6   :  { %v1266_v47 = vcombine.high %v1257_v54, %v1264_v4  ;;  %v1265_v63 = vcombine.low %v1257_v54, %v1264_v4  ;;  %v1275_v41 = vrot.slane %v1267_v57, %v21316_v13  ;;  %v20448_v57 = vld [vmem:[%s25473_s2 + $0x38] sm:$0xff]  }
  0xc7   :  { %v1026_v38 = vrot.slane %v1018_v26, %v21316_v13  ;;  %v1033_v17 = vrot.slane %v1019_v23, %v21316_v13  ;;  %v433_v5 = vpop.permute.xlu1 %432  ;;  %v626_v53 = vpop.permute.xlu0 %625 }
  0xc8   :  { %v749_v40 = vsel %vm723_vm5, %v714_v10, %v433_v5  ;;  %v25481_v10 = vmov 0   ;;  %v20449_v5 = vld [vmem:[%s25473_s2 + $0x30] sm:$0xff]  }
  0xc9   :  { %v1034_v29 = vcombine.high %v1026_v38, %v1026_v38  ;;  %v1268_v33 = vcombine.low %v1017_v20, %v1026_v38  ;;  %1616 = vmatmul.mubr.bf16.gmra.mxu0 %v1247_v42  ;;  %v782_v61 = vsel %vm756_vm6, %v749_v40, %v626_v53  ;;  %5105 = vmatprep.subr.bf16.mxu1 %v25481_v10 }
  0xca   :  { %v1035_v6 = vcombine.low %v782_v61, %v21266_v34  ;;  %v1036_v28 = vcombine.high %v782_v61, %v21266_v34  ;;  %19581 = vmatprep.mubr.msk.bf16.mxu0 %vm682_vm4, %v1266_v47  ;;  %5106 = vmatpush1.bf16.msra.mxu1 %v20448_v57 }
  0xcb   :  { %v1282_v44 = vrot.slane %v1268_v33, %v21316_v13  ;;  %v1285_v27 = vcombine.low %v1034_v29, %v1033_v17  ;;  %v354_v39 = vpop.permute.xlu1 %353  ;;  %v435_v55 = vpop.permute.xlu0 %434  ;;  %5107 = vmatprep.subr.bf16.mxu1 %v25481_v10 }
  0xcc   :  { %v1043_v60 = vrot.slane %v1035_v6, %v21316_v13  ;;  %v1050_v15 = vrot.slane %v1036_v28, %v21316_v13  ;;  %v717_v16 = vsel %vm682_vm4, %v19518_v3, %v354_v39 }
  0xcd   :  { %v751_v11 = vsel %vm723_vm5, %v717_v16, %v435_v55  ;;  %v1284_v7 = vcombine.high %v1275_v41, %v1282_v44  ;;  %v1283_v19 = vcombine.low %v1275_v41, %v1282_v44  ;;  %v1293_v62 = vrot.slane %v1285_v27, %v21316_v13  ;;  %v20450_v44 = vld [vmem:[%s25473_s2 + $0x28] sm:$0xff]   ;;  %v20451_v16 = vld [vmem:[%s25473_s2 + $0x20] sm:$0xff]  }
  0xce   :  { %v1051_v21 = vcombine.high %v1043_v60, %v1043_v60  ;;  %v1052_v32 = vcombine.high %v1050_v15, %v1050_v15  ;;  %5108 = vmatpush1.bf16.msra.mxu1 %v20449_v5 }
  0xcf   :  { %v628_v34 = vpop.permute.xlu1 %627  ;;  %v356_v50 = vpop.permute.xlu0 %355  ;;  %5109 = vmatprep.subr.bf16.mxu1 %v25481_v10 }
  0xd0   :  { %v1286_v22 = vcombine.low %v1043_v60, %v1051_v21  ;;  %v784_v30 = vsel %vm756_vm6, %v751_v11, %v628_v34  ;;  %v719_v45 = vsel %vm682_vm4, %v21251_v14, %v356_v50  ;;  %v1303_v46 = vcombine.low %v1050_v15, %v1052_v32  ;;  %v20452_v21 = vld [vmem:[%s25473_s2 + $0x18] sm:$0xff]   ;;  %v20453_v32 = vld [vmem:[%s25473_s2 + $0x10] sm:$0xff]   ;;  %v20455_v34 = vld [vmem:[%s25473_s2] sm:$0xff]  }
  0xd1   :  { %1626 = vmatmul.mubr.bf16.gmra.mxu0 %v1265_v63  ;;  %v1053_v8 = vcombine.low %v784_v30, %v21256_v58  ;;  %v1054_v35 = vcombine.high %v784_v30, %v21256_v58  ;;  %v20456_v50 = vld [vmem:[%s25473_s2 + $0x50] ss:$0 sps:$4 sm:$0xff]   ;;  %v20458_v30 = vld [vmem:[%s25473_s2 + $0x40] sm:$0xff]  }
  0xd2   :  { %v1300_v18 = vrot.slane %v1286_v22, %v21316_v13  ;;  %19582 = vmatprep.mubr.msk.bf16.mxu0 %vm682_vm4, %v1284_v7  ;;  %v1311_v31 = vrot.slane %v1303_v46, %v21316_v13  ;;  %5110 = vmatpush1.bf16.msra.mxu1 %v20450_v44  ;;  %v20457_v22 = vld [vmem:[%s25473_s2 + $0x48] sm:$0xff]  }
  0xd3   :  { %v1061_v2 = vrot.slane %v1053_v8, %v21316_v13  ;;  %v437_v37 = vpop.permute.xlu1 %436  ;;  %v630_v48 = vpop.permute.xlu0 %629  ;;  %v1068_v52 = vrot.slane %v1054_v35, %v21316_v13  ;;  %5111 = vmatprep.subr.bf16.mxu1 %v25481_v10 }
  0xd4   :  { %v1302_v49 = vcombine.high %v1293_v62, %v1300_v18  ;;  %v753_v9 = vsel %vm723_vm5, %v719_v45, %v437_v37  ;;  %v1301_v58 = vcombine.low %v1293_v62, %v1300_v18  ;;  %v5103_v62 = vsel %vm2270_vm7, %v20456_v50, 0 }
  0xd5   :  { %v1069_v14 = vcombine.high %v1061_v2, %v1061_v2  ;;  %v786_v54 = vsel %vm756_vm6, %v753_v9, %v630_v48 }
  0xd6   :  { %v1070_v1 = vcombine.low %v786_v54, %v21299_v12  ;;  %v1071_v24 = vcombine.high %v786_v54, %v21299_v12  ;;  %5112 = vmatpush1.bf16.msra.mxu1 %v20451_v16 }
  0xd7   :  { %v1304_v20 = vcombine.low %v1061_v2, %v1069_v14  ;;  %v358_v4 = vpop.permute.xlu1 %357  ;;  %v439_v56 = vpop.permute.xlu0 %438  ;;  %5113 = vmatprep.subr.bf16.mxu1 %v25481_v10 }
  0xd8   :  { %v1078_v36 = vrot.slane %v1070_v1, %v21316_v13  ;;  %v1085_v26 = vrot.slane %v1071_v24, %v21316_v13  ;;  %v722_v23 = vsel %vm682_vm4, %v19520_v51, %v358_v4 }
  0xd9   :  { %v1318_v12 = vrot.slane %v1304_v20, %v21316_v13  ;;  %1636 = vmatmul.mubr.bf16.gmra.mxu0 %v1283_v19  ;;  %v755_v0 = vsel %vm723_vm5, %v722_v23, %v439_v56 }
  0xda   :  { %19583 = vmatprep.mubr.msk.bf16.mxu0 %vm682_vm4, %v1302_v49  ;;  %v1086_v47 = vcombine.high %v1078_v36, %v1078_v36  ;;  %v1321_v63 = vcombine.low %v1068_v52, %v1078_v36  ;;  %v1087_v41 = vcombine.high %v1085_v26, %v1085_v26  ;;  %5114 = vmatpush1.bf16.msra.mxu1 %v20452_v21 }
  0xdb   :  { %v1320_v38 = vcombine.high %v1311_v31, %v1318_v12  ;;  %v632_v17 = vpop.permute.xlu1 %631  ;;  %v1319_v42 = vcombine.low %v1311_v31, %v1318_v12  ;;  %5115 = vmatprep.subr.bf16.mxu1 %v25481_v10 }
  0xdc   :  { %v1322_v53 = vcombine.low %v1086_v47, %v1085_v26  ;;  %v1329_v40 = vrot.slane %v1321_v63, %v21316_v13  ;;  %v788_v3 = vsel %vm756_vm6, %v755_v0, %v632_v17  ;;  %vm8123_vm6 = vcmask 680960  }
  0xdd   :  { %v1088_v29 = vcombine.low %v788_v3, %v21291_v59  ;;  %v1089_v33 = vcombine.high %v788_v3, %v21291_v59 }
  0xde   :  { %v1336_v61 = vrot.slane %v1322_v53, %v21316_v13  ;;  %5116 = vmatpush1.bf16.msra.mxu1 %v20453_v32 }
  0xdf   :  { %v1096_v6 = vrot.slane %v1088_v29, %v21316_v13  ;;  %v1103_v28 = vrot.slane %v1089_v33, %v21316_v13  ;;  %5117 = vmatprep.subr.bf16.mxu1 %v25481_v10 }
  0xe0   :  { %v1338_v27 = vcombine.high %v1329_v40, %v1336_v61  ;;  %v1337_v39 = vcombine.low %v1329_v40, %v1336_v61  ;;  %v20683_v40 = vmov 1966171168  }
  0xe1   :  { %1646 = vmatmul.mubr.bf16.gmra.mxu0 %v1301_v58  ;;  %v1104_v55 = vcombine.high %v1096_v6, %v1096_v6  ;;  %v1339_v60 = vcombine.low %v1087_v41, %v1096_v6  ;;  %v2778_v3 = vunpack.c.l.s4 %v20683_v40 }
  0xe2   :  { %19584 = vmatprep.mubr.msk.bf16.mxu0 %vm682_vm4, %v1320_v38 }
  0xe3   :  { %v1340_v59 = vcombine.low %v1104_v55, %v1103_v28  ;;  %v1347_v15 = vrot.slane %v1339_v60, %v21316_v13 }
  0xe5   :  { %v1354_v11 = vrot.slane %v1340_v59, %v21316_v13  ;;  %v20454_v13 = vld [vmem:[%s25473_s2 + $0x8] sm:$0xff]  }
  0xe6   :  { %5118 = vmatpush1.bf16.msra.mxu1 %v20454_v13 }
  0xe7   :  { %v1356_v7 = vcombine.high %v1347_v15, %v1354_v11  ;;  %v1355_v19 = vcombine.low %v1347_v15, %v1354_v11  ;;  %5119 = vmatprep.subr.bf16.mxu1 %v25481_v10  ;;  %v2779_v11 = vunpack.c.0.s8 %v2778_v3 }
  0xe9   :  { %1656 = vmatmul.mubr.bf16.gmra.mxu0 %v1319_v42 }
  0xea   :  { %19585 = vmatprep.mubr.msk.bf16.mxu0 %vm682_vm4, %v1338_v27  ;;  %5120 = vmatpush1.bf16.msra.mxu1 %v20455_v34 }
  0xeb   :  { %5131 = vmatprep.subr.bf16.mxu1 %v25481_v10 }
  0xee   :  { %5132 = vmatpush2.bf16.msra.mxu1 %v5103_v62 }
  0xef   :  { %5133 = vmatprep.subr.bf16.mxu1 %v25481_v10 }
  0xf1   :  { %1666 = vmatmul.mubr.bf16.gmra.mxu0 %v1337_v39 }
  0xf2   :  { %19586 = vmatprep.mubr.msk.bf16.mxu0 %vm682_vm4, %v1356_v7  ;;  %5134 = vmatpush2.bf16.msra.mxu1 %v20457_v22 }
  0xf3   :  { %5135 = vmatprep.subr.bf16.mxu1 %v25481_v10 }
  0xf6   :  { %5136 = vmatpush2.bf16.msra.mxu1 %v20458_v30 }
  0xf9   :  { %1676 = vmatmul.mubr.bf16.gmra.mxu0 %v1355_v19 }
 0x150   :  { %v1547_v8 = vpop.f32.mrf.mxu0 }
 0x152   :  { %v1549_v35 = vpop.f32.mrf.mxu0 }
 0x153   :  { %v1742_v45 = vcombine.low %v1547_v8, %v1549_v35  ;;  %v1743_v43 = vcombine.high %v1547_v8, %v1549_v35 }
 0x154   :  { %v1551_v18 = vpop.f32.mrf.mxu0 }
 0x155   :  { %v1854_v46 = vmax.f32 %v1742_v45, 0.0  ;;  %v1855_v2 = vmax.f32 %v1743_v43, 0.0 }
 0x156   :  { %v1553_v37 = vpop.f32.mrf.mxu0 }
 0x157   :  { %v1966_v48 = vcombine.low %v1854_v46, %v1855_v2  ;;  %v1967_v49 = vcombine.high %v1854_v46, %v1855_v2  ;;  %v1744_v9 = vcombine.low %v1551_v18, %v1553_v37  ;;  %v1745_v58 = vcombine.high %v1551_v18, %v1553_v37 }
 0x158   :  { %v21575_v2 = vsub.s32 %v2779_v11, %v21309_v25 }
 0x159   :  { %v20167_v14 = vpack.c.bf16 %v1967_v49, %v1966_v48  ;;  %v1856_v54 = vmax.f32 %v1744_v9, 0.0  ;;  %v1857_v52 = vmax.f32 %v1745_v58, 0.0  ;;  %v1557_v1 = vpop.f32.mrf.mxu0 }
 0x15b   :  { %v1968_v24 = vcombine.low %v1856_v54, %v1857_v52  ;;  %v1969_v31 = vcombine.high %v1856_v54, %v1857_v52  ;;  %v1559_v20 = vpop.f32.mrf.mxu0  ;;  %2273 = vst.msk [vmem:[#allocation2] sm:$0xff] %vm21551_vm9, %v20167_v14 }
 0x15c   :  { %v1746_v4 = vcombine.low %v1557_v1, %v1559_v20  ;;  %v1747_v56 = vcombine.high %v1557_v1, %v1559_v20 }
 0x15d   :  { %v20168_v57 = vpack.c.bf16 %v1969_v31, %v1968_v24  ;;  %v1561_v36 = vpop.f32.mrf.mxu0 }
 0x15e   :  { %v1858_v26 = vmax.f32 %v1746_v4, 0.0  ;;  %v1859_v23 = vmax.f32 %v1747_v56, 0.0 }
 0x15f   :  { %v1563_v12 = vpop.f32.mrf.mxu0  ;;  %2274 = vst.msk [vmem:[#allocation2 + $0x8] sm:$0xff] %vm21551_vm9, %v20168_v57 }
 0x160   :  { %v1970_v0 = vcombine.low %v1858_v26, %v1859_v23  ;;  %v1971_v47 = vcombine.high %v1858_v26, %v1859_v23  ;;  %v1748_v63 = vcombine.low %v1561_v36, %v1563_v12  ;;  %v1749_v42 = vcombine.high %v1561_v36, %v1563_v12 }
 0x161   :  { %v1567_v38 = vpop.f32.mrf.mxu0 }
 0x162   :  { %v20169_v17 = vpack.c.bf16 %v1971_v47, %v1970_v0  ;;  %v1860_v5 = vmax.f32 %v1748_v63, 0.0  ;;  %v2308_v53 = vld [vmem:[#allocation2] sm:$0xff]  ;;  %v1861_v55 = vmax.f32 %v1749_v42, 0.0 }
 0x163   :  { %v1569_v41 = vpop.f32.mrf.mxu0  ;;  %v2344_v29 = vshrl.u32 %v2308_v53, 16  ;;  %v2347_v33 = vshll.u32 %v2308_v53, 16 }
 0x164   :  { %v1972_v61 = vcombine.high %v1860_v5, %v1860_v5  ;;  %v1750_v6 = vcombine.low %v1567_v38, %v1569_v41  ;;  %2275 = vst.msk [vmem:[#allocation2 + $0x10] sm:$0xff] %vm21551_vm9, %v20169_v17  ;;  %v1751_v59 = vcombine.high %v1567_v38, %v1569_v41 }
 0x165   :  { %v1571_v44 = vpop.f32.mrf.mxu0  ;;  %v2346_v27 = vrot.slane %v2344_v29, 4  ;;  %v2349_v39 = vrot.slane %v2347_v33, 5 }
 0x166   :  { %v20170_v60 = vpack.c.bf16 %v1972_v61, %v1860_v5  ;;  %v1862_v15 = vmax.f32 %v1750_v6, 0.0  ;;  %v2309_v16 = vld [vmem:[#allocation2 + $0x8] sm:$0xff]  ;;  %v1863_v45 = vmax.f32 %v1751_v59, 0.0 }
 0x167   :  { %v1573_v7 = vpop.f32.mrf.mxu0  ;;  %v2350_v19 = vor.u32 %v2349_v39, %v2346_v27  ;;  %v2353_v21 = vshll.u32 %v2309_v16, 16  ;;  %v2357_v32 = vshrl.u32 %v2309_v16, 16 }
 0x168   :  { %2279 = vst.msk [vmem:[#allocation2 + $0x18] sm:$0x33] %vm21562_vm12, %v20170_v60  ;;  %v1973_v13 = vcombine.low %v1861_v55, %v1862_v15  ;;  %v1974_v34 = vcombine.high %v1861_v55, %v1862_v15  ;;  %v1752_v50 = vcombine.low %v1571_v44, %v1573_v7  ;;  %v1753_v18 = vcombine.high %v1571_v44, %v1573_v7 }
 0x169   :  { %v1577_v22 = vpop.f32.mrf.mxu0  ;;  %v2351_v30 = vrot.slane %v2350_v19, 4  ;;  %v2355_v8 = vrot.slane %v2353_v21, 5  ;;  %v2359_v35 = vrot.slane %v2357_v32, 4 }
 0x16a   :  { %v20171_v43 = vpack.c.bf16 %v1974_v34, %v1973_v13  ;;  %v1864_v46 = vmax.f32 %v1752_v50, 0.0  ;;  %v1865_v56 = vmax.f32 %v1753_v18, 0.0 }
 0x16b   :  { %v1579_v37 = vpop.f32.mrf.mxu0  ;;  %v21577_v48 = vld [vmem:[#allocation2 + $0x10] sm:$0xff]  ;;  %v2356_v49 = vsel %vm21570_vm15, %v2351_v30, %v2355_v8  ;;  %v2360_v9 = vor.u32 %v2359_v35, %v2355_v8 }
 0x16c   :  { %v1975_v58 = vcombine.low %v1863_v45, %v1864_v46  ;;  %v1976_v14 = vcombine.high %v1863_v45, %v1864_v46  ;;  %v1754_v54 = vcombine.low %v1577_v22, %v1579_v37  ;;  %v1755_v52 = vcombine.high %v1577_v22, %v1579_v37  ;;  %2280 = vst.msk [vmem:[#allocation2 + $0x20] sm:$0xff] %vm21551_vm9, %v20171_v43 }
 0x16d   :  { %v1581_v1 = vpop.f32.mrf.mxu0  ;;  %v2361_v24 = vrot.slane %v2360_v9, 4  ;;  %v2363_v31 = vshll.u32 %v21577_v48, 16  ;;  %v2367_v20 = vshrl.u32 %v21577_v48, 16  ;;  %v2687_v4 = vadd.bf16 %v2356_v49, %v2308_v53 }
 0x16e   :  { %v20172_v57 = vpack.c.bf16 %v1976_v14, %v1975_v58  ;;  %v1866_v36 = vmax.f32 %v1754_v54, 0.0  ;;  %v1867_v26 = vmax.f32 %v1755_v52, 0.0 }
 0x16f   :  { %v1583_v23 = vpop.f32.mrf.mxu0  ;;  %v2365_v12 = vrot.slane %v2363_v31, 5  ;;  %v2369_v0 = vrot.slane %v2367_v20, 4  ;;  %v2783_v47 = vrot.slane %v2687_v4, %v21575_v2  ;;  %v21590_v29 = vld [vmem:[#allocation2 + $0x18] sm:$0x33] }
 0x170   :  { %v1977_v63 = vcombine.low %v1865_v56, %v1866_v36  ;;  %v1978_v38 = vcombine.high %v1865_v56, %v1866_v36  ;;  %v1979_v17 = vcombine.high %v1867_v26, %v1867_v26  ;;  %v1756_v42 = vcombine.low %v1581_v1, %v1583_v23  ;;  %2281 = vst.msk [vmem:[#allocation2 + $0x28] sm:$0xff] %vm21551_vm9, %v20172_v57 }
 0x171   :  { %v1757_v5 = vcombine.high %v1581_v1, %v1583_v23  ;;  %v1587_v40 = vpop.f32.mrf.mxu0  ;;  %v2366_v53 = vsel %vm21570_vm15, %v2361_v24, %v2365_v12  ;;  %v2370_v3 = vor.u32 %v2369_v0, %v2365_v12  ;;  %v2784_v41 = vcombine.high %v2783_v47, %v2783_v47 }
 0x172   :  { %v20173_v33 = vpack.c.bf16 %v1978_v38, %v1977_v63  ;;  %v20174_v61 = vpack.c.bf16 %v1979_v17, %v1867_v26  ;;  %v1868_v6 = vmax.f32 %v1756_v42, 0.0  ;;  %v2688_v44 = vadd.bf16 %v2366_v53, %v2309_v16 }
 0x173   :  { %v1869_v27 = vmax.f32 %v1757_v5, 0.0  ;;  %v1589_v39 = vpop.f32.mrf.mxu0  ;;  %v21592_v55 = vrot.slane %v2370_v3, 4  ;;  %v2791_v60 = vrot.slane %v2783_v47, %v21575_v2  ;;  %v2798_v59 = vrot.slane %v2784_v41, %v21575_v2  ;;  %v21611_v56 = vld [vmem:[#allocation2 + $0x20] sm:$0xff] }
 0x174   :  { %2283 = vst.msk [vmem:[#allocation2 + $0x38] sm:$0x33] %vm21562_vm12, %v20174_v61  ;;  %v1758_v15 = vcombine.low %v1587_v40, %v1589_v39  ;;  %v1759_v11 = vcombine.high %v1587_v40, %v1589_v39  ;;  %v2807_v7 = vrot.slane %v2688_v44, %v21575_v2  ;;  %v2373_v16 = vshll.u32 %v21590_v29, 16 }
 0x175   :  { %2282 = vst.msk [vmem:[#allocation2 + $0x30] sm:$0xff] %vm21551_vm9, %v20173_v33  ;;  %v1980_v19 = vcombine.low %v1868_v6, %v1869_v27  ;;  %v1981_v21 = vcombine.high %v1868_v6, %v1869_v27  ;;  %v1591_v32 = vpop.f32.mrf.mxu0  ;;  %v3902_v13 = vcombine.low %v2791_v60, %v2798_v59  ;;  %v19676_v34 = vcombine.high %v2791_v60, %v2798_v59 }
 0x176   :  { %v1870_v50 = vmax.f32 %v1758_v15, 0.0  ;;  %v1871_v22 = vmax.f32 %v1759_v11, 0.0  ;;  %v2808_v30 = vcombine.high %v2807_v7, %v2807_v7  ;;  %v2815_v8 = vrot.slane %v2807_v7, %v21575_v2 }
 0x177   :  { %v20175_v35 = vpack.c.bf16 %v1981_v21, %v1980_v19  ;;  %v1593_v45 = vpop.f32.mrf.mxu0  ;;  %v3912_v43 = vrot.slane %v3902_v13, %v21575_v2  ;;  %v3919_v18 = vrot.slane %v19676_v34, %v21575_v2  ;;  %v2375_v46 = vrot.slane %v2373_v16, 5  ;;  %v21621_v6 = vld [vmem:[#allocation2 + $0x28] sm:$0xff] }
 0x178   :  { %v1982_v37 = vcombine.low %v1870_v50, %v1871_v22  ;;  %v1983_v49 = vcombine.high %v1870_v50, %v1871_v22  ;;  %v1760_v9 = vcombine.low %v1591_v32, %v1593_v45  ;;  %v1761_v58 = vcombine.high %v1591_v32, %v1593_v45 }
 0x179   :  { %v1597_v14 = vpop.f32.mrf.mxu0  ;;  %2284 = vst.msk [vmem:[#allocation2 + $0x40] sm:$0xff] %vm21551_vm9, %v20175_v35  ;;  %v2822_v54 = vrot.slane %v2808_v30, %v21575_v2  ;;  %v3935_v52 = vcombine.high %v3912_v43, %v3919_v18  ;;  %v3934_v1 = vcombine.low %v3912_v43, %v3919_v18  ;;  %v2376_v24 = vsel %vm21570_vm15, %v21592_v55, %v2375_v46 }
 0x17a   :  { %v20176_v31 = vpack.c.bf16 %v1983_v49, %v1982_v37  ;;  %v1872_v20 = vmax.f32 %v1760_v9, 0.0  ;;  %v1873_v4 = vmax.f32 %v1761_v58, 0.0  ;;  %v2377_v57 = vshrl.u32 %v21590_v29, 16 }
 0x17b   :  { %v1599_v36 = vpop.f32.mrf.mxu0  ;;  %v3904_v26 = vcombine.low %v2815_v8, %v2822_v54  ;;  %v19677_v23 = vcombine.high %v2815_v8, %v2822_v54  ;;  %v3951_v12 = vrot.slane %v3935_v52, %v21575_v2  ;;  %v3944_v0 = vrot.slane %v3934_v1, %v21575_v2 }
 0x17c   :  { %v1984_v47 = vcombine.low %v1872_v20, %v1873_v4  ;;  %v1985_v63 = vcombine.high %v1872_v20, %v1873_v4  ;;  %2285 = vst.msk [vmem:[#allocation2 + $0x48] sm:$0xff] %vm21551_vm9, %v20176_v31  ;;  %v1762_v38 = vcombine.low %v1597_v14, %v1599_v36  ;;  %v1763_v17 = vcombine.high %v1597_v14, %v1599_v36  ;;  %v21632_v37 = vld [vmem:[#allocation2 + $0x30] sm:$0xff] }
 0x17d   :  { %v1601_v42 = vpop.f32.mrf.mxu0  ;;  %v3926_v5 = vrot.slane %v3904_v26, %v21575_v2  ;;  %v3933_v40 = vrot.slane %v19677_v23, %v21575_v2  ;;  %v2379_v53 = vrot.slane %v2377_v57, 4  ;;  %v2383_v3 = vshrl.u32 %v21611_v56, 16 }
 0x17e   :  { %v20177_v41 = vpack.c.bf16 %v1985_v63, %v1984_v47  ;;  %v1874_v33 = vmax.f32 %v1762_v38, 0.0  ;;  %v1875_v61 = vmax.f32 %v1763_v17, 0.0  ;;  %v2386_v44 = vshll.u32 %v21611_v56, 16 }
 0x17f   :  { %v1603_v27 = vpop.f32.mrf.mxu0  ;;  %v3937_v39 = vcombine.high %v3926_v5, %v3933_v40  ;;  %v3936_v55 = vcombine.low %v3926_v5, %v3933_v40  ;;  %v2380_v60 = vor.u32 %v2379_v53, %v2375_v46  ;;  %v2385_v59 = vrot.slane %v2383_v3, 4 }
 0x180   :  { %2286 = vst.msk [vmem:[#allocation2 + $0x50] sm:$0xff] %vm21551_vm9, %v20177_v41  ;;  %v1986_v15 = vcombine.high %v1874_v33, %v1874_v33  ;;  %v1764_v11 = vcombine.low %v1601_v42, %v1603_v27  ;;  %v1765_v7 = vcombine.high %v1601_v42, %v1603_v27  ;;  %v2388_v16 = vrot.slane %v2386_v44, 5 }
 0x181   :  { %v1607_v19 = vpop.f32.mrf.mxu0  ;;  %v3965_v21 = vrot.slane %v3937_v39, %v21575_v2  ;;  %v3958_v32 = vrot.slane %v3936_v55, %v21575_v2  ;;  %v2381_v13 = vrot.slane %v2380_v60, 4  ;;  %v2392_v34 = vshll.u32 %v21621_v6, 16 }
 0x182   :  { %v20178_v50 = vpack.c.bf16 %v1986_v15, %v1874_v33  ;;  %v1876_v22 = vmax.f32 %v1764_v11, 0.0  ;;  %v1877_v30 = vmax.f32 %v1765_v7, 0.0  ;;  %v2389_v8 = vor.u32 %v2388_v16, %v2385_v59 }
 0x183   :  { %v1609_v35 = vpop.f32.mrf.mxu0  ;;  %v3967_v45 = vcombine.low %v3951_v12, %v3965_v21  ;;  %v3966_v43 = vcombine.low %v3944_v0, %v3958_v32  ;;  %v21629_v18 = vrot.slane %v2392_v34, 5  ;;  %v2689_v46 = vadd.bf16 %v2376_v24, %v21577_v48 }
 0x184   :  { %2287 = vst.msk [vmem:[#allocation2 + $0x58] sm:$0x33] %vm21562_vm12, %v20178_v50  ;;  %v1987_v49 = vcombine.low %v1875_v61, %v1876_v22  ;;  %v1988_v9 = vcombine.high %v1875_v61, %v1876_v22  ;;  %v1766_v58 = vcombine.low %v1607_v19, %v1609_v35  ;;  %v1767_v14 = vcombine.high %v1607_v19, %v1609_v35 }
 0x185   :  { %19695 = vmatprep.mubr.msk.bf16.mxu1 %vm5059_vm1, %v3967_v45  ;;  %v1611_v54 = vpop.f32.mrf.mxu0  ;;  %v2390_v52 = vrot.slane %v2389_v8, 4  ;;  %v2690_v1 = vadd.bf16 %v2381_v13, %v21590_v29  ;;  %v2831_v31 = vrot.slane %v2689_v46, %v21575_v2  ;;  %v2396_v20 = vshrl.u32 %v21621_v6, 16 }
 0x186   :  { %v20179_v48 = vpack.c.bf16 %v1988_v9, %v1987_v49  ;;  %v1878_v24 = vmax.f32 %v1766_v58, 0.0  ;;  %v1879_v4 = vmax.f32 %v1767_v14, 0.0  ;;  %5138 = vmatmul.mubr.bf16.vlgmr.msra.gmra.mxu1 %v3966_v43  ;;  %v2402_v57 = vshll.u32 %v21632_v37, 16 }
 0x187   :  { %v1613_v36 = vpop.f32.mrf.mxu0  ;;  %v2395_v26 = vsel %vm21570_vm15, %v2390_v52, %v21629_v18  ;;  %v2832_v23 = vcombine.high %v2831_v31, %v2831_v31  ;;  %v2839_v12 = vrot.slane %v2831_v31, %v21575_v2  ;;  %v2855_v29 = vrot.slane %v2690_v1, %v21575_v2 }
 0x188   :  { %2288 = vst.msk [vmem:[#allocation2 + $0x60] sm:$0xff] %vm21551_vm9, %v20179_v48  ;;  %v1989_v0 = vcombine.low %v1877_v30, %v1878_v24  ;;  %v1990_v47 = vcombine.high %v1877_v30, %v1878_v24  ;;  %v1768_v63 = vcombine.low %v1611_v54, %v1613_v36  ;;  %v1769_v38 = vcombine.high %v1611_v54, %v1613_v36 }
 0x189   :  { %v1617_v17 = vpop.f32.mrf.mxu0  ;;  %v2691_v42 = vadd.bf16 %v2395_v26, %v21611_v56  ;;  %v2846_v5 = vrot.slane %v2832_v23, %v21575_v2  ;;  %v2856_v40 = vcombine.high %v2855_v29, %v2855_v29  ;;  %v2863_v53 = vrot.slane %v2855_v29, %v21575_v2 }
 0x18a   :  { %v20180_v3 = vpack.c.bf16 %v1990_v47, %v1989_v0  ;;  %v1880_v41 = vmax.f32 %v1768_v63, 0.0  ;;  %v1881_v33 = vmax.f32 %v1769_v38, 0.0  ;;  %v2398_v61 = vrot.slane %v2396_v20, 4 }
 0x18b   :  { %v1619_v44 = vpop.f32.mrf.mxu0  ;;  %v2870_v27 = vrot.slane %v2856_v40, %v21575_v2  ;;  %v2877_v39 = vrot.slane %v2691_v42, %v21575_v2  ;;  %v3968_v55 = vcombine.low %v2839_v12, %v2846_v5  ;;  %v19678_v60 = vcombine.high %v2839_v12, %v2846_v5 }
 0x18c   :  { %2289 = vst.msk [vmem:[#allocation2 + $0x68] sm:$0xff] %vm21551_vm9, %v20180_v3  ;;  %v1991_v56 = vcombine.low %v1879_v4, %v1880_v41  ;;  %v1992_v59 = vcombine.high %v1879_v4, %v1880_v41  ;;  %v1993_v15 = vcombine.high %v1881_v33, %v1881_v33  ;;  %v1770_v11 = vcombine.low %v1617_v17, %v1619_v44 }
 0x18d   :  { %v1771_v7 = vcombine.high %v1617_v17, %v1619_v44  ;;  %v1621_v16 = vpop.f32.mrf.mxu0  ;;  %v2878_v19 = vcombine.high %v2877_v39, %v2877_v39  ;;  %v2885_v21 = vrot.slane %v2877_v39, %v21575_v2  ;;  %v3978_v32 = vrot.slane %v3968_v55, %v21575_v2  ;;  %v21668_v17 = vld [vmem:[#allocation2 + $0x38] sm:$0x33] }
 0x18e   :  { %v20181_v13 = vpack.c.bf16 %v1992_v59, %v1991_v56  ;;  %v20182_v34 = vpack.c.bf16 %v1993_v15, %v1881_v33  ;;  %v1882_v50 = vmax.f32 %v1770_v11, 0.0  ;;  %v3985_v22 = vrot.slane %v19678_v60, %v21575_v2 }
 0x18f   :  { %v1883_v30 = vmax.f32 %v1771_v7, 0.0  ;;  %v1623_v8 = vpop.f32.mrf.mxu0  ;;  %v2892_v35 = vrot.slane %v2878_v19, %v21575_v2  ;;  %v21659_v45 = vcombine.high %v2885_v21, %v2885_v21  ;;  %v3557_v43 = vunpack.i.h.s16 %v2885_v21 }
 0x190   :  { %2290 = vst.msk [vmem:[#allocation2 + $0x70] sm:$0xff] %vm21551_vm9, %v20181_v13  ;;  %v1772_v46 = vcombine.low %v1621_v16, %v1623_v8  ;;  %v1773_v49 = vcombine.high %v1621_v16, %v1623_v8  ;;  %v19620_v9 = vpack.i.b16 %v2885_v21, %v2870_v27  ;;  %v4001_v58 = vcombine.high %v3978_v32, %v3985_v22 }
 0x191   :  { %2291 = vst.msk [vmem:[#allocation2 + $0x78] sm:$0x33] %vm21562_vm12, %v20182_v34  ;;  %v1994_v14 = vcombine.low %v1882_v50, %v1883_v30  ;;  %v1995_v54 = vcombine.high %v1882_v50, %v1883_v30  ;;  %v1627_v52 = vpop.f32.mrf.mxu0  ;;  %v3559_v1 = vunpack.i.h.s16 %v2892_v35  ;;  %v19621_v31 = vpack.i.b16 %v2892_v35, %v3557_v43 }
 0x192   :  { %v1884_v20 = vmax.f32 %v1772_v46, 0.0  ;;  %v1885_v48 = vmax.f32 %v1773_v49, 0.0  ;;  %v3970_v24 = vcombine.low %v2863_v53, %v19620_v9  ;;  %v4017_v4 = vrot.slane %v4001_v58, %v21575_v2 }
 0x193   :  { %v20183_v36 = vpack.c.bf16 %v1995_v54, %v1994_v14  ;;  %v1629_v26 = vpop.f32.mrf.mxu0  ;;  %v19622_v23 = vpack.i.b16 %v21659_v45, %v3559_v1  ;;  %v4000_v12 = vcombine.low %v3978_v32, %v3985_v22  ;;  %v2399_v29 = vor.u32 %v2398_v61, %v21629_v18 }
 0x194   :  { %v1996_v0 = vcombine.low %v1884_v20, %v1885_v48  ;;  %v1997_v47 = vcombine.high %v1884_v20, %v1885_v48  ;;  %v1774_v63 = vcombine.low %v1627_v52, %v1629_v26  ;;  %v1775_v38 = vcombine.high %v1627_v52, %v1629_v26 }
 0x195   :  { %2292 = vst.msk [vmem:[#allocation2 + $0x80] sm:$0xff] %vm21551_vm9, %v20183_v36  ;;  %v3971_v42 = vcombine.low %v19621_v31, %v19622_v23  ;;  %v3992_v5 = vrot.slane %v3970_v24, %v21575_v2  ;;  %v4010_v40 = vrot.slane %v4000_v12, %v21575_v2  ;;  %v1631_v53 = vpop.f32.mrf.mxu0  ;;  %v2400_v3 = vrot.slane %v2399_v29, 4  ;;  %v21701_v23 = vld [vmem:[#allocation2 + $0x40] sm:$0xff] }
 0x196   :  { %v20184_v41 = vpack.c.bf16 %v1997_v47, %v1996_v0  ;;  %v1886_v33 = vmax.f32 %v1774_v63, 0.0  ;;  %v1887_v44 = vmax.f32 %v1775_v38, 0.0  ;;  %v2404_v18 = vrot.slane %v2402_v57, 5 }
 0x197   :  { %v3999_v61 = vrot.slane %v3971_v42, %v21575_v2  ;;  %v1633_v27 = vpop.f32.mrf.mxu0  ;;  %v2406_v39 = vshrl.u32 %v21632_v37, 16  ;;  %v2412_v55 = vshll.u32 %v21668_v17, 16  ;;  %v2894_v60 = vcombine.high %v2892_v35, %v2892_v35 }
 0x198   :  { %2293 = vst.msk [vmem:[#allocation2 + $0x88] sm:$0xff] %vm21551_vm9, %v20184_v41  ;;  %v1998_v56 = vcombine.low %v1886_v33, %v1887_v44  ;;  %v1999_v59 = vcombine.high %v1886_v33, %v1887_v44  ;;  %v1776_v15 = vcombine.low %v1631_v53, %v1633_v27  ;;  %v1777_v11 = vcombine.high %v1631_v53, %v1633_v27 }
 0x199   :  { %v4003_v7 = vcombine.high %v3992_v5, %v3999_v61  ;;  %v4002_v16 = vcombine.low %v3992_v5, %v3999_v61  ;;  %v1637_v19 = vpop.f32.mrf.mxu0  ;;  %v2405_v57 = vsel %vm21570_vm15, %v2400_v3, %v2404_v18  ;;  %v2408_v21 = vrot.slane %v2406_v39, 4 }
 0x19a   :  { %v20185_v32 = vpack.c.bf16 %v1999_v59, %v1998_v56  ;;  %v1888_v13 = vmax.f32 %v1776_v15, 0.0  ;;  %v1889_v34 = vmax.f32 %v1777_v11, 0.0  ;;  %v21683_v50 = vrot.slane %v2412_v55, 5 }
 0x19b   :  { %v4031_v22 = vrot.slane %v4003_v7, %v21575_v2  ;;  %v4024_v30 = vrot.slane %v4002_v16, %v21575_v2  ;;  %v1639_v8 = vpop.f32.mrf.mxu0  ;;  %v2409_v35 = vor.u32 %v2408_v21, %v2404_v18  ;;  %v2692_v43 = vadd.bf16 %v2405_v57, %v21621_v6  ;;  %v2317_v16 = vld [vmem:[#allocation2 + $0x48] sm:$0xff] }
 0x19c   :  { %2294 = vst.msk [vmem:[#allocation2 + $0x90] sm:$0xff] %vm21551_vm9, %v20185_v32  ;;  %v2000_v46 = vcombine.high %v1888_v13, %v1888_v13  ;;  %v1778_v49 = vcombine.low %v1637_v19, %v1639_v8  ;;  %v1779_v9 = vcombine.high %v1637_v19, %v1639_v8  ;;  %v3561_v58 = vunpack.i.h.s16 %v21659_v45 }
 0x19d   :  { %v4033_v14 = vcombine.low %v4017_v4, %v4031_v22  ;;  %v4032_v54 = vcombine.low %v4010_v40, %v4024_v30  ;;  %v2410_v52 = vrot.slane %v2409_v35, 4  ;;  %v2901_v1 = vrot.slane %v2692_v43, %v21575_v2  ;;  %v21692_v31 = vpop.f32.mrf.mxu0 }
 0x19e   :  { %v20186_v20 = vpack.c.bf16 %v2000_v46, %v1888_v13  ;;  %v1890_v48 = vmax.f32 %v1778_v49, 0.0  ;;  %v21694_v24 = vmax.f32 %v1779_v9, 0.0  ;;  %v3563_v6 = vunpack.i.h.s16 %v2894_v60 }
 0x19f   :  { %19696 = vmatprep.mubr.msk.bf16.mxu1 %vm5059_vm1, %v4033_v14  ;;  %v2415_v36 = vsel %vm21570_vm15, %v2410_v52, %v21683_v50  ;;  %v2902_v26 = vcombine.high %v2901_v1, %v2901_v1  ;;  %v2909_v45 = vrot.slane %v2901_v1, %v21575_v2  ;;  %v19623_v4 = vpack.i.b16 %v2894_v60, %v3561_v58  ;;  %v21703_v12 = vpop.f32.mrf.mxu0 }
 0x1a0   :  { %5146 = vmatmul.mubr.bf16.gmra.mxu1 %v4032_v54  ;;  %2295 = vst.msk [vmem:[#allocation2 + $0x98] sm:$0x33] %vm21562_vm12, %v20186_v20  ;;  %v2001_v29 = vcombine.low %v1889_v34, %v1890_v48  ;;  %v2002_v0 = vcombine.high %v1889_v34, %v1890_v48  ;;  %v2693_v47 = vadd.bf16 %v2415_v36, %v21632_v37  ;;  %v2416_v63 = vshrl.u32 %v21668_v17, 16  ;;  %v21722_v34 = vld [vmem:[#allocation2 + $0x50] sm:$0xff] }
 0x1a1   :  { %v2916_v38 = vrot.slane %v2902_v26, %v21575_v2  ;;  %v2917_v42 = vcombine.high %v2909_v45, %v2909_v45  ;;  %v3565_v5 = vunpack.i.h.s16 %v2909_v45  ;;  %v19624_v40 = vpack.i.b16 %v2909_v45, %v3563_v6  ;;  %v21710_v53 = vpop.f32.mrf.mxu0 }
 0x1a2   :  { %v20187_v3 = vpack.c.bf16 %v2002_v0, %v2001_v29  ;;  %v2925_v41 = vrot.slane %v2693_v47, %v21575_v2  ;;  %v2418_v33 = vrot.slane %v2416_v63, 4  ;;  %v2422_v44 = vshrl.u32 %v21701_v23, 16 }
 0x1a3   :  { %v2918_v18 = vcombine.high %v2916_v38, %v2916_v38  ;;  %v3567_v61 = vunpack.i.h.s16 %v2916_v38  ;;  %v3569_v27 = vunpack.i.h.s16 %v2917_v42  ;;  %v19625_v39 = vpack.i.b16 %v2916_v38, %v3565_v5  ;;  %v21718_v59 = vpop.f32.mrf.mxu0 }
 0x1a4   :  { %2296 = vst.msk [vmem:[#allocation2 + $0xa0] sm:$0xff] %vm21551_vm9, %v20187_v3  ;;  %v2926_v37 = vcombine.high %v2925_v41, %v2925_v41  ;;  %v2933_v55 = vrot.slane %v2925_v41, %v21575_v2  ;;  %v4034_v60 = vcombine.low %v19623_v4, %v19624_v40  ;;  %v2419_v56 = vor.u32 %v2418_v33, %v21683_v50 }
 0x1a5   :  { %v3571_v15 = vunpack.i.h.s16 %v2918_v18  ;;  %v19626_v11 = vpack.i.b16 %v2917_v42, %v3567_v61  ;;  %v19627_v7 = vpack.i.b16 %v2918_v18, %v3569_v27  ;;  %v2424_v19 = vrot.slane %v2422_v44, 4  ;;  %v21725_v9 = vpop.f32.mrf.mxu0 }
 0x1a6   :  { %v2940_v57 = vrot.slane %v2926_v37, %v21575_v2  ;;  %v2941_v21 = vcombine.high %v2933_v55, %v2933_v55  ;;  %v3573_v32 = vunpack.i.h.s16 %v2933_v55  ;;  %v4044_v13 = vrot.slane %v4034_v60, %v21575_v2 }
 0x1a7   :  { %v19628_v22 = vpack.i.b16 %v2933_v55, %v3571_v15  ;;  %v4035_v30 = vcombine.low %v19625_v39, %v19626_v11  ;;  %v2420_v8 = vrot.slane %v2419_v56, 4  ;;  %v2425_v50 = vshll.u32 %v21701_v23, 16  ;;  %v21733_v38 = vpop.f32.mrf.mxu0 }
 0x1a8   :  { %v3575_v35 = vunpack.i.h.s16 %v2940_v57  ;;  %v19629_v43 = vpack.i.b16 %v2940_v57, %v3573_v32  ;;  %v2431_v46 = vshll.u32 %v2317_v16, 16  ;;  %v2435_v49 = vshrl.u32 %v2317_v16, 16 }
 0x1a9   :  { %v4036_v58 = vcombine.low %v19627_v7, %v19628_v22  ;;  %v4051_v14 = vrot.slane %v4035_v30, %v21575_v2  ;;  %v2427_v54 = vrot.slane %v2425_v50, 5  ;;  %v2441_v52 = vshll.u32 %v21722_v34, 16  ;;  %v21748_v15 = vpop.f32.mrf.mxu0 }
 0x1aa   :  { %v19630_v1 = vpack.i.b16 %v2941_v21, %v3575_v35  ;;  %v2433_v20 = vrot.slane %v2431_v46, 5  ;;  %v2437_v48 = vrot.slane %v2435_v49, 4  ;;  %v2694_v6 = vadd.bf16 %v2420_v8, %v21668_v17 }
 0x1ab   :  { %v4058_v36 = vrot.slane %v4036_v58, %v21575_v2  ;;  %v4067_v26 = vcombine.high %v4044_v13, %v4051_v14  ;;  %v4066_v45 = vcombine.low %v4044_v13, %v4051_v14  ;;  %v2428_v4 = vor.u32 %v2427_v54, %v2424_v19  ;;  %v21760_v49 = vpop.f32.mrf.mxu0 }
 0x1ac   :  { %v4037_v29 = vcombine.low %v19629_v43, %v19630_v1  ;;  %v2438_v0 = vor.u32 %v2437_v48, %v2433_v20  ;;  %v21731_v47 = vrot.slane %v2441_v52, 5  ;;  %v2942_v63 = vcombine.high %v2940_v57, %v2940_v57  ;;  %v21770_v48 = vld [vmem:[#allocation2 + $0x58] sm:$0x33] }
 0x1ad   :  { %v4083_v42 = vrot.slane %v4067_v26, %v21575_v2  ;;  %v4076_v5 = vrot.slane %v4066_v45, %v21575_v2  ;;  %v2429_v40 = vrot.slane %v2428_v4, 4  ;;  %v2949_v3 = vrot.slane %v2694_v6, %v21575_v2 }
 0x1ae   :  { %v4065_v17 = vrot.slane %v4037_v29, %v21575_v2  ;;  %v2439_v41 = vrot.slane %v2438_v0, 4  ;;  %v3577_v33 = vunpack.i.h.s16 %v2941_v21  ;;  %v3579_v44 = vunpack.i.h.s16 %v2942_v63 }
 0x1af   :  { %v2434_v18 = vsel %vm21570_vm15, %v2429_v40, %v2433_v20  ;;  %v2950_v61 = vcombine.high %v2949_v3, %v2949_v3  ;;  %v2957_v27 = vrot.slane %v2949_v3, %v21575_v2  ;;  %v1780_v39 = vcombine.low %v21692_v31, %v21703_v12 }
 0x1b0   :  { %v4069_v37 = vcombine.high %v4058_v36, %v4065_v17  ;;  %v4068_v55 = vcombine.low %v4058_v36, %v4065_v17  ;;  %v2444_v60 = vsel %vm21570_vm15, %v2439_v41, %v21731_v47  ;;  %v2695_v56 = vadd.bf16 %v2434_v18, %v21701_v23 }
 0x1b1   :  { %v2696_v11 = vadd.bf16 %v2444_v60, %v2317_v16  ;;  %v2964_v7 = vrot.slane %v2950_v61, %v21575_v2  ;;  %v3581_v19 = vunpack.i.h.s16 %v2957_v27  ;;  %v19631_v57 = vpack.i.b16 %v2942_v63, %v3577_v33 }
 0x1b2   :  { %v4097_v21 = vrot.slane %v4069_v37, %v21575_v2  ;;  %v4090_v32 = vrot.slane %v4068_v55, %v21575_v2  ;;  %v2971_v13 = vrot.slane %v2695_v56, %v21575_v2  ;;  %v19632_v22 = vpack.i.b16 %v2957_v27, %v3579_v44 }
 0x1b3   :  { %v21755_v30 = vrot.slane %v2696_v11, %v21575_v2  ;;  %v19633_v8 = vpack.i.b16 %v2964_v7, %v3581_v19  ;;  %v1781_v23 = vcombine.high %v21692_v31, %v21703_v12  ;;  %v1892_v50 = vmax.f32 %v1780_v39, 0.0 }
 0x1b4   :  { %v4099_v16 = vcombine.low %v4083_v42, %v4097_v21  ;;  %v4098_v35 = vcombine.low %v4076_v5, %v4090_v32  ;;  %v2972_v43 = vcombine.high %v2971_v13, %v2971_v13  ;;  %v2979_v46 = vrot.slane %v2971_v13, %v21575_v2  ;;  %v21779_v42 = vpop.f32.mrf.mxu0 }
 0x1b5   :  { %v21764_v58 = vrot.slane %v21755_v30, %v21575_v2  ;;  %v4100_v14 = vcombine.low %v19631_v57, %v19632_v22  ;;  %v1893_v54 = vmax.f32 %v1781_v23, 0.0  ;;  %v2003_v52 = vcombine.low %v21694_v24, %v1892_v50 }
 0x1b6   :  { %19697 = vmatprep.mubr.msk.bf16.mxu1 %vm5059_vm1, %v4099_v16  ;;  %v2986_v31 = vrot.slane %v2972_v43, %v21575_v2  ;;  %v2987_v12 = vcombine.high %v2979_v46, %v2979_v46  ;;  %v4101_v1 = vcombine.low %v19633_v8, %v2979_v46  ;;  %v2004_v20 = vcombine.high %v21694_v24, %v1892_v50  ;;  %v1663_v60 = vpop.f32.mrf.mxu0 }
 0x1b7   :  { %5154 = vmatmul.mubr.bf16.gmra.mxu1 %v4098_v35  ;;  %v4110_v6 = vrot.slane %v4100_v14, %v21575_v2  ;;  %v1782_v36 = vcombine.low %v21710_v53, %v21718_v59  ;;  %v1783_v26 = vcombine.high %v21710_v53, %v21718_v59  ;;  %v2445_v45 = vshrl.u32 %v21722_v34, 16 }
 0x1b8   :  { %v2988_v4 = vcombine.high %v2986_v31, %v2986_v31  ;;  %v4102_v29 = vcombine.low %v2986_v31, %v2987_v12  ;;  %v4117_v0 = vrot.slane %v4101_v1, %v21575_v2  ;;  %v20188_v63 = vpack.c.bf16 %v2004_v20, %v2003_v52  ;;  %v1667_v43 = vpop.f32.mrf.mxu0 }
 0x1b9   :  { %v1894_v24 = vmax.f32 %v1782_v36, 0.0  ;;  %v1895_v5 = vmax.f32 %v1783_v26, 0.0  ;;  %v2447_v40 = vrot.slane %v2445_v45, 4  ;;  %v2451_v3 = vshll.u32 %v21770_v48, 16 }
 0x1ba   :  { %v4103_v17 = vcombine.low %v2988_v4, %v21764_v58  ;;  %v4124_v41 = vrot.slane %v4102_v29, %v21575_v2  ;;  %v4133_v33 = vcombine.high %v4110_v6, %v4117_v0  ;;  %2297 = vst.msk [vmem:[#allocation2 + $0xa8] sm:$0xff] %vm21551_vm9, %v20188_v63  ;;  %v4132_v53 = vcombine.low %v4110_v6, %v4117_v0  ;;  %v1669_v4 = vpop.f32.mrf.mxu0 }
 0x1bb   :  { %v2005_v59 = vcombine.low %v1893_v54, %v1894_v24  ;;  %v2006_v44 = vcombine.high %v1893_v54, %v1894_v24  ;;  %v2007_v18 = vcombine.high %v1895_v5, %v1895_v5  ;;  %v2448_v61 = vor.u32 %v2447_v40, %v21731_v47 }
 0x1bc   :  { %v4131_v27 = vrot.slane %v4103_v17, %v21575_v2  ;;  %v4149_v39 = vrot.slane %v4133_v33, %v21575_v2  ;;  %v4142_v37 = vrot.slane %v4132_v53, %v21575_v2  ;;  %v2453_v55 = vrot.slane %v2451_v3, 5 }
 0x1bd   :  { %v20189_v56 = vpack.c.bf16 %v2006_v44, %v2005_v59  ;;  %v20190_v11 = vpack.c.bf16 %v2007_v18, %v1895_v5  ;;  %v2449_v7 = vrot.slane %v2448_v61, 4  ;;  %v2455_v19 = vshrl.u32 %v21770_v48, 16 }
 0x1be   :  { %v4135_v57 = vcombine.high %v4124_v41, %v4131_v27  ;;  %v4134_v21 = vcombine.low %v4124_v41, %v4131_v27  ;;  %v2996_v32 = vcombine.high %v21755_v30, %v21755_v30  ;;  %v3011_v47 = vcombine.high %v21764_v58, %v21764_v58 }
 0x1bf   :  { %2298 = vst.msk [vmem:[#allocation2 + $0xb0] sm:$0xff] %vm21551_vm9, %v20189_v56  ;;  %v2454_v13 = vsel %vm21570_vm15, %v2449_v7, %v2453_v55  ;;  %v2457_v22 = vrot.slane %v2455_v19, 4  ;;  %v1784_v8 = vcombine.low %v21725_v9, %v21733_v38  ;;  %v1785_v23 = vcombine.high %v21725_v9, %v21733_v38  ;;  %v2320_v7 = vld [vmem:[#allocation2 + $0x60] sm:$0xff]  ;;  %v1671_v19 = vpop.f32.mrf.mxu0 }
 0x1c0   :  { %2299 = vst.msk [vmem:[#allocation2 + $0xb8] sm:$0x33] %vm21562_vm12, %v20190_v11  ;;  %v4163_v30 = vrot.slane %v4135_v57, %v21575_v2  ;;  %v4156_v50 = vrot.slane %v4134_v21, %v21575_v2  ;;  %v2697_v16 = vadd.bf16 %v2454_v13, %v21722_v34  ;;  %v3010_v35 = vrot.slane %v2996_v32, %v21575_v2  ;;  %v2321_v32 = vld [vmem:[#allocation2 + $0x68] sm:$0xff] }
 0x1c1   :  { %v2458_v46 = vor.u32 %v2457_v22, %v2453_v55  ;;  %v1896_v58 = vmax.f32 %v1784_v8, 0.0  ;;  %v1897_v14 = vmax.f32 %v1785_v23, 0.0  ;;  %v1786_v54 = vcombine.low %v21748_v15, %v21760_v49 }
 0x1c2   :  { %v4165_v52 = vcombine.low %v4149_v39, %v4163_v30  ;;  %v4164_v31 = vcombine.low %v4142_v37, %v4156_v50  ;;  %v3012_v12 = vcombine.high %v3010_v35, %v3010_v35  ;;  %v3019_v9 = vrot.slane %v2697_v16, %v21575_v2 }
 0x1c3   :  { %v2459_v38 = vrot.slane %v2458_v46, 4  ;;  %v4166_v1 = vcombine.low %v3010_v35, %v3011_v47  ;;  %v2008_v20 = vcombine.low %v1896_v58, %v1897_v14  ;;  %v2009_v6 = vcombine.high %v1896_v58, %v1897_v14  ;;  %v21827_v47 = vld [vmem:[#allocation2 + $0x70] sm:$0xff] }
 0x1c4   :  { %19698 = vmatprep.mubr.msk.bf16.mxu1 %vm5059_vm1, %v4165_v52  ;;  %v3020_v34 = vcombine.high %v3019_v9, %v3019_v9  ;;  %v3027_v36 = vrot.slane %v3019_v9, %v21575_v2  ;;  %v1787_v26 = vcombine.high %v21748_v15, %v21760_v49  ;;  %v1898_v45 = vmax.f32 %v1786_v54, 0.0  ;;  %v1673_v54 = vpop.f32.mrf.mxu0 }
 0x1c5   :  { %5162 = vmatmul.mubr.bf16.gmra.mxu1 %v4164_v31  ;;  %v2698_v29 = vadd.bf16 %v2459_v38, %v21770_v48  ;;  %v4176_v0 = vrot.slane %v4166_v1, %v21575_v2  ;;  %v20191_v63 = vpack.c.bf16 %v2009_v6, %v2008_v20  ;;  %v1788_v24 = vcombine.low %v21779_v42, %v1663_v60 }
 0x1c6   :  { %v3034_v5 = vrot.slane %v3020_v34, %v21575_v2  ;;  %v3035_v40 = vcombine.high %v3027_v36, %v3027_v36  ;;  %v4167_v3 = vcombine.low %v3012_v12, %v3027_v36  ;;  %v1899_v17 = vmax.f32 %v1787_v26, 0.0 }
 0x1c7   :  { %v3043_v41 = vrot.slane %v2698_v29, %v21575_v2  ;;  %2300 = vst.msk [vmem:[#allocation2 + $0xc0] sm:$0xff] %vm21551_vm9, %v20191_v63  ;;  %v1789_v15 = vcombine.high %v21779_v42, %v1663_v60  ;;  %v1900_v49 = vmax.f32 %v1788_v24, 0.0  ;;  %v1790_v33 = vcombine.low %v1667_v43, %v1669_v4  ;;  %v21846_v24 = vpop.f32.mrf.mxu0 }
 0x1c8   :  { %v3036_v48 = vcombine.high %v3034_v5, %v3034_v5  ;;  %v4168_v53 = vcombine.low %v3034_v5, %v3035_v40  ;;  %v4183_v59 = vrot.slane %v4167_v3, %v21575_v2  ;;  %v2010_v44 = vcombine.low %v1898_v45, %v1899_v17 }
 0x1c9   :  { %v3051_v18 = vrot.slane %v3043_v41, %v21575_v2  ;;  %v2011_v61 = vcombine.high %v1898_v45, %v1899_v17  ;;  %v1901_v27 = vmax.f32 %v1789_v15, 0.0  ;;  %v1791_v39 = vcombine.high %v1667_v43, %v1669_v4  ;;  %v21841_v4 = vld [vmem:[#allocation2 + $0x78] sm:$0x33] }
 0x1ca   :  { %v4190_v37 = vrot.slane %v4168_v53, %v21575_v2  ;;  %v4199_v55 = vcombine.high %v4176_v0, %v4183_v59  ;;  %v4198_v56 = vcombine.low %v4176_v0, %v4183_v59  ;;  %v1902_v11 = vmax.f32 %v1790_v33, 0.0  ;;  %v21851_v33 = vld [vmem:[#allocation2 + $0x80] sm:$0xff] }
 0x1cb   :  { %v4169_v42 = vcombine.low %v3036_v48, %v3051_v18  ;;  %v20192_v60 = vpack.c.bf16 %v2011_v61, %v2010_v44  ;;  %v2012_v57 = vcombine.low %v1900_v49, %v1901_v27  ;;  %v2013_v21 = vcombine.high %v1900_v49, %v1901_v27  ;;  %v21857_v61 = vld [vmem:[#allocation2 + $0x88] sm:$0xff] }
 0x1cc   :  { %v4215_v13 = vrot.slane %v4199_v55, %v21575_v2  ;;  %v4208_v22 = vrot.slane %v4198_v56, %v21575_v2  ;;  %v1903_v8 = vmax.f32 %v1791_v39, 0.0  ;;  %v2014_v23 = vcombine.high %v1902_v11, %v1902_v11 }
 0x1cd   :  { %v4197_v30 = vrot.slane %v4169_v42, %v21575_v2  ;;  %2301 = vst.msk [vmem:[#allocation2 + $0xc8] sm:$0xff] %vm21551_vm9, %v20192_v60  ;;  %v20193_v50 = vpack.c.bf16 %v2013_v21, %v2012_v57  ;;  %v2461_v16 = vshrl.u32 %v2320_v7, 16  ;;  %v2464_v35 = vshll.u32 %v2320_v7, 16 }
 0x1ce   :  { %v20194_v43 = vpack.c.bf16 %v2014_v23, %v1902_v11  ;;  %v2470_v46 = vshll.u32 %v2321_v32, 16  ;;  %v2474_v58 = vshrl.u32 %v2321_v32, 16  ;;  %v2480_v14 = vshll.u32 %v21827_v47, 16  ;;  %v21862_v11 = vpop.f32.mrf.mxu0 }
 0x1cf   :  { %v4201_v52 = vcombine.high %v4190_v37, %v4197_v30  ;;  %v4200_v31 = vcombine.low %v4190_v37, %v4197_v30  ;;  %2302 = vst.msk [vmem:[#allocation2 + $0xd0] sm:$0xff] %vm21551_vm9, %v20193_v50  ;;  %v2463_v12 = vrot.slane %v2461_v16, 4  ;;  %v2466_v9 = vrot.slane %v2464_v35, 5 }
 0x1d0   :  { %2303 = vst.msk [vmem:[#allocation2 + $0xd8] sm:$0x33] %vm21562_vm12, %v20194_v43  ;;  %v2472_v38 = vrot.slane %v2470_v46, 5  ;;  %v2476_v1 = vrot.slane %v2474_v58, 4  ;;  %v2482_v20 = vrot.slane %v2480_v14, 5  ;;  %v3044_v6 = vcombine.high %v3043_v41, %v3043_v41 }
 0x1d1   :  { %v4229_v34 = vrot.slane %v4201_v52, %v21575_v2  ;;  %v4222_v36 = vrot.slane %v4200_v31, %v21575_v2  ;;  %v2467_v26 = vor.u32 %v2466_v9, %v2463_v12  ;;  %v1792_v45 = vcombine.low %v1671_v19, %v1673_v54 }
 0x1d2   :  { %v2477_v29 = vor.u32 %v2476_v1, %v2472_v38  ;;  %v21844_v0 = vrot.slane %v3044_v6, %v21575_v2  ;;  %v1793_v63 = vcombine.high %v1671_v19, %v1673_v54  ;;  %v2484_v5 = vshrl.u32 %v21827_v47, 16 }
 0x1d3   :  { %v4231_v40 = vcombine.low %v4215_v13, %v4229_v34  ;;  %v4230_v3 = vcombine.low %v4208_v22, %v4222_v36  ;;  %v2468_v17 = vrot.slane %v2467_v26, 4  ;;  %v1904_v41 = vmax.f32 %v1792_v45, 0.0 }
 0x1d4   :  { %v2478_v15 = vrot.slane %v2477_v29, 4  ;;  %v21849_v49 = vmax.f32 %v1793_v63, 0.0  ;;  %v2486_v48 = vrot.slane %v2484_v5, 4  ;;  %v2490_v53 = vshll.u32 %v21841_v4, 16 }
 0x1d5   :  { %19699 = vmatprep.mubr.msk.bf16.mxu1 %vm5059_vm1, %v4231_v40  ;;  %v2473_v59 = vsel %vm21570_vm15, %v2468_v17, %v2472_v38  ;;  %v2015_v44 = vcombine.low %v1903_v8, %v1904_v41  ;;  %v2016_v18 = vcombine.high %v1903_v8, %v1904_v41  ;;  %v2494_v27 = vshrl.u32 %v21841_v4, 16 }
 0x1d6   :  { %5170 = vmatmul.mubr.bf16.gmra.mxu1 %v4230_v3  ;;  %v2483_v39 = vsel %vm21570_vm15, %v2478_v15, %v2482_v20  ;;  %v2699_v37 = vadd.bf16 %v2473_v59, %v2320_v7  ;;  %v2487_v55 = vor.u32 %v2486_v48, %v2482_v20  ;;  %v2492_v56 = vrot.slane %v2490_v53, 5 }
 0x1d7   :  { %v2700_v19 = vadd.bf16 %v2483_v39, %v2321_v32  ;;  %v20195_v42 = vpack.c.bf16 %v2016_v18, %v2015_v44  ;;  %v2496_v60 = vrot.slane %v2494_v27, 4  ;;  %v2500_v57 = vshrl.u32 %v21851_v33, 16 }
 0x1d8   :  { %v3065_v21 = vrot.slane %v2699_v37, %v21575_v2  ;;  %v2488_v13 = vrot.slane %v2487_v55, 4  ;;  %v2503_v22 = vshll.u32 %v21851_v33, 16  ;;  %v2509_v8 = vshll.u32 %v21857_v61, 16 }
 0x1d9   :  { %v3089_v23 = vrot.slane %v2700_v19, %v21575_v2  ;;  %2304 = vst.msk [vmem:[#allocation2 + $0xe0] sm:$0xff] %vm21551_vm9, %v20195_v42  ;;  %v2497_v7 = vor.u32 %v2496_v60, %v2492_v56  ;;  %v2502_v30 = vrot.slane %v2500_v57, 4  ;;  %v1794_v32 = vcombine.low %v21846_v24, %v21862_v11 }
 0x1da   :  { %v3066_v50 = vcombine.high %v3065_v21, %v3065_v21  ;;  %v3073_v16 = vrot.slane %v3065_v21, %v21575_v2  ;;  %v2493_v35 = vsel %vm21570_vm15, %v2488_v13, %v2492_v56  ;;  %v2505_v43 = vrot.slane %v2503_v22, 5 }
 0x1db   :  { %v3090_v46 = vcombine.high %v3089_v23, %v3089_v23  ;;  %v3097_v58 = vrot.slane %v3089_v23, %v21575_v2  ;;  %v2498_v14 = vrot.slane %v2497_v7, 4  ;;  %v21877_v54 = vrot.slane %v2509_v8, 5 }
 0x1dc   :  { %v3080_v52 = vrot.slane %v3066_v50, %v21575_v2  ;;  %v3081_v31 = vcombine.high %v3073_v16, %v3073_v16  ;;  %v3611_v12 = vunpack.i.h.s16 %v3073_v16  ;;  %v19634_v9 = vpack.i.b16 %v3073_v16, %v21844_v0 }
 0x1dd   :  { %v3104_v38 = vrot.slane %v3090_v46, %v21575_v2  ;;  %v3105_v1 = vcombine.high %v3097_v58, %v3097_v58  ;;  %v3619_v20 = vunpack.i.h.s16 %v3097_v58  ;;  %v2506_v6 = vor.u32 %v2505_v43, %v2502_v30 }
 0x1de   :  { %v3082_v34 = vcombine.high %v3080_v52, %v3080_v52  ;;  %v3613_v36 = vunpack.i.h.s16 %v3080_v52  ;;  %v3615_v26 = vunpack.i.h.s16 %v3081_v31  ;;  %v19635_v45 = vpack.i.b16 %v3080_v52, %v3611_v12  ;;  %v1681_v52 = vpop.f32.mrf.mxu0 }
 0x1df   :  { %v3106_v29 = vcombine.high %v3104_v38, %v3104_v38  ;;  %v3621_v63 = vunpack.i.h.s16 %v3104_v38  ;;  %v3623_v5 = vunpack.i.h.s16 %v3105_v1  ;;  %v19639_v40 = vpack.i.b16 %v3104_v38, %v3619_v20 }
 0x1e0   :  { %v3617_v3 = vunpack.i.h.s16 %v3082_v34  ;;  %v19636_v17 = vpack.i.b16 %v3081_v31, %v3613_v36  ;;  %v19637_v41 = vpack.i.b16 %v3082_v34, %v3615_v26  ;;  %v4232_v15 = vcombine.low %v19634_v9, %v19635_v45 }
 0x1e1   :  { %v19640_v48 = vpack.i.b16 %v3105_v1, %v3621_v63  ;;  %v19641_v53 = vpack.i.b16 %v3106_v29, %v3623_v5  ;;  %v2507_v0 = vrot.slane %v2506_v6, 4  ;;  %v2701_v59 = vadd.bf16 %v2493_v35, %v21827_v47 }
 0x1e2   :  { %v19638_v44 = vpack.i.b16 %v3097_v58, %v3617_v3  ;;  %v4233_v18 = vcombine.low %v19636_v17, %v19637_v41  ;;  %v4242_v27 = vrot.slane %v4232_v15, %v21575_v2  ;;  %v2702_v39 = vadd.bf16 %v2498_v14, %v21841_v4  ;;  %v1683_v17 = vpop.f32.mrf.mxu0 }
 0x1e3   :  { %v4235_v37 = vcombine.low %v19640_v48, %v19641_v53  ;;  %v2512_v55 = vsel %vm21570_vm15, %v2507_v0, %v21877_v54  ;;  %v3113_v56 = vrot.slane %v2701_v59, %v21575_v2  ;;  %v3625_v19 = vunpack.i.h.s16 %v3106_v29 }
 0x1e4   :  { %v4234_v42 = vcombine.low %v19638_v44, %v19639_v40  ;;  %v4249_v60 = vrot.slane %v4233_v18, %v21575_v2  ;;  %v2703_v57 = vadd.bf16 %v2512_v55, %v21851_v33  ;;  %v3137_v47 = vrot.slane %v2702_v39, %v21575_v2 }
 0x1e5   :  { %v4263_v21 = vrot.slane %v4235_v37, %v21575_v2  ;;  %v3114_v13 = vcombine.high %v3113_v56, %v3113_v56  ;;  %v3121_v4 = vrot.slane %v3113_v56, %v21575_v2  ;;  %v1795_v22 = vcombine.high %v21846_v24, %v21862_v11  ;;  %v21917_v56 = vld [vmem:[#allocation2 + $0x90] sm:$0xff] }
 0x1e6   :  { %v4256_v8 = vrot.slane %v4234_v42, %v21575_v2  ;;  %v4265_v23 = vcombine.high %v4242_v27, %v4249_v60  ;;  %v4264_v7 = vcombine.low %v4242_v27, %v4249_v60  ;;  %v3138_v30 = vcombine.high %v3137_v47, %v3137_v47 }
 0x1e7   :  { %v3128_v50 = vrot.slane %v3114_v13, %v21575_v2  ;;  %v3129_v16 = vcombine.high %v3121_v4, %v3121_v4  ;;  %v3145_v33 = vrot.slane %v3137_v47, %v21575_v2  ;;  %v3159_v35 = vrot.slane %v2703_v57, %v21575_v2 }
 0x1e8   :  { %v4267_v43 = vcombine.high %v4256_v8, %v4263_v21  ;;  %v4281_v46 = vrot.slane %v4265_v23, %v21575_v2  ;;  %v4266_v58 = vcombine.low %v4256_v8, %v4263_v21  ;;  %v4274_v14 = vrot.slane %v4264_v7, %v21575_v2 }
 0x1e9   :  { %v3130_v31 = vcombine.high %v3128_v50, %v3128_v50  ;;  %v3152_v12 = vrot.slane %v3138_v30, %v21575_v2  ;;  %v3160_v9 = vcombine.high %v3159_v35, %v3159_v35  ;;  %v21904_v38 = vrot.slane %v3159_v35, %v21575_v2 }
 0x1ea   :  { %v4295_v1 = vrot.slane %v4267_v43, %v21575_v2  ;;  %v4288_v20 = vrot.slane %v4266_v58, %v21575_v2  ;;  %v3627_v6 = vunpack.i.h.s16 %v3121_v4  ;;  %v3629_v34 = vunpack.i.h.s16 %v3128_v50 }
 0x1eb   :  { %v21909_v36 = vrot.slane %v3160_v9, %v21575_v2  ;;  %v3631_v26 = vunpack.i.h.s16 %v3129_v16  ;;  %v3633_v45 = vunpack.i.h.s16 %v3130_v31  ;;  %v3635_v29 = vunpack.i.h.s16 %v3145_v33 }
 0x1ec   :  { %v4297_v63 = vcombine.low %v4281_v46, %v4295_v1  ;;  %v4296_v5 = vcombine.low %v4274_v14, %v4288_v20  ;;  %v19642_v40 = vpack.i.b16 %v3121_v4, %v3625_v19  ;;  %v19643_v3 = vpack.i.b16 %v3128_v50, %v3627_v6  ;;  %v21937_v20 = vld [vmem:[#allocation2 + $0xa8] sm:$0xff] }
 0x1ed   :  { %v19644_v41 = vpack.i.b16 %v3129_v16, %v3629_v34  ;;  %v19645_v15 = vpack.i.b16 %v3130_v31, %v3631_v26  ;;  %v19646_v48 = vpack.i.b16 %v3145_v33, %v3633_v45  ;;  %v19647_v53 = vpack.i.b16 %v3152_v12, %v3635_v29  ;;  %v21930_v33 = vld [vmem:[#allocation2 + $0x98] sm:$0x33] }
 0x1ee   :  { %19700 = vmatprep.mubr.msk.bf16.mxu1 %vm5059_vm1, %v4297_v63  ;;  %v4298_v0 = vcombine.low %v19642_v40, %v19643_v3  ;;  %v4301_v59 = vcombine.low %v21904_v38, %v21909_v36  ;;  %v1906_v44 = vmax.f32 %v1794_v32, 0.0  ;;  %v1907_v18 = vmax.f32 %v1795_v22, 0.0 }
 0x1ef   :  { %5178 = vmatmul.mubr.bf16.gmra.mxu1 %v4296_v5  ;;  %v4299_v27 = vcombine.low %v19644_v41, %v19645_v15  ;;  %v4300_v39 = vcombine.low %v19646_v48, %v19647_v53  ;;  %v1796_v37 = vcombine.low %v1681_v52, %v1683_v17  ;;  %v1797_v55 = vcombine.high %v1681_v52, %v1683_v17  ;;  %v2328_v52 = vld [vmem:[#allocation2 + $0xa0] sm:$0xff]  ;;  %v21948_v17 = vld [vmem:[#allocation2 + $0xb0] sm:$0xff] }
 0x1f0   :  { %v4308_v19 = vrot.slane %v4298_v0, %v21575_v2  ;;  %v4329_v42 = vrot.slane %v4301_v59, %v21575_v2  ;;  %v2017_v60 = vcombine.low %v21849_v49, %v1906_v44  ;;  %v2018_v57 = vcombine.high %v21849_v49, %v1906_v44 }
 0x1f1   :  { %v4315_v47 = vrot.slane %v4299_v27, %v21575_v2  ;;  %v4322_v24 = vrot.slane %v4300_v39, %v21575_v2  ;;  %v1908_v11 = vmax.f32 %v1796_v37, 0.0  ;;  %v1909_v32 = vmax.f32 %v1797_v55, 0.0 }
 0x1f2   :  { %v20196_v21 = vpack.c.bf16 %v2018_v57, %v2017_v60  ;;  %v2513_v13 = vshrl.u32 %v21857_v61, 16  ;;  %v2519_v4 = vshll.u32 %v21917_v56, 16  ;;  %v2523_v22 = vshrl.u32 %v21917_v56, 16 }
 0x1f3   :  { %v4331_v8 = vcombine.high %v4308_v19, %v4315_v47  ;;  %v4333_v23 = vcombine.high %v4322_v24, %v4329_v42  ;;  %v4330_v7 = vcombine.low %v4308_v19, %v4315_v47  ;;  %v4332_v30 = vcombine.low %v4322_v24, %v4329_v42 }
 0x1f4   :  { %2305 = vst.msk [vmem:[#allocation2 + $0xe8] sm:$0xff] %vm21551_vm9, %v20196_v21  ;;  %v2019_v49 = vcombine.low %v1907_v18, %v1908_v11  ;;  %v2020_v50 = vcombine.high %v1907_v18, %v1908_v11  ;;  %v2021_v16 = vcombine.high %v1909_v32, %v1909_v32  ;;  %v2515_v35 = vrot.slane %v2513_v13, 4 }
 0x1f5   :  { %v4347_v43 = vrot.slane %v4331_v8, %v21575_v2  ;;  %v4361_v46 = vrot.slane %v4333_v23, %v21575_v2  ;;  %v4340_v58 = vrot.slane %v4330_v7, %v21575_v2  ;;  %v4354_v14 = vrot.slane %v4332_v30, %v21575_v2 }
 0x1f6   :  { %v20197_v31 = vpack.c.bf16 %v2020_v50, %v2019_v49  ;;  %v20198_v12 = vpack.c.bf16 %v2021_v16, %v1909_v32  ;;  %v2516_v9 = vor.u32 %v2515_v35, %v21877_v54  ;;  %v2521_v1 = vrot.slane %v2519_v4, 5 }
 0x1f7   :  { %v4363_v6 = vcombine.low %v4347_v43, %v4361_v46  ;;  %v4362_v34 = vcombine.low %v4340_v58, %v4354_v14  ;;  %v2525_v26 = vrot.slane %v2523_v22, 4  ;;  %v2529_v45 = vshll.u32 %v21930_v33, 16 }
 0x1f8   :  { %2306 = vst.msk [vmem:[#allocation2 + $0xf0] sm:$0xff] %vm21551_vm9, %v20197_v31  ;;  %v2517_v29 = vrot.slane %v2516_v9, 4  ;;  %v19679_v63 = vcombine.high %v21904_v38, %v21909_v36  ;;  %v2533_v54 = vshrl.u32 %v21930_v33, 16  ;;  %v2539_v5 = vshrl.u32 %v2328_v52, 16  ;;  %v21954_v36 = vld [vmem:[#allocation2 + $0xb8] sm:$0x33]  ;;  %vm22300_vm9 = vmand %vm8123_vm6, %vm8124_vm8 }
 0x1f9   :  { %2307 = vst.msk [vmem:[#allocation2 + $0xf8] sm:$0x33] %vm21562_vm12, %v20198_v12  ;;  %19701 = vmatprep.mubr.msk.bf16.mxu1 %vm5059_vm1, %v4363_v6  ;;  %v2526_v40 = vor.u32 %v2525_v26, %v2521_v1  ;;  %v2531_v3 = vrot.slane %v2529_v45, 5  ;;  %v2542_v41 = vshll.u32 %v2328_v52, 16  ;;  %v2548_v51 = vshll.u32 %v21937_v20, 16  ;;  %vm23820_vm6 = vmand %vm2276_vm10, %vm8124_vm8 }
 0x1fa   :  { %5186 = vmatmul.mubr.bf16.gmra.mxu1 %v4362_v34  ;;  %v2522_v28 = vsel %vm21570_vm15, %v2517_v29, %v2521_v1  ;;  %v4374_v15 = vrot.slane %v19679_v63, %v21575_v2  ;;  %v2535_v48 = vrot.slane %v2533_v54, 4  ;;  %v2541_v38 = vrot.slane %v2539_v5, 4 }
 0x1fb   :  { %v2527_v53 = vrot.slane %v2526_v40, 4  ;;  %v2704_v0 = vadd.bf16 %v2522_v28, %v21857_v61  ;;  %v2544_v59 = vrot.slane %v2542_v41, 5  ;;  %v2550_v44 = vrot.slane %v2548_v51, 5 }
 0x1fc   :  { %v2536_v18 = vor.u32 %v2535_v48, %v2531_v3  ;;  %v2552_v27 = vshrl.u32 %v21937_v20, 16  ;;  %v2558_v39 = vshll.u32 %v21948_v17, 16  ;;  %v2562_v37 = vshrl.u32 %v21948_v17, 16 }
 0x1fd   :  { %v2532_v55 = vsel %vm21570_vm15, %v2527_v53, %v2531_v3  ;;  %v3183_v19 = vrot.slane %v2704_v0, %v21575_v2  ;;  %v2545_v42 = vor.u32 %v2544_v59, %v2541_v38  ;;  %v2568_v60 = vshll.u32 %v21954_v36, 16 }
 0x1fe   :  { %v2705_v57 = vadd.bf16 %v2532_v55, %v21917_v56  ;;  %v2537_v61 = vrot.slane %v2536_v18, 4  ;;  %v2554_v47 = vrot.slane %v2552_v27, 4  ;;  %v2560_v24 = vrot.slane %v2558_v39, 5 }
 0x1ff   :  { %v3184_v11 = vcombine.high %v3183_v19, %v3183_v19  ;;  %v3191_v32 = vrot.slane %v3183_v19, %v21575_v2  ;;  %v2546_v21 = vrot.slane %v2545_v42, 4  ;;  %v2564_v13 = vrot.slane %v2562_v37, 4 }
 0x200   :  { %v3207_v4 = vrot.slane %v2705_v57, %v21575_v2  ;;  %v2555_v22 = vor.u32 %v2554_v47, %v2550_v44  ;;  %v2706_v8 = vadd.bf16 %v2537_v61, %v21930_v33  ;;  %v21968_v23 = vrot.slane %v2568_v60, 5 }
 0x201   :  { %v3198_v7 = vrot.slane %v3184_v11, %v21575_v2  ;;  %v2551_v56 = vsel %vm21570_vm15, %v2546_v21, %v2550_v44  ;;  %v2565_v30 = vor.u32 %v2564_v13, %v2560_v24  ;;  %v2572_v49 = vshrl.u32 %v21954_v36, 16 }
 0x202   :  { %v3208_v50 = vcombine.high %v3207_v4, %v3207_v4  ;;  %v3215_v16 = vrot.slane %v3207_v4, %v21575_v2  ;;  %v2556_v35 = vrot.slane %v2555_v22, 4  ;;  %v2707_v43 = vadd.bf16 %v2551_v56, %v2328_v52 }
 0x203   :  { %v4365_v46 = vcombine.low %v3191_v32, %v3198_v7  ;;  %v19680_v58 = vcombine.high %v3191_v32, %v3198_v7  ;;  %v3231_v14 = vrot.slane %v2706_v8, %v21575_v2  ;;  %v2566_v33 = vrot.slane %v2565_v30, 4 }
 0x204   :  { %v3222_v31 = vrot.slane %v3208_v50, %v21575_v2  ;;  %v2561_v12 = vsel %vm21570_vm15, %v2556_v35, %v2560_v24  ;;  %v3253_v9 = vrot.slane %v2707_v43, %v21575_v2  ;;  %v2574_v1 = vrot.slane %v2572_v49, 4  ;;  %v22003_v43 = vld [vmem:[#allocation2 + $0xc0] sm:$0xff] }
 0x205   :  { %v4381_v6 = vrot.slane %v4365_v46, %v21575_v2  ;;  %v4388_v34 = vrot.slane %v19680_v58, %v21575_v2  ;;  %v2708_v26 = vadd.bf16 %v2561_v12, %v21937_v20  ;;  %v3232_v52 = vcombine.high %v3231_v14, %v3231_v14 }
 0x206   :  { %v4367_v45 = vcombine.low %v3215_v16, %v3222_v31  ;;  %v3239_v29 = vrot.slane %v3231_v14, %v21575_v2  ;;  %v3254_v63 = vcombine.high %v3253_v9, %v3253_v9  ;;  %v3261_v54 = vrot.slane %v3253_v9, %v21575_v2 }
 0x207   :  { %v4397_v5 = vcombine.high %v4374_v15, %v4381_v6  ;;  %v4396_v40 = vcombine.low %v4374_v15, %v4381_v6  ;;  %v3246_v3 = vrot.slane %v3232_v52, %v21575_v2  ;;  %v3277_v41 = vrot.slane %v2708_v26, %v21575_v2 }
 0x208   :  { %v4395_v51 = vrot.slane %v4367_v45, %v21575_v2  ;;  %v3268_v28 = vrot.slane %v3254_v63, %v21575_v2  ;;  %v3269_v48 = vcombine.high %v3261_v54, %v3261_v54  ;;  %v3665_v38 = vunpack.i.h.s16 %v3261_v54 }
 0x209   :  { %v4413_v20 = vrot.slane %v4397_v5, %v21575_v2  ;;  %v4406_v53 = vrot.slane %v4396_v40, %v21575_v2  ;;  %v3285_v0 = vrot.slane %v3277_v41, %v21575_v2  ;;  %v19648_v59 = vpack.i.b16 %v3261_v54, %v3246_v3 }
 0x20a   :  { %v4399_v44 = vcombine.high %v4388_v34, %v4395_v51  ;;  %v4398_v18 = vcombine.low %v4388_v34, %v4395_v51  ;;  %v3270_v15 = vcombine.high %v3268_v28, %v3268_v28  ;;  %v3667_v27 = vunpack.i.h.s16 %v3268_v28 }
 0x20b   :  { %v3669_v39 = vunpack.i.h.s16 %v3269_v48  ;;  %v19649_v37 = vpack.i.b16 %v3268_v28, %v3665_v38  ;;  %v19681_v55 = vcombine.high %v3215_v16, %v3222_v31  ;;  %v4431_v19 = vcombine.low %v3239_v29, %v19648_v59 }
 0x20c   :  { %v4427_v42 = vrot.slane %v4399_v44, %v21575_v2  ;;  %v4420_v60 = vrot.slane %v4398_v18, %v21575_v2  ;;  %v3671_v57 = vunpack.i.h.s16 %v3270_v15  ;;  %v19650_v61 = vpack.i.b16 %v3269_v48, %v3667_v27  ;;  %v2333_v18 = vld [vmem:[#allocation2 + $0xc8] sm:$0xff] }
 0x20d   :  { %v19651_v47 = vpack.i.b16 %v3270_v15, %v3669_v39  ;;  %v4440_v24 = vrot.slane %v19681_v55, %v21575_v2  ;;  %v4447_v11 = vrot.slane %v4431_v19, %v21575_v2  ;;  %v2571_v32 = vsel %vm21570_vm15, %v2566_v33, %v21968_v23  ;;  %v22018_v55 = vld [vmem:[#allocation2 + $0xd0] sm:$0xff] }
 0x20e   :  { %v4429_v21 = vcombine.low %v4413_v20, %v4427_v42  ;;  %v4428_v13 = vcombine.low %v4406_v53, %v4420_v60  ;;  %v19652_v4 = vpack.i.b16 %v3285_v0, %v3671_v57  ;;  %v4432_v22 = vcombine.low %v19649_v37, %v19650_v61 }
 0x20f   :  { %v4463_v8 = vcombine.high %v4440_v24, %v4447_v11  ;;  %v4462_v7 = vcombine.low %v4440_v24, %v4447_v11  ;;  %v2575_v56 = vor.u32 %v2574_v1, %v21968_v23  ;;  %v2709_v30 = vadd.bf16 %v2571_v32, %v21948_v17 }
 0x210   :  { %19702 = vmatprep.mubr.msk.bf16.mxu1 %vm5059_vm1, %v4429_v21  ;;  %v4433_v49 = vcombine.low %v19651_v47, %v19652_v4  ;;  %v4454_v50 = vrot.slane %v4432_v22, %v21575_v2  ;;  %v3278_v16 = vcombine.high %v3277_v41, %v3277_v41  ;;  %v3293_v35 = vcombine.high %v3285_v0, %v3285_v0 }
 0x211   :  { %5194 = vmatmul.mubr.bf16.gmra.mxu1 %v4428_v13  ;;  %v4479_v46 = vrot.slane %v4463_v8, %v21575_v2  ;;  %v4472_v58 = vrot.slane %v4462_v7, %v21575_v2  ;;  %v2576_v14 = vrot.slane %v2575_v56, 4  ;;  %v3301_v33 = vrot.slane %v2709_v30, %v21575_v2 }
 0x212   :  { %v4461_v23 = vrot.slane %v4433_v49, %v21575_v2  ;;  %v3292_v17 = vrot.slane %v3278_v16, %v21575_v2  ;;  %v3673_v31 = vunpack.i.h.s16 %v3285_v0  ;;  %v3677_v12 = vunpack.i.h.s16 %v3293_v35 }
 0x213   :  { %v2710_v9 = vadd.bf16 %v2576_v14, %v21954_v36  ;;  %v3302_v1 = vcombine.high %v3301_v33, %v3301_v33  ;;  %v3309_v6 = vrot.slane %v3301_v33, %v21575_v2  ;;  %v2578_v34 = vshrl.u32 %v22003_v43, 16 }
 0x214   :  { %v4465_v26 = vcombine.high %v4454_v50, %v4461_v23  ;;  %v4464_v52 = vcombine.low %v4454_v50, %v4461_v23  ;;  %v3294_v45 = vcombine.high %v3292_v17, %v3292_v17  ;;  %v3675_v29 = vunpack.i.h.s16 %v3292_v17 }
 0x215   :  { %v3316_v63 = vrot.slane %v3302_v1, %v21575_v2  ;;  %v3317_v54 = vcombine.high %v3309_v6, %v3309_v6  ;;  %v3325_v5 = vrot.slane %v2710_v9, %v21575_v2  ;;  %v3681_v40 = vunpack.i.h.s16 %v3309_v6 }
 0x216   :  { %v4493_v3 = vrot.slane %v4465_v26, %v21575_v2  ;;  %v4486_v41 = vrot.slane %v4464_v52, %v21575_v2  ;;  %v3679_v36 = vunpack.i.h.s16 %v3294_v45  ;;  %v19653_v51 = vpack.i.b16 %v3292_v17, %v3673_v31  ;;  %v2335_v31 = vld [vmem:[#allocation2 + $0xd8] sm:$0x33]  ;;  %v22031_v26 = vld [vmem:[#allocation2 + $0xe0] sm:$0xff] }
 0x217   :  { %v3318_v28 = vcombine.high %v3316_v63, %v3316_v63  ;;  %v3333_v48 = vrot.slane %v3325_v5, %v21575_v2  ;;  %v3683_v38 = vunpack.i.h.s16 %v3316_v63  ;;  %v3685_v20 = vunpack.i.h.s16 %v3317_v54 }
 0x218   :  { %v4495_v53 = vcombine.low %v4479_v46, %v4493_v3  ;;  %v4494_v0 = vcombine.low %v4472_v58, %v4486_v41  ;;  %v19654_v59 = vpack.i.b16 %v3293_v35, %v3675_v29  ;;  %v19655_v44 = vpack.i.b16 %v3294_v45, %v3677_v12 }
 0x219   :  { %v3687_v15 = vunpack.i.h.s16 %v3318_v28  ;;  %v19656_v27 = vpack.i.b16 %v3309_v6, %v3679_v36  ;;  %v19657_v39 = vpack.i.b16 %v3316_v63, %v3681_v40  ;;  %v19658_v37 = vpack.i.b16 %v3317_v54, %v3683_v38 }
 0x21a   :  { %19703 = vmatprep.mubr.msk.bf16.mxu1 %vm5059_vm1, %v4495_v53  ;;  %v19659_v19 = vpack.i.b16 %v3318_v28, %v3685_v20  ;;  %v4496_v42 = vcombine.low %v19653_v51, %v19654_v59  ;;  %v2580_v60 = vrot.slane %v2578_v34, 4  ;;  %v2581_v57 = vshll.u32 %v22003_v43, 16 }
 0x21b   :  { %5202 = vmatmul.mubr.bf16.gmra.mxu1 %v4494_v0  ;;  %v19660_v61 = vpack.i.b16 %v3333_v48, %v3687_v15  ;;  %v4497_v47 = vcombine.low %v19655_v44, %v19656_v27  ;;  %v4498_v24 = vcombine.low %v19657_v39, %v19658_v37  ;;  %v2587_v11 = vshll.u32 %v2333_v18, 16  ;;  %v22042_v0 = vld [vmem:[#allocation2 + $0xe8] sm:$0xff] }
 0x21c   :  { %v4506_v32 = vrot.slane %v4496_v42, %v21575_v2  ;;  %v2583_v21 = vrot.slane %v2581_v57, 5  ;;  %v2591_v13 = vshrl.u32 %v2333_v18, 16  ;;  %v2597_v4 = vshll.u32 %v22018_v55, 16 }
 0x21d   :  { %v4499_v22 = vcombine.low %v19659_v19, %v19660_v61  ;;  %v4513_v8 = vrot.slane %v4497_v47, %v21575_v2  ;;  %v4520_v7 = vrot.slane %v4498_v24, %v21575_v2  ;;  %v2589_v56 = vrot.slane %v2587_v11, 5 }
 0x21e   :  { %v2584_v30 = vor.u32 %v2583_v21, %v2580_v60  ;;  %v2593_v49 = vrot.slane %v2591_v13, 4  ;;  %v2599_v50 = vrot.slane %v2597_v4, 5  ;;  %v3326_v16 = vcombine.high %v3325_v5, %v3325_v5 }
 0x21f   :  { %v4527_v35 = vrot.slane %v4499_v22, %v21575_v2  ;;  %v4529_v46 = vcombine.high %v4506_v32, %v4513_v8  ;;  %v4528_v58 = vcombine.low %v4506_v32, %v4513_v8  ;;  %v3689_v14 = vunpack.i.h.s16 %v3333_v48 }
 0x220   :  { %v2585_v33 = vrot.slane %v2584_v30, 4  ;;  %v2594_v23 = vor.u32 %v2593_v49, %v2589_v56  ;;  %v3340_v17 = vrot.slane %v3326_v16, %v21575_v2  ;;  %v2601_v12 = vshrl.u32 %v22018_v55, 16 }
 0x221   :  { %v4531_v9 = vcombine.high %v4520_v7, %v4527_v35  ;;  %v4545_v1 = vrot.slane %v4529_v46, %v21575_v2  ;;  %v4530_v6 = vcombine.low %v4520_v7, %v4527_v35  ;;  %v4538_v34 = vrot.slane %v4528_v58, %v21575_v2 }
 0x222   :  { %v2590_v52 = vsel %vm21570_vm15, %v2585_v33, %v2589_v56  ;;  %v2595_v45 = vrot.slane %v2594_v23, 4  ;;  %v19661_v29 = vpack.i.b16 %v3340_v17, %v3689_v14  ;;  %v2603_v63 = vrot.slane %v2601_v12, 4 }
 0x223   :  { %v4559_v54 = vrot.slane %v4531_v9, %v21575_v2  ;;  %v4552_v5 = vrot.slane %v4530_v6, %v21575_v2  ;;  %v2711_v40 = vadd.bf16 %v2590_v52, %v22003_v43  ;;  %v2607_v3 = vshll.u32 %v2335_v31, 16 }
 0x224   :  { %v2600_v41 = vsel %vm21570_vm15, %v2595_v45, %v2599_v50  ;;  %v2604_v36 = vor.u32 %v2603_v63, %v2599_v50  ;;  %v2611_v51 = vshrl.u32 %v2335_v31, 16  ;;  %v2617_v28 = vshrl.u32 %v22031_v26, 16 }
 0x225   :  { %v4561_v48 = vcombine.low %v4545_v1, %v4559_v54  ;;  %v4560_v38 = vcombine.low %v4538_v34, %v4552_v5  ;;  %v2712_v20 = vadd.bf16 %v2600_v41, %v2333_v18  ;;  %v3347_v53 = vrot.slane %v2711_v40, %v21575_v2 }
 0x226   :  { %v2605_v59 = vrot.slane %v2604_v36, 4  ;;  %v2609_v44 = vrot.slane %v2607_v3, 5  ;;  %v2613_v15 = vrot.slane %v2611_v51, 4  ;;  %v2619_v27 = vrot.slane %v2617_v28, 4  ;;  %v2338_v51 = vld [vmem:[#allocation2 + $0xf0] sm:$0xff] }
 0x227   :  { %19704 = vmatprep.mubr.msk.bf16.mxu1 %vm5059_vm1, %v4561_v48  ;;  %v3348_v43 = vcombine.high %v3347_v53, %v3347_v53  ;;  %v3355_v39 = vrot.slane %v3347_v53, %v21575_v2  ;;  %v3371_v37 = vrot.slane %v2712_v20, %v21575_v2  ;;  %v2620_v19 = vshll.u32 %v22031_v26, 16 }
 0x228   :  { %5210 = vmatmul.mubr.bf16.gmra.mxu1 %v4560_v38  ;;  %v2610_v18 = vsel %vm21570_vm15, %v2605_v59, %v2609_v44  ;;  %v2614_v42 = vor.u32 %v2613_v15, %v2609_v44  ;;  %v2626_v60 = vshll.u32 %v22042_v0, 16  ;;  %v2630_v57 = vshrl.u32 %v22042_v0, 16  ;;  %v22074_v15 = vld [vmem:[#allocation2 + $0xf8] sm:$0x33] }
 0x229   :  { %v3362_v61 = vrot.slane %v3348_v43, %v21575_v2  ;;  %v3363_v47 = vcombine.high %v3355_v39, %v3355_v39  ;;  %v3372_v24 = vcombine.high %v3371_v37, %v3371_v37  ;;  %v3379_v11 = vrot.slane %v3371_v37, %v21575_v2 }
 0x22a   :  { %v4562_v32 = vcombine.low %v19661_v29, %v3355_v39  ;;  %v2615_v21 = vrot.slane %v2614_v42, 4  ;;  %v2622_v13 = vrot.slane %v2620_v19, 5  ;;  %v2628_v4 = vrot.slane %v2626_v60, 5 }
 0x22b   :  { %v3364_v22 = vcombine.high %v3362_v61, %v3362_v61  ;;  %v3386_v8 = vrot.slane %v3372_v24, %v21575_v2  ;;  %v3387_v7 = vcombine.high %v3379_v11, %v3379_v11  ;;  %v4563_v56 = vcombine.low %v3362_v61, %v3363_v47 }
 0x22c   :  { %v4572_v30 = vrot.slane %v4562_v32, %v21575_v2  ;;  %v2623_v49 = vor.u32 %v2622_v13, %v2619_v27  ;;  %v2713_v50 = vadd.bf16 %v2610_v18, %v22018_v55  ;;  %v2714_v16 = vadd.bf16 %v2615_v21, %v2335_v31 }
 0x22d   :  { %v4564_v35 = vcombine.low %v3364_v22, %v3379_v11  ;;  %v4565_v46 = vcombine.low %v3386_v8, %v3387_v7  ;;  %v4579_v58 = vrot.slane %v4563_v56, %v21575_v2  ;;  %v3388_v14 = vcombine.high %v3386_v8, %v3386_v8 }
 0x22e   :  { %v2624_v33 = vrot.slane %v2623_v49, 4  ;;  %v3395_v23 = vrot.slane %v2713_v50, %v21575_v2  ;;  %v3419_v17 = vrot.slane %v2714_v16, %v21575_v2  ;;  %v2632_v12 = vrot.slane %v2630_v57, 4  ;;  %v19619_v16 = vld [vmem:[%s25474_s8] ss:$0 sm:$0xff] }
 0x22f   :  { %v4586_v9 = vrot.slane %v4564_v35, %v21575_v2  ;;  %v4593_v1 = vrot.slane %v4565_v46, %v21575_v2  ;;  %v4595_v6 = vcombine.high %v4572_v30, %v4579_v58  ;;  %v4594_v34 = vcombine.low %v4572_v30, %v4579_v58 }
 0x230   :  { %v2629_v55 = vsel %vm21570_vm15, %v2624_v33, %v2628_v4  ;;  %v3396_v31 = vcombine.high %v3395_v23, %v3395_v23  ;;  %v3403_v52 = vrot.slane %v3395_v23, %v21575_v2  ;;  %v3420_v45 = vcombine.high %v3419_v17, %v3419_v17 }
 0x231   :  { %v4597_v29 = vcombine.high %v4586_v9, %v4593_v1  ;;  %v4611_v63 = vrot.slane %v4595_v6, %v21575_v2  ;;  %v4596_v54 = vcombine.low %v4586_v9, %v4593_v1  ;;  %v4604_v5 = vrot.slane %v4594_v34, %v21575_v2 }
 0x232   :  { %v2715_v40 = vadd.bf16 %v2629_v55, %v22031_v26  ;;  %v3410_v3 = vrot.slane %v3396_v31, %v21575_v2  ;;  %v3411_v41 = vcombine.high %v3403_v52, %v3403_v52  ;;  %v3427_v36 = vrot.slane %v3419_v17, %v21575_v2 }
 0x233   :  { %v4625_v28 = vrot.slane %v4597_v29, %v21575_v2  ;;  %v4618_v48 = vrot.slane %v4596_v54, %v21575_v2  ;;  %v3434_v38 = vrot.slane %v3420_v45, %v21575_v2  ;;  %v4628_v20 = vcombine.low %v3388_v14, %v3403_v52 }
 0x234   :  { %v3412_v53 = vcombine.high %v3410_v3, %v3410_v3  ;;  %v3441_v59 = vrot.slane %v2715_v40, %v21575_v2  ;;  %v4629_v44 = vcombine.low %v3410_v3, %v3411_v41  ;;  %v2633_v26 = vor.u32 %v2632_v12, %v2628_v4 }
 0x235   :  { %v4627_v27 = vcombine.low %v4611_v63, %v4625_v28  ;;  %v4626_v43 = vcombine.low %v4604_v5, %v4618_v48  ;;  %v4638_v39 = vrot.slane %v4628_v20, %v21575_v2  ;;  %v2636_v37 = vshll.u32 %v2338_v51, 16 }
 0x236   :  { %v3442_v19 = vcombine.high %v3441_v59, %v3441_v59  ;;  %v3449_v18 = vrot.slane %v3441_v59, %v21575_v2  ;;  %v4630_v42 = vcombine.low %v3412_v53, %v3427_v36  ;;  %v4645_v60 = vrot.slane %v4629_v44, %v21575_v2 }
 0x237   :  { %19705 = vmatprep.mubr.msk.bf16.mxu1 %vm5059_vm1, %v4627_v27  ;;  %v2634_v57 = vrot.slane %v2633_v26, 4  ;;  %v2638_v61 = vrot.slane %v2636_v37, 5  ;;  %v2640_v47 = vshrl.u32 %v2338_v51, 16  ;;  %v2646_v24 = vshll.u32 %v22074_v15, 16 }
 0x238   :  { %5218 = vmatmul.mubr.bf16.gmra.mxu1 %v4626_v43  ;;  %v3456_v11 = vrot.slane %v3442_v19, %v21575_v2  ;;  %v3719_v32 = vunpack.i.h.s16 %v3449_v18  ;;  %v19662_v21 = vpack.i.b16 %v3449_v18, %v3434_v38  ;;  %v4652_v13 = vrot.slane %v4630_v42, %v21575_v2 }
 0x239   :  { %v4661_v4 = vcombine.high %v4638_v39, %v4645_v60  ;;  %v4660_v22 = vcombine.low %v4638_v39, %v4645_v60  ;;  %v2639_v8 = vsel %vm21570_vm15, %v2634_v57, %v2638_v61  ;;  %v2642_v7 = vrot.slane %v2640_v47, 4 }
 0x23a   :  { %v19663_v56 = vpack.i.b16 %v3456_v11, %v3719_v32  ;;  %v2648_v30 = vrot.slane %v2646_v24, 5  ;;  %v2716_v49 = vadd.bf16 %v2639_v8, %v22042_v0  ;;  %v3457_v50 = vcombine.high %v3449_v18, %v3449_v18 }
 0x23b   :  { %v4677_v35 = vrot.slane %v4661_v4, %v21575_v2  ;;  %v4670_v46 = vrot.slane %v4660_v22, %v21575_v2  ;;  %v2643_v58 = vor.u32 %v2642_v7, %v2638_v61  ;;  %v3458_v14 = vcombine.high %v3456_v11, %v3456_v11 }
 0x23c   :  { %v4631_v33 = vcombine.low %v19662_v21, %v19663_v56  ;;  %v3465_v23 = vrot.slane %v2716_v49, %v21575_v2  ;;  %v3721_v17 = vunpack.i.h.s16 %v3456_v11  ;;  %v3723_v12 = vunpack.i.h.s16 %v3457_v50 }
 0x23d   :  { %v2644_v9 = vrot.slane %v2643_v58, 4  ;;  %v3725_v1 = vunpack.i.h.s16 %v3458_v14  ;;  %v2650_v0 = vshrl.u32 %v22074_v15, 16  ;;  %v3745_v6 = vcombine.high %v19619_v16, %v19619_v16 }
 0x23e   :  { %v4659_v34 = vrot.slane %v4631_v33, %v21575_v2  ;;  %v3466_v55 = vcombine.high %v3465_v23, %v3465_v23  ;;  %v3473_v31 = vrot.slane %v3465_v23, %v21575_v2  ;;  %v19664_v52 = vpack.i.b16 %v3457_v50, %v3721_v17 }
 0x23f   :  { %v2649_v45 = vsel %vm21570_vm15, %v2644_v9, %v2648_v30  ;;  %v19665_v29 = vpack.i.b16 %v3458_v14, %v3723_v12  ;;  %v2652_v63 = vrot.slane %v2650_v0, 4  ;;  %v3752_v54 = vrot.slane %v19619_v16, %v21575_v2 }
 0x240   :  { %v4663_v5 = vcombine.high %v4652_v13, %v4659_v34  ;;  %v4662_v40 = vcombine.low %v4652_v13, %v4659_v34  ;;  %v2717_v3 = vadd.bf16 %v2649_v45, %v2338_v51  ;;  %v3480_v41 = vrot.slane %v3466_v55, %v21575_v2 }
 0x241   :  { %v3481_v36 = vcombine.high %v3473_v31, %v3473_v31  ;;  %v3727_v28 = vunpack.i.h.s16 %v3473_v31  ;;  %v19666_v48 = vpack.i.b16 %v3473_v31, %v3725_v1  ;;  %v4694_v38 = vcombine.low %v19664_v52, %v19665_v29 }
 0x242   :  { %v4691_v20 = vrot.slane %v4663_v5, %v21575_v2  ;;  %v4684_v53 = vrot.slane %v4662_v40, %v21575_v2  ;;  %v3482_v59 = vcombine.high %v3480_v41, %v3480_v41  ;;  %v3489_v62 = vrot.slane %v2717_v3, %v21575_v2 }
 0x243   :  { %v3729_v44 = vunpack.i.h.s16 %v3480_v41  ;;  %v3731_v26 = vunpack.i.h.s16 %v3481_v36  ;;  %v19667_v27 = vpack.i.b16 %v3480_v41, %v3727_v28  ;;  %v4704_v43 = vrot.slane %v4694_v38, %v21575_v2 }
 0x244   :  { %v4693_v39 = vcombine.low %v4677_v35, %v4691_v20  ;;  %v4692_v51 = vcombine.low %v4670_v46, %v4684_v53  ;;  %v3490_v37 = vcombine.high %v3489_v62, %v3489_v62  ;;  %v3497_v19 = vrot.slane %v3489_v62, %v21575_v2 }
 0x245   :  { %v3733_v18 = vunpack.i.h.s16 %v3482_v59  ;;  %v19668_v42 = vpack.i.b16 %v3481_v36, %v3729_v44  ;;  %v19669_v60 = vpack.i.b16 %v3482_v59, %v3731_v26  ;;  %v4695_v57 = vcombine.low %v19666_v48, %v19667_v27 }
 0x246   :  { %19706 = vmatprep.mubr.msk.bf16.mxu1 %vm5059_vm1, %v4693_v39  ;;  %v3504_v61 = vrot.slane %v3490_v37, %v21575_v2  ;;  %v3735_v47 = vunpack.i.h.s16 %v3497_v19  ;;  %v2653_v24 = vor.u32 %v2652_v63, %v2648_v30  ;;  %v3505_v11 = vcombine.high %v3497_v19, %v3497_v19  ;;  %v22106_v32 = vpop.f32.mrf.mxu1 }
 0x247   :  { %5226 = vmatmul.mubr.bf16.gmra.mxu1 %v4692_v51  ;;  %v19670_v21 = vpack.i.b16 %v3497_v19, %v3733_v18  ;;  %v4696_v13 = vcombine.low %v19668_v42, %v19669_v60  ;;  %v4711_v4 = vrot.slane %v4695_v57, %v21575_v2  ;;  %v3759_v22 = vrot.slane %v3745_v6, %v21575_v2 }
 0x248   :  { %v19671_v8 = vpack.i.b16 %v3504_v61, %v3735_v47  ;;  %v2654_v7 = vrot.slane %v2653_v24, 4  ;;  %v3506_v56 = vcombine.high %v3504_v61, %v3504_v61  ;;  %v3737_v49 = vunpack.i.h.s16 %v3504_v61  ;;  %v5141_v50 = vpop.f32.mrf.mxu1 }
 0x249   :  { %v4727_v16 = vcombine.high %v4704_v43, %v4711_v4  ;;  %v4726_v35 = vcombine.low %v4704_v43, %v4711_v4  ;;  %v3739_v46 = vunpack.i.h.s16 %v3505_v11  ;;  %v4718_v30 = vrot.slane %v4696_v13, %v21575_v2 }
 0x24a   :  { %v4697_v58 = vcombine.low %v19670_v21, %v19671_v8  ;;  %v2718_v14 = vadd.bf16 %v2654_v7, %v22074_v15  ;;  %v22112_v33 = vpop.f32.mrf.mxu1  ;;  %v3741_v23 = vunpack.i.h.s16 %v3506_v56  ;;  %v19672_v17 = vpack.i.b16 %v3505_v11, %v3737_v49 }
 0x24b   :  { %v19673_v12 = vpack.i.b16 %v3506_v56, %v3739_v46  ;;  %v3760_v9 = vcombine.high %v3752_v54, %v3752_v54  ;;  %v3761_v6 = vcombine.high %v3759_v22, %v3759_v22  ;;  %v3768_v34 = vrot.slane %v3752_v54, %v21575_v2 }
 0x24c   :  { %v4725_v1 = vrot.slane %v4697_v58, %v21575_v2  ;;  %v3513_v0 = vrot.slane %v2718_v14, %v21575_v2  ;;  %v5144_v55 = vpop.f32.mrf.mxu1  ;;  %v4743_v31 = vrot.slane %v4727_v16, %v21575_v2  ;;  %v4736_v52 = vrot.slane %v4726_v35, %v21575_v2 }
 0x24d   :  { %v3775_v15 = vrot.slane %v3759_v22, %v21575_v2  ;;  %v3782_v45 = vrot.slane %v3760_v9, %v21575_v2  ;;  %v4760_v3 = vcombine.low %v19672_v17, %v19673_v12  ;;  %v3789_v41 = vrot.slane %v3761_v6, %v21575_v2 }
 0x24e   :  { %v4729_v29 = vcombine.high %v4718_v30, %v4725_v1  ;;  %v4728_v63 = vcombine.low %v4718_v30, %v4725_v1  ;;  %v3514_v5 = vcombine.high %v3513_v0, %v3513_v0  ;;  %v3521_v40 = vrot.slane %v3513_v0, %v21575_v2 }
 0x24f   :  { %v4869_v36 = vcombine.low %v3768_v34, %v3782_v45  ;;  %v19693_v28 = vcombine.high %v3768_v34, %v3782_v45  ;;  %v4871_v59 = vcombine.low %v3775_v15, %v3789_v41  ;;  %v19694_v62 = vcombine.high %v3775_v15, %v3789_v41 }
 0x250   :  { %v4757_v54 = vrot.slane %v4729_v29, %v21575_v2  ;;  %v4750_v48 = vrot.slane %v4728_v63, %v21575_v2  ;;  %v3528_v38 = vrot.slane %v3514_v5, %v21575_v2  ;;  %v3743_v20 = vunpack.i.h.s16 %v3521_v40 }
 0x251   :  { %v19674_v53 = vpack.i.b16 %v3521_v40, %v3741_v23  ;;  %v22127_v44 = vrot.slane %v4869_v36, %v21575_v2  ;;  %v22130_v39 = vrot.slane %v19693_v28, %v21575_v2  ;;  %v22133_v51 = vrot.slane %v4871_v59, %v21575_v2 }
 0x252   :  { %v4759_v26 = vcombine.low %v4743_v31, %v4757_v54  ;;  %v4758_v27 = vcombine.low %v4736_v52, %v4750_v48  ;;  %v19675_v43 = vpack.i.b16 %v3528_v38, %v3743_v20  ;;  %v22136_v37 = vrot.slane %v19694_v62, %v21575_v2 }
 0x253   :  { %v3790_v19 = vcombine.high %v3768_v34, %v3768_v34  ;;  %v3792_v18 = vcombine.high %v3782_v45, %v3782_v45  ;;  %v4901_v60 = vcombine.low %v22127_v44, %v22130_v39  ;;  %v4768_v11 = vrot.slane %v4760_v3, %v21575_v2 }
 0x254   :  { %19707 = vmatprep.mubr.msk.bf16.mxu1 %vm5059_vm1, %v4759_v26  ;;  %v4761_v42 = vcombine.low %v19674_v53, %v19675_v43  ;;  %v4902_v57 = vcombine.low %v22133_v51, %v22136_v37  ;;  %v3791_v50 = vcombine.high %v3775_v15, %v3775_v15  ;;  %v3793_v16 = vcombine.high %v3789_v41, %v3789_v41 }
 0x255   :  { %5234 = vmatmul.mubr.bf16.gmra.mxu1 %v4758_v27  ;;  %v4918_v61 = vcombine.low %v3790_v19, %v3768_v34  ;;  %v4919_v47 = vcombine.low %v3782_v45, %v3790_v19  ;;  %v4920_v24 = vcombine.low %v3792_v18, %v3775_v15  ;;  %v22146_v13 = vrot.slane %v4901_v60, %v21575_v2 }
 0x256   :  { %v4775_v21 = vrot.slane %v4761_v42, %v21575_v2  ;;  %v22149_v4 = vrot.slane %v4902_v57, %v21575_v2  ;;  %v4959_v17 = vcombine.low %v3789_v41, %v3791_v50  ;;  %v4960_v12 = vcombine.low %v3793_v16, %v3768_v34 }
 0x257   :  { %v22152_v22 = vrot.slane %v4918_v61, %v21575_v2  ;;  %v22155_v8 = vrot.slane %v4919_v47, %v21575_v2  ;;  %v22158_v7 = vrot.slane %v4920_v24, %v21575_v2  ;;  %v4993_v45 = vcombine.low %v22130_v39, %v22133_v51 }
 0x258   :  { %v4777_v56 = vcombine.high %v4768_v11, %v4775_v21  ;;  %v4776_v49 = vcombine.low %v4768_v11, %v4775_v21  ;;  %v4917_v35 = vcombine.low %v22146_v13, %v22149_v4  ;;  %v22180_v55 = vrot.slane %v4959_v17, %v21575_v2 }
 0x259   :  { %v4942_v46 = vcombine.low %v22127_v44, %v22152_v22  ;;  %v4943_v58 = vcombine.low %v22155_v8, %v22158_v7  ;;  %v4984_v30 = vcombine.low %v22155_v8, %v22127_v44  ;;  %v22183_v31 = vrot.slane %v4960_v12, %v21575_v2 }
 0x25a   :  { %v4791_v14 = vrot.slane %v4777_v56, %v21575_v2  ;;  %v4784_v23 = vrot.slane %v4776_v49, %v21575_v2  ;;  %v5140_v9 = vadd.f32 %v22106_v32, %v4917_v35  ;;  %v5143_v1 = vadd.f32 %v22112_v33, %v4917_v35 }
 0x25b   :  { %v22173_v0 = vrot.slane %v4942_v46, %v21575_v2  ;;  %v22176_v6 = vrot.slane %v4943_v58, %v21575_v2  ;;  %v22188_v15 = vrot.slane %v4984_v30, %v21575_v2  ;;  %v4975_v28 = vcombine.low %v22180_v55, %v22183_v31 }
 0x25c   :  { %19708 = vmatprep.mubr.msk.bf16.mxu1 %vm5059_vm1, %v4791_v14  ;;  %v5276_v34 = vcombine.high %v5140_v9, %v5140_v9  ;;  %v5283_v32 = vrot.slane %v5140_v9, %v21575_v2  ;;  %v5325_v52 = vcombine.high %v5143_v1, %v5143_v1  ;;  %v5332_v33 = vrot.slane %v5143_v1, %v21575_v2 }
 0x25d   :  { %5242 = vmatmul.mubr.bf16.gmra.mxu1 %v4784_v23  ;;  %v4958_v40 = vcombine.low %v22173_v0, %v22176_v6  ;;  %v4994_v54 = vcombine.low %v22136_v37, %v22127_v44  ;;  %v22276_v44 = vcombine.low %v22149_v4, %v22146_v13  ;;  %vm8692_vm12 = vcmask 687104  }
 0x25e   :  { %v5290_v29 = vrot.slane %v5276_v34, %v21575_v2  ;;  %v5291_v63 = vcombine.high %v5283_v32, %v5283_v32  ;;  %v5339_v5 = vrot.slane %v5325_v52, %v21575_v2  ;;  %v5299_v3 = vrot.slane %v5283_v32, %v21575_v2 }
 0x25f   :  { %v5340_v41 = vcombine.high %v5332_v33, %v5332_v33  ;;  %v5348_v53 = vrot.slane %v5332_v33, %v21575_v2  ;;  %v22219_v52 = vrot.slane %v4975_v28, %v21575_v2  ;;  %v22222_v33 = vrot.slane %v4993_v45, %v21575_v2 }
 0x260   :  { %v5147_v36 = vpop.f32.mrf.mxu1  ;;  %v5292_v48 = vcombine.high %v5290_v29, %v5290_v29  ;;  %v5313_v38 = vrot.slane %v5291_v63, %v21575_v2  ;;  %v5341_v20 = vcombine.high %v5339_v5, %v5339_v5  ;;  %v5306_v59 = vrot.slane %v5290_v29, %v21575_v2 }
 0x261   :  { %v5355_v62 = vrot.slane %v5339_v5, %v21575_v2  ;;  %v5362_v26 = vrot.slane %v5340_v41, %v21575_v2  ;;  %v5148_v27 = vadd.f32 %v5147_v36, %v4917_v35 }
 0x262   :  { %v5149_v43 = vpop.f32.mrf.mxu1  ;;  %v5320_v39 = vrot.slane %v5292_v48, %v21575_v2  ;;  %v6599_v51 = vcombine.low %v5299_v3, %v5313_v38  ;;  %v19709_v19 = vcombine.high %v5299_v3, %v5313_v38  ;;  %v5369_v18 = vrot.slane %v5341_v20, %v21575_v2 }
 0x263   :  { %v6648_v42 = vcombine.low %v5348_v53, %v5362_v26  ;;  %v19711_v60 = vcombine.high %v5348_v53, %v5362_v26  ;;  %v5374_v57 = vcombine.high %v5148_v27, %v5148_v27  ;;  %v5381_v61 = vrot.slane %v5148_v27, %v21575_v2 }
 0x264   :  { %v5150_v47 = vpop.f32.mrf.mxu1  ;;  %v6601_v24 = vcombine.low %v5306_v59, %v5320_v39  ;;  %v19710_v11 = vcombine.high %v5306_v59, %v5320_v39  ;;  %v6609_v21 = vrot.slane %v6599_v51, %v21575_v2  ;;  %v6616_v56 = vrot.slane %v19709_v19, %v21575_v2 }
 0x265   :  { %v6650_v49 = vcombine.low %v5355_v62, %v5369_v18  ;;  %v19712_v50 = vcombine.high %v5355_v62, %v5369_v18  ;;  %v6658_v16 = vrot.slane %v6648_v42, %v21575_v2  ;;  %v6665_v35 = vrot.slane %v19711_v60, %v21575_v2 }
 0x266   :  { %v5152_v46 = vpop.f32.mrf.mxu1  ;;  %v6623_v58 = vrot.slane %v6601_v24, %v21575_v2  ;;  %v6630_v30 = vrot.slane %v19710_v11, %v21575_v2  ;;  %v6631_v14 = vcombine.low %v6609_v21, %v6616_v56  ;;  %v5388_v23 = vrot.slane %v5374_v57, %v21575_v2 }
 0x267   :  { %v6672_v17 = vrot.slane %v6650_v49, %v21575_v2  ;;  %v6679_v12 = vrot.slane %v19712_v50, %v21575_v2  ;;  %v6680_v9 = vcombine.low %v6658_v16, %v6665_v35  ;;  %v5389_v1 = vcombine.high %v5381_v61, %v5381_v61 }
 0x268   :  { %v6632_v34 = vcombine.low %v6623_v58, %v6630_v30  ;;  %v5390_v32 = vcombine.high %v5388_v23, %v5388_v23  ;;  %v6639_v29 = vrot.slane %v6631_v14, %v21575_v2  ;;  %v5397_v5 = vrot.slane %v5381_v61, %v21575_v2 }
 0x269   :  { %v6681_v63 = vcombine.low %v6672_v17, %v6679_v12  ;;  %v5411_v3 = vrot.slane %v5389_v1, %v21575_v2  ;;  %v5404_v36 = vrot.slane %v5388_v23, %v21575_v2  ;;  %v5151_v38 = vadd.f32 %v5150_v47, %v4958_v40 }
 0x26a   :  { %v6646_v41 = vrot.slane %v6632_v34, %v21575_v2  ;;  %v5418_v48 = vrot.slane %v5390_v32, %v21575_v2  ;;  %v6688_v28 = vrot.slane %v6680_v9, %v21575_v2  ;;  %v5010_v49 = vcombine.low %v22152_v22, %v22155_v8 }
 0x26b   :  { %v6695_v20 = vrot.slane %v6681_v63, %v21575_v2  ;;  %v6697_v45 = vcombine.low %v5397_v5, %v5411_v3  ;;  %v19713_v53 = vcombine.high %v5397_v5, %v5411_v3  ;;  %v5423_v27 = vcombine.high %v5151_v38, %v5151_v38 }
 0x26c   :  { %v6647_v59 = vcombine.low %v6639_v29, %v6646_v41  ;;  %v6699_v62 = vcombine.low %v5404_v36, %v5418_v48  ;;  %v19714_v26 = vcombine.high %v5404_v36, %v5418_v48  ;;  %v5430_v19 = vrot.slane %v5151_v38, %v21575_v2 }
 0x26d   :  { %v6696_v43 = vcombine.low %v6688_v28, %v6695_v20  ;;  %v6707_v39 = vrot.slane %v6697_v45, %v21575_v2  ;;  %v6714_v51 = vrot.slane %v19713_v53, %v21575_v2  ;;  %v5437_v60 = vrot.slane %v5423_v27, %v21575_v2 }
 0x26e   :  { %v20199_v18 = vpack.c.bf16 %v6647_v59, %v6647_v59  ;;  %v6721_v40 = vrot.slane %v6699_v62, %v21575_v2  ;;  %v6728_v42 = vrot.slane %v19714_v26, %v21575_v2  ;;  %v5438_v47 = vcombine.high %v5430_v19, %v5430_v19 }
 0x26f   :  { %v20200_v57 = vpack.c.bf16 %v6696_v43, %v6696_v43  ;;  %v6729_v61 = vcombine.low %v6707_v39, %v6714_v51  ;;  %v5446_v24 = vrot.slane %v5430_v19, %v21575_v2  ;;  %v5439_v21 = vcombine.high %v5437_v60, %v5437_v60  ;;  %v8126_v39 = vld [vmem:[#allocation3 + $0xc] sm:$0x3] }
 0x270   :  { %8120 = vst.msk [vmem:[#allocation3] sm:$0xf] %vm8119_vm2, %v20199_v18  ;;  %v6730_v11 = vcombine.low %v6721_v40, %v6728_v42  ;;  %v5453_v56 = vrot.slane %v5437_v60, %v21575_v2  ;;  %v5460_v16 = vrot.slane %v5438_v47, %v21575_v2  ;;  %v5011_v46 = vcombine.low %v22158_v7, %v22180_v55 }
 0x271   :  { %8121 = vst.msk [vmem:[#allocation3 + $0x4] sm:$0xf] %vm8119_vm2, %v20200_v57  ;;  %v6737_v50 = vrot.slane %v6729_v61, %v21575_v2  ;;  %v5468_v35 = vcombine.high %v5446_v24, %v5446_v24  ;;  %v5467_v30 = vrot.slane %v5439_v21, %v21575_v2  ;;  %v22251_v23 = vrot.slane %v5010_v49, %v21575_v2 }
 0x272   :  { %v6744_v58 = vrot.slane %v6730_v11, %v21575_v2  ;;  %v5469_v14 = vcombine.high %v5453_v56, %v5453_v56  ;;  %v5470_v17 = vcombine.high %v5460_v16, %v5460_v16  ;;  %v6746_v22 = vcombine.low %v5446_v24, %v5460_v16 }
 0x273   :  { %v4983_v12 = vcombine.low %v22219_v52, %v22176_v6  ;;  %v22256_v9 = vrot.slane %v5011_v46, %v21575_v2  ;;  %v22262_v7 = vrot.slane %v4994_v54, %v21575_v2  ;;  %v5027_v55 = vcombine.low %v22183_v31, %v22155_v8 }
 0x274   :  { %v6745_v1 = vcombine.low %v6737_v50, %v6744_v58  ;;  %v6770_v34 = vcombine.low %v5467_v30, %v5469_v14  ;;  %v6753_v32 = vrot.slane %v6746_v22, %v21575_v2  ;;  %v6760_v29 = vrot.slane %v5468_v35, %v21575_v2 }
 0x275   :  { %v6769_v63 = vcombine.low %v5470_v17, %v5453_v56  ;;  %v5026_v5 = vcombine.low %v22251_v23, %v22256_v9  ;;  %v22272_v48 = vrot.slane %v5027_v55, %v21575_v2  ;;  %v5038_v54 = vcombine.low %v22149_v4, %v22173_v0  ;;  %v20527_v4 = vld [vmem:[%s25475_s3] ss:$8 sps:$4 sm:$0xff]  }
 0x276   :  { %v20201_v3 = vpack.c.bf16 %v6745_v1, %v6745_v1  ;;  %v6786_v41 = vrot.slane %v6770_v34, %v21575_v2  ;;  %v6761_v37 = vcombine.low %v6753_v32, %v6760_v29  ;;  %v22292_v53 = vcombine.low %v22176_v6, %v22219_v52 }
 0x277   :  { %v5155_v36 = vpop.f32.mrf.mxu1  ;;  %v6779_v8 = vrot.slane %v6769_v63, %v21575_v2  ;;  %v22286_v20 = vcombine.low %v22272_v48, %v22256_v9  ;;  %v5036_v45 = vcombine.low %v22272_v48, %v22146_v13  ;;  %v5471_v51 = vcombine.high %v5467_v30, %v5467_v30  ;;  %v8195_v40 = vld [vmem:[#allocation3] sm:$0xe] }
 0x278   :  { %v5156_v31 = vadd.f32 %v5155_v36, %v4983_v12  ;;  %8122 = vst.msk [vmem:[#allocation3 + $0x8] sm:$0xf] %vm8119_vm2, %v20201_v3  ;;  %v22282_v28 = vld [vmem:[#allocation3 + $0x4] sm:$0xf]  ;;  %v6768_v59 = vrot.slane %v6761_v37, %v21575_v2  ;;  %v4992_v6 = vcombine.low %v22219_v52, %v22188_v15  ;;  %v22308_v18 = vcombine.low %v22222_v33, %v22262_v7  ;;  %v22312_v47 = vld [vmem:[#allocation3] sm:$0xc] }
 0x279   :  { %v5157_v38 = vpop.f32.mrf.mxu1  ;;  %v22296_v27 = vcombine.low %v6779_v8, %v6786_v41  ;;  %v19783_v61 = vcombine.low %v8195_v40, %v22282_v28  ;;  %v22314_v24 = vld [vmem:[#allocation3] sm:$0x8]  ;;  %v19799_v52 = vcombine.low %v22312_v47, %v22282_v28 }
 0x27a   :  { %v5472_v62 = vcombine.high %v5156_v31, %v5156_v31  ;;  %v5479_v26 = vrot.slane %v5156_v31, %v21575_v2  ;;  %v20202_v42 = vpack.c.bf16 %v6768_v59, %v6768_v59  ;;  %v19815_v49 = vcombine.low %v22314_v24, %v22282_v28 }
 0x27b   :  { %v5158_v19 = vpop.f32.mrf.mxu1  ;;  %v6809_v22 = vrot.slane %v22296_v27, %v21575_v2 }
 0x27c   :  { %v5486_v60 = vrot.slane %v5472_v62, %v21575_v2  ;;  %v5487_v57 = vcombine.high %v5479_v26, %v5479_v26  ;;  %v5495_v11 = vrot.slane %v5479_v26, %v21575_v2  ;;  %v5159_v21 = vadd.f32 %v5158_v19, %v4983_v12 }
 0x27d   :  { %v5160_v56 = vpop.f32.mrf.mxu1  ;;  %v8127_v50 = vsel %vm22300_vm9, %v20202_v42, %v8126_v39  ;;  %v8572_v47 = vrot.slane %v19815_v49, 3 }
 0x27e   :  { %v5488_v16 = vcombine.high %v5486_v60, %v5486_v60  ;;  %v5502_v35 = vrot.slane %v5486_v60, %v21575_v2  ;;  %v5509_v46 = vrot.slane %v5487_v57, %v21575_v2  ;;  %8128 = vst [vmem:[#allocation3 + $0xc] sm:$0x3] %v8127_v50  ;;  %v5517_v58 = vcombine.high %v5495_v11, %v5495_v11 }
 0x27f   :  { %v6771_v30 = vcombine.low %v5471_v51, %v5495_v11  ;;  %v5521_v14 = vcombine.high %v5159_v21, %v5159_v21  ;;  %v5528_v17 = vrot.slane %v5159_v21, %v21575_v2  ;;  %v22339_v56 = vld [vmem:[#allocation3 + $0x8] sm:$0xf]  ;;  %v8363_v50 = vrot.slane %v19783_v61, 1 }
 0x280   :  { %v5516_v12 = vrot.slane %v5488_v16, %v21575_v2  ;;  %v5518_v1 = vcombine.high %v5502_v35, %v5502_v35  ;;  %v5519_v34 = vcombine.high %v5509_v46, %v5509_v46  ;;  %v6772_v55 = vcombine.low %v5509_v46, %v5517_v58 }
 0x281   :  { %v6793_v32 = vrot.slane %v6771_v30, %v21575_v2  ;;  %v5535_v29 = vrot.slane %v5521_v14, %v21575_v2  ;;  %v5536_v63 = vcombine.high %v5528_v17, %v5528_v17  ;;  %v5544_v37 = vrot.slane %v5528_v17, %v21575_v2  ;;  %v20460_v14 = vld [vmem:[#allocation3 + $0x8] ss:$0 sps:$4 sm:$0x77]  }
 0x282   :  { %v6818_v3 = vcombine.low %v5519_v34, %v5502_v35  ;;  %v6819_v41 = vcombine.low %v5516_v12, %v5518_v1  ;;  %v5520_v36 = vcombine.high %v5516_v12, %v5516_v12  ;;  %v6800_v8 = vrot.slane %v6772_v55, %v21575_v2 }
 0x283   :  { %v5537_v31 = vcombine.high %v5535_v29, %v5535_v29  ;;  %v5551_v38 = vrot.slane %v5535_v29, %v21575_v2  ;;  %v5558_v59 = vrot.slane %v5536_v63, %v21575_v2  ;;  %v5566_v27 = vcombine.high %v5544_v37, %v5544_v37 }
 0x284   :  { %v6828_v62 = vrot.slane %v6818_v3, %v21575_v2  ;;  %v6835_v26 = vrot.slane %v6819_v41, %v21575_v2  ;;  %v6820_v39 = vcombine.low %v5520_v36, %v5544_v37  ;;  %v6802_v51 = vcombine.low %v6793_v32, %v6800_v8 }
 0x285   :  { %v5565_v19 = vrot.slane %v5537_v31, %v21575_v2  ;;  %v5567_v40 = vcombine.high %v5551_v38, %v5551_v38  ;;  %v5568_v42 = vcombine.high %v5558_v59, %v5558_v59  ;;  %v5163_v60 = vpop.f32.mrf.mxu1  ;;  %v6821_v57 = vcombine.low %v5558_v59, %v5566_v27 }
 0x286   :  { %v6842_v11 = vrot.slane %v6820_v39, %v21575_v2  ;;  %v5164_v21 = vadd.f32 %v5163_v60, %v4992_v6  ;;  %v6816_v16 = vrot.slane %v6802_v51, %v21575_v2  ;;  %v6850_v35 = vcombine.low %v6828_v62, %v6835_v26 }
 0x287   :  { %v6867_v46 = vcombine.low %v5568_v42, %v5551_v38  ;;  %v6868_v58 = vcombine.low %v5565_v19, %v5567_v40  ;;  %v5165_v30 = vpop.f32.mrf.mxu1  ;;  %v6849_v17 = vrot.slane %v6821_v57, %v21575_v2  ;;  %v5569_v12 = vcombine.high %v5565_v19, %v5565_v19  ;;  %v20461_v42 = vld [vmem:[#allocation3 + $0xc] ss:$0 sps:$4 sm:$0x33]  }
 0x288   :  { %v5570_v1 = vcombine.high %v5164_v21, %v5164_v21  ;;  %v5577_v34 = vrot.slane %v5164_v21, %v21575_v2  ;;  %v6817_v55 = vcombine.low %v6809_v22, %v6816_v16  ;;  %v19831_v61 = vcombine.low %v22282_v28, %v22339_v56 }
 0x289   :  { %v6877_v32 = vrot.slane %v6867_v46, %v21575_v2  ;;  %v6884_v6 = vrot.slane %v6868_v58, %v21575_v2  ;;  %v5166_v29 = vpop.f32.mrf.mxu1  ;;  %v6851_v63 = vcombine.low %v6842_v11, %v6849_v17  ;;  %v8364_v22 = vrot.slane %v20460_v14, 1 }
 0x28a   :  { %v5584_v3 = vrot.slane %v5570_v1, %v21575_v2  ;;  %v5585_v41 = vcombine.high %v5577_v34, %v5577_v34  ;;  %v5593_v36 = vrot.slane %v5577_v34, %v21575_v2  ;;  %v20203_v37 = vpack.c.bf16 %v6817_v55, %v6817_v55  ;;  %8660 = vrot.lane.b32.xlu1 %v19831_v61, %s20684_s11  ;;  %v8228_v1 = vld [vmem:[#allocation3 + $0xc] sm:$0x1] }
 0x28b   :  { %v6899_v8 = vcombine.low %v6877_v32, %v6884_v6  ;;  %v5167_v31 = vadd.f32 %v5166_v29, %v22308_v18  ;;  %v5168_v38 = vpop.f32.mrf.mxu1  ;;  %v6858_v59 = vrot.slane %v6850_v35, %v21575_v2  ;;  %v6865_v62 = vrot.slane %v6851_v63, %v21575_v2  ;;  %8389 = vrot.lane.b32.xlu0 %v8364_v22, %s20685_s12 }
 0x28c   :  { %v5586_v26 = vcombine.high %v5584_v3, %v5584_v3  ;;  %v5607_v27 = vrot.slane %v5585_v41, %v21575_v2  ;;  %8129 = vst.msk [vmem:[#allocation3 + $0x10] sm:$0xf] %vm8119_vm2, %v20203_v37  ;;  %v5600_v39 = vrot.slane %v5584_v3, %v21575_v2  ;;  %v5615_v51 = vcombine.high %v5593_v36, %v5593_v36 }
 0x28d   :  { %v6869_v19 = vcombine.low %v5569_v12, %v5593_v36  ;;  %v5619_v40 = vcombine.high %v5167_v31, %v5167_v31  ;;  %v6866_v60 = vcombine.low %v6858_v59, %v6865_v62  ;;  %v5626_v21 = vrot.slane %v5167_v31, %v21575_v2 }
 0x28e   :  { %v5614_v57 = vrot.slane %v5586_v26, %v21575_v2  ;;  %v5617_v11 = vcombine.high %v5607_v27, %v5607_v27  ;;  %v6907_v16 = vrot.slane %v6899_v8, %v21575_v2  ;;  %v6870_v35 = vcombine.low %v5607_v27, %v5615_v51  ;;  %8662 = vrot.lane.b32.xlu1 %v20461_v42, %s20684_s11 }
 0x28f   :  { %v6891_v46 = vrot.slane %v6869_v19, %v21575_v2  ;;  %v5633_v58 = vrot.slane %v5619_v40, %v21575_v2  ;;  %v20204_v30 = vpack.c.bf16 %v6866_v60, %v6866_v60  ;;  %v8365_v12 = vsel %vm383_vm0, %v8363_v50, %v8364_v22  ;;  %v8132_v60 = vld [vmem:[#allocation3 + $0x1c] sm:$0x3] }
 0x290   :  { %v6916_v14 = vcombine.low %v5617_v11, %v5600_v39  ;;  %v6930_v17 = vrot.slane %v5614_v57, %v21575_v2  ;;  %v6898_v34 = vrot.slane %v6870_v35, %v21575_v2  ;;  %v19715_v55 = vcombine.high %v5600_v39, %v5614_v57  ;;  %8387 = vrot.lane.b32.xlu0 %v8365_v12, %s20685_s12 }
 0x291   :  { %v5634_v32 = vcombine.high %v5626_v21, %v5626_v21  ;;  %v5635_v6 = vcombine.high %v5633_v58, %v5633_v58  ;;  %8130 = vst.msk [vmem:[#allocation3 + $0x14] sm:$0xf] %vm8119_vm2, %v20204_v30  ;;  %v5642_v61 = vrot.slane %v5626_v21, %v21575_v2  ;;  %v5649_v63 = vrot.slane %v5633_v58, %v21575_v2 }
 0x292   :  { %v6923_v29 = vrot.slane %v6916_v14, %v21575_v2  ;;  %v19800_v3 = vcombine.low %v22339_v56, %v22339_v56  ;;  %v6900_v50 = vcombine.low %v6891_v46, %v6898_v34  ;;  %v19816_v37 = vcombine.low %v22339_v56, %v8228_v1 }
 0x293   :  { %v5656_v41 = vrot.slane %v5634_v32, %v21575_v2  ;;  %v5663_v36 = vrot.slane %v5635_v6, %v21575_v2  ;;  %v5040_v38 = vcombine.low %v22188_v15, %v22222_v33  ;;  %v22381_v22 = vcombine.low %v22262_v7, %v22222_v33 }
 0x294   :  { %v6931_v8 = vcombine.low %v6923_v29, %v6930_v17  ;;  %v8468_v31 = vrot.slane %v19800_v3, 2  ;;  %v6914_v59 = vrot.slane %v6900_v50, %v21575_v2  ;;  %v6949_v51 = vrot.slane %v19715_v55, %v21575_v2 }
 0x295   :  { %v6940_v62 = vcombine.low %v5642_v61, %v5656_v41  ;;  %v19716_v26 = vcombine.high %v5642_v61, %v5656_v41  ;;  %v6942_v27 = vcombine.low %v5649_v63, %v5663_v36  ;;  %v8573_v56 = vrot.slane %v19816_v37, 3 }
 0x296   :  { %v6938_v39 = vrot.slane %v6931_v8, %v21575_v2  ;;  %v5171_v19 = vpop.f32.mrf.mxu1  ;;  %8493 = vrot.lane.b32.xlu1 %v8468_v31, %s20686_s13  ;;  %v8467_v40 = vrot.slane %v19799_v52, 2  ;;  %v6915_v42 = vcombine.low %v6907_v16, %v6914_v59  ;;  %v19717_v12 = vcombine.high %v5649_v63, %v5663_v36 }
 0x297   :  { %v6956_v57 = vrot.slane %v6940_v62, %v21575_v2  ;;  %v6963_v11 = vrot.slane %v19716_v26, %v21575_v2  ;;  %v6970_v21 = vrot.slane %v6942_v27, %v21575_v2  ;;  %v5172_v46 = vadd.f32 %v5171_v19, %v22308_v18  ;;  %8598 = vrot.lane.b32.xlu0 %v8573_v56, %s20687_s14 }
 0x298   :  { %v20206_v35 = vpack.c.bf16 %v6938_v39, %v6938_v39  ;;  %v5173_v58 = vpop.f32.mrf.mxu1  ;;  %v20205_v52 = vpack.c.bf16 %v6915_v42, %v6915_v42  ;;  %v8469_v14 = vsel %vm657_vm3, %v8467_v40, %v8468_v31  ;;  %v8574_v32 = vsel %vm8571_vm11, %v8572_v47, %v8573_v56  ;;  %v8175_v40 = vld [vmem:[#allocation3 + $0x14] sm:$0xf] }
 0x299   :  { %v6971_v16 = vcombine.low %v6949_v51, %v6956_v57  ;;  %v6972_v30 = vcombine.low %v6963_v11, %v6970_v21  ;;  %v5668_v1 = vcombine.high %v5172_v46, %v5172_v46  ;;  %v5675_v34 = vrot.slane %v5172_v46, %v21575_v2 }
 0x29a   :  { %v8133_v17 = vsel %vm22300_vm9, %v20206_v35, %v8132_v60  ;;  %v5174_v55 = vpop.f32.mrf.mxu1  ;;  %8491 = vrot.lane.b32.xlu1 %v8469_v14, %s20686_s13  ;;  %8131 = vst.msk [vmem:[#allocation3 + $0x18] sm:$0xf] %vm8119_vm2, %v20205_v52  ;;  %v6998_v8 = vrot.slane %v19717_v12, %v21575_v2  ;;  %v5042_v42 = vcombine.low %v22262_v7, %v22251_v23  ;;  %v8197_v12 = vld [vmem:[#allocation3 + $0x10] sm:$0xe] }
 0x29b   :  { %8134 = vst [vmem:[#allocation3 + $0x1c] sm:$0x3] %v8133_v17  ;;  %v6979_v28 = vrot.slane %v6971_v16, %v21575_v2  ;;  %v6986_v24 = vrot.slane %v6972_v30, %v21575_v2  ;;  %v5175_v49 = vadd.f32 %v5174_v55, %v22308_v18  ;;  %v5682_v6 = vrot.slane %v5668_v1, %v21575_v2 }
 0x29c   :  { %v5683_v29 = vcombine.high %v5675_v34, %v5675_v34  ;;  %v5176_v61 = vpop.f32.mrf.mxu1  ;;  %8596 = vrot.lane.b32.xlu0 %v8574_v32, %s20687_s14  ;;  %v5691_v36 = vrot.slane %v5675_v34, %v21575_v2 }
 0x29d   :  { %v6987_v63 = vcombine.low %v6979_v28, %v6986_v24  ;;  %v5717_v3 = vcombine.high %v5175_v49, %v5175_v49  ;;  %v5724_v50 = vrot.slane %v5175_v49, %v21575_v2  ;;  %v5684_v41 = vcombine.high %v5682_v6, %v5682_v6 }
 0x29e   :  { %v5705_v37 = vrot.slane %v5683_v29, %v21575_v2  ;;  %v5698_v62 = vrot.slane %v5682_v6, %v21575_v2  ;;  %v19785_v28 = vcombine.low %v8197_v12, %v8175_v40 }
 0x29f   :  { %v20207_v18 = vpack.c.bf16 %v6987_v63, %v6987_v63  ;;  %v5731_v31 = vrot.slane %v5717_v3, %v21575_v2  ;;  %v5732_v59 = vcombine.high %v5724_v50, %v5724_v50  ;;  %v5712_v26 = vrot.slane %v5684_v41, %v21575_v2 }
 0x2a0   :  { %v6989_v27 = vcombine.low %v5691_v36, %v5705_v37  ;;  %v19718_v39 = vcombine.high %v5691_v36, %v5705_v37  ;;  %v5740_v19 = vrot.slane %v5724_v50, %v21575_v2  ;;  %v22443_v36 = vcombine.low %v22256_v9, %v22272_v48 }
 0x2a1   :  { %8135 = vst.msk [vmem:[#allocation3 + $0x20] sm:$0xf] %vm8119_vm2, %v20207_v18  ;;  %v5733_v51 = vcombine.high %v5731_v31, %v5731_v31  ;;  %v5754_v56 = vrot.slane %v5732_v59, %v21575_v2  ;;  %v6991_v60 = vcombine.low %v5698_v62, %v5712_v26  ;;  %v19719_v11 = vcombine.high %v5698_v62, %v5712_v26  ;;  %v8214_v35 = vld [vmem:[#allocation3 + $0x18] sm:$0xf]  ;;  %v8213_v18 = vld [vmem:[#allocation3 + $0x10] sm:$0xc] }
 0x2a2   :  { %v7005_v57 = vrot.slane %v6989_v27, %v21575_v2  ;;  %v22424_v21 = vrot.slane %v5731_v31, %v21575_v2  ;;  %v19833_v52 = vcombine.low %v8175_v40, %v8214_v35  ;;  %v20463_v16 = vld [vmem:[#allocation3 + $0x18] ss:$0 sps:$4 sm:$0x77]   ;;  %v7012_v30 = vrot.slane %v19718_v39, %v21575_v2  ;;  %v20464_v61 = vld [vmem:[#allocation3 + $0x1c] ss:$0 sps:$4 sm:$0x33]  }
 0x2a3   :  { %v22427_v46 = vrot.slane %v5733_v51, %v21575_v2  ;;  %v7038_v58 = vcombine.low %v5740_v19, %v5754_v56  ;;  %v19720_v47 = vcombine.high %v5740_v19, %v5754_v56  ;;  %v7019_v14 = vrot.slane %v6991_v60, %v21575_v2  ;;  %v8230_v3 = vld [vmem:[#allocation3 + $0x1c] sm:$0x1]  ;;  %v8229_v56 = vld [vmem:[#allocation3 + $0x10] sm:$0x8] }
 0x2a4   :  { %v7020_v17 = vcombine.low %v6998_v8, %v7005_v57  ;;  %v7047_v1 = vrot.slane %v19719_v11, %v21575_v2  ;;  %8664 = vrot.lane.b32.xlu1 %v19833_v52, %s20684_s11  ;;  %v8367_v49 = vrot.slane %v20463_v16, 1  ;;  %v19802_v63 = vcombine.low %v8214_v35, %v8214_v35 }
 0x2a5   :  { %v7040_v34 = vcombine.low %v22424_v21, %v22427_v46  ;;  %v7054_v55 = vrot.slane %v7038_v58, %v21575_v2  ;;  %v7021_v24 = vcombine.low %v7012_v30, %v7019_v14  ;;  %v7061_v32 = vrot.slane %v19720_v47, %v21575_v2 }
 0x2a6   :  { %v7028_v50 = vrot.slane %v7020_v17, %v21575_v2  ;;  %8393 = vrot.lane.b32.xlu0 %v8367_v49, %s20685_s12  ;;  %v8366_v8 = vrot.slane %v19785_v28, 1  ;;  %v19818_v59 = vcombine.low %v8214_v35, %v8230_v3  ;;  %v19801_v62 = vcombine.low %v8213_v18, %v8175_v40 }
 0x2a7   :  { %v7068_v6 = vrot.slane %v7040_v34, %v21575_v2  ;;  %v7069_v29 = vcombine.low %v7047_v1, %v7054_v55  ;;  %v7035_v41 = vrot.slane %v7021_v24, %v21575_v2  ;;  %v8471_v51 = vrot.slane %v19802_v63, 2 }
 0x2a8   :  { %8666 = vrot.lane.b32.xlu1 %v20464_v61, %s20684_s11  ;;  %v8368_v39 = vsel %vm383_vm0, %v8366_v8, %v8367_v49  ;;  %v19817_v57 = vcombine.low %v8229_v56, %v8175_v40  ;;  %v8576_v11 = vrot.slane %v19818_v59, 3  ;;  %v8470_v35 = vrot.slane %v19801_v62, 2  ;;  %v22472_v61 = vld [vmem:[#allocation3 + $0x20] sm:$0xe]  ;;  %v8138_v56 = vld [vmem:[#allocation3 + $0x2c] sm:$0x3] }
 0x2a9   :  { %v7070_v37 = vcombine.low %v7061_v32, %v7068_v6  ;;  %v7036_v31 = vcombine.low %v7028_v50, %v7035_v41  ;;  %v7077_v26 = vrot.slane %v7069_v29, %v21575_v2  ;;  %v19721_v30 = vcombine.high %v22424_v21, %v22427_v46  ;;  %v23007_v43 = vld [vmem:[#allocation3 + $0x20] sm:$0xf] }
 0x2aa   :  { %8391 = vrot.lane.b32.xlu0 %v8368_v39, %s20685_s12  ;;  %v8472_v16 = vsel %vm657_vm3, %v8470_v35, %v8471_v51  ;;  %v8575_v14 = vrot.slane %v19817_v57, 3 }
 0x2ab   :  { %v7084_v27 = vrot.slane %v7070_v37, %v21575_v2  ;;  %v20208_v19 = vpack.c.bf16 %v7036_v31, %v7036_v31  ;;  %v7093_v21 = vrot.slane %v19721_v30, %v21575_v2 }
 0x2ac   :  { %8497 = vrot.lane.b32.xlu1 %v8471_v51, %s20686_s13  ;;  %v8577_v9 = vsel %vm8571_vm11, %v8575_v14, %v8576_v11 }
 0x2ad   :  { %v7085_v60 = vcombine.low %v7077_v26, %v7084_v27  ;;  %8136 = vst.msk [vmem:[#allocation3 + $0x24] sm:$0xf] %vm8119_vm2, %v20208_v19 }
 0x2ae   :  { %8602 = vrot.lane.b32.xlu0 %v8576_v11, %s20687_s14  ;;  %v20476_v11 = vld [vmem:[%s25475_s3 + $0x70] ss:$8 sps:$4 sm:$0xff]  }
 0x2af   :  { %v20209_v58 = vpack.c.bf16 %v7085_v60, %v7085_v60  ;;  %v5179_v47 = vpop.f32.mrf.mxu1 }
 0x2b0   :  { %v5180_v52 = vadd.f32 %v5179_v47, %v5026_v5  ;;  %8495 = vrot.lane.b32.xlu1 %v8472_v16, %s20686_s13  ;;  %v20478_v16 = vld [vmem:[%s25475_s3 + $0x74] ss:$8 sps:$4 sm:$0xff]  }
 0x2b1   :  { %8137 = vst.msk [vmem:[#allocation3 + $0x28] sm:$0xf] %vm8119_vm2, %v20209_v58  ;;  %v5181_v40 = vpop.f32.mrf.mxu1  ;;  %10946 = vmatprep.subr.bf16.mxu0 %v20478_v16 }
 0x2b2   :  { %v5766_v17 = vcombine.high %v5180_v52, %v5180_v52  ;;  %v5773_v12 = vrot.slane %v5180_v52, %v21575_v2  ;;  %8600 = vrot.lane.b32.xlu0 %v8577_v9, %s20687_s14  ;;  %v20479_v9 = vld [vmem:[%s25475_s3 + $0x170] ss:$8 sps:$4 sm:$0xff]   ;;  %10947 = vmatpush1.bf16.msra.mxu0 %v20476_v11 }
 0x2b3   :  { %v5182_v1 = vpop.f32.mrf.mxu1 }
 0x2b4   :  { %v5780_v5 = vrot.slane %v5766_v17, %v21575_v2  ;;  %v5781_v34 = vcombine.high %v5773_v12, %v5773_v12  ;;  %v5789_v55 = vrot.slane %v5773_v12, %v21575_v2  ;;  %v5183_v28 = vadd.f32 %v5182_v1, %v22286_v20  ;;  %v22468_v24 = vld [vmem:[#allocation3 + $0x24] sm:$0xf] }
 0x2b5   :  { %v5184_v46 = vpop.f32.mrf.mxu1  ;;  %v19787_v41 = vcombine.low %v22472_v61, %v22468_v24 }
 0x2b6   :  { %v5782_v49 = vcombine.high %v5780_v5, %v5780_v5  ;;  %v5796_v32 = vrot.slane %v5780_v5, %v21575_v2  ;;  %v5803_v6 = vrot.slane %v5781_v34, %v21575_v2  ;;  %v5811_v29 = vcombine.high %v5789_v55, %v5789_v55  ;;  %v20481_v5 = vld [vmem:[%s25475_s3 + $0x174] ss:$8 sps:$4 sm:$0xff]  }
 0x2b7   :  { %v7100_v63 = vrot.slane %v5789_v55, %v21575_v2  ;;  %v5815_v3 = vcombine.high %v5183_v28, %v5183_v28  ;;  %v5822_v50 = vrot.slane %v5183_v28, %v21575_v2  ;;  %11077 = vmatprep.subr.bf16.mxu1 %v20481_v5  ;;  %v20491_v5 = vld [vmem:[%s25475_s3 + $0x164] ss:$8 sps:$4 sm:$0xff]  }
 0x2b8   :  { %v5810_v37 = vrot.slane %v5782_v49, %v21575_v2  ;;  %v5812_v8 = vcombine.high %v5796_v32, %v5796_v32  ;;  %v5813_v18 = vcombine.high %v5803_v6, %v5803_v6  ;;  %v7109_v31 = vcombine.low %v5803_v6, %v5811_v29  ;;  %v22493_v1 = vld [vmem:[#allocation3 + $0x28] ss:$0 sps:$4 sm:$0x77]   ;;  %11078 = vmatpush1.bf16.msra.mxu1 %v20479_v9 }
 0x2b9   :  { %v7101_v59 = vcombine.low %v7093_v21, %v7100_v63  ;;  %v5829_v62 = vrot.slane %v5815_v3, %v21575_v2  ;;  %v5830_v26 = vcombine.high %v5822_v50, %v5822_v50  ;;  %v5838_v27 = vrot.slane %v5822_v50, %v21575_v2  ;;  %v22502_v46 = vld [vmem:[#allocation3 + $0x28] sm:$0xf]  ;;  %11079 = vmatprep.subr.bf16.mxu1 %v20491_v5 }
 0x2ba   :  { %v7110_v39 = vcombine.low %v5813_v18, %v5796_v32  ;;  %v7111_v51 = vcombine.low %v5810_v37, %v5812_v8  ;;  %v7119_v19 = vrot.slane %v7109_v31, %v21575_v2  ;;  %v5814_v60 = vcombine.high %v5810_v37, %v5810_v37  ;;  %v5187_v57 = vpop.f32.mrf.mxu1  ;;  %v20489_v9 = vld [vmem:[%s25475_s3 + $0x160] ss:$8 sps:$4 sm:$0xff]  }
 0x2bb   :  { %v7108_v35 = vrot.slane %v7101_v59, %v21575_v2  ;;  %v5831_v58 = vcombine.high %v5829_v62, %v5829_v62  ;;  %v5845_v47 = vrot.slane %v5829_v62, %v21575_v2  ;;  %v5852_v52 = vrot.slane %v5830_v26, %v21575_v2 }
 0x2bc   :  { %v7126_v30 = vrot.slane %v7110_v39, %v21575_v2  ;;  %v5860_v40 = vcombine.high %v5838_v27, %v5838_v27  ;;  %v7112_v14 = vcombine.low %v5814_v60, %v5838_v27  ;;  %v7133_v17 = vrot.slane %v7111_v51, %v21575_v2  ;;  %v5189_v12 = vpop.f32.mrf.mxu1  ;;  %11080 = vmatpush1.bf16.msra.mxu1 %v20489_v9  ;;  %v20500_v9 = vld [vmem:[%s25475_s3 + $0x44] ss:$8 sps:$4 sm:$0xff]  }
 0x2bd   :  { %v20210_v34 = vpack.c.bf16 %v7108_v35, %v7108_v35  ;;  %v5859_v55 = vrot.slane %v5831_v58, %v21575_v2  ;;  %v5861_v28 = vcombine.high %v5845_v47, %v5845_v47  ;;  %v5862_v21 = vcombine.high %v5852_v52, %v5852_v52 }
 0x2be   :  { %v7141_v49 = vcombine.low %v7119_v19, %v7126_v30  ;;  %v7140_v32 = vrot.slane %v7112_v14, %v21575_v2  ;;  %v7158_v6 = vcombine.low %v5852_v52, %v5860_v40  ;;  %v5188_v29 = vadd.f32 %v5187_v57, %v22286_v20  ;;  %v5190_v63 = vpop.f32.mrf.mxu1  ;;  %v20485_v19 = vld [vmem:[%s25475_s3 + $0x60] ss:$8 sps:$4 sm:$0xff]  }
 0x2bf   :  { %v8139_v3 = vsel %vm22300_vm9, %v20210_v34, %v8138_v56  ;;  %v7159_v50 = vcombine.low %v5862_v21, %v5845_v47  ;;  %v7160_v37 = vcombine.low %v5859_v55, %v5861_v28  ;;  %v5863_v8 = vcombine.high %v5859_v55, %v5859_v55  ;;  %v20487_v56 = vld [vmem:[%s25475_s3 + $0x64] ss:$8 sps:$4 sm:$0xff]  }
 0x2c0   :  { %v7149_v18 = vrot.slane %v7141_v49, %v21575_v2  ;;  %8140 = vst [vmem:[#allocation3 + $0x2c] sm:$0x3] %v8139_v3  ;;  %v7142_v31 = vcombine.low %v7133_v17, %v7140_v32  ;;  %v7168_v59 = vrot.slane %v7158_v6, %v21575_v2  ;;  %v5864_v62 = vcombine.high %v5188_v29, %v5188_v29  ;;  %v5192_v26 = vpop.f32.mrf.mxu1 }
 0x2c1   :  { %v7175_v20 = vrot.slane %v7159_v50, %v21575_v2  ;;  %v5871_v27 = vrot.slane %v5188_v29, %v21575_v2  ;;  %v7182_v39 = vrot.slane %v7160_v37, %v21575_v2  ;;  %v5191_v51 = vadd.f32 %v5190_v63, %v5036_v45  ;;  %10948 = vmatprep.subr.bf16.mxu0 %v20487_v56 }
 0x2c2   :  { %v7156_v60 = vrot.slane %v7142_v31, %v21575_v2  ;;  %v5878_v57 = vrot.slane %v5864_v62, %v21575_v2  ;;  %v8370_v11 = vrot.slane %v22493_v1, 1  ;;  %v19835_v35 = vcombine.low %v22468_v24, %v22502_v46  ;;  %10949 = vmatpush1.bf16.msra.mxu0 %v20485_v19 }
 0x2c3   :  { %v7190_v58 = vcombine.low %v7168_v59, %v7175_v20  ;;  %v5879_v13 = vcombine.high %v5871_v27, %v5871_v27  ;;  %v5887_v48 = vrot.slane %v5871_v27, %v21575_v2  ;;  %v5913_v45 = vcombine.high %v5191_v51, %v5191_v51  ;;  %v20494_v20 = vld [vmem:[%s25475_s3 + $0x50] ss:$8 sps:$4 sm:$0xff]   ;;  %v20496_v27 = vld [vmem:[%s25475_s3 + $0x54] ss:$8 sps:$4 sm:$0xff]  }
 0x2c4   :  { %v7157_v47 = vcombine.low %v7149_v18, %v7156_v60  ;;  %v5880_v52 = vcombine.high %v5878_v57, %v5878_v57  ;;  %v5894_v16 = vrot.slane %v5878_v57, %v21575_v2  ;;  %v5920_v30 = vrot.slane %v5191_v51, %v21575_v2  ;;  %8397 = vrot.lane.b32.xlu0 %v8370_v11, %s20685_s12 }
 0x2c5   :  { %v7198_v40 = vrot.slane %v7190_v58, %v21575_v2  ;;  %v5901_v14 = vrot.slane %v5879_v13, %v21575_v2  ;;  %v5909_v17 = vcombine.high %v5887_v48, %v5887_v48  ;;  %v7161_v12 = vcombine.low %v5863_v8, %v5887_v48  ;;  %10950 = vmatprep.subr.bf16.mxu0 %v20496_v27  ;;  %v8144_v27 = vld [vmem:[#allocation3 + $0x3c] sm:$0x3] }
 0x2c6   :  { %v20211_v34 = vpack.c.bf16 %v7157_v47, %v7157_v47  ;;  %v5908_v55 = vrot.slane %v5880_v52, %v21575_v2  ;;  %v5910_v28 = vcombine.high %v5894_v16, %v5894_v16  ;;  %v5927_v21 = vrot.slane %v5913_v45, %v21575_v2  ;;  %10951 = vmatpush1.bf16.msra.mxu0 %v20494_v20 }
 0x2c7   :  { %v5911_v49 = vcombine.high %v5901_v14, %v5901_v14  ;;  %v7189_v32 = vrot.slane %v7161_v12, %v21575_v2  ;;  %v7207_v6 = vcombine.low %v5901_v14, %v5909_v17  ;;  %v5928_v29 = vcombine.high %v5920_v30, %v5920_v30  ;;  %v20465_v63 = vld [vmem:[#allocation3 + $0x2c] ss:$0 sps:$4 sm:$0x33]   ;;  %v20498_v12 = vld [vmem:[%s25475_s3 + $0x40] ss:$8 sps:$4 sm:$0xff]   ;;  %10952 = vmatprep.subr.bf16.mxu0 %v20500_v9 }
 0x2c8   :  { %8141 = vst.msk [vmem:[#allocation3 + $0x30] sm:$0xf] %vm8119_vm2, %v20211_v34  ;;  %v7209_v3 = vcombine.low %v5908_v55, %v5910_v28  ;;  %v5912_v50 = vcombine.high %v5908_v55, %v5908_v55  ;;  %v5929_v37 = vcombine.high %v5927_v21, %v5927_v21  ;;  %v5936_v8 = vrot.slane %v5920_v30, %v21575_v2  ;;  %v8232_v18 = vld [vmem:[#allocation3 + $0x2c] sm:$0x1] }
 0x2c9   :  { %v7191_v31 = vcombine.low %v7182_v39, %v7189_v32  ;;  %v7208_v59 = vcombine.low %v5911_v49, %v5894_v16  ;;  %v7217_v62 = vrot.slane %v7207_v6, %v21575_v2  ;;  %v5943_v26 = vrot.slane %v5927_v21, %v21575_v2  ;;  %8670 = vrot.lane.b32.xlu1 %v20465_v63, %s20684_s11  ;;  %v8215_v32 = vld [vmem:[#allocation3 + $0x20] sm:$0xc] }
 0x2ca   :  { %v5950_v51 = vrot.slane %v5928_v29, %v21575_v2  ;;  %v5957_v19 = vrot.slane %v5929_v37, %v21575_v2  ;;  %v5958_v39 = vcombine.high %v5936_v8, %v5936_v8  ;;  %v7210_v56 = vcombine.low %v5912_v50, %v5936_v8  ;;  %v8231_v6 = vld [vmem:[#allocation3 + $0x20] sm:$0x8]  ;;  %10953 = vmatpush1.bf16.msra.mxu0 %v20498_v12 }
 0x2cb   :  { %v7205_v60 = vrot.slane %v7191_v31, %v21575_v2  ;;  %v7224_v57 = vrot.slane %v7208_v59, %v21575_v2  ;;  %v7231_v58 = vrot.slane %v7209_v3, %v21575_v2  ;;  %v19820_v13 = vcombine.low %v22502_v46, %v8232_v18  ;;  %v20505_v31 = vld [vmem:[%s25475_s3 + $0x34] ss:$8 sps:$4 sm:$0xff]  }
 0x2cc   :  { %v5960_v48 = vcombine.high %v5950_v51, %v5950_v51  ;;  %v7238_v45 = vrot.slane %v7210_v56, %v21575_v2  ;;  %v7256_v47 = vcombine.low %v5950_v51, %v5958_v39  ;;  %v7279_v52 = vcombine.low %v5943_v26, %v5957_v19  ;;  %10954 = vmatprep.subr.bf16.mxu0 %v20505_v31 }
 0x2cd   :  { %v7206_v16 = vcombine.low %v7198_v40, %v7205_v60  ;;  %v7239_v30 = vcombine.low %v7217_v62, %v7224_v57  ;;  %v19722_v14 = vcombine.high %v5943_v26, %v5957_v19  ;;  %8668 = vrot.lane.b32.xlu1 %v19835_v35, %s20684_s11  ;;  %v8579_v17 = vrot.slane %v19820_v13, 3  ;;  %v20508_v26 = vld [vmem:[%s25475_s3 + $0x154] ss:$8 sps:$4 sm:$0xff]   ;;  %v20511_v13 = vld [vmem:[%s25475_s3 + $0x20] ss:$8 sps:$4 sm:$0xff]  }
 0x2ce   :  { %v7240_v5 = vcombine.low %v7231_v58, %v7238_v45  ;;  %v7263_v34 = vrot.slane %v7256_v47, %v21575_v2  ;;  %v7270_v55 = vrot.slane %v5960_v48, %v21575_v2  ;;  %v7289_v40 = vrot.slane %v7279_v52, %v21575_v2  ;;  %11081 = vmatprep.subr.bf16.mxu1 %v20508_v26  ;;  %v20513_v48 = vld [vmem:[%s25475_s3 + $0x24] ss:$8 sps:$4 sm:$0xff]  }
 0x2cf   :  { %v7247_v28 = vrot.slane %v7239_v30, %v21575_v2  ;;  %v20212_v21 = vpack.c.bf16 %v7206_v16, %v7206_v16  ;;  %v7296_v35 = vrot.slane %v19722_v14, %v21575_v2  ;;  %8606 = vrot.lane.b32.xlu0 %v8579_v17, %s20687_s14  ;;  %v19804_v49 = vcombine.low %v22502_v46, %v22502_v46  ;;  %v20503_v46 = vld [vmem:[%s25475_s3 + $0x30] ss:$8 sps:$4 sm:$0xff]  }
 0x2d0   :  { %v7254_v29 = vrot.slane %v7240_v5, %v21575_v2  ;;  %v7271_v63 = vcombine.low %v7263_v34, %v7270_v55  ;;  %v8369_v3 = vrot.slane %v19787_v41, 1  ;;  %v19803_v50 = vcombine.low %v8215_v32, %v22468_v24  ;;  %10955 = vmatpush1.bf16.msra.mxu0 %v20503_v46  ;;  %v22630_v32 = vld [vmem:[#allocation3 + $0x30] sm:$0x8] }
 0x2d1   :  { %8142 = vst.msk [vmem:[#allocation3 + $0x34] sm:$0xf] %vm8119_vm2, %v20212_v21  ;;  %v5195_v37 = vpop.f32.mrf.mxu1  ;;  %v8474_v8 = vrot.slane %v19804_v49, 2  ;;  %v19819_v18 = vcombine.low %v8231_v6, %v22468_v24  ;;  %v20506_v24 = vld [vmem:[%s25475_s3 + $0x150] ss:$8 sps:$4 sm:$0xff]   ;;  %v7311_v20 = vcombine.low %v7289_v40, %v7296_v35  ;;  %10956 = vmatprep.subr.bf16.mxu0 %v20513_v48 }
 0x2d2   :  { %v7255_v61 = vcombine.low %v7247_v28, %v7254_v29  ;;  %v7278_v41 = vrot.slane %v7271_v63, %v21575_v2  ;;  %v5196_v59 = vadd.f32 %v5195_v37, %v22276_v44  ;;  %v8371_v62 = vsel %vm383_vm0, %v8369_v3, %v8370_v11  ;;  %11082 = vmatpush1.bf16.msra.mxu1 %v20506_v24  ;;  %v8201_v40 = vld [vmem:[#allocation3 + $0x30] sm:$0xe]  ;;  %v20519_v29 = vld [vmem:[%s25475_s3 + $0x14] ss:$8 sps:$4 sm:$0xff]  }
 0x2d3   :  { %v5197_v51 = vpop.f32.mrf.mxu1  ;;  %8501 = vrot.lane.b32.xlu1 %v8474_v8, %s20686_s13  ;;  %8395 = vrot.lane.b32.xlu0 %v8371_v62, %s20685_s12  ;;  %v8473_v19 = vrot.slane %v19803_v50, 2  ;;  %v8578_v39 = vrot.slane %v19819_v18, 3  ;;  %v22617_v30 = vrot.slane %v7311_v20, %v21575_v2  ;;  %v8217_v28 = vld [vmem:[#allocation3 + $0x30] sm:$0xc]  ;;  %v20524_v18 = vld [vmem:[%s25475_s3 + $0x144] ss:$8 sps:$4 sm:$0xff]  }
 0x2d4   :  { %v20213_v1 = vpack.c.bf16 %v7255_v61, %v7255_v61  ;;  %v20214_v56 = vpack.c.bf16 %v7278_v41, %v7278_v41  ;;  %v5962_v11 = vcombine.high %v5196_v59, %v5196_v59  ;;  %v5969_v60 = vrot.slane %v5196_v59, %v21575_v2  ;;  %10957 = vmatpush1.bf16.msra.mxu0 %v20511_v13  ;;  %v20517_v6 = vld [vmem:[%s25475_s3 + $0x10] ss:$8 sps:$4 sm:$0xff]  }
 0x2d5   :  { %v5198_v57 = vpop.f32.mrf.mxu1  ;;  %v8475_v58 = vsel %vm657_vm3, %v8473_v19, %v8474_v8  ;;  %v8580_v16 = vsel %vm8571_vm11, %v8578_v39, %v8579_v17  ;;  %v20522_v8 = vld [vmem:[%s25475_s3 + $0x140] ss:$8 sps:$4 sm:$0xff]   ;;  %10958 = vmatprep.subr.bf16.mxu0 %v20519_v29  ;;  %11083 = vmatprep.subr.bf16.mxu1 %v20524_v18 }
 0x2d6   :  { %8143 = vst.msk [vmem:[#allocation3 + $0x38] sm:$0xf] %vm8119_vm2, %v20213_v1  ;;  %v8145_v45 = vsel %vm22300_vm9, %v20214_v56, %v8144_v27  ;;  %v5976_v47 = vrot.slane %v5962_v11, %v21575_v2  ;;  %v5977_v52 = vcombine.high %v5969_v60, %v5969_v60  ;;  %v5199_v14 = vadd.f32 %v5198_v57, %v22276_v44 }
 0x2d7   :  { %8146 = vst [vmem:[#allocation3 + $0x3c] sm:$0x3] %v8145_v45  ;;  %v5200_v12 = vpop.f32.mrf.mxu1  ;;  %8499 = vrot.lane.b32.xlu1 %v8475_v58, %s20686_s13  ;;  %8604 = vrot.lane.b32.xlu0 %v8580_v16, %s20687_s14  ;;  %v5985_v5 = vrot.slane %v5969_v60, %v21575_v2 }
 0x2d8   :  { %v5978_v9 = vcombine.high %v5976_v47, %v5976_v47  ;;  %v5992_v34 = vrot.slane %v5976_v47, %v21575_v2  ;;  %v5999_v55 = vrot.slane %v5977_v52, %v21575_v2  ;;  %v22625_v17 = vld [vmem:[#allocation3 + $0x34] sm:$0xf]  ;;  %v6011_v21 = vcombine.high %v5199_v14, %v5199_v14  ;;  %10959 = vmatpush1.bf16.msra.mxu0 %v20517_v6  ;;  %v20529_v12 = vld [vmem:[%s25475_s3 + $0x4] ss:$8 sps:$4 sm:$0xff]  }
 0x2d9   :  { %v6018_v44 = vrot.slane %v5199_v14, %v21575_v2  ;;  %v19789_v35 = vcombine.low %v8201_v40, %v22625_v17  ;;  %v19805_v49 = vcombine.low %v8217_v28, %v22625_v17  ;;  %v19821_v37 = vcombine.low %v22630_v32, %v22625_v17  ;;  %11084 = vmatpush1.bf16.msra.mxu1 %v20522_v8  ;;  %v20536_v28 = vld [vmem:[%s25475_s3 + $0xf4] ss:$8 sps:$4 sm:$0xff]  }
 0x2da   :  { %v6006_v63 = vrot.slane %v5978_v9, %v21575_v2  ;;  %v7281_v3 = vcombine.low %v5985_v5, %v5999_v55  ;;  %v19723_v50 = vcombine.high %v5985_v5, %v5999_v55  ;;  %v6025_v46 = vrot.slane %v6011_v21, %v21575_v2  ;;  %10960 = vmatprep.subr.bf16.mxu0 %v20529_v12 }
 0x2db   :  { %v6026_v31 = vcombine.high %v6018_v44, %v6018_v44  ;;  %v6034_v61 = vrot.slane %v6018_v44, %v21575_v2  ;;  %v5203_v41 = vpop.f32.mrf.mxu1  ;;  %v22649_v59 = vrot.slane %v19789_v35, 1  ;;  %v22660_v58 = vrot.slane %v19805_v49, 2 }
 0x2dc   :  { %v7303_v62 = vrot.slane %v7281_v3, %v21575_v2  ;;  %v7310_v24 = vrot.slane %v19723_v50, %v21575_v2  ;;  %v7328_v26 = vcombine.low %v5992_v34, %v6006_v63  ;;  %v19724_v20 = vcombine.high %v5992_v34, %v6006_v63  ;;  %10961 = vmatpush1.bf16.msra.mxu0 %v20527_v4  ;;  %v20534_v50 = vld [vmem:[%s25475_s3 + $0xf0] ss:$8 sps:$4 sm:$0xff]  }
 0x2dd   :  { %v6027_v27 = vcombine.high %v6025_v46, %v6025_v46  ;;  %v6041_v51 = vrot.slane %v6025_v46, %v21575_v2  ;;  %v6048_v19 = vrot.slane %v6026_v31, %v21575_v2  ;;  %v5204_v39 = vadd.f32 %v5203_v41, %v5038_v54  ;;  %v5205_v1 = vpop.f32.mrf.mxu1  ;;  %10962 = vmatprep.subr.bf16.mxu0 %v20536_v28  ;;  %v20549_v28 = vld [vmem:[%s25475_s3 + $0x124] ss:$8 sps:$4 sm:$0xff]  }
 0x2de   :  { %v7312_v56 = vcombine.low %v7303_v62, %v7310_v24  ;;  %v7338_v11 = vrot.slane %v7328_v26, %v21575_v2  ;;  %v7345_v60 = vrot.slane %v19724_v20, %v21575_v2  ;;  %v20468_v57 = vld [vmem:[#allocation3 + $0x3c] ss:$0 sps:$4 sm:$0x33]   ;;  %v20539_v24 = vld [vmem:[%s25475_s3 + $0xe4] ss:$8 sps:$4 sm:$0xff]  }
 0x2df   :  { %v6055_v13 = vrot.slane %v6027_v27, %v21575_v2  ;;  %v7330_v48 = vcombine.low %v6034_v61, %v6048_v19  ;;  %v19725_v45 = vcombine.high %v6034_v61, %v6048_v19  ;;  %v6060_v47 = vcombine.high %v5204_v39, %v5204_v39  ;;  %v5206_v52 = vpop.f32.mrf.mxu1  ;;  %8674 = vrot.lane.b32.xlu1 %v20468_v57, %s20684_s11  ;;  %v20540_v19 = vld [vmem:[%s25475_s3 + $0x130] ss:$8 sps:$4 sm:$0xff]   ;;  %v20537_v57 = vld [vmem:[%s25475_s3 + $0xe0] ss:$8 sps:$4 sm:$0xff]  }
 0x2e0   :  { %v7326_v0 = vrot.slane %v7312_v56, %v21575_v2  ;;  %v7360_v54 = vcombine.low %v7338_v11, %v7345_v60  ;;  %v6067_v16 = vrot.slane %v5204_v39, %v21575_v2  ;;  %v5207_v14 = vadd.f32 %v5206_v52, %v22292_v53  ;;  %v20542_v39 = vld [vmem:[%s25475_s3 + $0x134] ss:$8 sps:$4 sm:$0xff]   ;;  %10963 = vmatpush2.bf16.msra.mxu0 %v20534_v50 }
 0x2e1   :  { %v7352_v9 = vrot.slane %v7330_v48, %v21575_v2  ;;  %v7359_v5 = vrot.slane %v19725_v45, %v21575_v2  ;;  %v7377_v34 = vcombine.low %v6041_v51, %v6055_v13  ;;  %v19726_v55 = vcombine.high %v6041_v51, %v6055_v13  ;;  %v5208_v40 = vpop.f32.mrf.mxu1  ;;  %10964 = vmatprep.subr.bf16.mxu0 %v20539_v24 }
 0x2e2   :  { %v7327_v21 = vcombine.low %v22617_v30, %v7326_v0  ;;  %v7368_v44 = vrot.slane %v7360_v54, %v21575_v2  ;;  %v6074_v35 = vrot.slane %v6060_v47, %v21575_v2  ;;  %v6075_v49 = vcombine.high %v6067_v16, %v6067_v16  ;;  %11085 = vmatprep.subr.bf16.mxu1 %v20542_v39  ;;  %v20547_v40 = vld [vmem:[%s25475_s3 + $0x120] ss:$8 sps:$4 sm:$0xff]  }
 0x2e3   :  { %v7361_v6 = vcombine.low %v7352_v9, %v7359_v5  ;;  %v7387_v29 = vrot.slane %v7377_v34, %v21575_v2  ;;  %v7394_v63 = vrot.slane %v19726_v55, %v21575_v2  ;;  %v6083_v3 = vrot.slane %v6067_v16, %v21575_v2  ;;  %11086 = vmatpush1.bf16.msra.mxu1 %v20540_v19  ;;  %v8150_v19 = vld [vmem:[#allocation3 + $0x4c] sm:$0x3] }
 0x2e4   :  { %v20215_v8 = vpack.c.bf16 %v7327_v21, %v7327_v21  ;;  %v6076_v30 = vcombine.high %v6074_v35, %v6074_v35  ;;  %v6090_v18 = vrot.slane %v6074_v35, %v21575_v2  ;;  %v6097_v46 = vrot.slane %v6075_v49, %v21575_v2  ;;  %10965 = vmatpush2.bf16.msra.mxu0 %v20537_v57 }
 0x2e5   :  { %v7375_v31 = vrot.slane %v7361_v6, %v21575_v2  ;;  %v7409_v61 = vcombine.low %v7387_v29, %v7394_v63  ;;  %v6109_v41 = vcombine.high %v5207_v14, %v5207_v14  ;;  %v6116_v62 = vrot.slane %v5207_v14, %v21575_v2  ;;  %v20546_v14 = vld [vmem:[%s25475_s3 + $0xd4] ss:$8 sps:$4 sm:$0xff]   ;;  %v20544_v6 = vld [vmem:[%s25475_s3 + $0xd0] ss:$8 sps:$4 sm:$0xff]   ;;  %11087 = vmatprep.subr.bf16.mxu1 %v20549_v28 }
 0x2e6   :  { %8147 = vst.msk [vmem:[#allocation3 + $0x40] sm:$0xf] %vm8119_vm2, %v20215_v8  ;;  %v6104_v26 = vrot.slane %v6076_v30, %v21575_v2  ;;  %v6106_v20 = vcombine.high %v6090_v18, %v6090_v18  ;;  %v7379_v27 = vcombine.low %v6083_v3, %v6097_v46  ;;  %v19727_v51 = vcombine.high %v6083_v3, %v6097_v46  ;;  %v20552_v30 = vld [vmem:[%s25475_s3 + $0xc4] ss:$8 sps:$4 sm:$0xff]  }
 0x2e7   :  { %v7376_v1 = vcombine.low %v7368_v44, %v7375_v31  ;;  %v7417_v56 = vrot.slane %v7409_v61, %v21575_v2  ;;  %v6123_v11 = vrot.slane %v6109_v41, %v21575_v2  ;;  %v6124_v60 = vcombine.high %v6116_v62, %v6116_v62  ;;  %10966 = vmatprep.subr.bf16.mxu0 %v20546_v14  ;;  %v20555_v41 = vld [vmem:[%s25475_s3 + $0x114] ss:$8 sps:$4 sm:$0xff]  }
 0x2e8   :  { %v7401_v13 = vrot.slane %v7379_v27, %v21575_v2  ;;  %v7408_v48 = vrot.slane %v19727_v51, %v21575_v2  ;;  %v7426_v45 = vcombine.low %v6090_v18, %v6104_v26  ;;  %v7440_v47 = vrot.slane %v6106_v20, %v21575_v2  ;;  %v5211_v52 = vpop.f32.mrf.mxu1  ;;  %11088 = vmatpush1.bf16.msra.mxu1 %v20547_v40  ;;  %v20553_v51 = vld [vmem:[%s25475_s3 + $0x110] ss:$8 sps:$4 sm:$0xff]  }
 0x2e9   :  { %v20216_v4 = vpack.c.bf16 %v7376_v1, %v7376_v1  ;;  %v6108_v0 = vcombine.high %v6104_v26, %v6104_v26  ;;  %v6125_v54 = vcombine.high %v6123_v11, %v6123_v11  ;;  %v6132_v16 = vrot.slane %v6116_v62, %v21575_v2  ;;  %10967 = vmatpush2.bf16.msra.mxu0 %v20544_v6 }
 0x2ea   :  { %v7410_v12 = vcombine.low %v7401_v13, %v7408_v48  ;;  %v7433_v9 = vrot.slane %v7426_v45, %v21575_v2  ;;  %v6139_v5 = vrot.slane %v6123_v11, %v21575_v2  ;;  %v6146_v34 = vrot.slane %v6124_v60, %v21575_v2  ;;  %v5213_v55 = vpop.f32.mrf.mxu1  ;;  %10968 = vmatprep.subr.bf16.mxu0 %v20552_v30 }
 0x2eb   :  { %8148 = vst.msk [vmem:[#allocation3 + $0x44] sm:$0xf] %vm8119_vm2, %v20216_v4  ;;  %v6153_v21 = vrot.slane %v6125_v54, %v21575_v2  ;;  %v6154_v44 = vcombine.high %v6132_v16, %v6132_v16  ;;  %v7449_v35 = vcombine.low %v6108_v0, %v6132_v16  ;;  %v5212_v49 = vadd.f32 %v5211_v52, %v22292_v53  ;;  %v20562_v54 = vld [vmem:[%s25475_s3 + $0x104] ss:$8 sps:$4 sm:$0xff]  }
 0x2ec   :  { %v7424_v29 = vrot.slane %v7410_v12, %v21575_v2  ;;  %v7441_v63 = vcombine.low %v7433_v9, %v7440_v47  ;;  %v6155_v3 = vcombine.high %v6139_v5, %v6139_v5  ;;  %v6156_v50 = vcombine.high %v6146_v34, %v6146_v34  ;;  %v5214_v8 = vpop.f32.mrf.mxu1  ;;  %v20559_v47 = vld [vmem:[%s25475_s3 + $0xb4] ss:$8 sps:$4 sm:$0xff]   ;;  %11089 = vmatprep.subr.bf16.mxu1 %v20555_v41 }
 0x2ed   :  { %v7450_v18 = vcombine.low %v6146_v34, %v6154_v44  ;;  %v7459_v46 = vrot.slane %v7449_v35, %v21575_v2  ;;  %v6157_v31 = vcombine.high %v6153_v21, %v6153_v21  ;;  %v6158_v61 = vcombine.high %v5212_v49, %v5212_v49  ;;  %11090 = vmatpush1.bf16.msra.mxu1 %v20553_v51 }
 0x2ee   :  { %v7425_v62 = vcombine.low %v7417_v56, %v7424_v29  ;;  %v7448_v24 = vrot.slane %v7441_v63, %v21575_v2  ;;  %v7451_v26 = vcombine.low %v6156_v50, %v6139_v5  ;;  %v7452_v20 = vcombine.low %v6153_v21, %v6155_v3  ;;  %v5216_v27 = vpop.f32.mrf.mxu1  ;;  %v20550_v56 = vld [vmem:[%s25475_s3 + $0xc0] ss:$8 sps:$4 sm:$0xff]   ;;  %v20557_v21 = vld [vmem:[%s25475_s3 + $0xb0] ss:$8 sps:$4 sm:$0xff]   ;;  %v20565_v29 = vld [vmem:[%s25475_s3 + $0xa4] ss:$8 sps:$4 sm:$0xff]   ;;  %11091 = vmatprep.subr.bf16.mxu1 %v20562_v54 }
 0x2ef   :  { %v7466_v39 = vrot.slane %v7450_v18, %v21575_v2  ;;  %v6165_v1 = vrot.slane %v5212_v49, %v21575_v2  ;;  %v6172_v11 = vrot.slane %v6158_v61, %v21575_v2  ;;  %v5215_v60 = vadd.f32 %v5214_v8, %v22292_v53  ;;  %v20560_v5 = vld [vmem:[%s25475_s3 + $0x100] ss:$8 sps:$4 sm:$0xff]   ;;  %10969 = vmatpush2.bf16.msra.mxu0 %v20550_v56 }
 0x2f0   :  { %v20217_v57 = vpack.c.bf16 %v7425_v62, %v7425_v62  ;;  %v20218_v13 = vpack.c.bf16 %v7448_v24, %v7448_v24  ;;  %v7473_v48 = vrot.slane %v7451_v26, %v21575_v2  ;;  %v7480_v45 = vrot.slane %v7452_v20, %v21575_v2  ;;  %10970 = vmatprep.subr.bf16.mxu0 %v20559_v47  ;;  %v20563_v26 = vld [vmem:[%s25475_s3 + $0xa0] ss:$8 sps:$4 sm:$0xff]  }
 0x2f1   :  { %v7481_v52 = vcombine.low %v7459_v46, %v7466_v39  ;;  %v6173_v4 = vcombine.high %v6165_v1, %v6165_v1  ;;  %v6174_v0 = vcombine.high %v6172_v11, %v6172_v11  ;;  %v6181_v53 = vrot.slane %v6165_v1, %v21575_v2  ;;  %11092 = vmatpush1.bf16.msra.mxu1 %v20560_v5  ;;  %v20570_v1 = vld [vmem:[%s25475_s3 + $0x94] ss:$8 sps:$4 sm:$0xff]  }
 0x2f2   :  { %8149 = vst.msk [vmem:[#allocation3 + $0x48] sm:$0xf] %vm8119_vm2, %v20217_v57  ;;  %v8151_v16 = vsel %vm22300_vm9, %v20218_v13, %v8150_v19  ;;  %v7482_v14 = vcombine.low %v7473_v48, %v7480_v45  ;;  %v6188_v12 = vrot.slane %v6172_v11, %v21575_v2  ;;  %v6207_v9 = vcombine.high %v5215_v60, %v5215_v60 }
 0x2f3   :  { %8152 = vst [vmem:[#allocation3 + $0x4c] sm:$0x3] %v8151_v16  ;;  %v7489_v34 = vrot.slane %v7481_v52, %v21575_v2  ;;  %v6195_v55 = vrot.slane %v6173_v4, %v21575_v2  ;;  %v6202_v40 = vrot.slane %v6174_v0, %v21575_v2  ;;  %v6203_v28 = vcombine.high %v6181_v53, %v6181_v53  ;;  %v22794_v4 = vld [vmem:[#allocation3 + $0x38] ss:$0 sps:$4 sm:$0x77]  }
 0x2f4   :  { %v7496_v44 = vrot.slane %v7482_v14, %v21575_v2  ;;  %v6204_v35 = vcombine.high %v6188_v12, %v6188_v12  ;;  %v7498_v49 = vcombine.low %v6157_v31, %v6181_v53  ;;  %v6214_v6 = vrot.slane %v5215_v60, %v21575_v2  ;;  %10971 = vmatpush2.bf16.msra.mxu0 %v20557_v21  ;;  %v20568_v14 = vld [vmem:[%s25475_s3 + $0x90] ss:$8 sps:$4 sm:$0xff]  }
 0x2f5   :  { %v6205_v63 = vcombine.high %v6195_v55, %v6195_v55  ;;  %v7499_v3 = vcombine.low %v6195_v55, %v6203_v28  ;;  %v6206_v50 = vcombine.high %v6202_v40, %v6202_v40  ;;  %v6221_v8 = vrot.slane %v6207_v9, %v21575_v2  ;;  %10972 = vmatprep.subr.bf16.mxu0 %v20565_v29  ;;  %v20576_v28 = vld [vmem:[%s25475_s3 + $0x84] ss:$8 sps:$4 sm:$0xff]  }
 0x2f6   :  { %v7497_v30 = vcombine.low %v7489_v34, %v7496_v44  ;;  %v7501_v18 = vcombine.low %v6202_v40, %v6204_v35  ;;  %v7508_v46 = vrot.slane %v7498_v49, %v21575_v2  ;;  %v6222_v61 = vcombine.high %v6214_v6, %v6214_v6 }
 0x2f7   :  { %v7500_v31 = vcombine.low %v6205_v63, %v6188_v12  ;;  %v7515_v41 = vrot.slane %v7499_v3, %v21575_v2  ;;  %v6223_v62 = vcombine.high %v6221_v8, %v6221_v8  ;;  %v6230_v24 = vrot.slane %v6214_v6, %v21575_v2 }
 0x2f8   :  { %v20219_v20 = vpack.c.bf16 %v7497_v30, %v7497_v30  ;;  %v7529_v27 = vrot.slane %v7501_v18, %v21575_v2  ;;  %v6237_v51 = vrot.slane %v6221_v8, %v21575_v2  ;;  %v6244_v19 = vrot.slane %v6222_v61, %v21575_v2  ;;  %v5219_v39 = vpop.f32.mrf.mxu1  ;;  %10973 = vmatpush2.bf16.msra.mxu0 %v20563_v26  ;;  %v20574_v8 = vld [vmem:[%s25475_s3 + $0x80] ss:$8 sps:$4 sm:$0xff]  }
 0x2f9   :  { %v7522_v11 = vrot.slane %v7500_v31, %v21575_v2  ;;  %v7530_v60 = vcombine.low %v7508_v46, %v7515_v41  ;;  %v6251_v56 = vrot.slane %v6223_v62, %v21575_v2  ;;  %v6252_v57 = vcombine.high %v6230_v24, %v6230_v24  ;;  %10974 = vmatprep.subr.bf16.mxu0 %v20570_v1  ;;  %v22818_v31 = vld [vmem:[#allocation3 + $0x38] sm:$0xf] }
 0x2fa   :  { %8153 = vst.msk [vmem:[#allocation3 + $0x50] sm:$0xf] %vm8119_vm2, %v20219_v20  ;;  %v6253_v13 = vcombine.high %v6237_v51, %v6237_v51  ;;  %v6254_v48 = vcombine.high %v6244_v19, %v6244_v19  ;;  %v7547_v45 = vcombine.low %v6206_v50, %v6230_v24  ;;  %v5220_v47 = vadd.f32 %v5219_v39, %v5040_v38  ;;  %v5221_v52 = vpop.f32.mrf.mxu1 }
 0x2fb   :  { %v7531_v0 = vcombine.low %v7522_v11, %v7529_v27  ;;  %v7538_v53 = vrot.slane %v7530_v60, %v21575_v2  ;;  %v7548_v54 = vcombine.low %v6244_v19, %v6252_v57  ;;  %v6255_v16 = vcombine.high %v6251_v56, %v6251_v56 }
 0x2fc   :  { %v7549_v12 = vcombine.low %v6254_v48, %v6237_v51  ;;  %v7550_v9 = vcombine.low %v6251_v56, %v6253_v13  ;;  %v7557_v5 = vrot.slane %v7547_v45, %v21575_v2  ;;  %v6256_v34 = vcombine.high %v5220_v47, %v5220_v47  ;;  %v5222_v15 = vpop.f32.mrf.mxu1  ;;  %10975 = vmatpush2.bf16.msra.mxu0 %v20568_v14  ;;  %v8234_v45 = vld [vmem:[#allocation3 + $0x3c] sm:$0x1] }
 0x2fd   :  { %v7545_v33 = vrot.slane %v7531_v0, %v21575_v2  ;;  %v7564_v38 = vrot.slane %v7548_v54, %v21575_v2  ;;  %v6263_v55 = vrot.slane %v5220_v47, %v21575_v2  ;;  %v5223_v40 = vadd.f32 %v5222_v15, %v22381_v22  ;;  %10976 = vmatprep.subr.bf16.mxu0 %v20576_v28 }
 0x2fe   :  { %v7571_v21 = vrot.slane %v7549_v12, %v21575_v2  ;;  %v7578_v44 = vrot.slane %v7550_v9, %v21575_v2  ;;  %v6270_v35 = vrot.slane %v6256_v34, %v21575_v2  ;;  %v5224_v49 = vpop.f32.mrf.mxu1  ;;  %v8373_v6 = vrot.slane %v22794_v4, 1 }
 0x2ff   :  { %v7546_v29 = vcombine.low %v7538_v53, %v7545_v33  ;;  %v7579_v63 = vcombine.low %v7557_v5, %v7564_v38  ;;  %v6271_v3 = vcombine.high %v6263_v55, %v6263_v55  ;;  %v6279_v50 = vrot.slane %v6263_v55, %v21575_v2  ;;  %v8156_v38 = vld [vmem:[#allocation3 + $0x5c] sm:$0x3] }
 0x300   :  { %v7580_v30 = vcombine.low %v7571_v21, %v7578_v44  ;;  %v6272_v18 = vcombine.high %v6270_v35, %v6270_v35  ;;  %v6286_v46 = vrot.slane %v6270_v35, %v21575_v2  ;;  %v6305_v61 = vcombine.high %v5223_v40, %v5223_v40  ;;  %8401 = vrot.lane.b32.xlu0 %v8373_v6, %s20685_s12 }
 0x301   :  { %v20220_v41 = vpack.c.bf16 %v7546_v29, %v7546_v29  ;;  %v7587_v62 = vrot.slane %v7579_v63, %v21575_v2  ;;  %v6293_v24 = vrot.slane %v6271_v3, %v21575_v2  ;;  %v7596_v26 = vcombine.low %v6255_v16, %v6279_v50  ;;  %10977 = vmatpush2.bf16.msra.mxu0 %v20574_v8 }
 0x302   :  { %v7594_v20 = vrot.slane %v7580_v30, %v21575_v2  ;;  %v6300_v27 = vrot.slane %v6272_v18, %v21575_v2  ;;  %v6312_v51 = vrot.slane %v5223_v40, %v21575_v2  ;;  %v6319_v19 = vrot.slane %v6305_v61, %v21575_v2  ;;  %16219 = vmatprep.subr.bf16.mxu0 %v25481_v10 }
 0x303   :  { %8154 = vst.msk [vmem:[#allocation3 + $0x54] sm:$0xf] %vm8119_vm2, %v20220_v41  ;;  %v7603_v39 = vrot.slane %v7596_v26, %v21575_v2  ;;  %v7610_v1 = vrot.slane %v6293_v24, %v21575_v2  ;;  %v19728_v11 = vcombine.high %v6279_v50, %v6293_v24  ;;  %v19837_v60 = vcombine.low %v22625_v17, %v22818_v31 }
 0x304   :  { %v7595_v56 = vcombine.low %v7587_v62, %v7594_v20  ;;  %v7620_v57 = vcombine.low %v6286_v46, %v6300_v27  ;;  %v19729_v13 = vcombine.high %v6286_v46, %v6300_v27  ;;  %v6320_v48 = vcombine.high %v6312_v51, %v6312_v51 }
 0x305   :  { %v7611_v47 = vcombine.low %v7603_v39, %v7610_v1  ;;  %v7629_v52 = vrot.slane %v19728_v11, %v21575_v2  ;;  %v6321_v4 = vcombine.high %v6319_v19, %v6319_v19  ;;  %v6328_v0 = vrot.slane %v6312_v51, %v21575_v2  ;;  %8672 = vrot.lane.b32.xlu1 %v19837_v60, %s20684_s11 }
 0x306   :  { %v20221_v53 = vpack.c.bf16 %v7595_v56, %v7595_v56  ;;  %v7636_v54 = vrot.slane %v7620_v57, %v21575_v2  ;;  %v7643_v16 = vrot.slane %v19729_v13, %v21575_v2  ;;  %v6335_v14 = vrot.slane %v6319_v19, %v21575_v2 }
 0x307   :  { %v7618_v12 = vrot.slane %v7611_v47, %v21575_v2  ;;  %v6342_v9 = vrot.slane %v6320_v48, %v21575_v2  ;;  %v6349_v5 = vrot.slane %v6321_v4, %v21575_v2  ;;  %v5227_v34 = vpop.f32.mrf.mxu1  ;;  %v19822_v15 = vcombine.low %v22818_v31, %v8234_v45 }
 0x308   :  { %8155 = vst.msk [vmem:[#allocation3 + $0x58] sm:$0xf] %vm8119_vm2, %v20221_v53  ;;  %v7651_v33 = vcombine.low %v7629_v52, %v7636_v54  ;;  %v5228_v55 = vadd.f32 %v5227_v34, %v22381_v22  ;;  %v19806_v40 = vcombine.low %v22818_v31, %v22818_v31  ;;  %v8374_v28 = vsel %vm383_vm0, %v22649_v59, %v8373_v6 }
 0x309   :  { %v20222_v21 = vpack.c.bf16 %v7618_v12, %v7618_v12  ;;  %v7622_v44 = vcombine.low %v6328_v0, %v6342_v9  ;;  %v19730_v35 = vcombine.high %v6328_v0, %v6342_v9  ;;  %v7669_v49 = vcombine.low %v6335_v14, %v6349_v5  ;;  %v5229_v29 = vpop.f32.mrf.mxu1 }
 0x30a   :  { %v7659_v63 = vrot.slane %v7651_v33, %v21575_v2  ;;  %v19731_v3 = vcombine.high %v6335_v14, %v6349_v5  ;;  %v6354_v50 = vcombine.high %v5228_v55, %v5228_v55  ;;  %v6361_v8 = vrot.slane %v5228_v55, %v21575_v2  ;;  %v22889_v29 = vpop.permute.xlu1 %8660 }
 0x30b   :  { %v8157_v22 = vsel %vm22300_vm9, %v20222_v21, %v8156_v38  ;;  %v7650_v30 = vrot.slane %v7622_v44, %v21575_v2  ;;  %v7678_v18 = vrot.slane %v19730_v35, %v21575_v2  ;;  %v7685_v59 = vrot.slane %v7669_v49, %v21575_v2  ;;  %v5230_v6 = vpop.f32.mrf.mxu1 }
 0x30c   :  { %8158 = vst [vmem:[#allocation3 + $0x5c] sm:$0x3] %v8157_v22  ;;  %v7692_v46 = vrot.slane %v19731_v3, %v21575_v2  ;;  %v6368_v61 = vrot.slane %v6354_v50, %v21575_v2  ;;  %v6369_v31 = vcombine.high %v6361_v8, %v6361_v8  ;;  %v6377_v41 = vrot.slane %v6361_v8, %v21575_v2  ;;  %v22893_v50 = vpop.permute.xlu0 %8389 }
 0x30d   :  { %v7652_v62 = vcombine.low %v7643_v16, %v7650_v30  ;;  %v7700_v24 = vcombine.low %v7678_v18, %v7685_v59  ;;  %v5231_v26 = vadd.f32 %v5230_v6, %v5042_v42  ;;  %v8582_v20 = vrot.slane %v19822_v15, 3  ;;  %v5232_v27 = vpop.f32.mrf.mxu1  ;;  %v22897_v59 = vld [vmem:[#allocation3 + $0x48] sm:$0xf] }
 0x30e   :  { %v6370_v51 = vcombine.high %v6368_v61, %v6368_v61  ;;  %v6384_v19 = vrot.slane %v6368_v61, %v21575_v2  ;;  %v6391_v39 = vrot.slane %v6369_v31, %v21575_v2  ;;  %v8477_v1 = vrot.slane %v19806_v40, 2 }
 0x30f   :  { %v7666_v11 = vrot.slane %v7652_v62, %v21575_v2  ;;  %v7708_v60 = vrot.slane %v7700_v24, %v21575_v2  ;;  %v6403_v56 = vcombine.high %v5231_v26, %v5231_v26  ;;  %v6410_v57 = vrot.slane %v5231_v26, %v21575_v2  ;;  %8610 = vrot.lane.b32.xlu0 %v8582_v20, %s20687_s14 }
 0x310   :  { %v6398_v23 = vrot.slane %v6370_v51, %v21575_v2  ;;  %v7671_v7 = vcombine.low %v6377_v41, %v6391_v39  ;;  %v19732_v42 = vcombine.high %v6377_v41, %v6391_v39  ;;  %8505 = vrot.lane.b32.xlu1 %v8477_v1, %s20686_s13  ;;  %v8478_v13 = vsel %vm657_vm3, %v22660_v58, %v8477_v1  ;;  %v22904_v51 = vld [vmem:[#allocation3 + $0x44] sm:$0xf] }
 0x311   :  { %v7667_v48 = vcombine.low %v7659_v63, %v7666_v11  ;;  %v6417_v45 = vrot.slane %v6403_v56, %v21575_v2  ;;  %v6418_v47 = vcombine.high %v6410_v57, %v6410_v57  ;;  %v6426_v52 = vrot.slane %v6410_v57, %v21575_v2 }
 0x312   :  { %v7699_v4 = vrot.slane %v7671_v7, %v21575_v2  ;;  %v7718_v0 = vcombine.low %v6384_v19, %v6398_v23  ;;  %v19733_v53 = vcombine.high %v6384_v19, %v6398_v23  ;;  %v7727_v54 = vrot.slane %v19732_v42, %v21575_v2  ;;  %v20472_v42 = vld [vmem:[#allocation3 + $0x4c] ss:$0 sps:$4 sm:$0x33]  }
 0x313   :  { %v20223_v16 = vpack.c.bf16 %v7667_v48, %v7667_v48  ;;  %v6419_v14 = vcombine.high %v6417_v45, %v6417_v45  ;;  %v6433_v12 = vrot.slane %v6417_v45, %v21575_v2  ;;  %v6440_v9 = vrot.slane %v6418_v47, %v21575_v2  ;;  %8399 = vrot.lane.b32.xlu0 %v8374_v28, %s20685_s12 }
 0x314   :  { %v7701_v58 = vcombine.low %v7692_v46, %v7699_v4  ;;  %v7734_v5 = vrot.slane %v7718_v0, %v21575_v2  ;;  %v7741_v34 = vrot.slane %v19733_v53, %v21575_v2  ;;  %8503 = vrot.lane.b32.xlu1 %v8478_v13, %s20686_s13  ;;  %v8581_v15 = vrot.slane %v19821_v37, 3  ;;  %v22914_v13 = vpop.permute.xlu1 %8662  ;;  %v22917_v0 = vpop.permute.xlu0 %8387 }
 0x315   :  { %8159 = vst.msk [vmem:[#allocation3 + $0x60] sm:$0xf] %vm8119_vm2, %v20223_v16  ;;  %v6447_v33 = vrot.slane %v6419_v14, %v21575_v2  ;;  %v6449_v38 = vcombine.high %v6433_v12, %v6433_v12  ;;  %v7720_v55 = vcombine.low %v6426_v52, %v6440_v9  ;;  %v19734_v40 = vcombine.high %v6426_v52, %v6440_v9  ;;  %v5235_v21 = vpop.f32.mrf.mxu1 }
 0x316   :  { %v7715_v28 = vrot.slane %v7701_v58, %v21575_v2  ;;  %v7749_v44 = vcombine.low %v7727_v54, %v7734_v5  ;;  %v7780_v35 = vrot.slane %v6433_v12, %v21575_v2  ;;  %v5236_v49 = vadd.f32 %v5235_v21, %v22443_v36 }
 0x317   :  { %v7748_v17 = vrot.slane %v7720_v55, %v21575_v2  ;;  %v7773_v32 = vrot.slane %v19734_v40, %v21575_v2  ;;  %v7789_v37 = vcombine.low %v6447_v33, %v6449_v38  ;;  %v6451_v63 = vcombine.high %v6447_v33, %v6447_v33  ;;  %v5237_v3 = vpop.f32.mrf.mxu1 }
 0x318   :  { %v7716_v8 = vcombine.low %v7708_v60, %v7715_v28  ;;  %v7757_v22 = vrot.slane %v7749_v44, %v21575_v2  ;;  %v6452_v30 = vcombine.high %v5236_v49, %v5236_v49  ;;  %v6459_v18 = vrot.slane %v5236_v49, %v21575_v2  ;;  %v8162_v60 = vld [vmem:[#allocation3 + $0x6c] sm:$0x3]  ;;  %v22933_v3 = vpop.permute.xlu1 %8493 }
 0x319   :  { %v7750_v6 = vcombine.low %v7741_v34, %v7748_v17  ;;  %v7781_v46 = vcombine.low %v7773_v32, %v7780_v35  ;;  %v7799_v61 = vrot.slane %v7789_v37, %v21575_v2  ;;  %v5238_v31 = vpop.f32.mrf.mxu1  ;;  %v8583_v41 = vsel %vm8571_vm11, %v8581_v15, %v8582_v20  ;;  %v8219_v35 = vld [vmem:[#allocation3 + $0x40] sm:$0xc] }
 0x31a   :  { %v20224_v62 = vpack.c.bf16 %v7716_v8, %v7716_v8  ;;  %v6466_v24 = vrot.slane %v6452_v30, %v21575_v2  ;;  %v6467_v26 = vcombine.high %v6459_v18, %v6459_v18  ;;  %v6475_v27 = vrot.slane %v6459_v18, %v21575_v2  ;;  %8608 = vrot.lane.b32.xlu0 %v8583_v41, %s20687_s14 }
 0x31b   :  { %v7764_v19 = vrot.slane %v7750_v6, %v21575_v2  ;;  %v7788_v39 = vrot.slane %v7781_v46, %v21575_v2  ;;  %v5239_v1 = vadd.f32 %v5238_v31, %v22443_v36  ;;  %v5240_v11 = vpop.f32.mrf.mxu1  ;;  %v19839_v20 = vcombine.low %v22904_v51, %v22897_v59  ;;  %v22938_v46 = vpop.permute.xlu0 %8598 }
 0x31c   :  { %8160 = vst.msk [vmem:[#allocation3 + $0x64] sm:$0xf] %vm8119_vm2, %v20224_v62  ;;  %v6468_v56 = vcombine.high %v6466_v24, %v6466_v24  ;;  %v6482_v57 = vrot.slane %v6466_v24, %v21575_v2  ;;  %v6489_v23 = vrot.slane %v6467_v26, %v21575_v2  ;;  %v6497_v7 = vcombine.high %v6475_v27, %v6475_v27 }
 0x31d   :  { %v7765_v48 = vcombine.low %v7757_v22, %v7764_v19  ;;  %v20226_v45 = vpack.c.bf16 %v7788_v39, %v7788_v39  ;;  %v7790_v47 = vcombine.low %v6451_v63, %v6475_v27  ;;  %v6501_v52 = vcombine.high %v5239_v1, %v5239_v1  ;;  %8676 = vrot.lane.b32.xlu1 %v19839_v20, %s20684_s11  ;;  %v5243_v4 = vpop.f32.mrf.mxu1 }
 0x31e   :  { %v6496_v53 = vrot.slane %v6468_v56, %v21575_v2  ;;  %v6498_v54 = vcombine.high %v6482_v57, %v6482_v57  ;;  %v6499_v16 = vcombine.high %v6489_v23, %v6489_v23  ;;  %v7791_v14 = vcombine.low %v6489_v23, %v6497_v7  ;;  %8678 = vrot.lane.b32.xlu0 %v20472_v42, %s20684_s11 }
 0x31f   :  { %v20225_v12 = vpack.c.bf16 %v7765_v48, %v7765_v48  ;;  %v8163_v9 = vsel %vm22300_vm9, %v20226_v45, %v8162_v60  ;;  %v7806_v58 = vrot.slane %v7790_v47, %v21575_v2  ;;  %v6508_v5 = vrot.slane %v5239_v1, %v21575_v2  ;;  %v5245_v34 = vpop.f32.mrf.mxu1  ;;  %v22946_v45 = vpop.permute.xlu1 %8491 }
 0x320   :  { %8164 = vst [vmem:[#allocation3 + $0x6c] sm:$0x3] %v8163_v9  ;;  %v7792_v15 = vcombine.low %v6499_v16, %v6482_v57  ;;  %v7813_v33 = vrot.slane %v7791_v14, %v21575_v2  ;;  %v7838_v38 = vcombine.low %v6496_v53, %v6498_v54  ;;  %v6500_v55 = vcombine.high %v6496_v53, %v6496_v53  ;;  %v22952_v54 = vpop.permute.xlu0 %8596 }
 0x321   :  { %8161 = vst.msk [vmem:[#allocation3 + $0x68] sm:$0xf] %vm8119_vm2, %v20225_v12  ;;  %v7821_v40 = vcombine.low %v7799_v61, %v7806_v58  ;;  %v6515_v21 = vrot.slane %v6501_v52, %v21575_v2  ;;  %v6516_v28 = vcombine.high %v6508_v5, %v6508_v5  ;;  %v6524_v44 = vrot.slane %v6508_v5, %v21575_v2  ;;  %v5246_v49 = vpop.f32.mrf.mxu1  ;;  %v20473_v58 = vld [vmem:[#allocation3 + $0x48] ss:$0 sps:$4 sm:$0x77]  }
 0x322   :  { %v7820_v17 = vrot.slane %v7792_v15, %v21575_v2  ;;  %v7848_v32 = vrot.slane %v7838_v38, %v21575_v2  ;;  %v5244_v37 = vadd.f32 %v5243_v4, %v22443_v36  ;;  %v19807_v63 = vcombine.low %v8219_v35, %v22904_v51 }
 0x323   :  { %v7829_v8 = vrot.slane %v7821_v40, %v21575_v2  ;;  %v6517_v22 = vcombine.high %v6515_v21, %v6515_v21  ;;  %v6531_v30 = vrot.slane %v6515_v21, %v21575_v2  ;;  %v6538_v18 = vrot.slane %v6516_v28, %v21575_v2  ;;  %v5247_v6 = vpop.f32.mrf.mxu1 }
 0x324   :  { %v7822_v61 = vcombine.low %v7813_v33, %v7820_v17  ;;  %v6546_v31 = vcombine.high %v6524_v44, %v6524_v44  ;;  %v7839_v41 = vcombine.low %v6500_v55, %v6524_v44  ;;  %v6550_v62 = vcombine.high %v5244_v37, %v5244_v37 }
 0x325   :  { %v6545_v36 = vrot.slane %v6517_v22, %v21575_v2  ;;  %v6547_v24 = vcombine.high %v6531_v30, %v6531_v30  ;;  %v6548_v26 = vcombine.high %v6538_v18, %v6538_v18  ;;  %v6557_v27 = vrot.slane %v5244_v37, %v21575_v2  ;;  %v22963_v22 = vpop.permute.xlu1 %8664 }
 0x326   :  { %v7836_v19 = vrot.slane %v7822_v61, %v21575_v2  ;;  %v7840_v39 = vcombine.low %v6538_v18, %v6546_v31  ;;  %v7855_v1 = vrot.slane %v7839_v41, %v21575_v2  ;;  %v6564_v11 = vrot.slane %v6550_v62, %v21575_v2  ;;  %v8203_v61 = vld [vmem:[#allocation3 + $0x40] sm:$0xe]  ;;  %v22968_v31 = vpop.permute.xlu0 %8393 }
 0x327   :  { %v7841_v20 = vcombine.low %v6548_v26, %v6531_v30  ;;  %v7887_v60 = vcombine.low %v6545_v36, %v6547_v24  ;;  %v6549_v56 = vcombine.high %v6545_v36, %v6545_v36  ;;  %v6565_v57 = vcombine.high %v6557_v27, %v6557_v27  ;;  %v8222_v36 = vld [vmem:[#allocation3 + $0x58] sm:$0xf] }
 0x328   :  { %v7837_v23 = vcombine.low %v7829_v8, %v7836_v19  ;;  %v7862_v7 = vrot.slane %v7840_v39, %v21575_v2  ;;  %v7870_v42 = vcombine.low %v7848_v32, %v7855_v1  ;;  %v6566_v48 = vcombine.high %v6564_v11, %v6564_v11  ;;  %v22974_v39 = vld [vmem:[#allocation3 + $0x54] sm:$0xf]  ;;  %v8236_v1 = vld [vmem:[#allocation3 + $0x4c] sm:$0x1] }
 0x329   :  { %v7869_v47 = vrot.slane %v7841_v20, %v21575_v2  ;;  %v6573_v52 = vrot.slane %v6557_v27, %v21575_v2  ;;  %v6580_v4 = vrot.slane %v6564_v11, %v21575_v2  ;;  %v6587_v53 = vrot.slane %v6565_v57, %v21575_v2  ;;  %v8238_v57 = vld [vmem:[#allocation3 + $0x5c] sm:$0x1] }
 0x32a   :  { %v20227_v16 = vpack.c.bf16 %v7837_v23, %v7837_v23  ;;  %v7878_v14 = vrot.slane %v7870_v42, %v21575_v2  ;;  %v6594_v12 = vrot.slane %v6566_v48, %v21575_v2  ;;  %v7897_v9 = vrot.slane %v7887_v60, %v21575_v2  ;;  %v8168_v23 = vld [vmem:[#allocation3 + $0x7c] sm:$0x3]  ;;  %v22982_v42 = vld [vmem:[#allocation3 + $0x58] ss:$0 sps:$4 sm:$0x77]   ;;  %v22984_v48 = vpop.permute.xlu1 %8666 }
 0x32b   :  { %v7871_v5 = vcombine.low %v7862_v7, %v7869_v47  ;;  %v6595_v34 = vcombine.high %v6573_v52, %v6573_v52  ;;  %v6596_v15 = vcombine.high %v6580_v4, %v6580_v4  ;;  %v6597_v33 = vcombine.high %v6587_v53, %v6587_v53 }
 0x32c   :  { %8165 = vst.msk [vmem:[#allocation3 + $0x70] sm:$0xf] %vm8119_vm2, %v20227_v16  ;;  %v6598_v38 = vcombine.high %v6594_v12, %v6594_v12  ;;  %v7888_v55 = vcombine.low %v6549_v56, %v6573_v52  ;;  %v19808_v40 = vcombine.low %v22897_v59, %v22897_v59  ;;  %v8479_v21 = vrot.slane %v19807_v63, 2  ;;  %v8205_v16 = vld [vmem:[#allocation3 + $0x50] sm:$0xe] }
 0x32d   :  { %v7885_v28 = vrot.slane %v7871_v5, %v21575_v2  ;;  %v7889_v44 = vcombine.low %v6587_v53, %v6595_v34  ;;  %v7890_v35 = vcombine.low %v6597_v33, %v6580_v4  ;;  %v7936_v49 = vcombine.low %v6594_v12, %v6596_v15  ;;  %v8221_v5 = vld [vmem:[#allocation3 + $0x50] sm:$0xc]  ;;  %v22992_v33 = vld [vmem:[#allocation3] sm:$0xf] }
 0x32e   :  { %v7904_v17 = vrot.slane %v7888_v55, %v21575_v2  ;;  %v7950_v32 = vrot.slane %v6598_v38, %v21575_v2  ;;  %v8480_v37 = vrot.slane %v19808_v40, 2  ;;  %v8376_v8 = vrot.slane %v20473_v58, 1  ;;  %v8235_v58 = vld [vmem:[#allocation3 + $0x40] sm:$0x8]  ;;  %v8237_v34 = vld [vmem:[#allocation3 + $0x50] sm:$0x8] }
 0x32f   :  { %v7886_v30 = vcombine.low %v7878_v14, %v7885_v28  ;;  %v7911_v18 = vrot.slane %v7889_v44, %v21575_v2  ;;  %v7918_v6 = vrot.slane %v7890_v35, %v21575_v2  ;;  %v7943_v63 = vrot.slane %v7936_v49, %v21575_v2  ;;  %v22988_v14 = vpop.permute.xlu0 %8391  ;;  %v20475_v40 = vld [vmem:[#allocation3 + $0x5c] ss:$0 sps:$4 sm:$0x33]   ;;  %v22998_v28 = vld [vmem:[#allocation3 + $0x68] sm:$0xf] }
 0x330   :  { %v7919_v41 = vcombine.low %v7897_v9, %v7904_v17  ;;  %v8481_v62 = vsel %vm657_vm3, %v8479_v21, %v8480_v37  ;;  %8405 = vrot.lane.b32.xlu0 %v8376_v8, %s20685_s12  ;;  %v19791_v24 = vcombine.low %v8203_v61, %v22904_v51  ;;  %v19841_v56 = vcombine.low %v22974_v39, %v8222_v36  ;;  %v23000_v44 = vld [vmem:[#allocation3 + $0x10] sm:$0xf]  ;;  %v23005_v17 = vld [vmem:[#allocation3 + $0x64] sm:$0xf]  ;;  %v8207_v61 = vld [vmem:[#allocation3 + $0x60] sm:$0xe] }
 0x331   :  { %v20228_v26 = vpack.c.bf16 %v7886_v30, %v7886_v30  ;;  %v7920_v27 = vcombine.low %v7911_v18, %v7918_v6  ;;  %v7951_v19 = vcombine.low %v7943_v63, %v7950_v32  ;;  %8507 = vrot.lane.b32.xlu1 %v8481_v62, %s20686_s13  ;;  %v19810_v4 = vcombine.low %v8222_v36, %v8222_v36  ;;  %v23018_v62 = vld [vmem:[#allocation3 + $0x14] sm:$0xf] }
 0x332   :  { %v7927_v11 = vrot.slane %v7919_v41, %v21575_v2  ;;  %v8375_v7 = vrot.slane %v19791_v24, 1  ;;  %v19824_v53 = vcombine.low %v22897_v59, %v8236_v1  ;;  %v19793_v9 = vcombine.low %v8205_v16, %v22974_v39  ;;  %v8240_v41 = vld [vmem:[#allocation3 + $0x6c] sm:$0x1]  ;;  %v23022_v24 = vpop.permute.xlu1 %8497  ;;  %v8223_v1 = vld [vmem:[#allocation3 + $0x60] sm:$0xc] }
 0x333   :  { %8166 = vst.msk [vmem:[#allocation3 + $0x74] sm:$0xf] %vm8119_vm2, %v20228_v26  ;;  %v7934_v20 = vrot.slane %v7920_v27, %v21575_v2  ;;  %v7958_v60 = vrot.slane %v7951_v19, %v21575_v2  ;;  %v19826_v15 = vcombine.low %v8222_v36, %v8238_v57  ;;  %v19823_v59 = vcombine.low %v8235_v58, %v22904_v51 }
 0x334   :  { %8509 = vrot.lane.b32.xlu0 %v8480_v37, %s20686_s13  ;;  %v8377_v12 = vsel %vm383_vm0, %v8375_v7, %v8376_v8  ;;  %v19809_v21 = vcombine.low %v8221_v5, %v22974_v39  ;;  %v8379_v35 = vrot.slane %v22982_v42, 1  ;;  %v19825_v49 = vcombine.low %v8237_v34, %v22974_v39  ;;  %v23011_v37 = vld [vmem:[#allocation3 + $0x68] ss:$0 sps:$4 sm:$0x77]   ;;  %v20673_v8 = vld [vmem:[#allocation3 + $0x4] sm:$0xf] }
 0x335   :  { %v7935_v47 = vcombine.low %v7927_v11, %v7934_v20  ;;  %v20230_v52 = vpack.c.bf16 %v7958_v60, %v7958_v60  ;;  %8680 = vrot.lane.b32.xlu1 %v19841_v56, %s20684_s11  ;;  %v8483_v51 = vrot.slane %v19810_v4, 2  ;;  %v8585_v32 = vrot.slane %v19824_v53, 3  ;;  %v23025_v11 = vpop.permute.xlu0 %8602  ;;  %v23027_v20 = vld [vmem:[#allocation3 + $0x24] sm:$0xf]  ;;  %v8239_v53 = vld [vmem:[#allocation3 + $0x60] sm:$0x8] }
 0x336   :  { %v19767_v30 = vcombine.low %v22992_v33, %v20673_v8  ;;  %v8378_v18 = vrot.slane %v19793_v9, 1  ;;  %v23014_v6 = vrot.slane %v19826_v15, 3  ;;  %v19812_v63 = vcombine.low %v22998_v28, %v22998_v28  ;;  %v8209_v34 = vld [vmem:[#allocation3 + $0x70] sm:$0xe] }
 0x337   :  { %v20229_v38 = vpack.c.bf16 %v7935_v47, %v7935_v47  ;;  %v8169_v55 = vsel %vm22300_vm9, %v20230_v52, %v8168_v23  ;;  %v19769_v36 = vcombine.low %v23000_v44, %v23018_v62  ;;  %v8584_v26 = vrot.slane %v19823_v59, 3  ;;  %v8225_v15 = vld [vmem:[#allocation3 + $0x70] sm:$0xc] }
 0x338   :  { %8170 = vst [vmem:[#allocation3 + $0x7c] sm:$0x3] %v8169_v55  ;;  %8403 = vrot.lane.b32.xlu0 %v8377_v12, %s20685_s12  ;;  %v8482_v27 = vrot.slane %v19809_v21, 2  ;;  %v19795_v19 = vcombine.low %v8207_v61, %v23005_v17  ;;  %v19771_v60 = vcombine.low %v23007_v43, %v23027_v20  ;;  %v8380_v56 = vsel %vm383_vm0, %v8378_v18, %v8379_v35  ;;  %v8241_v8 = vld [vmem:[#allocation3 + $0x70] sm:$0x8] }
 0x339   :  { %8167 = vst.msk [vmem:[#allocation3 + $0x78] sm:$0xf] %vm8119_vm2, %v20229_v38  ;;  %8682 = vrot.lane.b32.xlu1 %v20475_v40, %s20684_s11  ;;  %v8587_v57 = vrot.slane %v19825_v49, 3  ;;  %v19843_v23 = vcombine.low %v23005_v17, %v22998_v28  ;;  %v19811_v7 = vcombine.low %v8223_v1, %v23005_v17  ;;  %v8586_v47 = vsel %vm8571_vm11, %v8584_v26, %v8585_v32  ;;  %v23064_v49 = vpop.permute.xlu1 %8495  ;;  %v20533_v18 = vld [vmem:[#allocation3 + $0x8] ss:$0 sps:$4 sm:$0x33]  }
 0x33a   :  { %v8484_v52 = vsel %vm657_vm3, %v8482_v27, %v8483_v51  ;;  %v8382_v4 = vrot.slane %v23011_v37, 1  ;;  %v19828_v16 = vcombine.low %v22998_v28, %v8240_v41  ;;  %v23047_v9 = vrot.slane %v19812_v63, 2  ;;  %v23050_v5 = vld [vmem:[#allocation3 + $0x74] sm:$0xf]  ;;  %v8601_v63 = vpop.permute.xlu0 %8600  ;;  %v20577_v28 = vld [vmem:[%s25475_s3 + $0x180] ss:$8 sps:$4 sm:$0xff]  }
 0x33b   :  { %v23045_v12 = vsel %vm8571_vm11, %v8587_v57, %v23014_v6  ;;  %v19827_v58 = vcombine.low %v8239_v53, %v23005_v17  ;;  %v8381_v33 = vrot.slane %v19795_v19, 1  ;;  %v8742_v38 = vsel %vm5059_vm1, %v22917_v0, %v22946_v45 }
 0x33c   :  { %8614 = vrot.lane.b32.xlu0 %v8585_v32, %s20687_s14  ;;  %v8485_v55 = vrot.slane %v19811_v7, 2  ;;  %v8744_v40 = vsel %vm5059_vm1, %v22893_v50, %v22933_v3  ;;  %v8775_v59 = vsel %vm8773_vm13, %v8742_v38, %v22952_v54  ;;  %v8808_v21 = vsel %vm8806_vm14, %v22952_v54, %v22889_v29 }
 0x33d   :  { %8513 = vrot.lane.b32.xlu1 %v8483_v51, %s20686_s13  ;;  %v23067_v51 = vrot.slane %v19828_v16, 3  ;;  %v19797_v45 = vcombine.low %v8209_v34, %v23050_v5  ;;  %v19813_v32 = vcombine.low %v8225_v15, %v23050_v5  ;;  %v8695_v3 = vsel %vm8692_vm12, %v19767_v30, %v22917_v0  ;;  %v20556_v15 = vld [vmem:[#allocation3 + $0x18] ss:$0 sps:$4 sm:$0x33]  }
 0x33e   :  { %v19829_v61 = vcombine.low %v8241_v8, %v23050_v5  ;;  %v8940_v41 = vcombine.low %v8695_v3, %v8775_v59  ;;  %v8941_v54 = vcombine.high %v8695_v3, %v8775_v59  ;;  %v8942_v26 = vcombine.low %v8808_v21, %v22889_v29 }
 0x33f   :  { %v23078_v27 = vsel %vm383_vm0, %v8381_v33, %v8382_v4  ;;  %v8590_v19 = vrot.slane %v19827_v58, 3  ;;  %v8698_v1 = vsel %vm8692_vm12, %v20533_v18, %v22893_v50  ;;  %v23089_v0 = vsel %vm657_vm3, %v8485_v55, %v23047_v9  ;;  %v8891_v50 = vld [vmem:[%s25475_s3 + $0x1a0] sm:$0x33]  ;;  %v23115_v33 = vpop.permute.xlu1 %8670  ;;  %v23117_v38 = vld [vmem:[#allocation3 + $0x7c] sm:$0x1] }
 0x340   :  { %8612 = vrot.lane.b32.xlu0 %v8586_v47, %s20687_s14  ;;  %v8943_v30 = vcombine.high %v8808_v21, %v22889_v29  ;;  %v8950_v57 = vrot.slane %v8940_v41, %v21575_v2  ;;  %v8957_v7 = vrot.slane %v8941_v54, %v21575_v2  ;;  %v23104_v47 = vrot.slane %v19797_v45, 1  ;;  %v20573_v45 = vld [vmem:[%s25475_s3 + $0x194] ss:$8 sps:$4 sm:$0xff]  }
 0x341   :  { %8407 = vrot.lane.b32.xlu1 %v8380_v56, %s20685_s12  ;;  %v8777_v56 = vsel %vm8773_vm13, %v8744_v40, %v22938_v46  ;;  %v23100_v42 = vsel %vm8571_vm11, %v8590_v19, %v23067_v51  ;;  %v23106_v53 = vrot.slane %v19813_v32, 2  ;;  %v8964_v29 = vrot.slane %v8942_v26, %v21575_v2  ;;  %v23122_v32 = vpop.permute.xlu0 %8397 }
 0x342   :  { %v23109_v16 = vrot.slane %v19829_v61, 3  ;;  %v8810_v58 = vsel %vm8806_vm14, %v22938_v46, %v22914_v13  ;;  %v9008_v34 = vcombine.low %v8698_v1, %v8777_v56  ;;  %v19944_v59 = vcombine.high %v8891_v50, %v8891_v50  ;;  %v23149_v56 = vld [vmem:[#allocation3 + $0x78] ss:$0 sps:$4 sm:$0x77]  }
 0x343   :  { %v8972_v55 = vcombine.low %v8950_v57, %v8964_v29  ;;  %v8973_v40 = vcombine.high %v8950_v57, %v8964_v29  ;;  %v19943_v21 = vcombine.low %v8891_v50, %v8891_v50  ;;  %v23130_v3 = vsel %vm8692_vm12, %v20556_v15, %v22968_v31  ;;  %v23173_v29 = vpop.permute.xlu1 %8668 }
 0x344   :  { %8409 = vrot.lane.b32.xlu0 %v8379_v35, %s20685_s12  ;;  %v23102_v35 = vld [vmem:[#allocation3 + $0x78] sm:$0xf]  ;;  %v9009_v61 = vcombine.low %v8810_v58, %v22914_v13  ;;  %19945 = vmatprep.subr.msk.bf16.mxu1 %vm2276_vm10, %v19944_v59  ;;  %v8748_v13 = vsel %vm5059_vm1, %v22968_v31, %v23022_v24  ;;  %v8701_v57 = vsel %vm8692_vm12, %v19769_v36, %v22988_v14  ;;  %vm14171_vm2 = vsmask.f32 5376 }
 0x345   :  { %8511 = vrot.lane.b32.xlu1 %v8484_v52, %s20686_s13  ;;  %v8971_v52 = vrot.slane %v8943_v30, %v21575_v2  ;;  %v19814_v46 = vcombine.low %v23102_v35, %v23102_v35  ;;  %v8982_v41 = vrot.slane %v8972_v55, %v21575_v2  ;;  %v8996_v54 = vrot.slane %v8973_v40, %v21575_v2 }
 0x346   :  { %v19830_v26 = vcombine.low %v23102_v35, %v23117_v38  ;;  %v23152_v30 = vrot.slane %v9008_v34, %v21575_v2  ;;  %v8746_v31 = vsel %vm5059_vm1, %v22988_v14, %v23064_v49  ;;  %v8812_v24 = vsel %vm8806_vm14, %v8601_v63, %v22963_v22 }
 0x347   :  { %v8974_v8 = vcombine.low %v8957_v7, %v8971_v52  ;;  %v8975_v18 = vcombine.high %v8957_v7, %v8971_v52  ;;  %v20579_v7 = vld [vmem:[%s25475_s3 + $0x184] ss:$8 sps:$4 sm:$0xff]   ;;  %v8779_v44 = vsel %vm8773_vm13, %v8746_v31, %v8601_v63  ;;  %v9042_v62 = vcombine.low %v8812_v24, %v22963_v22  ;;  %v23184_v63 = vpop.permute.xlu0 %8606 }
 0x348   :  { %8618 = vrot.lane.b32.xlu0 %v23014_v6, %s20687_s14  ;;  %v10941_v6 = vsel %vm2276_vm10, %v19943_v21, 0  ;;  %v9043_v36 = vcombine.high %v8812_v24, %v22963_v22  ;;  %v9968_v50 = vcombine.low %v8982_v41, %v8996_v54  ;;  %v23180_v14 = vrot.slane %v9009_v61, %v21575_v2 }
 0x349   :  { %8616 = vrot.lane.b32.xlu1 %v23045_v12, %s20687_s14  ;;  %v8989_v19 = vrot.slane %v8974_v8, %v21575_v2  ;;  %v9003_v1 = vrot.slane %v8975_v18, %v21575_v2  ;;  %11104 = vmatpush2.bf16.msra.mxu1 %v10941_v6  ;;  %v20571_v12 = vld [vmem:[%s25475_s3 + $0x190] ss:$8 sps:$4 sm:$0xff]   ;;  %v8781_v37 = vsel %vm8773_vm13, %v8748_v13, %v23025_v11  ;;  %v8385_v52 = vrot.slane %v23149_v56, 1  ;;  %s20689_s3 = smov 112  }
 0x34a   :  { %11105 = vmatprep.subr.bf16.mxu1 %v20573_v45  ;;  %v9041_v49 = vcombine.high %v8701_v57, %v8779_v44  ;;  %v8814_v22 = vsel %vm8806_vm14, %v23025_v11, %v22984_v48  ;;  %v9064_v58 = vrot.slane %v9042_v62, %v21575_v2  ;;  %v9071_v55 = vrot.slane %v9043_v36, %v21575_v2 }
 0x34b   :  { %v9970_v34 = vcombine.low %v8989_v19, %v9003_v1  ;;  %v19888_v11 = vcombine.high %v8989_v19, %v9003_v1  ;;  %v9978_v40 = vrot.slane %v9968_v50, %v21575_v2  ;;  %v9108_v45 = vcombine.low %v23130_v3, %v8781_v37  ;;  %v23213_v19 = vpop.permute.xlu1 %8501 }
 0x34c   :  { %8413 = vrot.lane.b32.xlu0 %v8382_v4, %s20685_s12  ;;  %v9040_v4 = vcombine.low %v8701_v57, %v8779_v44  ;;  %v9057_v38 = vrot.slane %v9041_v49, %v21575_v2  ;;  %v9109_v8 = vcombine.low %v8814_v22, %v22984_v48 }
 0x34d   :  { %8684 = vrot.lane.b32.xlu1 %v19843_v23, %s20684_s11  ;;  %11106 = vmatpush2.bf16.msra.mxu1 %v20571_v12  ;;  %v19887_v23 = vcombine.high %v8982_v41, %v8996_v54  ;;  %v9992_v21 = vrot.slane %v9970_v34, %v21575_v2  ;;  %v23206_v41 = vrot.slane %v19814_v46, 2  ;;  %v23208_v54 = vrot.slane %v19830_v26, 3  ;;  %v8396_v46 = vpop.permute.xlu0 %8395 }
 0x34e   :  { %v9050_v15 = vrot.slane %v9040_v4, %v21575_v2  ;;  %11107 = vmatprep.subr.bf16.mxu1 %v20579_v7  ;;  %v9999_v6 = vrot.slane %v19888_v11, %v21575_v2  ;;  %v9074_v3 = vcombine.low %v9057_v38, %v9071_v55  ;;  %v9116_v31 = vrot.slane %v9108_v45, %v21575_v2 }
 0x34f   :  { %v9985_v59 = vrot.slane %v19887_v23, %v21575_v2  ;;  %v9123_v24 = vrot.slane %v9109_v8, %v21575_v2  ;;  %v9075_v7 = vcombine.high %v9057_v38, %v9071_v55  ;;  %v8595_v44 = vsel %vm8571_vm11, %v23109_v16, %v23208_v54 }
 0x350   :  { %8411 = vrot.lane.b32.xlu0 %v23078_v27, %s20685_s12  ;;  %v9072_v18 = vcombine.low %v9050_v15, %v9064_v58  ;;  %v9073_v61 = vcombine.high %v9050_v15, %v9064_v58  ;;  %v9025_v27 = vcombine.high %v23152_v30, %v23180_v14  ;;  %v10002_v12 = vcombine.low %v9992_v21, %v9999_v6 }
 0x351   :  { %8517 = vrot.lane.b32.xlu1 %v23047_v9, %s20686_s13  ;;  %11108 = vmatpush2.bf16.msra.mxu1 %v20577_v28  ;;  %v19845_v9 = vcombine.low %v23050_v5, %v23102_v35  ;;  %v10001_v1 = vcombine.high %v9978_v40, %v9985_v59  ;;  %v10000_v13 = vcombine.low %v9978_v40, %v9985_v59  ;;  %v8605_v28 = vpop.permute.xlu0 %8604  ;;  %vm14276_vm11 = vcmask 1042432  }
 0x352   :  { %v23218_v48 = vrot.slane %v9072_v18, %v21575_v2  ;;  %v9096_v26 = vrot.slane %v9073_v61, %v21575_v2  ;;  %v10003_v57 = vcombine.high %v9992_v21, %v9999_v6  ;;  %v8386_v35 = vsel %vm383_vm0, %v23104_v47, %v8385_v52 }
 0x353   :  { %v23240_v62 = vrot.slane %v9025_v27, %v21575_v2  ;;  %v9089_v47 = vrot.slane %v9074_v3, %v21575_v2  ;;  %v10017_v50 = vrot.slane %v10001_v1, %v21575_v2  ;;  %vm10909_vm0 = vcmask 293888   ;;  %v20532_v1 = vld [vmem:[#allocation3 + $0x6c] ss:$0 sps:$4 sm:$0x33]  }
 0x354   :  { %8620 = vrot.lane.b32.xlu0 %v23100_v42, %s20687_s14  ;;  %v8490_v42 = vsel %vm657_vm3, %v23106_v53, %v23206_v41  ;;  %v9104_v36 = vcombine.high %v23218_v48, %v23218_v48  ;;  %v10031_v37 = vrot.slane %v10003_v57, %v21575_v2  ;;  %v9106_v53 = vcombine.high %v9096_v26, %v9096_v26 }
 0x355   :  { %8515 = vrot.lane.b32.xlu1 %v23089_v0, %s20686_s13  ;;  %v9024_v0 = vcombine.low %v23152_v30, %v23180_v14  ;;  %v10010_v16 = vrot.slane %v10000_v13, %v21575_v2  ;;  %v10024_v30 = vrot.slane %v10002_v12, %v21575_v2  ;;  %v8500_v14 = vpop.permute.xlu1 %8499  ;;  %v9124_v4 = vcombine.low %v9116_v31, %v9123_v24 }
 0x356   :  { %v9103_v49 = vrot.slane %v9075_v7, %v21575_v2  ;;  %v10034_v22 = vcombine.low %v10017_v50, %v10031_v37  ;;  %v10035_v58 = vcombine.high %v10017_v50, %v10031_v37  ;;  %v9125_v23 = vcombine.high %v9116_v31, %v9123_v24 }
 0x357   :  { %v9760_v34 = vunpack.i.h.s16 %v23218_v48  ;;  %v10032_v15 = vcombine.low %v10010_v16, %v10024_v30  ;;  %v10033_v38 = vcombine.high %v10010_v16, %v10024_v30  ;;  %v23253_v55 = vcombine.high %v9089_v47, %v9089_v47 }
 0x358   :  { %8415 = vrot.lane.b32.xlu0 %v8386_v35, %s20685_s12  ;;  %v9762_v11 = vunpack.i.h.s16 %v9096_v26  ;;  %10978 = vmatprep.mubr.bf16.mxu0 %v10034_v22  ;;  %v8707_v40 = vsel %vm8692_vm12, %v19771_v60, %v8396_v46  ;;  %v8750_v59 = vsel %vm5059_vm1, %v8396_v46, %v8500_v14  ;;  %v8816_v45 = vsel %vm8806_vm14, %v8605_v28, %v23173_v29 }
 0x359   :  { %8688 = vrot.lane.b32.xlu1 %v19845_v9, %s20684_s11  ;;  %19946 = vmatprep.mubr.msk.bf16.mxu1 %vm10909_vm0, %v10035_v58  ;;  %v8783_v21 = vsel %vm8773_vm13, %v8750_v59, %v8605_v28  ;;  %v9764_v8 = vunpack.i.h.s16 %v9104_v36  ;;  %v9766_v18 = vunpack.i.h.s16 %v9106_v53  ;;  %v9768_v61 = vunpack.i.h.s16 %v9089_v47 }
 0x35a   :  { %10979 = vmatmul.mubr.bf16.vlgmr.msra.gmra.mxu0 %v10032_v15  ;;  %v9770_v27 = vunpack.i.h.s16 %v9103_v49  ;;  %11110 = vmatmul.mubr.bf16.vlgmr.msra.gmra.mxu1 %v10033_v38  ;;  %v9140_v43 = vcombine.low %v8707_v40, %v8783_v21  ;;  %v9141_v20 = vcombine.high %v8707_v40, %v8783_v21  ;;  %v9132_v60 = vrot.slane %v9124_v4, %v21575_v2 }
 0x35b   :  { %v9142_v6 = vcombine.low %v8816_v45, %v23173_v29  ;;  %v9143_v9 = vcombine.high %v8816_v45, %v23173_v29  ;;  %v19847_v3 = vpack.i.b16 %v23218_v48, %v23240_v62  ;;  %v19848_v12 = vpack.i.b16 %v9096_v26, %v9760_v34 }
 0x35c   :  { %8624 = vrot.lane.b32.xlu0 %v8595_v44, %s20687_s14  ;;  %v9150_v46 = vrot.slane %v9140_v43, %v21575_v2  ;;  %v23273_v13 = vrot.slane %v9141_v20, %v21575_v2  ;;  %v19849_v57 = vpack.i.b16 %v9104_v36, %v9762_v11  ;;  %v19850_v29 = vpack.i.b16 %v9106_v53, %v9764_v8 }
 0x35d   :  { %8519 = vrot.lane.b32.xlu1 %v8490_v42, %s20686_s13  ;;  %v9164_v35 = vrot.slane %v9142_v6, %v21575_v2  ;;  %v23279_v31 = vrot.slane %v9143_v9, %v21575_v2  ;;  %v19851_v24 = vpack.i.b16 %v9089_v47, %v9766_v18  ;;  %v9032_v48 = vrot.slane %v9024_v0, %v21575_v2 }
 0x35e   :  { %v9139_v7 = vrot.slane %v9125_v23, %v21575_v2  ;;  %v19852_v42 = vpack.i.b16 %v9103_v49, %v9768_v61  ;;  %v19853_v26 = vpack.i.b16 %v23253_v55, %v9770_v27  ;;  %v9776_v44 = vunpack.i.h.s16 %v9132_v60  ;;  %v20543_v23 = vld [vmem:[#allocation3 + $0x7c] ss:$0 sps:$4 sm:$0x33]  }
 0x35f   :  { %v9107_v62 = vcombine.high %v9103_v49, %v9103_v49  ;;  %v9172_v36 = vcombine.low %v9150_v46, %v9164_v35  ;;  %v10036_v50 = vcombine.low %v9032_v48, %v19847_v3  ;;  %v10037_v37 = vcombine.low %v19848_v12, %v19849_v57 }
 0x360   :  { %8622 = vrot.lane.b32.xlu0 %v23067_v51, %s20687_s14  ;;  %v9173_v51 = vcombine.high %v9150_v46, %v9164_v35  ;;  %v10038_v16 = vcombine.low %v19850_v29, %v19851_v24  ;;  %v10039_v30 = vcombine.low %v19852_v42, %v19853_v26  ;;  %v9174_v0 = vcombine.low %v23273_v13, %v23279_v31 }
 0x361   :  { %8686 = vrot.lane.b32.xlu1 %v20532_v1, %s20684_s11  ;;  %v9182_v47 = vrot.slane %v9172_v36, %v21575_v2  ;;  %v9772_v14 = vunpack.i.h.s16 %v23253_v55  ;;  %v10046_v4 = vrot.slane %v10036_v50, %v21575_v2  ;;  %v10053_v49 = vrot.slane %v10037_v37, %v21575_v2  ;;  %v23319_v50 = vpop.permute.xlu1 %8674 }
 0x362   :  { %v9196_v53 = vrot.slane %v9173_v51, %v21575_v2  ;;  %v10060_v22 = vrot.slane %v10038_v16, %v21575_v2  ;;  %v10067_v56 = vrot.slane %v10039_v30, %v21575_v2  ;;  %v9774_v55 = vunpack.i.h.s16 %v9107_v62 }
 0x363   :  { %v9204_v58 = vcombine.high %v9182_v47, %v9182_v47  ;;  %v10069_v34 = vcombine.high %v10046_v4, %v10053_v49  ;;  %v10068_v38 = vcombine.low %v10046_v4, %v10053_v49  ;;  %v19854_v40 = vpack.i.b16 %v9107_v62, %v9772_v14 }
 0x364   :  { %8417 = vrot.lane.b32.xlu0 %v8385_v52, %s20685_s12  ;;  %v19856_v52 = vpack.i.b16 %v9139_v7, %v9776_v44  ;;  %v9206_v28 = vcombine.high %v9196_v53, %v9196_v53  ;;  %v10071_v15 = vcombine.high %v10060_v22, %v10067_v56  ;;  %v10070_v11 = vcombine.low %v10060_v22, %v10067_v56 }
 0x365   :  { %8521 = vrot.lane.b32.xlu1 %v23206_v41, %s20686_s13  ;;  %v23302_v41 = vrot.slane %v9174_v0, %v21575_v2  ;;  %v10085_v21 = vrot.slane %v10069_v34, %v21575_v2  ;;  %v10078_v8 = vrot.slane %v10068_v38, %v21575_v2  ;;  %v19855_v61 = vpack.i.b16 %v9132_v60, %v9774_v55 }
 0x366   :  { %v10105_v59 = vcombine.low %v19856_v52, %v9182_v47  ;;  %v10099_v45 = vrot.slane %v10071_v15, %v21575_v2  ;;  %v10092_v18 = vrot.slane %v10070_v11, %v21575_v2  ;;  %v10106_v27 = vcombine.low %v9196_v53, %v9204_v58  ;;  %v20580_v53 = vld [vmem:[#allocation3 + $0x28] ss:$0 sps:$4 sm:$0x33]   ;;  %v20676_v15 = vld [vmem:[#allocation3 + $0x34] sm:$0xf] }
 0x367   :  { %v10104_v3 = vcombine.low %v19854_v40, %v19855_v61  ;;  %v8752_v30 = vsel %vm5059_vm1, %v23122_v32, %v23213_v19  ;;  %v8818_v4 = vsel %vm8806_vm14, %v23184_v63, %v23115_v33  ;;  %v8710_v49 = vsel %vm8692_vm12, %v20580_v53, %v23122_v32 }
 0x368   :  { %8626 = vrot.lane.b32.xlu0 %v23208_v54, %s20687_s14  ;;  %v10107_v54 = vcombine.low %v9206_v28, %v23302_v41  ;;  %v10102_v43 = vcombine.low %v10085_v21, %v10099_v45  ;;  %v10103_v20 = vcombine.high %v10085_v21, %v10099_v45  ;;  %v10100_v6 = vcombine.low %v10078_v8, %v10092_v18  ;;  %v8180_v28 = vld [vmem:[#allocation3 + $0x30] sm:$0xf] }
 0x369   :  { %8690 = vrot.lane.b32.xlu1 %v20543_v23, %s20684_s11  ;;  %v10101_v9 = vcombine.high %v10078_v8, %v10092_v18  ;;  %v10121_v1 = vrot.slane %v10105_v59, %v21575_v2  ;;  %v10128_v46 = vrot.slane %v10106_v27, %v21575_v2  ;;  %v10114_v60 = vrot.slane %v10104_v3, %v21575_v2 }
 0x36a   :  { %v10135_v12 = vrot.slane %v10107_v54, %v21575_v2  ;;  %10988 = vmatprep.mubr.bf16.mxu0 %v10102_v43  ;;  %19947 = vmatprep.mubr.msk.bf16.mxu1 %vm10909_vm0, %v10103_v20  ;;  %v8785_v14 = vsel %vm8773_vm13, %v8752_v30, %v23184_v63  ;;  %v9209_v58 = vcombine.low %v8818_v4, %v23115_v33  ;;  %v20581_v30 = vld [vmem:[#allocation3 + $0x38] ss:$0 sps:$4 sm:$0x33]   ;;  %vm14164_vm3 = vcmask 261124  }
 0x36b   :  { %10989 = vmatmul.mubr.bf16.gmra.mxu0 %v10100_v6  ;;  %11120 = vmatmul.mubr.bf16.gmra.mxu1 %v10101_v9  ;;  %v10137_v29 = vcombine.high %v10114_v60, %v10121_v1  ;;  %v10136_v48 = vcombine.low %v10114_v60, %v10121_v1  ;;  %v9208_v56 = vcombine.low %v8710_v49, %v8785_v14  ;;  %vm23785_vm15 = vmor %vm14164_vm3, %vm2270_vm7  ;;  %vm16161_vm3 = vcmask 359424  }
 0x36c   :  { %v10139_v57 = vcombine.high %v10128_v46, %v10135_v12  ;;  %v10138_v35 = vcombine.low %v10128_v46, %v10135_v12  ;;  %v9175_v19 = vcombine.high %v23273_v13, %v23279_v31  ;;  %v19773_v38 = vcombine.low %v8180_v28, %v20676_v15 }
 0x36d   :  { %v10153_v42 = vrot.slane %v10137_v29, %v21575_v2  ;;  %v10146_v26 = vrot.slane %v10136_v48, %v21575_v2  ;;  %v9216_v34 = vrot.slane %v9208_v56, %v21575_v2  ;;  %v9223_v63 = vrot.slane %v9209_v58, %v21575_v2 }
 0x36e   :  { %v10167_v24 = vrot.slane %v10139_v57, %v21575_v2  ;;  %v10160_v7 = vrot.slane %v10138_v35, %v21575_v2  ;;  %v9203_v32 = vrot.slane %v9175_v19, %v21575_v2  ;;  %v9205_v61 = vcombine.high %v23302_v41, %v23302_v41 }
 0x36f   :  { %v9224_v31 = vcombine.low %v9216_v34, %v9223_v63  ;;  %v9225_v20 = vcombine.high %v9216_v34, %v9223_v63 }
 0x370   :  { %v10170_v44 = vcombine.low %v10153_v42, %v10167_v24  ;;  %v10171_v62 = vcombine.high %v10153_v42, %v10167_v24  ;;  %v10168_v36 = vcombine.low %v10146_v26, %v10160_v7  ;;  %v10169_v51 = vcombine.high %v10146_v26, %v10160_v7 }
 0x371   :  { %v9207_v27 = vcombine.high %v9203_v32, %v9203_v32  ;;  %v9232_v6 = vrot.slane %v9224_v31, %v21575_v2  ;;  %v10172_v12 = vcombine.low %v9203_v32, %v9205_v61  ;;  %v9239_v35 = vrot.slane %v9225_v20, %v21575_v2 }
 0x372   :  { %10998 = vmatprep.mubr.bf16.mxu0 %v10170_v44  ;;  %19948 = vmatprep.mubr.msk.bf16.mxu1 %vm10909_vm0, %v10171_v62  ;;  %v23322_v37 = vpop.permute.xlu0 %8401 }
 0x373   :  { %10999 = vmatmul.mubr.bf16.gmra.mxu0 %v10168_v36  ;;  %11130 = vmatmul.mubr.bf16.gmra.mxu1 %v10169_v51  ;;  %v10173_v60 = vcombine.low %v9207_v27, %v9232_v6  ;;  %v10182_v62 = vrot.slane %v10172_v12, %v21575_v2  ;;  %v8716_v56 = vsel %vm8692_vm12, %v20581_v30, %v23322_v37 }
 0x375   :  { %v10189_v36 = vrot.slane %v10173_v60, %v21575_v2 }
 0x377   :  { %v8673_v16 = vpop.permute.xlu1 %8672  ;;  %v10205_v58 = vcombine.high %v10182_v62, %v10189_v36  ;;  %v10204_v19 = vcombine.low %v10182_v62, %v10189_v36 }
 0x379   :  { %v10221_v32 = vrot.slane %v10205_v58, %v21575_v2 }
 0x381   :  { %v8611_v0 = vpop.permute.xlu0 %8610 }
 0x382   :  { %v8506_v47 = vpop.permute.xlu1 %8505  ;;  %v8822_v49 = vsel %vm8806_vm14, %v8611_v0, %v23319_v50 }
 0x383   :  { %v8756_v48 = vsel %vm5059_vm1, %v23322_v37, %v8506_v47 }
 0x384   :  { %v8789_v53 = vsel %vm8773_vm13, %v8756_v48, %v8611_v0 }
 0x385   :  { %v8400_v22 = vpop.permute.xlu0 %8399  ;;  %v9308_v28 = vcombine.low %v8716_v56, %v8789_v53 }
 0x386   :  { %v8504_v52 = vpop.permute.xlu1 %8503  ;;  %v8713_v55 = vsel %vm8692_vm12, %v19773_v38, %v8400_v22  ;;  %v9309_v38 = vcombine.low %v8822_v49, %v23319_v50 }
 0x387   :  { %v8754_v23 = vsel %vm5059_vm1, %v8400_v22, %v8504_v52  ;;  %v9316_v37 = vrot.slane %v9308_v28, %v21575_v2 }
 0x388   :  { %v9323_v31 = vrot.slane %v9309_v38, %v21575_v2 }
 0x38a   :  { %v9325_v12 = vcombine.high %v9316_v37, %v9323_v31 }
 0x38c   :  { %v8609_v11 = vpop.permute.xlu0 %8608 }
 0x38d   :  { %v8787_v40 = vsel %vm8773_vm13, %v8754_v23, %v8609_v11  ;;  %v8820_v33 = vsel %vm8806_vm14, %v8609_v11, %v8673_v16 }
 0x38e   :  { %v9240_v59 = vcombine.low %v8713_v55, %v8787_v40  ;;  %v9242_v13 = vcombine.low %v8820_v33, %v8673_v16  ;;  %v9241_v21 = vcombine.high %v8713_v55, %v8787_v40  ;;  %v9243_v45 = vcombine.high %v8820_v33, %v8673_v16 }
 0x38f   :  { %v23366_v52 = vpop.permute.xlu1 %8676  ;;  %v10214_v55 = vrot.slane %v10204_v19, %v21575_v2  ;;  %v20677_v19 = vld [vmem:[#allocation3 + $0x44] sm:$0xf] }
 0x390   :  { %v9250_v8 = vrot.slane %v9240_v59, %v21575_v2  ;;  %v9264_v18 = vrot.slane %v9242_v13, %v21575_v2  ;;  %v9257_v9 = vrot.slane %v9241_v21, %v21575_v2  ;;  %v9271_v3 = vrot.slane %v9243_v45, %v21575_v2  ;;  %v23362_v47 = vpop.permute.xlu0 %8678 }
 0x392   :  { %v9272_v54 = vcombine.low %v9250_v8, %v9264_v18  ;;  %v9273_v43 = vcombine.high %v9250_v8, %v9264_v18  ;;  %v9274_v41 = vcombine.low %v9257_v9, %v9271_v3  ;;  %v9275_v23 = vcombine.high %v9257_v9, %v9271_v3 }
 0x394   :  { %v9282_v1 = vrot.slane %v9272_v54, %v21575_v2  ;;  %v9296_v46 = vrot.slane %v9273_v43, %v21575_v2  ;;  %v9289_v14 = vrot.slane %v9274_v41, %v21575_v2  ;;  %v9303_v40 = vrot.slane %v9275_v23, %v21575_v2 }
 0x395   :  { %v9324_v54 = vcombine.low %v9316_v37, %v9323_v31 }
 0x396   :  { %v9304_v57 = vcombine.high %v9282_v1, %v9282_v1  ;;  %v9798_v29 = vunpack.i.h.s16 %v9282_v1  ;;  %v9800_v24 = vunpack.i.h.s16 %v9296_v46  ;;  %v9306_v7 = vcombine.high %v9296_v46, %v9296_v46 }
 0x397   :  { %v19857_v26 = vpack.i.b16 %v9282_v1, %v9239_v35  ;;  %v9305_v63 = vcombine.high %v9289_v14, %v9289_v14  ;;  %v9307_v43 = vcombine.high %v9303_v40, %v9303_v40  ;;  %v9806_v20 = vunpack.i.h.s16 %v9289_v14 }
 0x398   :  { %v9802_v42 = vunpack.i.h.s16 %v9304_v57  ;;  %v19858_v44 = vpack.i.b16 %v9296_v46, %v9798_v29  ;;  %v19859_v51 = vpack.i.b16 %v9304_v57, %v9800_v24  ;;  %v9804_v50 = vunpack.i.h.s16 %v9306_v7 }
 0x399   :  { %v9810_v45 = vunpack.i.h.s16 %v9305_v63  ;;  %v9808_v6 = vunpack.i.h.s16 %v9303_v40  ;;  %v9332_v60 = vrot.slane %v9324_v54, %v21575_v2  ;;  %v19862_v35 = vpack.i.b16 %v9303_v40, %v9806_v20  ;;  %v23408_v54 = vld [vmem:[#allocation3 + $0x70] sm:$0xf] }
 0x39a   :  { %v19860_v16 = vpack.i.b16 %v9306_v7, %v9802_v42  ;;  %v10174_v4 = vcombine.low %v19857_v26, %v19858_v44  ;;  %v19861_v1 = vpack.i.b16 %v9289_v14, %v9804_v50  ;;  %v9812_v24 = vunpack.i.h.s16 %v9307_v43  ;;  %v20582_v42 = vld [vmem:[#allocation3 + $0x48] ss:$0 sps:$4 sm:$0x33]   ;;  %v23402_v50 = vld [vmem:[#allocation3 + $0x60] sm:$0xf] }
 0x39b   :  { %v19864_v46 = vpack.i.b16 %v9307_v43, %v9810_v45  ;;  %v19863_v41 = vpack.i.b16 %v9305_v63, %v9808_v6  ;;  %v9339_v26 = vrot.slane %v9325_v12, %v21575_v2  ;;  %v9814_v44 = vunpack.i.h.s16 %v9332_v60 }
 0x39c   :  { %v10175_v22 = vcombine.low %v19859_v51, %v19860_v16  ;;  %v10196_v34 = vrot.slane %v10174_v4, %v21575_v2  ;;  %v10240_v48 = vcombine.low %v19861_v1, %v19862_v35  ;;  %v19865_v14 = vpack.i.b16 %v9332_v60, %v9812_v24  ;;  %v8183_v4 = vld [vmem:[#allocation3 + $0x40] sm:$0xf] }
 0x39d   :  { %v10241_v7 = vcombine.low %v19863_v41, %v19864_v46  ;;  %v19775_v28 = vcombine.low %v8183_v4, %v20677_v19  ;;  %v19866_v23 = vpack.i.b16 %v9339_v26, %v9814_v44 }
 0x39e   :  { %v10203_v15 = vrot.slane %v10175_v22, %v21575_v2  ;;  %v10250_v56 = vrot.slane %v10240_v48, %v21575_v2 }
 0x39f   :  { %v10257_v58 = vrot.slane %v10241_v7, %v21575_v2  ;;  %v10242_v37 = vcombine.low %v19865_v14, %v19866_v23 }
 0x3a0   :  { %v10207_v0 = vcombine.high %v10196_v34, %v10203_v15  ;;  %v10206_v11 = vcombine.low %v10196_v34, %v10203_v15 }
 0x3a1   :  { %v10273_v40 = vcombine.high %v10250_v56, %v10257_v58 }
 0x3a2   :  { %v8406_v33 = vpop.permute.xlu0 %8405  ;;  %v10235_v59 = vrot.slane %v10207_v0, %v21575_v2  ;;  %v10228_v13 = vrot.slane %v10206_v11, %v21575_v2 }
 0x3a3   :  { %v8508_v21 = vpop.permute.xlu1 %8507  ;;  %v8722_v51 = vsel %vm8692_vm12, %v20582_v42, %v8406_v33  ;;  %v23419_v46 = vrot.slane %v10273_v40, %v21575_v2 }
 0x3a4   :  { %v10238_v8 = vcombine.low %v10221_v32, %v10235_v59  ;;  %v10239_v18 = vcombine.high %v10221_v32, %v10235_v59  ;;  %v10236_v61 = vcombine.low %v10214_v55, %v10228_v13  ;;  %v10237_v27 = vcombine.high %v10214_v55, %v10228_v13  ;;  %v8186_v59 = vld [vmem:[#allocation3 + $0x50] sm:$0xf] }
 0x3a6   :  { %v8510_v9 = vpop.permute.xlu0 %8509  ;;  %11008 = vmatprep.mubr.bf16.mxu0 %v10238_v8  ;;  %19949 = vmatprep.mubr.msk.bf16.mxu1 %vm10909_vm0, %v10239_v18  ;;  %v19777_v8 = vcombine.low %v8186_v59, %v22974_v39  ;;  %v23416_v39 = vrot.slane %v10242_v37, %v21575_v2 }
 0x3a7   :  { %v23379_v3 = vpop.permute.xlu1 %8680  ;;  %11009 = vmatmul.mubr.bf16.gmra.mxu0 %v10236_v61  ;;  %11140 = vmatmul.mubr.bf16.gmra.mxu1 %v10237_v27  ;;  %v8760_v62 = vsel %vm5059_vm1, %v8406_v33, %v8510_v9  ;;  %v10272_v33 = vcombine.low %v10250_v56, %v10257_v58  ;;  %v19779_v27 = vcombine.low %v23402_v50, %v23005_v17 }
 0x3a8   :  { %v19781_v9 = vcombine.low %v23408_v54, %v23050_v5 }
 0x3a9   :  { %v23422_v12 = vrot.slane %v10272_v33, %v21575_v2 }
 0x3aa   :  { %v8404_v57 = vpop.permute.xlu0 %8403 }
 0x3ab   :  { %v23382_v29 = vpop.permute.xlu1 %8682  ;;  %v8758_v34 = vsel %vm5059_vm1, %v8404_v57, %v8508_v21  ;;  %v8719_v0 = vsel %vm8692_vm12, %v19775_v28, %v8404_v57 }
 0x3ae   :  { %v8615_v36 = vpop.permute.xlu0 %8614 }
 0x3af   :  { %v8514_v16 = vpop.permute.xlu1 %8513  ;;  %v8793_v30 = vsel %vm8773_vm13, %v8760_v62, %v8615_v36  ;;  %v8826_v53 = vsel %vm8806_vm14, %v8615_v36, %v23362_v47 }
 0x3b0   :  { %v9408_v49 = vcombine.low %v8722_v51, %v8793_v30  ;;  %v9409_v22 = vcombine.low %v8826_v53, %v23362_v47  ;;  %v20584_v30 = vld [vmem:[#allocation3 + $0x58] ss:$0 sps:$4 sm:$0x33]  }
 0x3b2   :  { %v9416_v15 = vrot.slane %v9408_v49, %v21575_v2  ;;  %v9423_v38 = vrot.slane %v9409_v22, %v21575_v2  ;;  %v8613_v63 = vpop.permute.xlu0 %8612 }
 0x3b3   :  { %v8408_v11 = vpop.permute.xlu1 %8407  ;;  %v8791_v32 = vsel %vm8773_vm13, %v8758_v34, %v8613_v63  ;;  %v8824_v47 = vsel %vm8806_vm14, %v8613_v63, %v23366_v52 }
 0x3b4   :  { %v9340_v55 = vcombine.low %v8719_v0, %v8791_v32  ;;  %v9341_v13 = vcombine.high %v8719_v0, %v8791_v32  ;;  %v9342_v31 = vcombine.low %v8824_v47, %v23366_v52  ;;  %v9343_v21 = vcombine.high %v8824_v47, %v23366_v52 }
 0x3b5   :  { %v9424_v45 = vcombine.low %v9416_v15, %v9423_v38  ;;  %v9425_v1 = vcombine.high %v9416_v15, %v9423_v38  ;;  %v8725_v48 = vsel %vm8692_vm12, %v19777_v8, %v8408_v11 }
 0x3b6   :  { %v9350_v18 = vrot.slane %v9340_v55, %v21575_v2  ;;  %v8410_v61 = vpop.permute.xlu0 %8409  ;;  %v9357_v43 = vrot.slane %v9341_v13, %v21575_v2  ;;  %v9364_v20 = vrot.slane %v9342_v31, %v21575_v2  ;;  %v9371_v6 = vrot.slane %v9343_v21, %v21575_v2 }
 0x3b7   :  { %v8512_v52 = vpop.permute.xlu1 %8511  ;;  %v23425_v24 = vrot.slane %v9424_v45, %v21575_v2  ;;  %v8764_v42 = vsel %vm5059_vm1, %v8410_v61, %v8514_v16  ;;  %v23449_v22 = vrot.slane %v9425_v1, %v21575_v2  ;;  %v8728_v19 = vsel %vm8692_vm12, %v20584_v30, %v8410_v61 }
 0x3b8   :  { %v9372_v60 = vcombine.low %v9350_v18, %v9364_v20  ;;  %v9373_v57 = vcombine.high %v9350_v18, %v9364_v20  ;;  %v9374_v35 = vcombine.low %v9357_v43, %v9371_v6  ;;  %v9375_v41 = vcombine.high %v9357_v43, %v9371_v6 }
 0x3b9   :  { %v8762_v7 = vsel %vm5059_vm1, %v8408_v11, %v8512_v52 }
 0x3ba   :  { %v8619_v26 = vpop.permute.xlu0 %8618  ;;  %v23431_v44 = vrot.slane %v9372_v60, %v21575_v2  ;;  %v23434_v62 = vrot.slane %v9374_v35, %v21575_v2  ;;  %v23437_v36 = vrot.slane %v9373_v57, %v21575_v2  ;;  %v23440_v51 = vrot.slane %v9375_v41, %v21575_v2 }
 0x3bb   :  { %v8617_v53 = vpop.permute.xlu1 %8616  ;;  %v8797_v4 = vsel %vm8773_vm13, %v8764_v42, %v8619_v26  ;;  %v8830_v49 = vsel %vm8806_vm14, %v8619_v26, %v23382_v29 }
 0x3bc   :  { %v8795_v14 = vsel %vm8773_vm13, %v8762_v7, %v8617_v53  ;;  %v8828_v16 = vsel %vm8806_vm14, %v8617_v53, %v23379_v3  ;;  %v10243_v56 = vcombine.low %v23431_v44, %v23437_v36  ;;  %v19889_v58 = vcombine.high %v23431_v44, %v23437_v36 }
 0x3bd   :  { %v9440_v28 = vcombine.low %v8725_v48, %v8795_v14  ;;  %v9441_v23 = vcombine.high %v8725_v48, %v8795_v14  ;;  %v9442_v34 = vcombine.low %v8828_v16, %v23379_v3  ;;  %v9443_v15 = vcombine.high %v8828_v16, %v23379_v3 }
 0x3be   :  { %v8414_v38 = vpop.permute.xlu0 %8413  ;;  %v10309_v63 = vcombine.low %v23434_v62, %v23440_v51  ;;  %v9508_v0 = vcombine.low %v8728_v19, %v8797_v4  ;;  %v9509_v11 = vcombine.low %v8830_v49, %v23382_v29  ;;  %v10271_v47 = vrot.slane %v10243_v56, %v21575_v2  ;;  %v20585_v29 = vld [vmem:[#allocation3 + $0x68] ss:$0 sps:$4 sm:$0x33]  }
 0x3bf   :  { %v23461_v32 = vpop.permute.xlu1 %8684  ;;  %v9450_v55 = vrot.slane %v9440_v28, %v21575_v2  ;;  %v9457_v37 = vrot.slane %v9441_v23, %v21575_v2  ;;  %v9464_v40 = vrot.slane %v9442_v34, %v21575_v2  ;;  %v9471_v33 = vrot.slane %v9443_v15, %v21575_v2 }
 0x3c0   :  { %v19890_v3 = vcombine.high %v23434_v62, %v23440_v51  ;;  %v9516_v59 = vrot.slane %v9508_v0, %v21575_v2  ;;  %v9523_v13 = vrot.slane %v9509_v11, %v21575_v2  ;;  %v10275_v31 = vcombine.high %v23416_v39, %v10271_v47 }
 0x3c1   :  { %v9472_v21 = vcombine.low %v9450_v55, %v9464_v40  ;;  %v9473_v45 = vcombine.high %v9450_v55, %v9464_v40  ;;  %v9474_v8 = vcombine.low %v9457_v37, %v9471_v33  ;;  %v9475_v18 = vcombine.high %v9457_v37, %v9471_v33 }
 0x3c2   :  { %v8412_v61 = vpop.permute.xlu0 %8411  ;;  %v9524_v43 = vcombine.low %v9516_v59, %v9523_v13  ;;  %v9525_v20 = vcombine.high %v9516_v59, %v9523_v13  ;;  %v23474_v6 = vsel %vm8692_vm12, %v20585_v29, %v8414_v38  ;;  %v10303_v1 = vrot.slane %v10275_v31, %v21575_v2 }
 0x3c3   :  { %v8518_v52 = vpop.permute.xlu1 %8517  ;;  %v9482_v60 = vrot.slane %v9472_v21, %v21575_v2  ;;  %v9489_v57 = vrot.slane %v9474_v8, %v21575_v2  ;;  %v23480_v35 = vrot.slane %v9473_v45, %v21575_v2  ;;  %v23483_v41 = vrot.slane %v9475_v18, %v21575_v2 }
 0x3c4   :  { %v23486_v48 = vrot.slane %v9524_v43, %v21575_v2  ;;  %v8731_v7 = vsel %vm8692_vm12, %v19779_v27, %v8412_v61  ;;  %v10306_v42 = vcombine.low %v23419_v46, %v10303_v1  ;;  %v10274_v26 = vcombine.low %v23416_v39, %v10271_v47 }
 0x3c5   :  { %v23494_v30 = vcombine.high %v9482_v60, %v9482_v60  ;;  %v23496_v53 = vcombine.high %v9489_v57, %v9489_v57  ;;  %v23500_v14 = vcombine.high %v23480_v35, %v23480_v35  ;;  %v23504_v16 = vcombine.high %v23483_v41, %v23483_v41 }
 0x3c6   :  { %v8621_v4 = vpop.permute.xlu0 %8620  ;;  %v9836_v17 = vunpack.i.h.s16 %v9482_v60  ;;  %v9844_v50 = vunpack.i.h.s16 %v9489_v57  ;;  %v9539_v27 = vrot.slane %v9525_v20, %v21575_v2  ;;  %v23508_v49 = vsel %vm5059_vm1, %v8414_v38, %v8518_v52  ;;  %11018 = vmatprep.mubr.bf16.mxu0 %v10306_v42 }
 0x3c7   :  { %v8516_v39 = vpop.permute.xlu1 %8515  ;;  %v9838_v56 = vunpack.i.h.s16 %v23480_v35  ;;  %v9840_v19 = vunpack.i.h.s16 %v23494_v30  ;;  %v9842_v28 = vunpack.i.h.s16 %v23500_v14  ;;  %v9846_v23 = vunpack.i.h.s16 %v23483_v41 }
 0x3c8   :  { %v9848_v34 = vunpack.i.h.s16 %v23496_v53  ;;  %v19867_v15 = vpack.i.b16 %v9482_v60, %v23449_v22  ;;  %v23517_v0 = vpack.i.b16 %v23480_v35, %v9836_v17  ;;  %v9850_v38 = vunpack.i.h.s16 %v23504_v16 }
 0x3c9   :  { %v23521_v11 = vpack.i.b16 %v23483_v41, %v9844_v50  ;;  %v8766_v47 = vsel %vm5059_vm1, %v8412_v61, %v8516_v39  ;;  %v10307_v55 = vcombine.high %v23419_v46, %v10303_v1  ;;  %v8832_v37 = vsel %vm8806_vm14, %v8621_v4, %v23461_v32 }
 0x3ca   :  { %v8416_v40 = vpop.permute.xlu0 %8415  ;;  %v23527_v33 = vpack.i.b16 %v9489_v57, %v9842_v28  ;;  %v9852_v22 = vunpack.i.h.s16 %v23486_v48  ;;  %v8799_v59 = vsel %vm8773_vm13, %v8766_v47, %v8621_v4  ;;  %v9542_v13 = vcombine.low %v8832_v37, %v23461_v32 }
 0x3cb   :  { %v8689_v29 = vpop.permute.xlu1 %8688  ;;  %19950 = vmatprep.mubr.msk.bf16.mxu1 %vm10909_vm0, %v10307_v55  ;;  %v9540_v31 = vcombine.low %v8731_v7, %v8799_v59  ;;  %v9541_v21 = vcombine.high %v8731_v7, %v8799_v59  ;;  %v9543_v45 = vcombine.high %v8832_v37, %v23461_v32  ;;  %v10296_v46 = vrot.slane %v10274_v26, %v21575_v2 }
 0x3cc   :  { %v23536_v8 = vpack.i.b16 %v23486_v48, %v9850_v38  ;;  %v9564_v18 = vrot.slane %v9542_v13, %v21575_v2  ;;  %v10311_v61 = vcombine.low %v23425_v24, %v19867_v15  ;;  %v10318_v43 = vrot.slane %v19889_v58, %v21575_v2 }
 0x3cd   :  { %v9550_v20 = vrot.slane %v9540_v31, %v21575_v2  ;;  %v9557_v52 = vrot.slane %v9541_v21, %v21575_v2  ;;  %v9571_v32 = vrot.slane %v9543_v45, %v21575_v2  ;;  %v10304_v1 = vcombine.low %v23422_v12, %v10296_v46 }
 0x3ce   :  { %v8625_v60 = vpop.permute.xlu0 %8624  ;;  %v10305_v57 = vcombine.high %v23422_v12, %v10296_v46  ;;  %v10325_v24 = vrot.slane %v10309_v63, %v21575_v2  ;;  %v10332_v44 = vrot.slane %v19890_v3, %v21575_v2  ;;  %v10339_v36 = vrot.slane %v10311_v61, %v21575_v2 }
 0x3cf   :  { %v8520_v48 = vpop.permute.xlu1 %8519  ;;  %v9572_v58 = vcombine.low %v9550_v20, %v9564_v18  ;;  %v9573_v7 = vcombine.high %v9550_v20, %v9564_v18  ;;  %v9574_v42 = vcombine.low %v9557_v52, %v9571_v32  ;;  %v9575_v26 = vcombine.high %v9557_v52, %v9571_v32  ;;  %11019 = vmatmul.mubr.bf16.gmra.mxu0 %v10304_v1 }
 0x3d0   :  { %11150 = vmatmul.mubr.bf16.gmra.mxu1 %v10305_v57  ;;  %v8770_v12 = vsel %vm5059_vm1, %v8416_v40, %v8520_v48  ;;  %v10341_v4 = vcombine.high %v10318_v43, %v10325_v24  ;;  %v10343_v17 = vcombine.high %v10332_v44, %v10339_v36  ;;  %v8836_v50 = vsel %vm8806_vm14, %v8625_v60, %v8689_v29 }
 0x3d1   :  { %v23561_v63 = vrot.slane %v9572_v58, %v21575_v2  ;;  %v9589_v62 = vrot.slane %v9574_v42, %v21575_v2  ;;  %v9596_v51 = vrot.slane %v9573_v7, %v21575_v2  ;;  %v23566_v3 = vrot.slane %v9575_v26, %v21575_v2 }
 0x3d2   :  { %v10357_v39 = vrot.slane %v10341_v4, %v21575_v2  ;;  %v10371_v28 = vrot.slane %v10343_v17, %v21575_v2  ;;  %v8803_v15 = vsel %vm8773_vm13, %v8770_v12, %v8625_v60  ;;  %v9642_v38 = vcombine.low %v8836_v50, %v8689_v29 }
 0x3d3   :  { %v23571_v47 = vpack.i.b16 %v9539_v27, %v9852_v22  ;;  %v9604_v55 = vcombine.high %v23561_v63, %v23561_v63  ;;  %v9605_v37 = vcombine.high %v9589_v62, %v9589_v62  ;;  %v8737_v59 = vsel %vm8692_vm12, %v19781_v9, %v8416_v40  ;;  %v23588_v9 = vpop.permute.xlu1 %8686  ;;  %v8623_v40 = vpop.permute.xlu0 %8622 }
 0x3d4   :  { %v9606_v13 = vcombine.high %v9596_v51, %v9596_v51  ;;  %v10374_v31 = vcombine.low %v10357_v39, %v10371_v28  ;;  %v10375_v21 = vcombine.high %v10357_v39, %v10371_v28  ;;  %v9640_v45 = vcombine.low %v8737_v59, %v8803_v15 }
 0x3d5   :  { %v9607_v46 = vcombine.high %v23566_v3, %v23566_v3  ;;  %v10444_v27 = vcombine.low %v23571_v47, %v23561_v63  ;;  %v23583_v22 = vcombine.low %v9596_v51, %v9604_v55  ;;  %v9641_v18 = vcombine.high %v8737_v59, %v8803_v15  ;;  %v20588_v59 = vld [vmem:[#allocation3 + $0x78] ss:$0 sps:$4 sm:$0x33]  }
 0x3d6   :  { %11028 = vmatprep.mubr.bf16.mxu0 %v10374_v31  ;;  %19951 = vmatprep.mubr.msk.bf16.mxu1 %vm10909_vm0, %v10375_v21  ;;  %v9643_v61 = vcombine.high %v8836_v50, %v8689_v29  ;;  %v9650_v5 = vrot.slane %v9640_v45, %v21575_v2  ;;  %v9664_v54 = vrot.slane %v9642_v38, %v21575_v2 }
 0x3d7   :  { %v9657_v20 = vrot.slane %v9641_v18, %v21575_v2  ;;  %v10340_v52 = vcombine.low %v10318_v43, %v10325_v24  ;;  %v10342_v32 = vcombine.low %v10332_v44, %v10339_v36  ;;  %v19869_v1 = vpack.i.b16 %v23494_v30, %v9838_v56  ;;  %v8522_v42 = vpop.permute.xlu1 %8521  ;;  %v8418_v26 = vpop.permute.xlu0 %8417  ;;  %v20589_v18 = vld [vmem:[%s25476_s4 + $0x38] sm:$0xff]  }
 0x3d8   :  { %v9671_v60 = vrot.slane %v9643_v61, %v21575_v2  ;;  %v9672_v57 = vcombine.low %v9650_v5, %v9664_v54  ;;  %v9673_v48 = vcombine.high %v9650_v5, %v9664_v54  ;;  %v19870_v29 = vpack.i.b16 %v23500_v14, %v9840_v19  ;;  %16220 = vmatpush1.bf16.msra.mxu0 %v20589_v18  ;;  %v20590_v18 = vld [vmem:[%s25476_s4 + $0x30] sm:$0xff]  }
 0x3d9   :  { %v10350_v58 = vrot.slane %v10340_v52, %v21575_v2  ;;  %v10364_v7 = vrot.slane %v10342_v32, %v21575_v2  ;;  %v19873_v43 = vpack.i.b16 %v23496_v53, %v9846_v23  ;;  %v19874_v35 = vpack.i.b16 %v23504_v16, %v9848_v34  ;;  %16221 = vmatprep.subr.bf16.mxu0 %v25481_v10 }
 0x3da   :  { %v9674_v56 = vcombine.low %v9657_v20, %v9671_v60  ;;  %v9675_v24 = vcombine.high %v9657_v20, %v9671_v60  ;;  %v23607_v44 = vrot.slane %v9672_v57, %v21575_v2  ;;  %v23610_v30 = vrot.slane %v9673_v48, %v21575_v2 }
 0x3db   :  { %v10372_v14 = vcombine.low %v10350_v58, %v10364_v7  ;;  %v10373_v19 = vcombine.high %v10350_v58, %v10364_v7  ;;  %v10376_v36 = vcombine.low %v23517_v0, %v19869_v1  ;;  %v10377_v41 = vcombine.low %v19870_v29, %v23527_v33  ;;  %v8691_v52 = vpop.permute.xlu1 %8690  ;;  %v8627_v32 = vpop.permute.xlu0 %8626 }
 0x3dc   :  { %v9689_v23 = vrot.slane %v9674_v56, %v21575_v2  ;;  %v23616_v53 = vrot.slane %v9675_v24, %v21575_v2  ;;  %v23620_v16 = vcombine.high %v23607_v44, %v23607_v44  ;;  %v23624_v34 = vcombine.high %v23610_v30, %v23610_v30  ;;  %16222 = vmatpush1.bf16.msra.mxu0 %v20590_v18 }
 0x3dd   :  { %v23626_v12 = vcombine.low %v9606_v13, %v9589_v62  ;;  %v9874_v0 = vunpack.i.h.s16 %v23607_v44  ;;  %11029 = vmatmul.mubr.bf16.gmra.mxu0 %v10372_v14  ;;  %11160 = vmatmul.mubr.bf16.gmra.mxu1 %v10373_v19  ;;  %v10378_v33 = vcombine.low %v23521_v11, %v19873_v43  ;;  %v10379_v4 = vcombine.low %v19874_v35, %v23536_v8 }
 0x3de   :  { %v10447_v17 = vcombine.low %v23566_v3, %v9605_v37  ;;  %v23632_v50 = vcombine.high %v9689_v23, %v9689_v23  ;;  %v9876_v51 = vunpack.i.h.s16 %v23610_v30  ;;  %v9880_v39 = vunpack.i.h.s16 %v23624_v34  ;;  %16223 = vmatprep.subr.bf16.mxu0 %v25481_v10 }
 0x3df   :  { %v23638_v62 = vcombine.high %v23616_v53, %v23616_v53  ;;  %v9878_v28 = vunpack.i.h.s16 %v23620_v16  ;;  %v9882_v15 = vunpack.i.h.s16 %v9689_v23  ;;  %v23642_v38 = vpack.i.b16 %v23610_v30, %v9874_v0 }
 0x3e0   :  { %v10386_v11 = vrot.slane %v10376_v36, %v21575_v2  ;;  %v10393_v8 = vrot.slane %v10377_v41, %v21575_v2  ;;  %v10400_v55 = vrot.slane %v10378_v33, %v21575_v2  ;;  %v10407_v37 = vrot.slane %v10379_v4, %v21575_v2 }
 0x3e1   :  { %v23648_v13 = vpack.i.b16 %v9689_v23, %v9880_v39  ;;  %v23651_v31 = vpack.i.b16 %v23616_v53, %v9882_v15  ;;  %v8801_v21 = vsel %vm8773_vm13, %v23508_v49, %v8623_v40  ;;  %v8834_v45 = vsel %vm8806_vm14, %v8623_v40, %v23588_v9 }
 0x3e2   :  { %v10409_v61 = vcombine.high %v10386_v11, %v10393_v8  ;;  %v10411_v5 = vcombine.high %v10400_v55, %v10407_v37  ;;  %v9608_v54 = vcombine.low %v23474_v6, %v8801_v21  ;;  %v9609_v20 = vcombine.low %v8834_v45, %v23588_v9 }
 0x3e3   :  { %v8740_v1 = vsel %vm8692_vm12, %v20588_v59, %v8418_v26  ;;  %v8772_v60 = vsel %vm5059_vm1, %v8418_v26, %v8522_v42  ;;  %v10408_v49 = vcombine.low %v10386_v11, %v10393_v8  ;;  %v10410_v57 = vcombine.low %v10400_v55, %v10407_v37 }
 0x3e4   :  { %v10425_v40 = vrot.slane %v10409_v61, %v21575_v2  ;;  %v10439_v48 = vrot.slane %v10411_v5, %v21575_v2  ;;  %v9616_v29 = vrot.slane %v9608_v54, %v21575_v2  ;;  %v9623_v58 = vrot.slane %v9609_v20, %v21575_v2 }
 0x3e5   :  { %v10418_v6 = vrot.slane %v10408_v49, %v21575_v2  ;;  %v10432_v9 = vrot.slane %v10410_v57, %v21575_v2  ;;  %v8805_v7 = vsel %vm8773_vm13, %v8772_v60, %v8627_v32  ;;  %v8838_v43 = vsel %vm8806_vm14, %v8627_v32, %v8691_v52 }
 0x3e6   :  { %v10442_v35 = vcombine.low %v10425_v40, %v10439_v48  ;;  %v10443_v56 = vcombine.high %v10425_v40, %v10439_v48  ;;  %v9624_v24 = vcombine.low %v9616_v29, %v9623_v58  ;;  %v9625_v14 = vcombine.high %v9616_v29, %v9623_v58 }
 0x3e7   :  { %v10440_v19 = vcombine.low %v10418_v6, %v10432_v9  ;;  %v10441_v36 = vcombine.high %v10418_v6, %v10432_v9  ;;  %v9708_v41 = vcombine.low %v8740_v1, %v8805_v7  ;;  %v9709_v23 = vcombine.low %v8838_v43, %v8691_v52 }
 0x3e8   :  { %v9884_v42 = vunpack.i.h.s16 %v23616_v53  ;;  %11038 = vmatprep.mubr.bf16.mxu0 %v10442_v35  ;;  %19952 = vmatprep.mubr.msk.bf16.mxu1 %vm10909_vm0, %v10443_v56  ;;  %v9632_v26 = vrot.slane %v9624_v24, %v21575_v2  ;;  %v9639_v0 = vrot.slane %v9625_v14, %v21575_v2  ;;  %v10454_v33 = vrot.slane %v10444_v27, %v21575_v2  ;;  %v20592_v35 = vld [vmem:[%s25476_s4 + $0x20] sm:$0xff]  }
 0x3e9   :  { %11039 = vmatmul.mubr.bf16.gmra.mxu0 %v10440_v19  ;;  %11170 = vmatmul.mubr.bf16.gmra.mxu1 %v10441_v36  ;;  %v9888_v4 = vunpack.i.h.s16 %v23638_v62  ;;  %v9716_v39 = vrot.slane %v9708_v41, %v21575_v2  ;;  %v9723_v53 = vrot.slane %v9709_v23, %v21575_v2  ;;  %v10461_v15 = vrot.slane %v23583_v22, %v21575_v2 }
 0x3ea   :  { %v19877_v11 = vpack.i.b16 %v23607_v44, %v9639_v0  ;;  %v10512_v8 = vcombine.low %v9607_v46, %v9632_v26  ;;  %v10468_v63 = vrot.slane %v23626_v12, %v21575_v2  ;;  %v10475_v47 = vrot.slane %v10447_v17, %v21575_v2 }
 0x3eb   :  { %v9724_v27 = vcombine.low %v9716_v39, %v9723_v53  ;;  %v9725_v55 = vcombine.high %v9716_v39, %v9723_v53  ;;  %v10477_v37 = vcombine.high %v10454_v33, %v10461_v15  ;;  %v10476_v59 = vcombine.low %v10454_v33, %v10461_v15  ;;  %v20593_v33 = vld [vmem:[%s25476_s4 + $0x18] sm:$0xff]  }
 0x3ec   :  { %v10479_v21 = vcombine.high %v10468_v63, %v10475_v47  ;;  %v10478_v45 = vcombine.low %v10468_v63, %v10475_v47  ;;  %v19879_v22 = vpack.i.b16 %v23620_v16, %v9876_v51  ;;  %v19880_v3 = vpack.i.b16 %v23624_v34, %v9878_v28  ;;  %v20596_v63 = vld [vmem:[%s25476_s4] sm:$0xff]   ;;  %v20597_v47 = vld [vmem:[%s25476_s4 + $0x48] sm:$0xff]  }
 0x3ed   :  { %v9732_v46 = vrot.slane %v9724_v27, %v21575_v2  ;;  %v10493_v44 = vrot.slane %v10477_v37, %v21575_v2  ;;  %v10486_v12 = vrot.slane %v10476_v59, %v21575_v2  ;;  %v9886_v17 = vunpack.i.h.s16 %v23632_v50 }
 0x3ee   :  { %v10507_v30 = vrot.slane %v10479_v21, %v21575_v2  ;;  %v10500_v51 = vrot.slane %v10478_v45, %v21575_v2  ;;  %v10513_v16 = vcombine.low %v19877_v11, %v23642_v38  ;;  %v10514_v61 = vcombine.low %v19879_v22, %v19880_v3  ;;  %v20591_v38 = vld [vmem:[%s25476_s4 + $0x28] sm:$0xff]   ;;  %v20594_v11 = vld [vmem:[%s25476_s4 + $0x10] sm:$0xff]  }
 0x3ef   :  { %v9739_v34 = vrot.slane %v9725_v55, %v21575_v2  ;;  %v9890_v28 = vunpack.i.h.s16 %v9732_v46  ;;  %v10515_v5 = vcombine.low %v23648_v13, %v23651_v31  ;;  %v10522_v54 = vrot.slane %v10512_v8, %v21575_v2  ;;  %16224 = vmatpush1.bf16.msra.mxu0 %v20591_v38  ;;  %v20595_v8 = vld [vmem:[%s25476_s4 + $0x8] sm:$0xff]  }
 0x3f0   :  { %v10510_v20 = vcombine.low %v10493_v44, %v10507_v30  ;;  %v10511_v52 = vcombine.high %v10493_v44, %v10507_v30  ;;  %v10508_v32 = vcombine.low %v10486_v12, %v10500_v51  ;;  %v10509_v1 = vcombine.high %v10486_v12, %v10500_v51  ;;  %16225 = vmatprep.subr.bf16.mxu0 %v25481_v10 }
 0x3f1   :  { %v19886_v60 = vpack.i.b16 %v9739_v34, %v9890_v28  ;;  %v10529_v49 = vrot.slane %v10513_v16, %v21575_v2  ;;  %v10536_v57 = vrot.slane %v10514_v61, %v21575_v2  ;;  %v10543_v13 = vrot.slane %v10515_v5, %v21575_v2 }
 0x3f2   :  { %v19885_v31 = vpack.i.b16 %v9732_v46, %v9888_v4  ;;  %11048 = vmatprep.mubr.bf16.mxu0 %v10510_v20  ;;  %19953 = vmatprep.mubr.msk.bf16.mxu1 %vm10909_vm0, %v10511_v52  ;;  %v19883_v40 = vpack.i.b16 %v23632_v50, %v9884_v42  ;;  %v19884_v48 = vpack.i.b16 %v23638_v62, %v9886_v17  ;;  %vm14170_vm1 = vcmask 259076  }
 0x3f3   :  { %11049 = vmatmul.mubr.bf16.gmra.mxu0 %v10508_v32  ;;  %11180 = vmatmul.mubr.bf16.gmra.mxu1 %v10509_v1  ;;  %v10545_v29 = vcombine.high %v10522_v54, %v10529_v49  ;;  %v10547_v58 = vcombine.high %v10536_v57, %v10543_v13  ;;  %v10544_v6 = vcombine.low %v10522_v54, %v10529_v49  ;;  %vm23828_vm9 = vmand %vm14170_vm1, %vm14171_vm2  ;;  %vm14277_vm13 = vcmask 1046532  }
 0x3f4   :  { %v10546_v9 = vcombine.low %v10536_v57, %v10543_v13  ;;  %v10580_v7 = vcombine.low %v19883_v40, %v19884_v48  ;;  %v10581_v43 = vcombine.low %v19885_v31, %v19886_v60  ;;  %16226 = vmatpush1.bf16.msra.mxu0 %v20592_v35  ;;  %vm23839_vm8 = vmor %vm23828_vm9, %vm23820_vm6  ;;  %vm18201_vm1 = vsmask.f32 256 }
 0x3f5   :  { %v10561_v56 = vrot.slane %v10545_v29, %v21575_v2  ;;  %v10575_v24 = vrot.slane %v10547_v58, %v21575_v2  ;;  %v10554_v50 = vrot.slane %v10544_v6, %v21575_v2  ;;  %16227 = vmatprep.subr.bf16.mxu0 %v25481_v10  ;;  %vm18197_vm6 = vcmask 650240  }
 0x3f6   :  { %v10568_v62 = vrot.slane %v10546_v9, %v21575_v2  ;;  %v10588_v14 = vrot.slane %v10580_v7, %v21575_v2  ;;  %v10595_v19 = vrot.slane %v10581_v43, %v21575_v2  ;;  %v20598_v43 = vld [vmem:[%s25476_s4 + $0x40] sm:$0xff]   ;;  %vm18637_vm9 = vcmask 1041409  }
 0x3f7   :  { %v10578_v36 = vcombine.low %v10561_v56, %v10575_v24  ;;  %v10579_v41 = vcombine.high %v10561_v56, %v10575_v24 }
 0x3f8   :  { %v10576_v23 = vcombine.low %v10554_v50, %v10568_v62  ;;  %v10577_v42 = vcombine.high %v10554_v50, %v10568_v62  ;;  %v10597_v26 = vcombine.high %v10588_v14, %v10595_v19  ;;  %v10596_v0 = vcombine.low %v10588_v14, %v10595_v19  ;;  %16228 = vmatpush1.bf16.msra.mxu0 %v20593_v33 }
 0x3f9   :  { %11058 = vmatprep.mubr.bf16.mxu0 %v10578_v36  ;;  %19954 = vmatprep.mubr.msk.bf16.mxu1 %vm10909_vm0, %v10579_v41 }
 0x3fa   :  { %v10611_v4 = vrot.slane %v10597_v26, %v21575_v2  ;;  %v10604_v39 = vrot.slane %v10596_v0, %v21575_v2  ;;  %16229 = vmatprep.subr.bf16.mxu0 %v25481_v10 }
 0x3fb   :  { %11059 = vmatmul.mubr.bf16.gmra.mxu0 %v10576_v23  ;;  %11190 = vmatmul.mubr.bf16.gmra.mxu1 %v10577_v42 }
 0x3fc   :  { %v10613_v53 = vcombine.high %v10611_v4, %v10611_v4  ;;  %11068 = vmatprep.mubr.bf16.mxu0 %v10611_v4  ;;  %v10612_v15 = vcombine.high %v10604_v39, %v10604_v39  ;;  %16230 = vmatpush1.bf16.msra.mxu0 %v20594_v11 }
 0x3fd   :  { %16231 = vmatprep.subr.bf16.mxu0 %v25481_v10 }
 0x3fe   :  { %19955 = vmatprep.mubr.msk.bf16.mxu1 %vm10909_vm0, %v10613_v53  ;;  %vm23884_vm0 = vmor %vm14276_vm11, %vm14277_vm13  ;;  %vm18643_vm11 = vcmask 1043459   ;;  %vm18646_vm13 = vcmask 1044484  }
 0x400   :  { %16232 = vmatpush1.bf16.msra.mxu0 %v20595_v8 }
 0x401   :  { %16233 = vmatprep.subr.bf16.mxu0 %v25481_v10 }
 0x403   :  { %11069 = vmatmul.mubr.bf16.gmra.mxu0 %v10604_v39  ;;  %11200 = vmatmul.mubr.bf16.gmra.mxu1 %v10612_v15 }
 0x404   :  { %16234 = vmatpush1.bf16.msra.mxu0 %v20596_v63 }
 0x405   :  { %16247 = vmatprep.subr.bf16.mxu0 %v25481_v10 }
 0x408   :  { %16248 = vmatpush2.bf16.msra.mxu0 %v20597_v47 }
 0x409   :  { %16249 = vmatprep.subr.bf16.mxu0 %v25481_v10 }
 0x40c   :  { %16250 = vmatpush2.bf16.msra.mxu0 %v20598_v43 }
 0x41a   :  { %v10980_v27 = vpop.f32.mrf.mxu0  ;;  %v11111_v55 = vpop.f32.mrf.mxu1 }
 0x41b   :  { %v11112_v21 = vadd.f32 %v11111_v55, %v10980_v27 }
 0x41c   :  { %v10982_v37 = vpop.f32.mrf.mxu0  ;;  %v11113_v59 = vpop.f32.mrf.mxu1 }
 0x41d   :  { %v11114_v45 = vadd.f32 %v11113_v59, %v10982_v37 }
 0x41e   :  { %v10984_v22 = vpop.f32.mrf.mxu0  ;;  %v11115_v3 = vpop.f32.mrf.mxu1 }
 0x41f   :  { %v11246_v46 = vcombine.low %v11112_v21, %v11114_v45  ;;  %v11247_v44 = vcombine.high %v11112_v21, %v11114_v45  ;;  %v11116_v16 = vadd.f32 %v11115_v3, %v10984_v22 }
 0x420   :  { %v10986_v12 = vpop.f32.mrf.mxu0  ;;  %v11117_v17 = vpop.f32.mrf.mxu1 }
 0x421   :  { %v11254_v18 = vrot.slane %v11246_v46, %v21575_v2  ;;  %v11261_v30 = vrot.slane %v11247_v44, %v21575_v2  ;;  %v11118_v51 = vadd.f32 %v11117_v17, %v10986_v12 }
 0x423   :  { %v11262_v61 = vcombine.high %v11254_v18, %v11254_v18  ;;  %v11263_v34 = vcombine.high %v11261_v30, %v11261_v30  ;;  %v11270_v28 = vrot.slane %v11254_v18, %v21575_v2  ;;  %v11277_v5 = vrot.slane %v11261_v30, %v21575_v2 }
 0x424   :  { %v11296_v54 = vcombine.low %v11116_v16, %v11118_v51  ;;  %v11297_v20 = vcombine.high %v11116_v16, %v11118_v51 }
 0x425   :  { %v11284_v52 = vrot.slane %v11262_v61, %v21575_v2  ;;  %v11291_v32 = vrot.slane %v11263_v34, %v21575_v2  ;;  %v11292_v1 = vcombine.high %v11270_v28, %v11270_v28  ;;  %v11293_v38 = vcombine.high %v11277_v5, %v11277_v5 }
 0x426   :  { %v12348_v60 = vmax.f32 %v11270_v28, 0.0  ;;  %v12352_v49 = vmax.f32 %v11277_v5, 0.0  ;;  %v11304_v57 = vrot.slane %v11296_v54, %v21575_v2  ;;  %v11311_v13 = vrot.slane %v11297_v20, %v21575_v2 }
 0x427   :  { %v11294_v31 = vcombine.high %v11284_v52, %v11284_v52  ;;  %v11295_v40 = vcombine.high %v11291_v32, %v11291_v32  ;;  %v12349_v48 = vmax.f32 %v11284_v52, 0.0  ;;  %v12350_v29 = vmax.f32 %v11292_v1, 0.0 }
 0x428   :  { %v12353_v58 = vmax.f32 %v11291_v32, 0.0  ;;  %v12354_v6 = vmax.f32 %v11293_v38, 0.0  ;;  %v11312_v9 = vcombine.high %v11304_v57, %v11304_v57  ;;  %v11313_v7 = vcombine.high %v11311_v13, %v11311_v13 }
 0x429   :  { %v12351_v35 = vmax.f32 %v11294_v31, 0.0  ;;  %v12355_v56 = vmax.f32 %v11295_v40, 0.0  ;;  %v12652_v24 = vcombine.low %v12348_v60, %v12349_v48  ;;  %v11320_v50 = vrot.slane %v11304_v57, %v21575_v2 }
 0x42a   :  { %v12654_v62 = vcombine.low %v12352_v49, %v12353_v58  ;;  %v11327_v14 = vrot.slane %v11311_v13, %v21575_v2  ;;  %v11334_v19 = vrot.slane %v11312_v9, %v21575_v2  ;;  %v11341_v36 = vrot.slane %v11313_v7, %v21575_v2 }
 0x42b   :  { %v12653_v41 = vcombine.low %v12350_v29, %v12351_v35  ;;  %v12655_v23 = vcombine.low %v12354_v6, %v12355_v56  ;;  %v12662_v42 = vrot.slane %v12652_v24, %v21575_v2  ;;  %v11342_v26 = vcombine.high %v11320_v50, %v11320_v50  ;;  %v10990_v0 = vpop.f32.mrf.mxu0  ;;  %v11121_v33 = vpop.f32.mrf.mxu1 }
 0x42c   :  { %v12676_v4 = vrot.slane %v12654_v62, %v21575_v2  ;;  %v11343_v39 = vcombine.high %v11327_v14, %v11327_v14  ;;  %v11344_v53 = vcombine.high %v11334_v19, %v11334_v19  ;;  %v11345_v15 = vcombine.high %v11341_v36, %v11341_v36 }
 0x42d   :  { %v12669_v11 = vrot.slane %v12653_v41, %v21575_v2  ;;  %v12683_v8 = vrot.slane %v12655_v23, %v21575_v2  ;;  %v12356_v63 = vmax.f32 %v11320_v50, 0.0  ;;  %v12357_v47 = vmax.f32 %v11334_v19, 0.0  ;;  %v10992_v27 = vpop.f32.mrf.mxu0  ;;  %v11123_v55 = vpop.f32.mrf.mxu1 }
 0x42e   :  { %v12358_v37 = vmax.f32 %v11342_v26, 0.0  ;;  %v12359_v59 = vmax.f32 %v11344_v53, 0.0  ;;  %v12360_v21 = vmax.f32 %v11327_v14, 0.0  ;;  %v12361_v45 = vmax.f32 %v11341_v36, 0.0 }
 0x42f   :  { %v12684_v22 = vcombine.low %v12662_v42, %v12669_v11  ;;  %v12685_v3 = vcombine.high %v12662_v42, %v12669_v11  ;;  %v12686_v46 = vcombine.low %v12676_v4, %v12683_v8  ;;  %v12687_v44 = vcombine.high %v12676_v4, %v12683_v8  ;;  %v10994_v12 = vpop.f32.mrf.mxu0  ;;  %v11125_v17 = vpop.f32.mrf.mxu1 }
 0x430   :  { %v12362_v18 = vmax.f32 %v11343_v39, 0.0  ;;  %v12363_v30 = vmax.f32 %v11345_v15, 0.0  ;;  %v12718_v51 = vcombine.low %v12356_v63, %v12357_v47  ;;  %v12719_v16 = vcombine.low %v12358_v37, %v12359_v59 }
 0x431   :  { %v12694_v61 = vrot.slane %v12684_v22, %v21575_v2  ;;  %v12701_v34 = vrot.slane %v12685_v3, %v21575_v2  ;;  %v12708_v28 = vrot.slane %v12686_v46, %v21575_v2  ;;  %v12715_v5 = vrot.slane %v12687_v44, %v21575_v2  ;;  %v10996_v1 = vpop.f32.mrf.mxu0  ;;  %v11127_v38 = vpop.f32.mrf.mxu1 }
 0x432   :  { %v12720_v54 = vcombine.low %v12360_v21, %v12361_v45  ;;  %v12721_v20 = vcombine.low %v12362_v18, %v12363_v30  ;;  %v12728_v52 = vrot.slane %v12718_v51, %v21575_v2  ;;  %v12735_v32 = vrot.slane %v12719_v16, %v21575_v2 }
 0x433   :  { %v12716_v60 = vcombine.low %v12694_v61, %v12708_v28  ;;  %v12717_v49 = vcombine.low %v12701_v34, %v12715_v5  ;;  %v11122_v57 = vadd.f32 %v11121_v33, %v10990_v0  ;;  %v11124_v13 = vadd.f32 %v11123_v55, %v10992_v27  ;;  %v11000_v6 = vpop.f32.mrf.mxu0  ;;  %v11131_v9 = vpop.f32.mrf.mxu1 }
 0x434   :  { %v12742_v40 = vrot.slane %v12720_v54, %v21575_v2  ;;  %v12749_v48 = vrot.slane %v12721_v20, %v21575_v2  ;;  %v12750_v29 = vcombine.low %v12728_v52, %v12735_v32  ;;  %v12751_v58 = vcombine.high %v12728_v52, %v12735_v32 }
 0x435   :  { %v20231_v7 = vpack.c.bf16 %v12717_v49, %v12716_v60  ;;  %v11346_v43 = vcombine.low %v11122_v57, %v11124_v13  ;;  %v11347_v35 = vcombine.high %v11122_v57, %v11124_v13  ;;  %v11002_v14 = vpop.f32.mrf.mxu0  ;;  %v11133_v19 = vpop.f32.mrf.mxu1  ;;  %v11126_v23 = vadd.f32 %v11125_v17, %v10994_v12 }
 0x436   :  { %v12752_v56 = vcombine.low %v12742_v40, %v12749_v48  ;;  %v12753_v24 = vcombine.high %v12742_v40, %v12749_v48  ;;  %v12760_v50 = vrot.slane %v12750_v29, %v21575_v2  ;;  %v12767_v62 = vrot.slane %v12751_v58, %v21575_v2 }
 0x437   :  { %14166 = vst.msk [vmem:[#allocation4] sm:$0xff] %vm23785_vm15, %v20231_v7  ;;  %v11354_v36 = vrot.slane %v11346_v43, %v21575_v2  ;;  %v11361_v41 = vrot.slane %v11347_v35, %v21575_v2  ;;  %v11128_v42 = vadd.f32 %v11127_v38, %v10996_v1  ;;  %v23799_v33 = vadd.f32 %v11131_v9, %v11000_v6 }
 0x438   :  { %v12774_v26 = vrot.slane %v12752_v56, %v21575_v2  ;;  %v12781_v0 = vrot.slane %v12753_v24, %v21575_v2  ;;  %v23801_v4 = vadd.f32 %v11133_v19, %v11002_v14 }
 0x439   :  { %v11362_v39 = vcombine.high %v11354_v36, %v11354_v36  ;;  %v11363_v53 = vcombine.high %v11361_v41, %v11361_v41  ;;  %v11370_v15 = vrot.slane %v11354_v36, %v21575_v2  ;;  %v11377_v11 = vrot.slane %v11361_v41, %v21575_v2 }
 0x43a   :  { %v12782_v8 = vcombine.low %v12760_v50, %v12774_v26  ;;  %v12783_v63 = vcombine.low %v12767_v62, %v12781_v0  ;;  %v11396_v47 = vcombine.low %v11126_v23, %v11128_v42  ;;  %v11397_v27 = vcombine.high %v11126_v23, %v11128_v42  ;;  %v11004_v23 = vpop.f32.mrf.mxu0  ;;  %v11135_v42 = vpop.f32.mrf.mxu1  ;;  %v14174_v0 = vld [vmem:[#allocation4 + $0x10] sm:$0x33] }
 0x43b   :  { %v11384_v55 = vrot.slane %v11362_v39, %v21575_v2  ;;  %v11391_v37 = vrot.slane %v11363_v53, %v21575_v2  ;;  %v11392_v59 = vcombine.high %v11370_v15, %v11370_v15  ;;  %v11393_v21 = vcombine.high %v11377_v11, %v11377_v11 }
 0x43c   :  { %v20232_v45 = vpack.c.bf16 %v12783_v63, %v12782_v8  ;;  %v12364_v22 = vmax.f32 %v11370_v15, 0.0  ;;  %v12368_v3 = vmax.f32 %v11377_v11, 0.0  ;;  %v11404_v46 = vrot.slane %v11396_v47, %v21575_v2 }
 0x43d   :  { %v11394_v44 = vcombine.high %v11384_v55, %v11384_v55  ;;  %v11395_v12 = vcombine.high %v11391_v37, %v11391_v37  ;;  %v12365_v17 = vmax.f32 %v11384_v55, 0.0  ;;  %v12366_v18 = vmax.f32 %v11392_v59, 0.0 }
 0x43e   :  { %14167 = vst.msk [vmem:[#allocation4 + $0x8] sm:$0xff] %vm23785_vm15, %v20232_v45  ;;  %v12369_v30 = vmax.f32 %v11391_v37, 0.0  ;;  %v12370_v51 = vmax.f32 %v11393_v21, 0.0  ;;  %v11411_v16 = vrot.slane %v11397_v27, %v21575_v2  ;;  %v11412_v61 = vcombine.high %v11404_v46, %v11404_v46 }
 0x43f   :  { %v12367_v34 = vmax.f32 %v11394_v44, 0.0  ;;  %v12371_v28 = vmax.f32 %v11395_v12, 0.0  ;;  %v12784_v5 = vcombine.low %v12364_v22, %v12365_v17  ;;  %v12798_v54 = vrot.slane %v12366_v18, %v21575_v2  ;;  %v11137_v44 = vpop.f32.mrf.mxu1 }
 0x440   :  { %v12816_v20 = vcombine.low %v12369_v30, %v12370_v51  ;;  %v11413_v52 = vcombine.high %v11411_v16, %v11411_v16  ;;  %v11420_v32 = vrot.slane %v11404_v46, %v21575_v2  ;;  %v11427_v1 = vrot.slane %v11411_v16, %v21575_v2  ;;  %v11006_v46 = vpop.f32.mrf.mxu0 }
 0x441   :  { %v12791_v38 = vrot.slane %v12784_v5, %v21575_v2  ;;  %v12815_v60 = vcombine.low %v12367_v34, %v12368_v3  ;;  %v11434_v49 = vrot.slane %v11412_v61, %v21575_v2  ;;  %v11446_v57 = vcombine.low %v23799_v33, %v23801_v4 }
 0x442   :  { %v12832_v40 = vrot.slane %v12816_v20, %v21575_v2  ;;  %v11441_v48 = vrot.slane %v11413_v52, %v21575_v2  ;;  %v11442_v29 = vcombine.high %v11420_v32, %v11420_v32  ;;  %v11443_v58 = vcombine.high %v11427_v1, %v11427_v1 }
 0x443   :  { %v12799_v9 = vcombine.low %v12791_v38, %v12798_v54  ;;  %v12800_v7 = vcombine.high %v12791_v38, %v12798_v54  ;;  %v12825_v43 = vrot.slane %v12815_v60, %v21575_v2  ;;  %v11444_v35 = vcombine.high %v11434_v49, %v11434_v49 }
 0x444   :  { %v11445_v56 = vcombine.high %v11441_v48, %v11441_v48  ;;  %v12372_v24 = vmax.f32 %v11420_v32, 0.0  ;;  %v12373_v50 = vmax.f32 %v11434_v49, 0.0  ;;  %v12374_v62 = vmax.f32 %v11442_v29, 0.0 }
 0x445   :  { %v12807_v14 = vrot.slane %v12799_v9, %v21575_v2  ;;  %v12814_v19 = vrot.slane %v12800_v7, %v21575_v2  ;;  %v12847_v36 = vcombine.low %v12825_v43, %v12832_v40  ;;  %v12848_v41 = vcombine.high %v12825_v43, %v12832_v40 }
 0x446   :  { %v12375_v39 = vmax.f32 %v11444_v35, 0.0  ;;  %v12376_v53 = vmax.f32 %v11427_v1, 0.0  ;;  %v12377_v15 = vmax.f32 %v11441_v48, 0.0  ;;  %v12378_v11 = vmax.f32 %v11443_v58, 0.0 }
 0x447   :  { %v12857_v8 = vrot.slane %v12847_v36, %v21575_v2  ;;  %v12864_v63 = vrot.slane %v12848_v41, %v21575_v2  ;;  %v20233_v47 = vpack.c.bf16 %v12814_v19, %v12807_v14  ;;  %v12817_v27 = vcombine.low %v12371_v28, %v12372_v24 }
 0x448   :  { %v12818_v55 = vcombine.low %v12373_v50, %v12374_v62  ;;  %v12881_v37 = vcombine.low %v12375_v39, %v12376_v53  ;;  %v12882_v59 = vcombine.low %v12377_v15, %v12378_v11  ;;  %v12379_v45 = vmax.f32 %v11445_v56, 0.0  ;;  %v23868_v11 = vld [vmem:[#allocation4 + $0x8] sm:$0xff] }
 0x449   :  { %v14175_v21 = vsel %vm23839_vm8, %v20233_v47, %v14174_v0  ;;  %v11447_v22 = vcombine.high %v23799_v33, %v23801_v4  ;;  %v11454_v3 = vrot.slane %v11446_v57, %v21575_v2  ;;  %v12839_v12 = vrot.slane %v12817_v27, %v21575_v2 }
 0x44a   :  { %14176 = vst [vmem:[#allocation4 + $0x10] sm:$0x33] %v14175_v21  ;;  %v12846_v17 = vrot.slane %v12818_v55, %v21575_v2  ;;  %v12891_v18 = vrot.slane %v12881_v37, %v21575_v2  ;;  %v12898_v30 = vrot.slane %v12882_v59, %v21575_v2  ;;  %v11136_v34 = vadd.f32 %v11135_v42, %v11004_v23  ;;  %v14236_v42 = vld [vmem:[#allocation4] sm:$0xee] }
 0x44b   :  { %v11461_v51 = vrot.slane %v11447_v22, %v21575_v2  ;;  %v11462_v16 = vcombine.high %v11454_v3, %v11454_v3  ;;  %v11470_v61 = vrot.slane %v11454_v3, %v21575_v2  ;;  %v11138_v5 = vadd.f32 %v11137_v44, %v11006_v46 }
 0x44c   :  { %v12849_v33 = vcombine.low %v12839_v12, %v12846_v17  ;;  %v12850_v4 = vcombine.high %v12839_v12, %v12846_v17  ;;  %v12913_v28 = vcombine.low %v12891_v18, %v12898_v30  ;;  %v12914_v60 = vcombine.high %v12891_v18, %v12898_v30 }
 0x44d   :  { %v11463_v54 = vcombine.high %v11461_v51, %v11461_v51  ;;  %v11477_v20 = vrot.slane %v11461_v51, %v21575_v2  ;;  %v11484_v52 = vrot.slane %v11462_v16, %v21575_v2  ;;  %v11492_v32 = vcombine.high %v11470_v61, %v11470_v61 }
 0x44e   :  { %v12871_v1 = vrot.slane %v12849_v33, %v21575_v2  ;;  %v12878_v38 = vrot.slane %v12850_v4, %v21575_v2  ;;  %v12923_v49 = vrot.slane %v12913_v28, %v21575_v2  ;;  %v12380_v48 = vmax.f32 %v11470_v61, 0.0  ;;  %v14179_v33 = vld [vmem:[#allocation4 + $0x28] sm:$0x33] }
 0x44f   :  { %v11491_v57 = vrot.slane %v11463_v54, %v21575_v2  ;;  %v11493_v13 = vcombine.high %v11477_v20, %v11477_v20  ;;  %v11494_v40 = vcombine.high %v11484_v52, %v11484_v52  ;;  %v12381_v6 = vmax.f32 %v11484_v52, 0.0 }
 0x450   :  { %v12879_v29 = vcombine.low %v12857_v8, %v12871_v1  ;;  %v12880_v58 = vcombine.low %v12864_v63, %v12878_v38  ;;  %v12382_v9 = vmax.f32 %v11492_v32, 0.0  ;;  %v12384_v35 = vmax.f32 %v11477_v20, 0.0 }
 0x451   :  { %v11495_v7 = vcombine.high %v11491_v57, %v11491_v57  ;;  %v12383_v43 = vmax.f32 %v11494_v40, 0.0  ;;  %v12385_v56 = vmax.f32 %v11491_v57, 0.0  ;;  %v12930_v24 = vrot.slane %v12914_v60, %v21575_v2 }
 0x452   :  { %v20234_v50 = vpack.c.bf16 %v12880_v58, %v12879_v29  ;;  %v12883_v62 = vcombine.low %v12379_v45, %v12380_v48  ;;  %v12884_v14 = vcombine.low %v12381_v6, %v12382_v9  ;;  %v12386_v19 = vmax.f32 %v11493_v13, 0.0 }
 0x453   :  { %v12387_v36 = vmax.f32 %v11495_v7, 0.0  ;;  %v12947_v41 = vcombine.low %v12383_v43, %v12384_v35  ;;  %v11496_v23 = vcombine.low %v11136_v34, %v11138_v5  ;;  %v12961_v53 = vrot.slane %v12385_v56, %v21575_v2  ;;  %v14212_v35 = vld [vmem:[#allocation4] sm:$0xff] }
 0x454   :  { %14177 = vst.msk [vmem:[#allocation4 + $0x18] sm:$0xff] %vm23785_vm15, %v20234_v50  ;;  %v12905_v0 = vrot.slane %v12883_v62, %v21575_v2  ;;  %v12912_v39 = vrot.slane %v12884_v14, %v21575_v2  ;;  %v11497_v15 = vcombine.high %v11136_v34, %v11138_v5  ;;  %v19980_v59 = vrot.slane %v14236_v42, 9 }
 0x455   :  { %v12954_v8 = vrot.slane %v12947_v41, %v21575_v2  ;;  %v12978_v63 = vcombine.low %v12386_v19, %v12387_v36  ;;  %v11504_v47 = vrot.slane %v11496_v23, %v21575_v2  ;;  %v14281_v3 = vrot.slane %v23868_v11, 5 }
 0x456   :  { %v12915_v27 = vcombine.low %v12905_v0, %v12912_v39  ;;  %v12916_v55 = vcombine.high %v12905_v0, %v12912_v39  ;;  %v11511_v37 = vrot.slane %v11497_v15, %v21575_v2 }
 0x457   :  { %v12962_v21 = vcombine.low %v12954_v8, %v12961_v53  ;;  %v12963_v45 = vcombine.high %v12954_v8, %v12961_v53  ;;  %v11512_v22 = vcombine.high %v11504_v47, %v11504_v47  ;;  %v11520_v17 = vrot.slane %v11504_v47, %v21575_v2 }
 0x458   :  { %v12937_v46 = vrot.slane %v12915_v27, %v21575_v2  ;;  %v12944_v44 = vrot.slane %v12916_v55, %v21575_v2  ;;  %v11513_v12 = vcombine.high %v11511_v37, %v11511_v37  ;;  %v11527_v51 = vrot.slane %v11511_v37, %v21575_v2 }
 0x459   :  { %v12970_v18 = vrot.slane %v12962_v21, %v21575_v2  ;;  %v12977_v30 = vrot.slane %v12963_v45, %v21575_v2  ;;  %v11534_v16 = vrot.slane %v11512_v22, %v21575_v2  ;;  %v11542_v28 = vcombine.high %v11520_v17, %v11520_v17 }
 0x45a   :  { %v12945_v61 = vcombine.low %v12923_v49, %v12937_v46  ;;  %v12946_v34 = vcombine.low %v12930_v24, %v12944_v44  ;;  %v11541_v4 = vrot.slane %v11513_v12, %v21575_v2  ;;  %v11543_v54 = vcombine.high %v11527_v51, %v11527_v51  ;;  %v14237_v49 = vld [vmem:[#allocation4 + $0x10] sm:$0x33] }
 0x45b   :  { %v20236_v5 = vpack.c.bf16 %v12977_v30, %v12970_v18  ;;  %v11544_v20 = vcombine.high %v11534_v16, %v11534_v16  ;;  %v12388_v52 = vmax.f32 %v11520_v17, 0.0  ;;  %v12389_v60 = vmax.f32 %v11534_v16, 0.0  ;;  %v14238_v42 = vld [vmem:[#allocation4 + $0x18] sm:$0xee] }
 0x45c   :  { %v20235_v1 = vpack.c.bf16 %v12946_v34, %v12945_v61  ;;  %v11545_v38 = vcombine.high %v11541_v4, %v11541_v4  ;;  %v12390_v57 = vmax.f32 %v11542_v28, 0.0  ;;  %v12392_v48 = vmax.f32 %v11527_v51, 0.0 }
 0x45d   :  { %v14180_v13 = vsel %vm23839_vm8, %v20236_v5, %v14179_v33  ;;  %v12391_v40 = vmax.f32 %v11544_v20, 0.0  ;;  %v12393_v29 = vmax.f32 %v11541_v4, 0.0  ;;  %v12979_v6 = vcombine.low %v12388_v52, %v12389_v60 }
 0x45e   :  { %14178 = vst.msk [vmem:[#allocation4 + $0x20] sm:$0xff] %vm23785_vm15, %v20235_v1  ;;  %14181 = vst [vmem:[#allocation4 + $0x28] sm:$0x33] %v14180_v13  ;;  %v12395_v58 = vmax.f32 %v11545_v38, 0.0  ;;  %v14282_v9 = vsel %vm23884_vm0, %v19980_v59, %v14281_v3  ;;  %v14283_v56 = vrot.slane %v14281_v3, 4  ;;  %v14284_v24 = vrot.slane %v14237_v49, 5 }
 0x45f   :  { %v12980_v7 = vcombine.low %v12390_v57, %v12391_v40  ;;  %v12981_v43 = vcombine.low %v12392_v48, %v12393_v29  ;;  %v12988_v50 = vrot.slane %v12978_v63, %v21575_v2  ;;  %v12995_v62 = vrot.slane %v12979_v6, %v21575_v2  ;;  %v23922_v40 = vld [vmem:[#allocation4 + $0x10] sm:$0x11] }
 0x460   :  { %v14367_v14 = vadd.bf16 %v14282_v9, %v14212_v35  ;;  %v12394_v19 = vmax.f32 %v11543_v54, 0.0  ;;  %v14285_v23 = vsel %vm23884_vm0, %v14283_v56, %v14284_v24  ;;  %v23904_v21 = vrot.slane %v14284_v24, 4 }
 0x461   :  { %v13002_v36 = vrot.slane %v12980_v7, %v21575_v2  ;;  %v13009_v41 = vrot.slane %v12981_v43, %v21575_v2  ;;  %v13010_v0 = vcombine.low %v12988_v50, %v12995_v62  ;;  %v13011_v39 = vcombine.high %v12988_v50, %v12995_v62 }
 0x462   :  { %v14368_v53 = vadd.bf16 %v14285_v23, %v23868_v11  ;;  %v13044_v47 = vcombine.low %v12394_v19, %v12395_v58  ;;  %v14450_v63 = vrot.slane %v14367_v14, %v21575_v2  ;;  %v19981_v45 = vrot.slane %v14238_v42, 9 }
 0x463   :  { %v13012_v15 = vcombine.low %v13002_v36, %v13009_v41  ;;  %v13013_v8 = vcombine.high %v13002_v36, %v13009_v41  ;;  %v13020_v27 = vrot.slane %v13010_v0, %v21575_v2  ;;  %v13027_v22 = vrot.slane %v13011_v39, %v21575_v2 }
 0x464   :  { %v14474_v59 = vrot.slane %v14368_v53, %v21575_v2  ;;  %v14451_v46 = vcombine.high %v14450_v63, %v14450_v63  ;;  %v14458_v51 = vrot.slane %v14450_v63, %v21575_v2  ;;  %v23920_v60 = vrot.slane %v13044_v47, %v21575_v2 }
 0x465   :  { %v13034_v3 = vrot.slane %v13012_v15, %v21575_v2  ;;  %v13041_v11 = vrot.slane %v13013_v8, %v21575_v2  ;;  %v23909_v44 = vld [vmem:[#allocation4 + $0x20] sm:$0xff]  ;;  %v23911_v12 = vld [vmem:[#allocation4 + $0x28] sm:$0x33]  ;;  %v14369_v7 = vadd.bf16 %v23904_v21, %v23922_v40 }
 0x466   :  { %v14475_v16 = vcombine.high %v14474_v59, %v14474_v59  ;;  %v14289_v61 = vrot.slane %v23909_v44, 5  ;;  %v14465_v28 = vrot.slane %v14451_v46, %v21575_v2  ;;  %v14482_v20 = vrot.slane %v14474_v59, %v21575_v2 }
 0x467   :  { %v11010_v55 = vpop.f32.mrf.mxu0  ;;  %v11141_v37 = vpop.f32.mrf.mxu1  ;;  %v13042_v34 = vcombine.low %v13020_v27, %v13034_v3  ;;  %v13043_v33 = vcombine.low %v13027_v22, %v13041_v11  ;;  %v14292_v38 = vrot.slane %v23911_v12, 5 }
 0x468   :  { %v11142_v17 = vadd.f32 %v11141_v37, %v11010_v55  ;;  %v14489_v52 = vrot.slane %v14475_v16, %v21575_v2  ;;  %v14291_v1 = vrot.slane %v14289_v61, 4  ;;  %v15194_v58 = vcombine.low %v14458_v51, %v14465_v28 }
 0x469   :  { %v11012_v18 = vpop.f32.mrf.mxu0  ;;  %v11143_v30 = vpop.f32.mrf.mxu1  ;;  %v20237_v57 = vpack.c.bf16 %v13043_v33, %v13042_v34  ;;  %v20024_v6 = vcombine.high %v14458_v51, %v14465_v28  ;;  %v23932_v24 = vsel %vm23884_vm0, %v19981_v45, %v14289_v61 }
 0x46a   :  { %v11144_v4 = vadd.f32 %v11143_v30, %v11012_v18  ;;  %v15196_v9 = vcombine.low %v14482_v20, %v14489_v52  ;;  %v20025_v62 = vcombine.high %v14482_v20, %v14489_v52  ;;  %v23935_v14 = vrot.slane %v15194_v58, %v21575_v2 }
 0x46b   :  { %v11014_v5 = vpop.f32.mrf.mxu0  ;;  %v11145_v54 = vpop.f32.mrf.mxu1  ;;  %14182 = vst.msk [vmem:[#allocation4 + $0x30] sm:$0xff] %vm23785_vm15, %v20237_v57  ;;  %v23941_v19 = vsel %vm23884_vm0, %v14291_v1, %v14292_v38  ;;  %v23946_v53 = vrot.slane %v20024_v6, %v21575_v2 }
 0x46c   :  { %v11546_v49 = vcombine.low %v11142_v17, %v11144_v4  ;;  %v11547_v13 = vcombine.high %v11142_v17, %v11144_v4  ;;  %v11146_v50 = vadd.f32 %v11145_v54, %v11014_v5  ;;  %v23949_v15 = vrot.slane %v15196_v9, %v21575_v2 }
 0x46d   :  { %v11016_v48 = vpop.f32.mrf.mxu0  ;;  %v11147_v29 = vpop.f32.mrf.mxu1  ;;  %v15225_v54 = vrot.slane %v20025_v62, %v21575_v2 }
 0x46e   :  { %v11554_v43 = vrot.slane %v11546_v49, %v21575_v2  ;;  %v11561_v35 = vrot.slane %v11547_v13, %v21575_v2  ;;  %v11148_v56 = vadd.f32 %v11147_v29, %v11016_v48  ;;  %v15226_v29 = vcombine.low %v23935_v14, %v23946_v53 }
 0x470   :  { %v11562_v36 = vcombine.high %v11554_v43, %v11554_v43  ;;  %v11563_v41 = vcombine.high %v11561_v35, %v11561_v35  ;;  %v11570_v23 = vrot.slane %v11554_v43, %v21575_v2  ;;  %v11577_v42 = vrot.slane %v11561_v35, %v21575_v2 }
 0x471   :  { %v11596_v0 = vcombine.low %v11146_v50, %v11148_v56  ;;  %v11597_v39 = vcombine.high %v11146_v50, %v11148_v56 }
 0x472   :  { %v11584_v8 = vrot.slane %v11562_v36, %v21575_v2  ;;  %v11591_v47 = vrot.slane %v11563_v41, %v21575_v2  ;;  %v11592_v63 = vcombine.high %v11570_v23, %v11570_v23  ;;  %v11593_v27 = vcombine.high %v11577_v42, %v11577_v42 }
 0x473   :  { %v12396_v55 = vmax.f32 %v11570_v23, 0.0  ;;  %v12400_v37 = vmax.f32 %v11577_v42, 0.0  ;;  %v11604_v59 = vrot.slane %v11596_v0, %v21575_v2  ;;  %v11611_v45 = vrot.slane %v11597_v39, %v21575_v2 }
 0x474   :  { %v11594_v22 = vcombine.high %v11584_v8, %v11584_v8  ;;  %v11595_v3 = vcombine.high %v11591_v47, %v11591_v47  ;;  %v12397_v11 = vmax.f32 %v11584_v8, 0.0  ;;  %v12398_v46 = vmax.f32 %v11592_v63, 0.0 }
 0x475   :  { %v12401_v17 = vmax.f32 %v11591_v47, 0.0  ;;  %v12402_v18 = vmax.f32 %v11593_v27, 0.0  ;;  %v11612_v30 = vcombine.high %v11604_v59, %v11604_v59  ;;  %v11613_v51 = vcombine.high %v11611_v45, %v11611_v45 }
 0x476   :  { %v12399_v16 = vmax.f32 %v11594_v22, 0.0  ;;  %v12403_v61 = vmax.f32 %v11595_v3, 0.0  ;;  %v13045_v34 = vcombine.low %v12396_v55, %v12397_v11  ;;  %v11620_v33 = vrot.slane %v11604_v59, %v21575_v2 }
 0x477   :  { %v13047_v4 = vcombine.low %v12400_v37, %v12401_v17  ;;  %v11627_v28 = vrot.slane %v11611_v45, %v21575_v2  ;;  %v11634_v5 = vrot.slane %v11612_v30, %v21575_v2  ;;  %v11641_v13 = vrot.slane %v11613_v51, %v21575_v2 }
 0x478   :  { %v13046_v20 = vcombine.low %v12398_v46, %v12399_v16  ;;  %v13061_v52 = vrot.slane %v13045_v34, %v21575_v2  ;;  %v13110_v1 = vcombine.low %v12402_v18, %v12403_v61  ;;  %v11642_v57 = vcombine.high %v11620_v33, %v11620_v33 }
 0x479   :  { %v13075_v49 = vrot.slane %v13047_v4, %v21575_v2  ;;  %v11644_v48 = vcombine.high %v11634_v5, %v11634_v5  ;;  %v11643_v43 = vcombine.high %v11627_v28, %v11627_v28  ;;  %v12404_v35 = vmax.f32 %v11620_v33, 0.0  ;;  %v14184_v4 = vld [vmem:[#allocation4 + $0x40] sm:$0x33] }
 0x47a   :  { %v13068_v58 = vrot.slane %v13046_v20, %v21575_v2  ;;  %v13076_v6 = vcombine.low %v23920_v60, %v13061_v52  ;;  %v13077_v9 = vcombine.high %v23920_v60, %v13061_v52  ;;  %v12405_v56 = vmax.f32 %v11634_v5, 0.0 }
 0x47b   :  { %v12406_v50 = vmax.f32 %v11642_v57, 0.0  ;;  %v12407_v62 = vmax.f32 %v11644_v48, 0.0  ;;  %v13117_v23 = vrot.slane %v13110_v1, %v21575_v2  ;;  %v15227_v42 = vcombine.high %v23935_v14, %v23946_v53 }
 0x47c   :  { %v13078_v36 = vcombine.low %v13068_v58, %v13075_v49  ;;  %v13079_v41 = vcombine.high %v13068_v58, %v13075_v49  ;;  %v13086_v0 = vrot.slane %v13076_v6, %v21575_v2  ;;  %v13093_v39 = vrot.slane %v13077_v9, %v21575_v2 }
 0x47d   :  { %v12408_v8 = vmax.f32 %v11627_v28, 0.0  ;;  %v12409_v47 = vmax.f32 %v11641_v13, 0.0  ;;  %v13124_v27 = vrot.slane %v12404_v35, %v21575_v2  ;;  %v13141_v55 = vcombine.low %v12405_v56, %v12406_v50  ;;  %v14217_v56 = vld [vmem:[#allocation4 + $0x28] sm:$0x11] }
 0x47e   :  { %v13100_v60 = vrot.slane %v13078_v36, %v21575_v2  ;;  %v13107_v63 = vrot.slane %v13079_v41, %v21575_v2  ;;  %v12410_v37 = vmax.f32 %v11643_v43, 0.0  ;;  %v15228_v45 = vcombine.low %v23949_v15, %v15225_v54 }
 0x47f   :  { %v13142_v59 = vcombine.low %v12407_v62, %v12408_v8  ;;  %v15229_v22 = vcombine.high %v23949_v15, %v15225_v54  ;;  %v13125_v3 = vcombine.low %v13117_v23, %v13124_v27  ;;  %v13126_v11 = vcombine.high %v13117_v23, %v13124_v27  ;;  %v14215_v54 = vld [vmem:[#allocation4 + $0x18] sm:$0xff] }
 0x480   :  { %v13108_v14 = vcombine.low %v13086_v0, %v13100_v60  ;;  %v13109_v53 = vcombine.low %v13093_v39, %v13107_v63  ;;  %v11645_v46 = vcombine.high %v11641_v13, %v11641_v13  ;;  %v13151_v17 = vrot.slane %v13141_v55, %v21575_v2 }
 0x481   :  { %v13158_v18 = vrot.slane %v13142_v59, %v21575_v2  ;;  %v15243_v30 = vrot.slane %v15227_v42, %v21575_v2  ;;  %v13133_v16 = vrot.slane %v13125_v3, %v21575_v2  ;;  %v13140_v61 = vrot.slane %v13126_v11, %v21575_v2 }
 0x482   :  { %v20238_v51 = vpack.c.bf16 %v13109_v53, %v13108_v14  ;;  %v15257_v34 = vrot.slane %v15229_v22, %v21575_v2  ;;  %v13143_v33 = vcombine.low %v12409_v47, %v12410_v37  ;;  %v15236_v28 = vrot.slane %v15226_v29, %v21575_v2 }
 0x483   :  { %v13173_v15 = vcombine.low %v13151_v17, %v13158_v18  ;;  %v15250_v5 = vrot.slane %v15228_v45, %v21575_v2  ;;  %v20239_v20 = vpack.c.bf16 %v13140_v61, %v13133_v16  ;;  %v14370_v1 = vadd.bf16 %v23932_v24, %v14215_v54  ;;  %v14240_v24 = vld [vmem:[#allocation4 + $0x30] sm:$0xee] }
 0x484   :  { %14183 = vst.msk [vmem:[#allocation4 + $0x38] sm:$0xff] %vm23785_vm15, %v20238_v51  ;;  %v15259_v52 = vcombine.low %v15243_v30, %v15257_v34  ;;  %v14371_v57 = vadd.bf16 %v23941_v19, %v23909_v44  ;;  %v13174_v49 = vcombine.high %v13151_v17, %v13158_v18  ;;  %v14498_v48 = vrot.slane %v14369_v7, %v21575_v2 }
 0x485   :  { %v15258_v13 = vcombine.low %v15236_v28, %v15250_v5  ;;  %v14185_v29 = vsel %vm23839_vm8, %v20239_v20, %v14184_v4  ;;  %v14512_v58 = vrot.slane %v14370_v1, %v21575_v2  ;;  %v14294_v44 = vrot.slane %v14292_v38, 4 }
 0x486   :  { %20040 = vmatprep.mubr.msk.bf16.mxu0 %vm682_vm4, %v15259_v52  ;;  %v14536_v6 = vrot.slane %v14371_v57, %v21575_v2  ;;  %v24001_v19 = vmax.f32 %v11645_v46, 0.0  ;;  %v24004_v9 = vrot.slane %v13143_v33, %v21575_v2  ;;  %v24007_v21 = vrot.slane %v13173_v15, %v21575_v2  ;;  %14186 = vst [vmem:[#allocation4 + $0x40] sm:$0x33] %v14185_v29  ;;  %v14218_v15 = vld [vmem:[#allocation4 + $0x30] sm:$0xff] }
 0x487   :  { %16252 = vmatmul.mubr.bf16.vlgmr.msra.gmra.mxu0 %v15258_v13  ;;  %v14513_v40 = vcombine.high %v14512_v58, %v14512_v58  ;;  %v14520_v7 = vrot.slane %v14512_v58, %v21575_v2  ;;  %v24012_v12 = vrot.slane %v13174_v49, %v21575_v2  ;;  %v14505_v38 = vrot.slane %v14498_v48, %v21575_v2 }
 0x488   :  { %v14537_v43 = vcombine.high %v14536_v6, %v14536_v6  ;;  %v14544_v35 = vrot.slane %v14536_v6, %v21575_v2  ;;  %v19982_v50 = vrot.slane %v14240_v24, 9  ;;  %v14372_v62 = vadd.bf16 %v14294_v44, %v14217_v56 }
 0x489   :  { %v14527_v36 = vrot.slane %v14513_v40, %v21575_v2  ;;  %v14528_v41 = vcombine.high %v14520_v7, %v14520_v7  ;;  %v14958_v0 = vunpack.i.h.s16 %v14520_v7  ;;  %v19988_v8 = vpack.i.b16 %v14520_v7, %v14505_v38 }
 0x48a   :  { %v14551_v23 = vrot.slane %v14537_v43, %v21575_v2  ;;  %v14552_v42 = vcombine.high %v14544_v35, %v14544_v35  ;;  %v14966_v39 = vunpack.i.h.s16 %v14544_v35  ;;  %v14560_v60 = vrot.slane %v14372_v62, %v21575_v2 }
 0x48b   :  { %v14219_v47 = vld [vmem:[#allocation4 + $0x38] sm:$0xff]  ;;  %v14529_v63 = vcombine.high %v14527_v36, %v14527_v36  ;;  %v14960_v55 = vunpack.i.h.s16 %v14527_v36  ;;  %v14962_v37 = vunpack.i.h.s16 %v14528_v41  ;;  %v19989_v22 = vpack.i.b16 %v14527_v36, %v14958_v0 }
 0x48c   :  { %v14553_v27 = vcombine.high %v14551_v23, %v14551_v23  ;;  %v14968_v59 = vunpack.i.h.s16 %v14551_v23  ;;  %v14970_v45 = vunpack.i.h.s16 %v14552_v42  ;;  %v19993_v14 = vpack.i.b16 %v14551_v23, %v14966_v39 }
 0x48d   :  { %v14964_v53 = vunpack.i.h.s16 %v14529_v63  ;;  %v19990_v3 = vpack.i.b16 %v14528_v41, %v14960_v55  ;;  %v19991_v11 = vpack.i.b16 %v14529_v63, %v14962_v37  ;;  %v24018_v46 = vld [vmem:[#allocation4 + $0x40] sm:$0x33]  ;;  %v14297_v17 = vrot.slane %v14219_v47, 5 }
 0x48e   :  { %v19994_v18 = vpack.i.b16 %v14552_v42, %v14968_v59  ;;  %v19995_v30 = vpack.i.b16 %v14553_v27, %v14970_v45  ;;  %v15260_v51 = vcombine.low %v19988_v8, %v19989_v22  ;;  %v25483_v16 = vrot.slane %v24018_v46, 5 }
 0x48f   :  { %v11020_v61 = vpop.f32.mrf.mxu0  ;;  %v19992_v34 = vpack.i.b16 %v14544_v35, %v14964_v53  ;;  %v15261_v33 = vcombine.low %v19990_v3, %v19991_v11  ;;  %v14298_v4 = vsel %vm23884_vm0, %v19982_v50, %v14297_v17  ;;  %v14299_v28 = vrot.slane %v14297_v17, 4 }
 0x490   :  { %v11151_v5 = vpop.f32.mrf.mxu1  ;;  %v15263_v54 = vcombine.low %v19994_v18, %v19995_v30  ;;  %v15270_v20 = vrot.slane %v15260_v51, %v21575_v2  ;;  %v14373_v52 = vadd.bf16 %v14298_v4, %v14218_v15  ;;  %v14567_v1 = vrot.slane %v14560_v60, %v21575_v2 }
 0x491   :  { %v11152_v57 = vadd.f32 %v11151_v5, %v11020_v61  ;;  %v11022_v49 = vpop.f32.mrf.mxu0  ;;  %v15262_v13 = vcombine.low %v19992_v34, %v19993_v14  ;;  %v15277_v48 = vrot.slane %v15261_v33, %v21575_v2  ;;  %v14301_v29 = vsel %vm23884_vm0, %v14299_v28, %v25483_v16 }
 0x492   :  { %v11153_v58 = vpop.f32.mrf.mxu1  ;;  %v15291_v6 = vrot.slane %v15263_v54, %v21575_v2  ;;  %v14374_v24 = vadd.bf16 %v14301_v29, %v14219_v47  ;;  %v14574_v44 = vrot.slane %v14373_v52, %v21575_v2  ;;  %v14972_v40 = vunpack.i.h.s16 %v14553_v27 }
 0x493   :  { %v11154_v7 = vadd.f32 %v11153_v58, %v11022_v49  ;;  %v11024_v43 = vpop.f32.mrf.mxu0  ;;  %v15284_v35 = vrot.slane %v15262_v13, %v21575_v2  ;;  %v15293_v56 = vcombine.high %v15270_v20, %v15277_v48  ;;  %v15292_v38 = vcombine.low %v15270_v20, %v15277_v48 }
 0x494   :  { %v11155_v50 = vpop.f32.mrf.mxu1  ;;  %v14575_v62 = vcombine.high %v14574_v44, %v14574_v44  ;;  %v24034_v36 = vrot.slane %v14574_v44, %v21575_v2  ;;  %v24037_v41 = vrot.slane %v14374_v24, %v21575_v2  ;;  %v24039_v23 = vpack.i.b16 %v14567_v1, %v14972_v40 }
 0x495   :  { %v11646_v42 = vcombine.low %v11152_v57, %v11154_v7  ;;  %v11647_v0 = vcombine.high %v11152_v57, %v11154_v7  ;;  %v11156_v39 = vadd.f32 %v11155_v50, %v11024_v43  ;;  %v11026_v8 = vpop.f32.mrf.mxu0  ;;  %v15295_v47 = vcombine.high %v15284_v35, %v15291_v6 }
 0x496   :  { %v11157_v60 = vpop.f32.mrf.mxu1  ;;  %v15309_v63 = vrot.slane %v15293_v56, %v21575_v2  ;;  %v15294_v27 = vcombine.low %v15284_v35, %v15291_v6  ;;  %v15302_v55 = vrot.slane %v15292_v38, %v21575_v2  ;;  %v24044_v37 = vrot.slane %v14575_v62, %v21575_v2 }
 0x497   :  { %v11654_v59 = vrot.slane %v11646_v42, %v21575_v2  ;;  %v11661_v45 = vrot.slane %v11647_v0, %v21575_v2  ;;  %v11158_v22 = vadd.f32 %v11157_v60, %v11026_v8  ;;  %v15323_v14 = vrot.slane %v15295_v47, %v21575_v2 }
 0x498   :  { %v15316_v53 = vrot.slane %v15294_v27, %v21575_v2  ;;  %v14590_v3 = vcombine.high %v24034_v36, %v24034_v36  ;;  %v14599_v17 = vcombine.high %v24037_v41, %v24037_v41 }
 0x499   :  { %v11662_v18 = vcombine.high %v11654_v59, %v11654_v59  ;;  %v11663_v30 = vcombine.high %v11661_v45, %v11661_v45  ;;  %v11670_v51 = vrot.slane %v11654_v59, %v21575_v2  ;;  %v11677_v61 = vrot.slane %v11661_v45, %v21575_v2 }
 0x49a   :  { %v11696_v34 = vcombine.low %v11156_v39, %v11158_v22  ;;  %v11697_v33 = vcombine.high %v11156_v39, %v11158_v22  ;;  %v15325_v15 = vcombine.low %v15309_v63, %v15323_v14  ;;  %v15324_v4 = vcombine.low %v15302_v55, %v15316_v53 }
 0x49b   :  { %v11684_v28 = vrot.slane %v11662_v18, %v21575_v2  ;;  %v11691_v5 = vrot.slane %v11663_v30, %v21575_v2  ;;  %v11692_v54 = vcombine.high %v11670_v51, %v11670_v51  ;;  %v11693_v20 = vcombine.high %v11677_v61, %v11677_v61 }
 0x49c   :  { %v12412_v52 = vmax.f32 %v11670_v51, 0.0  ;;  %v12416_v1 = vmax.f32 %v11677_v61, 0.0  ;;  %v11704_v57 = vrot.slane %v11696_v34, %v21575_v2  ;;  %v11711_v49 = vrot.slane %v11697_v33, %v21575_v2  ;;  %20041 = vmatprep.mubr.msk.bf16.mxu0 %vm682_vm4, %v15325_v15 }
 0x49d   :  { %v11694_v13 = vcombine.high %v11684_v28, %v11684_v28  ;;  %v11695_v48 = vcombine.high %v11691_v5, %v11691_v5  ;;  %v12413_v29 = vmax.f32 %v11684_v28, 0.0  ;;  %v12414_v58 = vmax.f32 %v11692_v54, 0.0  ;;  %v11030_v6 = vpop.f32.mrf.mxu0  ;;  %v11161_v24 = vpop.f32.mrf.mxu1  ;;  %16260 = vmatmul.mubr.bf16.gmra.mxu0 %v15324_v4 }
 0x49e   :  { %v12417_v44 = vmax.f32 %v11691_v5, 0.0  ;;  %v12418_v40 = vmax.f32 %v11693_v20, 0.0  ;;  %v13144_v7 = vcombine.low %v24001_v19, %v12412_v52  ;;  %v11712_v43 = vcombine.high %v11704_v57, %v11704_v57 }
 0x49f   :  { %v12415_v35 = vmax.f32 %v11694_v13, 0.0  ;;  %v12419_v56 = vmax.f32 %v11695_v48, 0.0  ;;  %v13207_v38 = vcombine.low %v12413_v29, %v12414_v58  ;;  %v11713_v50 = vcombine.high %v11711_v49, %v11711_v49  ;;  %v11032_v62 = vpop.f32.mrf.mxu0  ;;  %v11163_v42 = vpop.f32.mrf.mxu1 }
 0x4a0   :  { %v13172_v0 = vrot.slane %v13144_v7, %v21575_v2  ;;  %v13209_v39 = vcombine.low %v12417_v44, %v12418_v40  ;;  %v11720_v8 = vrot.slane %v11704_v57, %v21575_v2  ;;  %v11727_v47 = vrot.slane %v11711_v49, %v21575_v2 }
 0x4a1   :  { %v13208_v60 = vcombine.low %v12415_v35, %v12416_v1  ;;  %v13217_v63 = vrot.slane %v13207_v38, %v21575_v2  ;;  %v11734_v27 = vrot.slane %v11712_v43, %v21575_v2  ;;  %v11741_v19 = vrot.slane %v11713_v50, %v21575_v2  ;;  %v11034_v55 = vpop.f32.mrf.mxu0  ;;  %v11165_v59 = vpop.f32.mrf.mxu1 }
 0x4a2   :  { %v13175_v45 = vcombine.low %v24004_v9, %v13172_v0  ;;  %v13176_v22 = vcombine.high %v24004_v9, %v13172_v0  ;;  %v13231_v14 = vrot.slane %v13209_v39, %v21575_v2  ;;  %v11742_v53 = vcombine.high %v11720_v8, %v11720_v8 }
 0x4a3   :  { %v13224_v18 = vrot.slane %v13208_v60, %v21575_v2  ;;  %v11743_v30 = vcombine.high %v11727_v47, %v11727_v47  ;;  %v11744_v51 = vcombine.high %v11734_v27, %v11734_v27  ;;  %v11745_v61 = vcombine.high %v11741_v19, %v11741_v19  ;;  %v11036_v52 = vpop.f32.mrf.mxu0  ;;  %v11167_v9 = vpop.f32.mrf.mxu1 }
 0x4a4   :  { %v13197_v34 = vrot.slane %v13175_v45, %v21575_v2  ;;  %v13204_v33 = vrot.slane %v13176_v22, %v21575_v2  ;;  %v12420_v15 = vmax.f32 %v11720_v8, 0.0  ;;  %v12421_v4 = vmax.f32 %v11734_v27, 0.0 }
 0x4a5   :  { %v13239_v28 = vcombine.low %v13217_v63, %v13224_v18  ;;  %v13240_v5 = vcombine.high %v13217_v63, %v13224_v18  ;;  %v12422_v54 = vmax.f32 %v11742_v53, 0.0  ;;  %v12423_v20 = vmax.f32 %v11744_v51, 0.0 }
 0x4a6   :  { %v13205_v1 = vcombine.low %v24007_v21, %v13197_v34  ;;  %v13206_v57 = vcombine.low %v24012_v12, %v13204_v33  ;;  %v12424_v49 = vmax.f32 %v11727_v47, 0.0  ;;  %v12425_v13 = vmax.f32 %v11741_v19, 0.0 }
 0x4a7   :  { %v13249_v48 = vrot.slane %v13239_v28, %v21575_v2  ;;  %v13256_v29 = vrot.slane %v13240_v5, %v21575_v2  ;;  %v12426_v58 = vmax.f32 %v11743_v30, 0.0  ;;  %v12427_v44 = vmax.f32 %v11745_v61, 0.0  ;;  %v14189_v5 = vld [vmem:[#allocation4 + $0x58] sm:$0x33] }
 0x4a8   :  { %v20240_v40 = vpack.c.bf16 %v13206_v57, %v13205_v1  ;;  %v13210_v7 = vcombine.low %v12419_v56, %v12420_v15  ;;  %v13273_v43 = vcombine.low %v12421_v4, %v12422_v54  ;;  %v13287_v35 = vrot.slane %v12423_v20, %v21575_v2 }
 0x4a9   :  { %v13304_v38 = vcombine.low %v12424_v49, %v12425_v13  ;;  %v13305_v50 = vcombine.low %v12426_v58, %v12427_v44  ;;  %v11162_v0 = vadd.f32 %v11161_v24, %v11030_v6  ;;  %v11164_v39 = vadd.f32 %v11163_v42, %v11032_v62  ;;  %v24081_v21 = vpop.f32.mrf.mxu0  ;;  %v24083_v12 = vpop.f32.mrf.mxu1 }
 0x4aa   :  { %14187 = vst.msk [vmem:[#allocation4 + $0x48] sm:$0xff] %vm23785_vm15, %v20240_v40  ;;  %v13238_v8 = vrot.slane %v13210_v7, %v21575_v2  ;;  %v13280_v47 = vrot.slane %v13273_v43, %v21575_v2  ;;  %v11166_v60 = vadd.f32 %v11165_v59, %v11034_v55  ;;  %v11168_v56 = vadd.f32 %v11167_v9, %v11036_v52 }
 0x4ab   :  { %v13314_v63 = vrot.slane %v13304_v38, %v21575_v2  ;;  %v13321_v27 = vrot.slane %v13305_v50, %v21575_v2  ;;  %v11746_v19 = vcombine.low %v11162_v0, %v11164_v39  ;;  %v11747_v6 = vcombine.high %v11162_v0, %v11164_v39  ;;  %v11042_v24 = vpop.f32.mrf.mxu0  ;;  %v11173_v62 = vpop.f32.mrf.mxu1 }
 0x4ac   :  { %v13241_v42 = vcombine.low %v13231_v14, %v13238_v8  ;;  %v13242_v45 = vcombine.high %v13231_v14, %v13238_v8  ;;  %v13288_v22 = vcombine.low %v13280_v47, %v13287_v35  ;;  %v13289_v53 = vcombine.high %v13280_v47, %v13287_v35 }
 0x4ad   :  { %v13336_v18 = vcombine.low %v13314_v63, %v13321_v27  ;;  %v13337_v30 = vcombine.high %v13314_v63, %v13321_v27  ;;  %v11754_v51 = vrot.slane %v11746_v19, %v21575_v2  ;;  %v11761_v61 = vrot.slane %v11747_v6, %v21575_v2  ;;  %v24093_v55 = vpop.f32.mrf.mxu0  ;;  %v24095_v59 = vpop.f32.mrf.mxu1 }
 0x4ae   :  { %v13263_v34 = vrot.slane %v13241_v42, %v21575_v2  ;;  %v13270_v33 = vrot.slane %v13242_v45, %v21575_v2  ;;  %v13296_v15 = vrot.slane %v13288_v22, %v21575_v2  ;;  %v13303_v14 = vrot.slane %v13289_v53, %v21575_v2 }
 0x4af   :  { %v24102_v4 = vrot.slane %v13336_v18, %v21575_v2  ;;  %v24105_v28 = vrot.slane %v13337_v30, %v21575_v2  ;;  %v11762_v54 = vcombine.high %v11754_v51, %v11754_v51  ;;  %v11763_v20 = vcombine.high %v11761_v61, %v11761_v61  ;;  %v24107_v52 = vpop.f32.mrf.mxu0  ;;  %v24109_v9 = vpop.f32.mrf.mxu1 }
 0x4b0   :  { %v13271_v1 = vcombine.low %v13249_v48, %v13263_v34  ;;  %v13272_v57 = vcombine.low %v13256_v29, %v13270_v33  ;;  %v20242_v49 = vpack.c.bf16 %v13303_v14, %v13296_v15  ;;  %v11770_v13 = vrot.slane %v11754_v51, %v21575_v2 }
 0x4b1   :  { %v11777_v58 = vrot.slane %v11761_v61, %v21575_v2  ;;  %v11784_v44 = vrot.slane %v11762_v54, %v21575_v2  ;;  %v11791_v40 = vrot.slane %v11763_v20, %v21575_v2  ;;  %v11796_v7 = vcombine.low %v11166_v60, %v11168_v56 }
 0x4b2   :  { %v20241_v43 = vpack.c.bf16 %v13272_v57, %v13271_v1  ;;  %v14190_v35 = vsel %vm23839_vm8, %v20242_v49, %v14189_v5  ;;  %v11792_v38 = vcombine.high %v11770_v13, %v11770_v13  ;;  %v12428_v50 = vmax.f32 %v11770_v13, 0.0 }
 0x4b3   :  { %14191 = vst [vmem:[#allocation4 + $0x58] sm:$0x33] %v14190_v35  ;;  %v11793_v0 = vcombine.high %v11777_v58, %v11777_v58  ;;  %v11794_v48 = vcombine.high %v11784_v44, %v11784_v44  ;;  %v11795_v29 = vcombine.high %v11791_v40, %v11791_v40  ;;  %v12429_v39 = vmax.f32 %v11784_v44, 0.0  ;;  %v24117_v8 = vpop.f32.mrf.mxu0  ;;  %v24119_v47 = vpop.f32.mrf.mxu1 }
 0x4b4   :  { %14188 = vst.msk [vmem:[#allocation4 + $0x50] sm:$0xff] %vm23785_vm15, %v20241_v43  ;;  %v12430_v63 = vmax.f32 %v11792_v38, 0.0  ;;  %v12432_v27 = vmax.f32 %v11777_v58, 0.0  ;;  %v12433_v19 = vmax.f32 %v11791_v40, 0.0  ;;  %v11797_v6 = vcombine.high %v11166_v60, %v11168_v56 }
 0x4b5   :  { %v12431_v42 = vmax.f32 %v11794_v48, 0.0  ;;  %v12434_v45 = vmax.f32 %v11793_v0, 0.0  ;;  %v12435_v22 = vmax.f32 %v11795_v29, 0.0  ;;  %v13306_v53 = vcombine.low %v12428_v50, %v12429_v39  ;;  %v24123_v18 = vpop.f32.mrf.mxu0  ;;  %v24125_v30 = vpop.f32.mrf.mxu1 }
 0x4b6   :  { %v13370_v51 = vcombine.low %v12432_v27, %v12433_v19  ;;  %v11804_v61 = vrot.slane %v11796_v7, %v21575_v2  ;;  %v11811_v34 = vrot.slane %v11797_v6, %v21575_v2  ;;  %v11172_v33 = vadd.f32 %v24083_v12, %v24081_v21 }
 0x4b7   :  { %v13307_v15 = vcombine.low %v12430_v63, %v12431_v42  ;;  %v13328_v14 = vrot.slane %v13306_v53, %v21575_v2  ;;  %v13371_v60 = vcombine.low %v12434_v45, %v12435_v22  ;;  %v11174_v56 = vadd.f32 %v11173_v62, %v11042_v24  ;;  %v24132_v5 = vpop.f32.mrf.mxu0  ;;  %v24134_v54 = vpop.f32.mrf.mxu1 }
 0x4b8   :  { %v13380_v20 = vrot.slane %v13370_v51, %v21575_v2  ;;  %v11812_v1 = vcombine.high %v11804_v61, %v11804_v61  ;;  %v11813_v57 = vcombine.high %v11811_v34, %v11811_v34  ;;  %v11820_v49 = vrot.slane %v11804_v61, %v21575_v2 }
 0x4b9   :  { %v13335_v13 = vrot.slane %v13307_v15, %v21575_v2  ;;  %v13387_v58 = vrot.slane %v13371_v60, %v21575_v2  ;;  %v11827_v21 = vrot.slane %v11811_v34, %v21575_v2  ;;  %v11846_v12 = vcombine.low %v11172_v33, %v11174_v56  ;;  %v24141_v44 = vpop.f32.mrf.mxu0  ;;  %v24143_v24 = vpop.f32.mrf.mxu1 }
 0x4ba   :  { %v11834_v62 = vrot.slane %v11812_v1, %v21575_v2  ;;  %v11841_v40 = vrot.slane %v11813_v57, %v21575_v2  ;;  %v11842_v7 = vcombine.high %v11820_v49, %v11820_v49  ;;  %v12436_v43 = vmax.f32 %v11820_v49, 0.0 }
 0x4bb   :  { %v13338_v35 = vcombine.low %v13328_v14, %v13335_v13  ;;  %v13339_v38 = vcombine.high %v13328_v14, %v13335_v13  ;;  %v13402_v50 = vcombine.low %v13380_v20, %v13387_v58  ;;  %v13403_v0 = vcombine.high %v13380_v20, %v13387_v58  ;;  %v24147_v48 = vpop.f32.mrf.mxu0  ;;  %v24149_v29 = vpop.f32.mrf.mxu1 }
 0x4bc   :  { %v11843_v39 = vcombine.high %v11827_v21, %v11827_v21  ;;  %v11844_v63 = vcombine.high %v11834_v62, %v11834_v62  ;;  %v11845_v27 = vcombine.high %v11841_v40, %v11841_v40  ;;  %v12437_v19 = vmax.f32 %v11834_v62, 0.0 }
 0x4bd   :  { %v13360_v6 = vrot.slane %v13338_v35, %v21575_v2  ;;  %v13367_v42 = vrot.slane %v13339_v38, %v21575_v2  ;;  %v24154_v45 = vrot.slane %v13402_v50, %v21575_v2  ;;  %v24157_v22 = vrot.slane %v13403_v0, %v21575_v2  ;;  %v24159_v53 = vpop.f32.mrf.mxu0  ;;  %v24161_v51 = vpop.f32.mrf.mxu1 }
 0x4be   :  { %v12438_v61 = vmax.f32 %v11842_v7, 0.0  ;;  %v12439_v34 = vmax.f32 %v11844_v63, 0.0  ;;  %v12440_v15 = vmax.f32 %v11827_v21, 0.0  ;;  %v12441_v14 = vmax.f32 %v11841_v40, 0.0 }
 0x4bf   :  { %v13368_v60 = vcombine.low %v24102_v4, %v13360_v6  ;;  %v13369_v20 = vcombine.low %v24105_v28, %v13367_v42  ;;  %v12442_v1 = vmax.f32 %v11843_v39, 0.0  ;;  %v12443_v57 = vmax.f32 %v11845_v27, 0.0  ;;  %v24165_v49 = vpop.f32.mrf.mxu0  ;;  %v24167_v13 = vpop.f32.mrf.mxu1 }
 0x4c0   :  { %v13372_v58 = vcombine.low %v12436_v43, %v12437_v19  ;;  %v13373_v62 = vcombine.low %v12438_v61, %v12439_v34  ;;  %v13436_v35 = vcombine.low %v12440_v15, %v12441_v14  ;;  %v11847_v38 = vcombine.high %v11172_v33, %v11174_v56 }
 0x4c1   :  { %v20243_v50 = vpack.c.bf16 %v13369_v20, %v13368_v60  ;;  %v13450_v7 = vrot.slane %v12442_v1, %v21575_v2  ;;  %v11854_v21 = vrot.slane %v11846_v12, %v21575_v2  ;;  %v24173_v4 = vadd.f32 %v24095_v59, %v24093_v55  ;;  %v24175_v28 = vpop.f32.mrf.mxu0  ;;  %v24177_v40 = vpop.f32.mrf.mxu1 }
 0x4c2   :  { %v13394_v0 = vrot.slane %v13372_v58, %v21575_v2  ;;  %v13401_v43 = vrot.slane %v13373_v62, %v21575_v2  ;;  %v13443_v39 = vrot.slane %v13436_v35, %v21575_v2  ;;  %v11861_v33 = vrot.slane %v11847_v38, %v21575_v2  ;;  %v14194_v58 = vld [vmem:[#allocation4 + $0x70] sm:$0x33] }
 0x4c3   :  { %14192 = vst.msk [vmem:[#allocation4 + $0x60] sm:$0xff] %vm23785_vm15, %v20243_v50  ;;  %v11862_v56 = vcombine.high %v11854_v21, %v11854_v21  ;;  %v11870_v12 = vrot.slane %v11854_v21, %v21575_v2  ;;  %v11178_v55 = vadd.f32 %v24109_v9, %v24107_v52  ;;  %v24190_v59 = vadd.f32 %v24119_v47, %v24117_v8  ;;  %v24192_v63 = vpop.f32.mrf.mxu0  ;;  %v24194_v27 = vpop.f32.mrf.mxu1 }
 0x4c4   :  { %v13404_v19 = vcombine.low %v13394_v0, %v13401_v43  ;;  %v13405_v6 = vcombine.high %v13394_v0, %v13401_v43  ;;  %v13451_v42 = vcombine.low %v13443_v39, %v13450_v7  ;;  %v13452_v61 = vcombine.high %v13443_v39, %v13450_v7 }
 0x4c5   :  { %v11863_v34 = vcombine.high %v11861_v33, %v11861_v33  ;;  %v11877_v15 = vrot.slane %v11861_v33, %v21575_v2  ;;  %v11884_v14 = vrot.slane %v11862_v56, %v21575_v2  ;;  %v11892_v60 = vcombine.high %v11870_v12, %v11870_v12  ;;  %v24198_v20 = vpop.f32.mrf.mxu0  ;;  %v24200_v52 = vpop.f32.mrf.mxu1 }
 0x4c6   :  { %v13426_v9 = vrot.slane %v13404_v19, %v21575_v2  ;;  %v13433_v8 = vrot.slane %v13405_v6, %v21575_v2  ;;  %v13459_v47 = vrot.slane %v13451_v42, %v21575_v2  ;;  %v13466_v1 = vrot.slane %v13452_v61, %v21575_v2 }
 0x4c7   :  { %v11891_v62 = vrot.slane %v11863_v34, %v21575_v2  ;;  %v11893_v35 = vcombine.high %v11877_v15, %v11877_v15  ;;  %v11894_v38 = vcombine.high %v11884_v14, %v11884_v14  ;;  %v12444_v50 = vmax.f32 %v11870_v12, 0.0  ;;  %v11074_v7 = vpop.f32.mrf.mxu0  ;;  %v11205_v21 = vpop.f32.mrf.mxu1 }
 0x4c8   :  { %v13434_v0 = vcombine.low %v24154_v45, %v13426_v9  ;;  %v13435_v43 = vcombine.low %v24157_v22, %v13433_v8  ;;  %v20245_v39 = vpack.c.bf16 %v13466_v1, %v13459_v47  ;;  %v12445_v33 = vmax.f32 %v11884_v14, 0.0 }
 0x4c9   :  { %v11895_v56 = vcombine.high %v11891_v62, %v11891_v62  ;;  %v12446_v19 = vmax.f32 %v11892_v60, 0.0  ;;  %v12447_v6 = vmax.f32 %v11894_v38, 0.0  ;;  %v12448_v42 = vmax.f32 %v11877_v15, 0.0  ;;  %v11075_v10 = vpop.f32.mrf.mxu0  ;;  %v11206_v61 = vpop.f32.mrf.mxu1 }
 0x4ca   :  { %v20244_v16 = vpack.c.bf16 %v13435_v43, %v13434_v0  ;;  %v14195_v34 = vsel %vm23839_vm8, %v20245_v39, %v14194_v58  ;;  %v12449_v11 = vmax.f32 %v11891_v62, 0.0  ;;  %v12450_v12 = vmax.f32 %v11893_v35, 0.0 }
 0x4cb   :  { %14196 = vst [vmem:[#allocation4 + $0x70] sm:$0x33] %v14195_v34  ;;  %v12451_v7 = vmax.f32 %v11895_v56, 0.0  ;;  %v13467_v21 = vcombine.low %v12443_v57, %v12444_v50  ;;  %v13468_v45 = vcombine.low %v12445_v33, %v12446_v19  ;;  %v13469_v9 = vcombine.low %v12447_v6, %v12448_v42 }
 0x4cc   :  { %14193 = vst.msk [vmem:[#allocation4 + $0x68] sm:$0xff] %vm23785_vm15, %v20244_v16  ;;  %v13470_v22 = vcombine.low %v12449_v11, %v12450_v12  ;;  %v11896_v14 = vcombine.low %v24173_v4, %v11178_v55  ;;  %v11897_v10 = vcombine.high %v24173_v4, %v11178_v55  ;;  %v11184_v15 = vadd.f32 %v24125_v30, %v24123_v18 }
 0x4cd   :  { %v13477_v60 = vrot.slane %v13467_v21, %v21575_v2  ;;  %v13484_v8 = vrot.slane %v13468_v45, %v21575_v2  ;;  %v13491_v47 = vrot.slane %v13469_v9, %v21575_v2  ;;  %v24222_v57 = vadd.f32 %v24134_v54, %v24132_v5 }
 0x4ce   :  { %v13498_v16 = vrot.slane %v13470_v22, %v21575_v2  ;;  %v11904_v11 = vrot.slane %v11896_v14, %v21575_v2  ;;  %v11911_v1 = vrot.slane %v11897_v10, %v21575_v2  ;;  %v11946_v4 = vcombine.low %v24190_v59, %v11184_v15 }
 0x4cf   :  { %v13499_v55 = vcombine.low %v13477_v60, %v13484_v8  ;;  %v13500_v18 = vcombine.high %v13477_v60, %v13484_v8  ;;  %v11947_v30 = vcombine.high %v24190_v59, %v11184_v15  ;;  %v24231_v58 = vadd.f32 %v24143_v24, %v24141_v44 }
 0x4d0   :  { %v13501_v62 = vcombine.low %v13491_v47, %v13498_v16  ;;  %v13502_v35 = vcombine.high %v13491_v47, %v13498_v16  ;;  %v11912_v5 = vcombine.high %v11904_v11, %v11904_v11  ;;  %v11913_v54 = vcombine.high %v11911_v1, %v11911_v1 }
 0x4d1   :  { %v13509_v38 = vrot.slane %v13499_v55, %v21575_v2  ;;  %v13516_v50 = vrot.slane %v13500_v18, %v21575_v2  ;;  %v11920_v0 = vrot.slane %v11904_v11, %v21575_v2  ;;  %v11927_v43 = vrot.slane %v11911_v1, %v21575_v2 }
 0x4d2   :  { %v13523_v39 = vrot.slane %v13501_v62, %v21575_v2  ;;  %v13530_v59 = vrot.slane %v13502_v35, %v21575_v2  ;;  %v11934_v33 = vrot.slane %v11912_v5, %v21575_v2  ;;  %v11941_v44 = vrot.slane %v11913_v54, %v21575_v2 }
 0x4d3   :  { %v11942_v24 = vcombine.high %v11920_v0, %v11920_v0  ;;  %v11943_v56 = vcombine.high %v11927_v43, %v11927_v43  ;;  %v12452_v19 = vmax.f32 %v11920_v0, 0.0  ;;  %v12456_v6 = vmax.f32 %v11927_v43, 0.0 }
 0x4d4   :  { %v13531_v42 = vcombine.low %v13509_v38, %v13523_v39  ;;  %v13532_v61 = vcombine.low %v13516_v50, %v13530_v59  ;;  %v11944_v34 = vcombine.high %v11934_v33, %v11934_v33  ;;  %v11945_v12 = vcombine.high %v11941_v44, %v11941_v44 }
 0x4d5   :  { %v12453_v21 = vmax.f32 %v11934_v33, 0.0  ;;  %v12454_v45 = vmax.f32 %v11942_v24, 0.0  ;;  %v12457_v9 = vmax.f32 %v11941_v44, 0.0  ;;  %v12458_v22 = vmax.f32 %v11943_v56, 0.0 }
 0x4d6   :  { %v20246_v14 = vpack.c.bf16 %v13532_v61, %v13531_v42  ;;  %v12455_v10 = vmax.f32 %v11944_v34, 0.0  ;;  %v12459_v15 = vmax.f32 %v11945_v12, 0.0  ;;  %v13533_v60 = vcombine.low %v12451_v7, %v12452_v19 }
 0x4d7   :  { %v13534_v8 = vcombine.low %v12453_v21, %v12454_v45  ;;  %v13536_v47 = vcombine.low %v12457_v9, %v12458_v22  ;;  %v11954_v16 = vrot.slane %v11946_v4, %v21575_v2  ;;  %v11961_v11 = vrot.slane %v11947_v30, %v21575_v2 }
 0x4d8   :  { %14197 = vst.msk [vmem:[#allocation4 + $0x78] sm:$0xff] %vm23785_vm15, %v20246_v14  ;;  %v13535_v1 = vcombine.low %v12455_v10, %v12456_v6  ;;  %v13543_v55 = vrot.slane %v13533_v60, %v21575_v2  ;;  %v11996_v18 = vcombine.low %v24222_v57, %v24231_v58  ;;  %v11997_v62 = vcombine.high %v24222_v57, %v24231_v58 }
 0x4d9   :  { %v13550_v7 = vrot.slane %v13534_v8, %v21575_v2  ;;  %v13564_v35 = vrot.slane %v13536_v47, %v21575_v2  ;;  %v11962_v5 = vcombine.high %v11954_v16, %v11954_v16  ;;  %v11963_v4 = vcombine.high %v11961_v11, %v11961_v11 }
 0x4da   :  { %v13557_v30 = vrot.slane %v13535_v1, %v21575_v2  ;;  %v11970_v54 = vrot.slane %v11954_v16, %v21575_v2  ;;  %v11977_v38 = vrot.slane %v11961_v11, %v21575_v2  ;;  %v12004_v50 = vrot.slane %v11996_v18, %v21575_v2 }
 0x4db   :  { %v13565_v0 = vcombine.low %v13543_v55, %v13550_v7  ;;  %v13566_v43 = vcombine.high %v13543_v55, %v13550_v7  ;;  %v11984_v39 = vrot.slane %v11962_v5, %v21575_v2  ;;  %v11991_v57 = vrot.slane %v11963_v4, %v21575_v2 }
 0x4dc   :  { %v13567_v58 = vcombine.low %v13557_v30, %v13564_v35  ;;  %v13568_v59 = vcombine.high %v13557_v30, %v13564_v35  ;;  %v11992_v33 = vcombine.high %v11970_v54, %v11970_v54  ;;  %v11993_v44 = vcombine.high %v11977_v38, %v11977_v38 }
 0x4dd   :  { %v13575_v24 = vrot.slane %v13565_v0, %v21575_v2  ;;  %v13582_v56 = vrot.slane %v13566_v43, %v21575_v2  ;;  %v11994_v19 = vcombine.high %v11984_v39, %v11984_v39  ;;  %v11995_v6 = vcombine.high %v11991_v57, %v11991_v57 }
 0x4de   :  { %v13589_v42 = vrot.slane %v13567_v58, %v21575_v2  ;;  %v13596_v61 = vrot.slane %v13568_v59, %v21575_v2  ;;  %v12460_v34 = vmax.f32 %v11970_v54, 0.0  ;;  %v12461_v12 = vmax.f32 %v11984_v39, 0.0 }
 0x4df   :  { %v12462_v21 = vmax.f32 %v11992_v33, 0.0  ;;  %v12463_v45 = vmax.f32 %v11994_v19, 0.0  ;;  %v12464_v9 = vmax.f32 %v11977_v38, 0.0  ;;  %v12465_v22 = vmax.f32 %v11991_v57, 0.0 }
 0x4e0   :  { %v13597_v14 = vcombine.low %v13575_v24, %v13589_v42  ;;  %v13598_v10 = vcombine.low %v13582_v56, %v13596_v61  ;;  %v12466_v60 = vmax.f32 %v11993_v44, 0.0  ;;  %v12467_v8 = vmax.f32 %v11995_v6, 0.0  ;;  %v14199_v42 = vld [vmem:[#allocation4 + $0x88] sm:$0x33] }
 0x4e1   :  { %v13599_v47 = vcombine.low %v12459_v15, %v12460_v34  ;;  %v13613_v16 = vrot.slane %v12461_v12, %v21575_v2  ;;  %v13630_v11 = vcombine.low %v12462_v21, %v12463_v45  ;;  %v13631_v1 = vcombine.low %v12464_v9, %v12465_v22 }
 0x4e2   :  { %v20247_v55 = vpack.c.bf16 %v13598_v10, %v13597_v14  ;;  %v13632_v18 = vcombine.low %v12466_v60, %v12467_v8  ;;  %v12011_v7 = vrot.slane %v11997_v62, %v21575_v2  ;;  %v12012_v35 = vcombine.high %v12004_v50, %v12004_v50 }
 0x4e3   :  { %v13606_v5 = vrot.slane %v13599_v47, %v21575_v2  ;;  %v13640_v4 = vrot.slane %v13630_v11, %v21575_v2  ;;  %v13647_v30 = vrot.slane %v13631_v1, %v21575_v2  ;;  %v12020_v54 = vrot.slane %v12004_v50, %v21575_v2 }
 0x4e4   :  { %14198 = vst.msk [vmem:[#allocation4 + $0x80] sm:$0xff] %vm23785_vm15, %v20247_v55  ;;  %v13654_v15 = vrot.slane %v13632_v18, %v21575_v2  ;;  %v12013_v38 = vcombine.high %v12011_v7, %v12011_v7  ;;  %v12027_v0 = vrot.slane %v12011_v7, %v21575_v2  ;;  %v12034_v43 = vrot.slane %v12012_v35, %v21575_v2 }
 0x4e5   :  { %v13614_v62 = vcombine.low %v13606_v5, %v13613_v16  ;;  %v13615_v39 = vcombine.high %v13606_v5, %v13613_v16  ;;  %v13662_v57 = vcombine.low %v13640_v4, %v13647_v30  ;;  %v13663_v58 = vcombine.high %v13640_v4, %v13647_v30 }
 0x4e6   :  { %v12041_v59 = vrot.slane %v12013_v38, %v21575_v2  ;;  %v12042_v33 = vcombine.high %v12020_v54, %v12020_v54  ;;  %v12043_v44 = vcombine.high %v12027_v0, %v12027_v0  ;;  %v12044_v24 = vcombine.high %v12034_v43, %v12034_v43 }
 0x4e7   :  { %v13622_v50 = vrot.slane %v13614_v62, %v21575_v2  ;;  %v13629_v56 = vrot.slane %v13615_v39, %v21575_v2  ;;  %v13672_v19 = vrot.slane %v13662_v57, %v21575_v2  ;;  %v13679_v6 = vrot.slane %v13663_v58, %v21575_v2 }
 0x4e8   :  { %v12045_v61 = vcombine.high %v12041_v59, %v12041_v59  ;;  %v12468_v34 = vmax.f32 %v12020_v54, 0.0  ;;  %v12469_v12 = vmax.f32 %v12034_v43, 0.0  ;;  %v12470_v21 = vmax.f32 %v12042_v33, 0.0 }
 0x4e9   :  { %v20248_v45 = vpack.c.bf16 %v13629_v56, %v13622_v50  ;;  %v12471_v9 = vmax.f32 %v12044_v24, 0.0  ;;  %v12472_v22 = vmax.f32 %v12027_v0, 0.0  ;;  %v12473_v14 = vmax.f32 %v12041_v59, 0.0 }
 0x4ea   :  { %v12474_v10 = vmax.f32 %v12043_v44, 0.0  ;;  %v12475_v60 = vmax.f32 %v12045_v61, 0.0  ;;  %v13633_v8 = vcombine.low %v12468_v34, %v12469_v12  ;;  %v11192_v47 = vadd.f32 %v24149_v29, %v24147_v48 }
 0x4eb   :  { %v14200_v16 = vsel %vm23839_vm8, %v20248_v45, %v14199_v42  ;;  %v13696_v11 = vcombine.low %v12470_v21, %v12471_v9  ;;  %v13697_v1 = vcombine.low %v12472_v22, %v12473_v14  ;;  %v11194_v55 = vadd.f32 %v24161_v51, %v24159_v53 }
 0x4ec   :  { %14201 = vst [vmem:[#allocation4 + $0x88] sm:$0x33] %v14200_v16  ;;  %v13661_v18 = vrot.slane %v13633_v8, %v21575_v2  ;;  %v13698_v7 = vcombine.low %v12474_v10, %v12475_v60  ;;  %v11196_v35 = vadd.f32 %v24167_v13, %v24165_v49  ;;  %v11198_v5 = vadd.f32 %v24177_v40, %v24175_v28 }
 0x4ed   :  { %v13706_v48 = vrot.slane %v13696_v11, %v21575_v2  ;;  %v13713_v29 = vrot.slane %v13697_v1, %v21575_v2  ;;  %v12046_v4 = vcombine.low %v11192_v47, %v11194_v55  ;;  %v12047_v30 = vcombine.high %v11192_v47, %v11194_v55 }
 0x4ee   :  { %v13664_v54 = vcombine.low %v13654_v15, %v13661_v18  ;;  %v13665_v38 = vcombine.high %v13654_v15, %v13661_v18  ;;  %v13720_v53 = vrot.slane %v13698_v7, %v21575_v2  ;;  %v12096_v51 = vcombine.low %v11196_v35, %v11198_v5 }
 0x4ef   :  { %v13728_v0 = vcombine.low %v13706_v48, %v13713_v29  ;;  %v13729_v43 = vcombine.high %v13706_v48, %v13713_v29  ;;  %v12054_v62 = vrot.slane %v12046_v4, %v21575_v2  ;;  %v12061_v49 = vrot.slane %v12047_v30, %v21575_v2 }
 0x4f0   :  { %v13686_v13 = vrot.slane %v13664_v54, %v21575_v2  ;;  %v13693_v28 = vrot.slane %v13665_v38, %v21575_v2  ;;  %v12097_v40 = vcombine.high %v11196_v35, %v11198_v5  ;;  %v12104_v39 = vrot.slane %v12096_v51, %v21575_v2 }
 0x4f1   :  { %v24298_v57 = vrot.slane %v13728_v0, %v21575_v2  ;;  %v24301_v15 = vrot.slane %v13729_v43, %v21575_v2  ;;  %v12062_v58 = vcombine.high %v12054_v62, %v12054_v62  ;;  %v12063_v59 = vcombine.high %v12061_v49, %v12061_v49 }
 0x4f2   :  { %v13694_v33 = vcombine.low %v13672_v19, %v13686_v13  ;;  %v13695_v44 = vcombine.low %v13679_v6, %v13693_v28  ;;  %v12070_v24 = vrot.slane %v12054_v62, %v21575_v2  ;;  %v12077_v50 = vrot.slane %v12061_v49, %v21575_v2 }
 0x4f3   :  { %v12084_v56 = vrot.slane %v12062_v58, %v21575_v2  ;;  %v12091_v42 = vrot.slane %v12063_v59, %v21575_v2  ;;  %v12111_v61 = vrot.slane %v12097_v40, %v21575_v2  ;;  %v12112_v34 = vcombine.high %v12104_v39, %v12104_v39 }
 0x4f4   :  { %v20249_v12 = vpack.c.bf16 %v13695_v44, %v13694_v33  ;;  %v12092_v21 = vcombine.high %v12070_v24, %v12070_v24  ;;  %v12093_v45 = vcombine.high %v12077_v50, %v12077_v50  ;;  %v12476_v9 = vmax.f32 %v12070_v24, 0.0 }
 0x4f5   :  { %v12094_v22 = vcombine.high %v12084_v56, %v12084_v56  ;;  %v12095_v14 = vcombine.high %v12091_v42, %v12091_v42  ;;  %v12477_v10 = vmax.f32 %v12084_v56, 0.0  ;;  %v12480_v19 = vmax.f32 %v12077_v50, 0.0 }
 0x4f6   :  { %14202 = vst.msk [vmem:[#allocation4 + $0x90] sm:$0xff] %vm23785_vm15, %v20249_v12  ;;  %v12478_v6 = vmax.f32 %v12092_v21, 0.0  ;;  %v12481_v60 = vmax.f32 %v12091_v42, 0.0  ;;  %v12482_v8 = vmax.f32 %v12093_v45, 0.0  ;;  %v12113_v47 = vcombine.high %v12111_v61, %v12111_v61  ;;  %v14204_v45 = vld [vmem:[#allocation4 + $0xa0] sm:$0x33] }
 0x4f7   :  { %v12479_v16 = vmax.f32 %v12094_v22, 0.0  ;;  %v12483_v11 = vmax.f32 %v12095_v14, 0.0  ;;  %v13699_v1 = vcombine.low %v12476_v9, %v12477_v10  ;;  %v13776_v55 = vrot.slane %v12480_v19, %v21575_v2 }
 0x4f8   :  { %v13793_v18 = vcombine.low %v12481_v60, %v12482_v8  ;;  %v12120_v7 = vrot.slane %v12104_v39, %v21575_v2  ;;  %v12127_v35 = vrot.slane %v12111_v61, %v21575_v2  ;;  %v12134_v5 = vrot.slane %v12112_v34, %v21575_v2 }
 0x4f9   :  { %v13727_v48 = vrot.slane %v13699_v1, %v21575_v2  ;;  %v13762_v29 = vcombine.low %v12478_v6, %v12479_v16  ;;  %v12141_v4 = vrot.slane %v12113_v47, %v21575_v2  ;;  %v14606_v30 = vrot.slane %v24037_v41, %v21575_v2 }
 0x4fa   :  { %v13803_v54 = vrot.slane %v13793_v18, %v21575_v2  ;;  %v12142_v38 = vcombine.high %v12120_v7, %v12120_v7  ;;  %v12143_v51 = vcombine.high %v12127_v35, %v12127_v35  ;;  %v12144_v0 = vcombine.high %v12134_v5, %v12134_v5 }
 0x4fb   :  { %v13730_v43 = vcombine.low %v13720_v53, %v13727_v48  ;;  %v13731_v62 = vcombine.high %v13720_v53, %v13727_v48  ;;  %v13769_v49 = vrot.slane %v13762_v29, %v21575_v2  ;;  %v12145_v13 = vcombine.high %v12141_v4, %v12141_v4 }
 0x4fc   :  { %v12484_v28 = vmax.f32 %v12120_v7, 0.0  ;;  %v12485_v40 = vmax.f32 %v12134_v5, 0.0  ;;  %v12486_v39 = vmax.f32 %v12142_v38, 0.0  ;;  %v12487_v58 = vmax.f32 %v12144_v0, 0.0 }
 0x4fd   :  { %v13752_v59 = vrot.slane %v13730_v43, %v21575_v2  ;;  %v13759_v33 = vrot.slane %v13731_v62, %v21575_v2  ;;  %v13777_v44 = vcombine.low %v13769_v49, %v13776_v55  ;;  %v13778_v24 = vcombine.high %v13769_v49, %v13776_v55  ;;  %v34_v43 = vld [vmem:[%s25474_s8] sm:$0x3] }
 0x4fe   :  { %v12488_v50 = vmax.f32 %v12127_v35, 0.0  ;;  %v12489_v56 = vmax.f32 %v12141_v4, 0.0  ;;  %v12490_v42 = vmax.f32 %v12143_v51, 0.0  ;;  %v24322_v61 = vmax.f32 %v12145_v13, 0.0 }
 0x4ff   :  { %v13760_v53 = vcombine.low %v24298_v57, %v13752_v59  ;;  %v13761_v34 = vcombine.low %v24301_v15, %v13759_v33  ;;  %v13785_v12 = vrot.slane %v13777_v44, %v21575_v2  ;;  %v13792_v21 = vrot.slane %v13778_v24, %v21575_v2  ;;  %v24372_v33 = vld [vmem:[#allocation4 + $0x50] sm:$0xff] }
 0x500   :  { %v13794_v9 = vcombine.low %v12483_v11, %v12484_v28  ;;  %v13795_v22 = vcombine.low %v12485_v40, %v12486_v39  ;;  %v13796_v14 = vcombine.low %v12487_v58, %v12488_v50  ;;  %v13859_v10 = vcombine.low %v12489_v56, %v12490_v42  ;;  %v24374_v56 = vld [vmem:[#allocation4 + $0x58] sm:$0x33] }
 0x501   :  { %v20250_v19 = vpack.c.bf16 %v13761_v34, %v13760_v53  ;;  %v20251_v6 = vpack.c.bf16 %v13792_v21, %v13785_v12  ;;  %v24332_v60 = vrot.slane %v14599_v17, %v21575_v2  ;;  %v14614_v57 = vcombine.high %v14606_v30, %v14606_v30 }
 0x502   :  { %v13810_v15 = vrot.slane %v13794_v9, %v21575_v2  ;;  %v13817_v8 = vrot.slane %v13795_v22, %v21575_v2  ;;  %v13824_v47 = vrot.slane %v13796_v14, %v21575_v2  ;;  %v24338_v16 = vrot.slane %v13859_v10, %v21575_v2 }
 0x503   :  { %14203 = vst.msk [vmem:[#allocation4 + $0x98] sm:$0xff] %vm23785_vm15, %v20250_v19  ;;  %v14205_v11 = vsel %vm23839_vm8, %v20251_v6, %v14204_v45  ;;  %v15326_v41 = vcombine.low %v24039_v23, %v24034_v36  ;;  %v15327_v17 = vcombine.low %v24044_v37, %v14590_v3  ;;  %v25502_v1 = vcombine.high %v24044_v37, %v24044_v37 }
 0x504   :  { %14206 = vst [vmem:[#allocation4 + $0xa0] sm:$0x33] %v14205_v11  ;;  %v13825_v18 = vcombine.low %v13803_v54, %v13810_v15  ;;  %v13826_v7 = vcombine.high %v13803_v54, %v13810_v15  ;;  %v13827_v35 = vcombine.low %v13817_v8, %v13824_v47  ;;  %v13828_v5 = vcombine.high %v13817_v8, %v13824_v47 }
 0x505   :  { %v15328_v55 = vcombine.low %v25502_v1, %v14606_v30  ;;  %v15329_v48 = vcombine.low %v24332_v60, %v14614_v57  ;;  %v15336_v29 = vrot.slane %v15326_v41, %v21575_v2  ;;  %v15343_v23 = vrot.slane %v15327_v17, %v21575_v2 }
 0x506   :  { %v13835_v36 = vrot.slane %v13825_v18, %v21575_v2  ;;  %v13842_v3 = vrot.slane %v13826_v7, %v21575_v2  ;;  %v13849_v37 = vrot.slane %v13827_v35, %v21575_v2  ;;  %v13856_v30 = vrot.slane %v13828_v5, %v21575_v2 }
 0x507   :  { %v15350_v4 = vrot.slane %v15328_v55, %v21575_v2  ;;  %v15357_v54 = vrot.slane %v15329_v48, %v21575_v2  ;;  %v15359_v38 = vcombine.high %v15336_v29, %v15343_v23  ;;  %v15358_v51 = vcombine.low %v15336_v29, %v15343_v23 }
 0x508   :  { %v11202_v0 = vadd.f32 %v24194_v27, %v24192_v63  ;;  %v13857_v62 = vcombine.low %v13835_v36, %v13849_v37  ;;  %v13858_v49 = vcombine.low %v13842_v3, %v13856_v30  ;;  %v11204_v13 = vadd.f32 %v24200_v52, %v24198_v20  ;;  %v14242_v63 = vld [vmem:[#allocation4 + $0x48] sm:$0xee] }
 0x509   :  { %v14414_v28 = vsub.s32 0, %v21309_v25  ;;  %v15361_v40 = vcombine.high %v15350_v4, %v15357_v54  ;;  %v15375_v39 = vrot.slane %v15359_v38, %v21575_v2  ;;  %v15360_v58 = vcombine.low %v15350_v4, %v15357_v54 }
 0x50a   :  { %v15368_v59 = vrot.slane %v15358_v51, %v21575_v2  ;;  %v20252_v27 = vpack.c.bf16 %v13858_v49, %v13857_v62  ;;  %v12146_v44 = vcombine.low %v11202_v0, %v11204_v13  ;;  %v12147_v24 = vcombine.high %v11202_v0, %v11204_v13 }
 0x50b   :  { %v14415_v50 = vrot.slane %v34_v43, %v14414_v28  ;;  %v15389_v42 = vrot.slane %v15361_v40, %v21575_v2  ;;  %v15382_v20 = vrot.slane %v15360_v58, %v21575_v2  ;;  %v14418_v52 = vsub.s32 1, %v21309_v25 }
 0x50c   :  { %v25503_v53 = vrot.slane %v24018_v46, 5  ;;  %14207 = vst.msk [vmem:[#allocation4 + $0xa8] sm:$0xff] %vm23785_vm15, %v20252_v27  ;;  %v12154_v12 = vrot.slane %v12146_v44, %v21575_v2  ;;  %v12161_v21 = vrot.slane %v12147_v24, %v21575_v2  ;;  %v19983_v45 = vrot.slane %v14242_v63, 9 }
 0x50d   :  { %v14305_v9 = vrot.slane %v24372_v33, 5  ;;  %v15391_v22 = vcombine.low %v15375_v39, %v15389_v42  ;;  %v15390_v14 = vcombine.low %v15368_v59, %v15382_v20  ;;  %v14419_v10 = vrot.slane %v34_v43, %v14418_v52 }
 0x50e   :  { %v24381_v34 = vrot.slane %v25503_v53, 4  ;;  %v14308_v19 = vrot.slane %v24374_v56, 5  ;;  %v12162_v25 = vcombine.high %v12154_v12, %v12154_v12  ;;  %v12163_v6 = vcombine.high %v12161_v21, %v12161_v21 }
 0x50f   :  { %v12170_v46 = vrot.slane %v12154_v12, %v21575_v2  ;;  %v12177_v57 = vrot.slane %v12161_v21, %v21575_v2  ;;  %20042 = vmatprep.mubr.msk.bf16.mxu0 %vm682_vm4, %v15391_v22  ;;  %v15076_v15 = vcombine.low %v14415_v50, %v14419_v10  ;;  %v15077_v8 = vcombine.high %v14415_v50, %v14419_v10 }
 0x510   :  { %v24394_v47 = vsel %vm23884_vm0, %v19983_v45, %v14305_v9  ;;  %v14307_v11 = vrot.slane %v14305_v9, 4  ;;  %16268 = vmatmul.mubr.bf16.gmra.mxu0 %v15390_v14  ;;  %v12184_v41 = vrot.slane %v12162_v25, %v21575_v2  ;;  %v12191_v17 = vrot.slane %v12163_v6, %v21575_v2 }
 0x511   :  { %v12192_v1 = vcombine.high %v12170_v46, %v12170_v46  ;;  %v12193_v55 = vcombine.high %v12177_v57, %v12177_v57  ;;  %v12492_v18 = vmax.f32 %v12170_v46, 0.0  ;;  %v12496_v7 = vmax.f32 %v12177_v57, 0.0  ;;  %v14209_v57 = vld [vmem:[#allocation4 + $0xb8] sm:$0x33] }
 0x512   :  { %v15084_v35 = vrot.slane %v15076_v15, %v21575_v2  ;;  %v15091_v5 = vrot.slane %v15077_v8, %v21575_v2  ;;  %v12194_v48 = vcombine.high %v12184_v41, %v12184_v41  ;;  %v12195_v29 = vcombine.high %v12191_v17, %v12191_v17 }
 0x513   :  { %v12493_v23 = vmax.f32 %v12184_v41, 0.0  ;;  %v12494_v4 = vmax.f32 %v12192_v1, 0.0  ;;  %v12497_v36 = vmax.f32 %v12191_v17, 0.0  ;;  %v12498_v3 = vmax.f32 %v12193_v55, 0.0 }
 0x514   :  { %v13860_v37 = vcombine.low %v24322_v61, %v12492_v18  ;;  %v15092_v30 = vcombine.high %v15084_v35, %v15084_v35  ;;  %v12495_v54 = vmax.f32 %v12194_v48, 0.0  ;;  %v12499_v38 = vmax.f32 %v12195_v29, 0.0  ;;  %v14220_v48 = vld [vmem:[#allocation4 + $0x40] sm:$0x11] }
 0x515   :  { %v13861_v51 = vcombine.low %v12493_v23, %v12494_v4  ;;  %v15093_v0 = vcombine.high %v15091_v5, %v15091_v5  ;;  %v13925_v62 = vcombine.low %v12497_v36, %v12498_v3  ;;  %v24403_v49 = vrot.slane %v15084_v35, %v21575_v2  ;;  %v14221_v36 = vld [vmem:[#allocation4 + $0x48] sm:$0xff] }
 0x516   :  { %v13876_v43 = vrot.slane %v13860_v37, %v21575_v2  ;;  %v24406_v13 = vrot.slane %v15091_v5, %v21575_v2  ;;  %v13862_v28 = vcombine.low %v12495_v54, %v12496_v7  ;;  %v13939_v39 = vrot.slane %v12499_v38, %v21575_v2 }
 0x517   :  { %v13883_v40 = vrot.slane %v13861_v51, %v21575_v2  ;;  %v24411_v61 = vrot.slane %v15092_v30, %v21575_v2  ;;  %v13932_v63 = vrot.slane %v13925_v62, %v21575_v2  ;;  %v24417_v27 = vrot.slane %v15093_v0, %v21575_v2 }
 0x518   :  { %v13891_v58 = vcombine.low %v24338_v16, %v13876_v43  ;;  %v13892_v59 = vcombine.high %v24338_v16, %v13876_v43  ;;  %v13890_v44 = vrot.slane %v13862_v28, %v21575_v2  ;;  %v15122_v24 = vcombine.high %v24403_v49, %v24403_v49 }
 0x519   :  { %v15123_v50 = vcombine.high %v24406_v13, %v24406_v13  ;;  %v15124_v42 = vcombine.high %v24411_v61, %v24411_v61  ;;  %v13940_v52 = vcombine.low %v13932_v63, %v13939_v39  ;;  %v13941_v53 = vcombine.high %v13932_v63, %v13939_v39 }
 0x51a   :  { %v13901_v20 = vrot.slane %v13891_v58, %v21575_v2  ;;  %v13908_v16 = vrot.slane %v13892_v59, %v21575_v2  ;;  %v13893_v12 = vcombine.low %v13883_v40, %v13890_v44  ;;  %v13894_v21 = vcombine.high %v13883_v40, %v13890_v44 }
 0x51b   :  { %v15889_v45 = vcombine.low %v24403_v49, %v24403_v49  ;;  %v15890_v9 = vcombine.low %v24411_v61, %v15122_v24  ;;  %v13948_v22 = vrot.slane %v13940_v52, %v21575_v2  ;;  %v13955_v14 = vrot.slane %v13941_v53, %v21575_v2 }
 0x51c   :  { %v15891_v10 = vcombine.low %v15124_v42, %v24406_v13  ;;  %v15892_v25 = vcombine.low %v24417_v27, %v15123_v50  ;;  %v13915_v6 = vrot.slane %v13893_v12, %v21575_v2  ;;  %v13922_v46 = vrot.slane %v13894_v21, %v21575_v2 }
 0x51d   :  { %v24438_v15 = vrot.slane %v15889_v45, %v21575_v2  ;;  %v24441_v8 = vrot.slane %v15890_v9, %v21575_v2  ;;  %v20254_v41 = vpack.c.bf16 %v13955_v14, %v13948_v22  ;;  %v14309_v55 = vsel %vm23884_vm0, %v14307_v11, %v14308_v19 }
 0x51e   :  { %v24444_v17 = vrot.slane %v15891_v10, %v21575_v2  ;;  %v24447_v1 = vrot.slane %v15892_v25, %v21575_v2  ;;  %v13923_v18 = vcombine.low %v13901_v20, %v13915_v6  ;;  %v13924_v7 = vcombine.low %v13908_v16, %v13922_v46 }
 0x51f   :  { %v15922_v35 = vcombine.high %v24438_v15, %v24441_v8  ;;  %v15921_v5 = vcombine.low %v24438_v15, %v24441_v8  ;;  %v14210_v29 = vsel %vm23839_vm8, %v20254_v41, %v14209_v57  ;;  %v14375_v11 = vadd.bf16 %v24381_v34, %v14220_v48 }
 0x520   :  { %v15924_v23 = vcombine.high %v24444_v17, %v24447_v1  ;;  %v15923_v4 = vcombine.low %v24444_v17, %v24447_v1  ;;  %v20253_v3 = vpack.c.bf16 %v13924_v7, %v13923_v18  ;;  %14211 = vst [vmem:[#allocation4 + $0xb8] sm:$0x33] %v14210_v29  ;;  %v14376_v26 = vadd.bf16 %v24394_v47, %v14221_v36  ;;  %v14244_v36 = vld [vmem:[#allocation4 + $0x60] sm:$0xee] }
 0x521   :  { %v24465_v37 = vrot.slane %v15922_v35, %v21575_v2  ;;  %v24468_v30 = vrot.slane %v15921_v5, %v21575_v2  ;;  %v14377_v51 = vadd.bf16 %v14309_v55, %v24372_v33  ;;  %v14615_v34 = vcombine.high %v24332_v60, %v24332_v60 }
 0x522   :  { %v24472_v54 = vrot.slane %v15924_v23, %v21575_v2  ;;  %v24475_v38 = vrot.slane %v15923_v4, %v21575_v2  ;;  %14208 = vst.msk [vmem:[#allocation4 + $0xb0] sm:$0xff] %vm23785_vm15, %v20253_v3  ;;  %v14622_v0 = vrot.slane %v14375_v11, %v21575_v2  ;;  %v14636_v43 = vrot.slane %v14376_v26, %v21575_v2 }
 0x523   :  { %v15125_v47 = vcombine.high %v24417_v27, %v24417_v27  ;;  %v20039_v62 = vcombine.high %v24406_v13, %v24417_v27  ;;  %v14660_v60 = vrot.slane %v14377_v51, %v21575_v2  ;;  %v16036_v31 = vcombine.high %v24441_v8, %v24444_v17 }
 0x524   :  { %v15954_v28 = vcombine.low %v24465_v37, %v24472_v54  ;;  %v15953_v33 = vcombine.low %v24468_v30, %v24475_v38  ;;  %v14629_v40 = vrot.slane %v14622_v0, %v21575_v2  ;;  %v14637_v39 = vcombine.high %v14636_v43, %v14636_v43 }
 0x525   :  { %v14644_v58 = vrot.slane %v14636_v43, %v21575_v2  ;;  %v15955_v59 = vcombine.low %v15125_v47, %v24403_v49  ;;  %v14661_v63 = vcombine.high %v14660_v60, %v14660_v60  ;;  %v14668_v44 = vrot.slane %v14660_v60, %v21575_v2 }
 0x526   :  { %16107 = vrot.lane.b32.xlu1 %v15954_v28, %s20688_s0  ;;  %16105 = vrot.lane.b32.xlu0 %v15953_v33, %s20688_s0  ;;  %v24502_v24 = vrot.slane %v20039_v62, %v21575_v2  ;;  %v24506_v50 = vrot.slane %v14308_v19, 4  ;;  %v14651_v42 = vrot.slane %v14637_v39, %v21575_v2  ;;  %v24530_v4 = vrot.slane %v16036_v31, %v21575_v2  ;;  %v14225_v62 = vld [vmem:[#allocation4 + $0x68] sm:$0xff]  ;;  %v24544_v28 = vld [vmem:[#allocation4 + $0x70] sm:$0x33] }
 0x527   :  { %v14652_v20 = vcombine.high %v14644_v58, %v14644_v58  ;;  %v14992_v16 = vunpack.i.h.s16 %v14644_v58  ;;  %v19997_v52 = vpack.i.b16 %v14644_v58, %v14629_v40  ;;  %v14675_v53 = vrot.slane %v14661_v63, %v21575_v2 }
 0x528   :  { %v24510_v12 = vcombine.high %v14668_v44, %v14668_v44  ;;  %v15000_v21 = vunpack.i.h.s16 %v14668_v44  ;;  %v24513_v45 = vrot.slane %v15955_v59, %v21575_v2  ;;  %v14653_v9 = vcombine.high %v14651_v42, %v14651_v42 }
 0x529   :  { %v14994_v22 = vunpack.i.h.s16 %v14651_v42  ;;  %v14996_v14 = vunpack.i.h.s16 %v14652_v20  ;;  %v19998_v10 = vpack.i.b16 %v14651_v42, %v14992_v16  ;;  %v15002_v56 = vunpack.i.h.s16 %v14675_v53 }
 0x52a   :  { %v20002_v19 = vpack.i.b16 %v14675_v53, %v15000_v21  ;;  %v15392_v25 = vcombine.low %v14615_v34, %v19997_v52  ;;  %v15964_v6 = vcombine.high %v24513_v45, %v24441_v8  ;;  %v14998_v46 = vunpack.i.h.s16 %v14653_v9 }
 0x52b   :  { %v19999_v57 = vpack.i.b16 %v14652_v20, %v14994_v22  ;;  %v20000_v41 = vpack.i.b16 %v14653_v9, %v14996_v14  ;;  %v15963_v55 = vcombine.low %v24513_v45, %v24441_v8  ;;  %v20003_v18 = vpack.i.b16 %v24510_v12, %v15002_v56  ;;  %v14224_v22 = vld [vmem:[#allocation4 + $0x60] sm:$0xff] }
 0x52c   :  { %v15402_v7 = vrot.slane %v15392_v25, %v21575_v2  ;;  %v24522_v35 = vrot.slane %v15964_v6, %v21575_v2  ;;  %v16034_v5 = vcombine.high %v24502_v24, %v24438_v15  ;;  %v20001_v48 = vpack.i.b16 %v14668_v44, %v14998_v46 }
 0x52d   :  { %v15393_v29 = vcombine.low %v19998_v10, %v19999_v57  ;;  %v24527_v23 = vrot.slane %v15963_v55, %v21575_v2  ;;  %v15395_v11 = vcombine.low %v20002_v19, %v20003_v18  ;;  %v16033_v51 = vcombine.low %v24502_v24, %v24438_v15 }
 0x52e   :  { %v15980_v3 = vcombine.low %v24522_v35, %v24472_v54  ;;  %v24535_v26 = vrot.slane %v16034_v5, %v21575_v2  ;;  %v15394_v34 = vcombine.low %v20000_v41, %v20001_v48  ;;  %v16035_v47 = vcombine.low %v24441_v8, %v24444_v17  ;;  %v14223_v17 = vld [vmem:[#allocation4 + $0x58] sm:$0x11] }
 0x52f   :  { %v15409_v0 = vrot.slane %v15393_v29, %v21575_v2  ;;  %v15979_v43 = vcombine.low %v24527_v23, %v24475_v38  ;;  %v15423_v33 = vrot.slane %v15395_v11, %v21575_v2  ;;  %v24551_v15 = vrot.slane %v16033_v51, %v21575_v2 }
 0x530   :  { %16111 = vrot.lane.b32.xlu1 %v15980_v3, %s20688_s0  ;;  %v16066_v60 = vcombine.low %v24535_v26, %v24530_v4  ;;  %v19984_v31 = vrot.slane %v14244_v36, 9  ;;  %v15416_v40 = vrot.slane %v15394_v34, %v21575_v2  ;;  %v24556_v8 = vrot.slane %v16035_v47, %v21575_v2 }
 0x531   :  { %v15425_v39 = vcombine.high %v15402_v7, %v15409_v0  ;;  %v15424_v58 = vcombine.low %v15402_v7, %v15409_v0  ;;  %16109 = vrot.lane.b32.xlu0 %v15979_v43, %s20688_s0  ;;  %v14313_v59 = vrot.slane %v14225_v62, 5  ;;  %v14316_v63 = vrot.slane %v24544_v28, 5 }
 0x532   :  { %v14378_v44 = vadd.bf16 %v24506_v50, %v14223_v17  ;;  %v14677_v42 = vcombine.high %v14675_v53, %v14675_v53  ;;  %v15427_v20 = vcombine.high %v15416_v40, %v15423_v33  ;;  %v15426_v52 = vcombine.low %v15416_v40, %v15423_v33 }
 0x533   :  { %v15441_v16 = vrot.slane %v15425_v39, %v21575_v2  ;;  %v15434_v21 = vrot.slane %v15424_v58, %v21575_v2  ;;  %v16065_v9 = vcombine.low %v24551_v15, %v24556_v8  ;;  %v14314_v14 = vsel %vm23884_vm0, %v19984_v31, %v14313_v59 }
 0x534   :  { %16123 = vrot.lane.b32.xlu1 %v16066_v60, %s20688_s0  ;;  %v14315_v10 = vrot.slane %v14313_v59, 4  ;;  %v14684_v56 = vrot.slane %v14378_v44, %v21575_v2  ;;  %v15455_v50 = vrot.slane %v15427_v20, %v21575_v2  ;;  %v15448_v53 = vrot.slane %v15426_v52, %v21575_v2 }
 0x535   :  { %v14379_v19 = vadd.bf16 %v14314_v14, %v14224_v22  ;;  %v15004_v25 = vunpack.i.h.s16 %v24510_v12  ;;  %16121 = vrot.lane.b32.xlu0 %v16065_v9, %s20688_s0  ;;  %v15006_v57 = vunpack.i.h.s16 %v14677_v42  ;;  %v15823_v41 = vcombine.low %v24403_v49, %v24411_v61 }
 0x536   :  { %v14317_v6 = vsel %vm23884_vm0, %v14315_v10, %v14316_v63  ;;  %v14691_v46 = vrot.slane %v14684_v56, %v21575_v2  ;;  %v15457_v55 = vcombine.low %v15441_v16, %v15455_v50  ;;  %v15456_v18 = vcombine.low %v15434_v21, %v15448_v53 }
 0x537   :  { %v14380_v7 = vadd.bf16 %v14317_v6, %v14225_v62  ;;  %v14698_v5 = vrot.slane %v14379_v19, %v21575_v2  ;;  %v20004_v48 = vpack.i.b16 %v14677_v42, %v15004_v25  ;;  %v20038_v29 = vcombine.high %v24403_v49, %v24411_v61 }
 0x538   :  { %v20005_v12 = vpack.i.b16 %v14691_v46, %v15006_v57  ;;  %v15825_v36 = vcombine.low %v24406_v13, %v24417_v27  ;;  %20043 = vmatprep.mubr.msk.bf16.mxu0 %vm682_vm4, %v15457_v55  ;;  %v24588_v34 = vrot.slane %v15823_v41, %v21575_v2  ;;  %v16068_v49 = vcombine.high %v24447_v1, %v24513_v45  ;;  %v14228_v57 = vld [vmem:[#allocation4 + $0x80] sm:$0xff]  ;;  %v14246_v41 = vld [vmem:[#allocation4 + $0x78] sm:$0xee] }
 0x539   :  { %v14699_v11 = vcombine.high %v14698_v5, %v14698_v5  ;;  %v14706_v3 = vrot.slane %v14698_v5, %v21575_v2  ;;  %v14722_v51 = vrot.slane %v14380_v7, %v21575_v2  ;;  %16276 = vmatmul.mubr.bf16.gmra.mxu0 %v15456_v18  ;;  %v15840_v43 = vrot.slane %v20038_v29, %v21575_v2 }
 0x53a   :  { %v15458_v0 = vcombine.low %v20004_v48, %v20005_v12  ;;  %v15847_v47 = vrot.slane %v15825_v36, %v21575_v2  ;;  %v15982_v62 = vcombine.high %v24513_v45, %v24588_v34  ;;  %v15981_v31 = vcombine.low %v24513_v45, %v24588_v34  ;;  %v14247_v12 = vld [vmem:[#allocation4 + $0x88] sm:$0x33] }
 0x53b   :  { %v14713_v13 = vrot.slane %v14699_v11, %v21575_v2  ;;  %v14723_v61 = vcombine.high %v14722_v51, %v14722_v51  ;;  %v24596_v27 = vrot.slane %v14722_v51, %v21575_v2  ;;  %v24619_v16 = vrot.slane %v16068_v49, %v21575_v2  ;;  %v14226_v51 = vld [vmem:[#allocation4 + $0x70] sm:$0x11] }
 0x53c   :  { %v15468_v33 = vrot.slane %v15458_v0, %v21575_v2  ;;  %v15984_v60 = vcombine.high %v15840_v43, %v15847_v47  ;;  %v15983_v40 = vcombine.low %v15840_v43, %v15847_v47  ;;  %v24607_v59 = vrot.slane %v15982_v62, %v21575_v2  ;;  %v24667_v62 = vld [vmem:[#allocation4 + $0x98] sm:$0xff] }
 0x53d   :  { %v24604_v39 = vrot.slane %v14723_v61, %v21575_v2  ;;  %v15459_v58 = vcombine.low %v14706_v3, %v14713_v13  ;;  %v20026_v17 = vcombine.high %v14706_v3, %v14713_v13  ;;  %v24613_v42 = vrot.slane %v15981_v31, %v21575_v2 }
 0x53e   :  { %v24610_v44 = vrot.slane %v15984_v60, %v21575_v2  ;;  %v24616_v20 = vrot.slane %v15983_v40, %v21575_v2  ;;  %v16067_v22 = vcombine.low %v24447_v1, %v24513_v45  ;;  %v16084_v56 = vcombine.low %v24619_v16, %v24530_v4  ;;  %v14227_v40 = vld [vmem:[#allocation4 + $0x78] sm:$0xff] }
 0x53f   :  { %v15461_v52 = vcombine.low %v24596_v27, %v24604_v39  ;;  %v15475_v21 = vrot.slane %v15459_v58, %v21575_v2  ;;  %v15482_v9 = vrot.slane %v20026_v17, %v21575_v2  ;;  %v15856_v50 = vcombine.high %v24588_v34, %v15840_v43 }
 0x540   :  { %v16014_v14 = vcombine.low %v24607_v59, %v24610_v44  ;;  %v16013_v10 = vcombine.low %v24613_v42, %v24616_v20  ;;  %v24636_v6 = vrot.slane %v16067_v22, %v21575_v2  ;;  %v15858_v1 = vcombine.high %v15847_v47, %v24502_v24 }
 0x541   :  { %v15489_v53 = vrot.slane %v15461_v52, %v21575_v2  ;;  %v15491_v19 = vcombine.high %v15468_v33, %v15475_v21  ;;  %v15490_v25 = vcombine.low %v15468_v33, %v15475_v21  ;;  %v24642_v45 = vrot.slane %v15856_v50, %v21575_v2  ;;  %v14248_v33 = vld [vmem:[#allocation4 + $0x90] sm:$0xee]  ;;  %v14249_v52 = vld [vmem:[#allocation4 + $0xa0] sm:$0x33] }
 0x542   :  { %16115 = vrot.lane.b32.xlu1 %v16014_v14, %s20688_s0  ;;  %16113 = vrot.lane.b32.xlu0 %v16013_v10, %s20688_s0  ;;  %v15855_v46 = vcombine.low %v24588_v34, %v15840_v43  ;;  %v14318_v55 = vrot.slane %v14316_v63, 4  ;;  %v16083_v29 = vcombine.low %v24636_v6, %v24556_v8  ;;  %v24652_v36 = vrot.slane %v15858_v1, %v21575_v2 }
 0x543   :  { %v15493_v18 = vcombine.high %v15482_v9, %v15489_v53  ;;  %v15507_v7 = vrot.slane %v15491_v19, %v21575_v2  ;;  %v15492_v5 = vcombine.low %v15482_v9, %v15489_v53  ;;  %v15500_v48 = vrot.slane %v15490_v25, %v21575_v2 }
 0x544   :  { %v15857_v11 = vcombine.low %v15847_v47, %v24502_v24  ;;  %v24656_v3 = vrot.slane %v15855_v46, %v21575_v2  ;;  %v19985_v0 = vrot.slane %v14246_v41, 9  ;;  %v14321_v43 = vrot.slane %v14228_v57, 5 }
 0x545   :  { %v15521_v28 = vrot.slane %v15493_v18, %v21575_v2  ;;  %v15514_v63 = vrot.slane %v15492_v5, %v21575_v2  ;;  %v15888_v49 = vcombine.low %v24642_v45, %v24652_v36  ;;  %v14324_v47 = vrot.slane %v14247_v12, 5 }
 0x546   :  { %16127 = vrot.lane.b32.xlu1 %v16084_v56, %s20688_s0  ;;  %16125 = vrot.lane.b32.xlu0 %v16083_v29, %s20688_s0  ;;  %v24665_v13 = vrot.slane %v15857_v11, %v21575_v2  ;;  %v14381_v61 = vadd.bf16 %v14318_v55, %v14226_v51  ;;  %v14322_v58 = vsel %vm23884_vm0, %v19985_v0, %v14321_v43  ;;  %v14323_v17 = vrot.slane %v14321_v43, 4  ;;  %v14229_v55 = vld [vmem:[#allocation4 + $0x88] sm:$0x11] }
 0x547   :  { %v15523_v60 = vcombine.low %v15507_v7, %v15521_v28  ;;  %v15522_v31 = vcombine.low %v15500_v48, %v15514_v63  ;;  %v24671_v21 = vpop.f32.mrf.mxu0  ;;  %v14382_v22 = vadd.bf16 %v14322_v58, %v14227_v40  ;;  %v20027_v10 = vcombine.high %v24596_v27, %v24604_v39  ;;  %v24685_v39 = vld [vmem:[#allocation4 + $0xa8] sm:$0xee]  ;;  %v14230_v7 = vld [vmem:[#allocation4 + $0x90] sm:$0xff] }
 0x548   :  { %v15887_v9 = vcombine.low %v24656_v3, %v24665_v13  ;;  %v14746_v14 = vrot.slane %v14381_v61, %v21575_v2  ;;  %v14325_v56 = vsel %vm23884_vm0, %v14323_v17, %v14324_v47  ;;  %v14326_v50 = vrot.slane %v14324_v47, 4 }
 0x549   :  { %20044 = vmatprep.mubr.msk.bf16.mxu0 %vm682_vm4, %v15523_v60  ;;  %v19986_v53 = vrot.slane %v14248_v33, 9  ;;  %v14329_v19 = vrot.slane %v24667_v62, 5  ;;  %v16255_v25 = vpop.f32.mrf.mxu0  ;;  %v14383_v1 = vadd.bf16 %v14325_v56, %v14228_v57  ;;  %v14760_v41 = vrot.slane %v14382_v22, %v21575_v2 }
 0x54a   :  { %16284 = vmatmul.mubr.bf16.gmra.mxu0 %v15522_v31  ;;  %16103 = vrot.lane.b32.xlu1 %v15888_v49, %s20688_s0  ;;  %v14753_v46 = vrot.slane %v14746_v14, %v21575_v2  ;;  %v14332_v27 = vrot.slane %v14249_v52, 5  ;;  %v15534_v18 = vrot.slane %v20027_v10, %v21575_v2  ;;  %v14384_v12 = vadd.bf16 %v14326_v50, %v14229_v55 }
 0x54b   :  { %16101 = vrot.lane.b32.xlu0 %v15887_v9, %s20688_s0  ;;  %v14330_v5 = vsel %vm23884_vm0, %v19986_v53, %v14329_v19  ;;  %v14331_v48 = vrot.slane %v14329_v19, 4  ;;  %v14761_v29 = vcombine.high %v14760_v41, %v14760_v41  ;;  %v14768_v57 = vrot.slane %v14760_v41, %v21575_v2 }
 0x54c   :  { %v14784_v11 = vrot.slane %v14383_v1, %v21575_v2  ;;  %v14385_v28 = vadd.bf16 %v14330_v5, %v14230_v7  ;;  %v14808_v51 = vrot.slane %v14384_v12, %v21575_v2  ;;  %v24696_v0 = vrot.slane %v14332_v27, 4 }
 0x54d   :  { %v14333_v63 = vsel %vm23884_vm0, %v14331_v48, %v14332_v27  ;;  %v19987_v43 = vrot.slane %v24685_v39, 9  ;;  %v14775_v49 = vrot.slane %v14761_v29, %v21575_v2  ;;  %v14776_v47 = vcombine.high %v14768_v57, %v14768_v57 }
 0x54e   :  { %v14785_v61 = vcombine.high %v14784_v11, %v14784_v11  ;;  %v14792_v33 = vrot.slane %v14784_v11, %v21575_v2  ;;  %v15026_v60 = vunpack.i.h.s16 %v14768_v57  ;;  %v20006_v31 = vpack.i.b16 %v14768_v57, %v14753_v46  ;;  %v24711_v11 = vpop.f32.mrf.mxu0 }
 0x54f   :  { %v14386_v40 = vadd.bf16 %v14333_v63, %v24667_v62  ;;  %v14815_v58 = vrot.slane %v14808_v51, %v21575_v2  ;;  %v14777_v17 = vcombine.high %v14775_v49, %v14775_v49  ;;  %v15028_v9 = vunpack.i.h.s16 %v14775_v49 }
 0x550   :  { %v14799_v52 = vrot.slane %v14785_v61, %v21575_v2  ;;  %v15030_v22 = vunpack.i.h.s16 %v14776_v47  ;;  %v15034_v14 = vunpack.i.h.s16 %v14792_v33  ;;  %v20007_v10 = vpack.i.b16 %v14775_v49, %v15026_v60 }
 0x551   :  { %v14800_v56 = vcombine.high %v14792_v33, %v14792_v33  ;;  %v14822_v50 = vrot.slane %v14385_v28, %v21575_v2  ;;  %v15032_v53 = vunpack.i.h.s16 %v14777_v17  ;;  %v20008_v19 = vpack.i.b16 %v14776_v47, %v15028_v9  ;;  %v14234_v47 = vld [vmem:[#allocation4 + $0xb0] sm:$0xff] }
 0x552   :  { %v20009_v25 = vpack.i.b16 %v14777_v17, %v15030_v22  ;;  %v14801_v1 = vcombine.high %v14799_v52, %v14799_v52  ;;  %v20011_v41 = vpack.i.b16 %v14799_v52, %v15034_v14  ;;  %v15525_v46 = vcombine.low %v20006_v31, %v20007_v10 }
 0x553   :  { %v14823_v55 = vcombine.high %v14822_v50, %v14822_v50  ;;  %v14830_v62 = vrot.slane %v14822_v50, %v21575_v2  ;;  %v20010_v27 = vpack.i.b16 %v14792_v33, %v15032_v53  ;;  %v24707_v7 = vrot.slane %v14386_v40, %v21575_v2  ;;  %v16258_v40 = vpop.f32.mrf.mxu0 }
 0x554   :  { %v15526_v39 = vcombine.low %v20008_v19, %v20009_v25  ;;  %v15036_v5 = vunpack.i.h.s16 %v14799_v52  ;;  %v15541_v48 = vrot.slane %v15525_v46, %v21575_v2  ;;  %v15038_v57 = vunpack.i.h.s16 %v14800_v56 }
 0x555   :  { %v14837_v12 = vrot.slane %v14823_v55, %v21575_v2  ;;  %v14838_v29 = vcombine.high %v14830_v62, %v14830_v62  ;;  %v15527_v28 = vcombine.low %v20010_v27, %v20011_v41  ;;  %v24716_v51 = vrot.slane %v24707_v7, %v21575_v2 }
 0x556   :  { %v15548_v63 = vrot.slane %v15526_v39, %v21575_v2  ;;  %v15040_v49 = vunpack.i.h.s16 %v14801_v1  ;;  %v15557_v61 = vcombine.high %v15534_v18, %v15541_v48  ;;  %v15556_v33 = vcombine.low %v15534_v18, %v15541_v48  ;;  %v14251_v18 = vld [vmem:[#allocation4 + $0xb8] sm:$0x33] }
 0x557   :  { %v14839_v60 = vcombine.high %v14837_v12, %v14837_v12  ;;  %v20012_v31 = vpack.i.b16 %v14800_v56, %v15036_v5  ;;  %v15555_v17 = vrot.slane %v15527_v28, %v21575_v2  ;;  %v20013_v52 = vpack.i.b16 %v14801_v1, %v15038_v57 }
 0x558   :  { %v20014_v9 = vpack.i.b16 %v14815_v58, %v15040_v49  ;;  %v15592_v22 = vcombine.low %v14837_v12, %v14838_v29  ;;  %v15573_v14 = vrot.slane %v15557_v61, %v21575_v2  ;;  %v15566_v10 = vrot.slane %v15556_v33, %v21575_v2  ;;  %v14232_v12 = vld [vmem:[#allocation4 + $0xa0] sm:$0x11] }
 0x559   :  { %v15593_v50 = vcombine.low %v14839_v60, %v24716_v51  ;;  %v14337_v53 = vrot.slane %v14234_v47, 5  ;;  %v15559_v19 = vcombine.high %v15548_v63, %v15555_v17  ;;  %v15558_v25 = vcombine.low %v15548_v63, %v15555_v17 }
 0x55a   :  { %v15590_v41 = vcombine.low %v20012_v31, %v20013_v52  ;;  %v15591_v46 = vcombine.low %v20014_v9, %v14830_v62  ;;  %v15614_v56 = vrot.slane %v15592_v22, %v21575_v2  ;;  %v14340_v57 = vrot.slane %v14251_v18, 5 }
 0x55b   :  { %v15621_v55 = vrot.slane %v15593_v50, %v21575_v2  ;;  %v14338_v58 = vsel %vm23884_vm0, %v19987_v43, %v14337_v53  ;;  %v14339_v1 = vrot.slane %v14337_v53, 4  ;;  %v15587_v27 = vrot.slane %v15559_v19, %v21575_v2  ;;  %v14233_v43 = vld [vmem:[#allocation4 + $0xa8] sm:$0xff] }
 0x55c   :  { %v15580_v39 = vrot.slane %v15558_v25, %v21575_v2  ;;  %v15600_v5 = vrot.slane %v15590_v41, %v21575_v2  ;;  %v15607_v48 = vrot.slane %v15591_v46, %v21575_v2  ;;  %v14387_v28 = vadd.bf16 %v24696_v0, %v14232_v12  ;;  %v14235_v46 = vld [vmem:[#allocation4 + $0xb8] sm:$0x11] }
 0x55d   :  { %v15625_v29 = vcombine.high %v15614_v56, %v15621_v55  ;;  %v15624_v62 = vcombine.low %v15614_v56, %v15621_v55  ;;  %v15589_v63 = vcombine.low %v15573_v14, %v15587_v27  ;;  %v24731_v60 = vpop.f32.mrf.mxu0  ;;  %v14341_v40 = vsel %vm23884_vm0, %v14339_v1, %v14340_v57 }
 0x55e   :  { %v15588_v49 = vcombine.low %v15566_v10, %v15580_v39  ;;  %v15623_v61 = vcombine.high %v15600_v5, %v15607_v48  ;;  %v15622_v33 = vcombine.low %v15600_v5, %v15607_v48  ;;  %v14388_v17 = vadd.bf16 %v14338_v58, %v14233_v43 }
 0x55f   :  { %v15653_v31 = vrot.slane %v15625_v29, %v21575_v2  ;;  %20045 = vmatprep.mubr.msk.bf16.mxu0 %vm682_vm4, %v15589_v63  ;;  %v15646_v9 = vrot.slane %v15624_v62, %v21575_v2  ;;  %v14389_v0 = vadd.bf16 %v14341_v40, %v14234_v47  ;;  %v14847_v22 = vcombine.high %v24707_v7, %v24707_v7  ;;  %v16263_v14 = vpop.f32.mrf.mxu0 }
 0x560   :  { %v15639_v52 = vrot.slane %v15623_v61, %v21575_v2  ;;  %16292 = vmatmul.mubr.bf16.gmra.mxu0 %v15588_v49  ;;  %v15632_v10 = vrot.slane %v15622_v33, %v21575_v2  ;;  %v14870_v50 = vrot.slane %v14387_v28, %v21575_v2  ;;  %v14884_v32 = vrot.slane %v14388_v17, %v21575_v2 }
 0x561   :  { %v14342_v53 = vrot.slane %v14340_v57, 4  ;;  %v14861_v25 = vrot.slane %v14847_v22, %v21575_v2  ;;  %v14862_v41 = vcombine.high %v24716_v51, %v24716_v51  ;;  %v14908_v47 = vrot.slane %v14389_v0, %v21575_v2  ;;  %v24748_v18 = vpop.f32.mrf.mxu0 }
 0x562   :  { %v15655_v19 = vcombine.low %v15639_v52, %v15653_v31  ;;  %v14877_v7 = vrot.slane %v14870_v50, %v21575_v2  ;;  %v14885_v56 = vcombine.high %v14884_v32, %v14884_v32  ;;  %v14892_v55 = vrot.slane %v14884_v32, %v21575_v2 }
 0x563   :  { %v14390_v58 = vadd.bf16 %v14342_v53, %v14235_v46  ;;  %v15654_v1 = vcombine.low %v15632_v10, %v15646_v9  ;;  %v14863_v27 = vcombine.high %v14861_v25, %v14861_v25  ;;  %v14916_v39 = vrot.slane %v14908_v47, %v21575_v2  ;;  %v16266_v48 = vpop.f32.mrf.mxu0 }
 0x564   :  { %20046 = vmatprep.mubr.msk.bf16.mxu0 %vm682_vm4, %v15655_v19  ;;  %v14909_v5 = vcombine.high %v14908_v47, %v14908_v47  ;;  %v14899_v51 = vrot.slane %v14885_v56, %v21575_v2  ;;  %v14900_v12 = vcombine.high %v14892_v55, %v14892_v55  ;;  %v15060_v29 = vunpack.i.h.s16 %v14892_v55 }
 0x565   :  { %v20015_v62 = vpack.i.b16 %v14892_v55, %v14877_v7  ;;  %v15656_v57 = vcombine.low %v14861_v25, %v14862_v41  ;;  %v14924_v63 = vcombine.high %v14916_v39, %v14916_v39  ;;  %v14932_v49 = vrot.slane %v14390_v58, %v21575_v2 }
 0x566   :  { %v14923_v28 = vrot.slane %v14909_v5, %v21575_v2  ;;  %v14901_v61 = vcombine.high %v14899_v51, %v14899_v51  ;;  %v15062_v33 = vunpack.i.h.s16 %v14899_v51  ;;  %v15064_v43 = vunpack.i.h.s16 %v14900_v12 }
 0x567   :  { %v20016_v31 = vpack.i.b16 %v14899_v51, %v15060_v29  ;;  %v15657_v40 = vcombine.low %v14863_v27, %v20015_v62  ;;  %v14939_v52 = vrot.slane %v14932_v49, %v21575_v2  ;;  %v15068_v9 = vunpack.i.h.s16 %v14916_v39 }
 0x568   :  { %v14925_v17 = vcombine.high %v14923_v28, %v14923_v28  ;;  %16300 = vmatmul.mubr.bf16.gmra.mxu0 %v15654_v1  ;;  %v15066_v0 = vunpack.i.h.s16 %v14901_v61  ;;  %v20017_v22 = vpack.i.b16 %v14900_v12, %v15062_v33  ;;  %v20018_v14 = vpack.i.b16 %v14901_v61, %v15064_v43 }
 0x569   :  { %v15070_v10 = vunpack.i.h.s16 %v14923_v28  ;;  %v15673_v50 = vrot.slane %v15657_v40, %v21575_v2  ;;  %v15072_v32 = vunpack.i.h.s16 %v14924_v63  ;;  %v20020_v19 = vpack.i.b16 %v14923_v28, %v15068_v9 }
 0x56a   :  { %v15074_v53 = vunpack.i.h.s16 %v14925_v17  ;;  %v20019_v25 = vpack.i.b16 %v14916_v39, %v15066_v0  ;;  %v15658_v41 = vcombine.low %v20016_v31, %v20017_v22  ;;  %v16016_v46 = vcombine.high %v24502_v24, %v24588_v34 }
 0x56b   :  { %v20021_v47 = vpack.i.b16 %v14924_v63, %v15070_v10  ;;  %v15666_v7 = vrot.slane %v15656_v57, %v21575_v2  ;;  %v20022_v56 = vpack.i.b16 %v14925_v17, %v15072_v32  ;;  %v16015_v51 = vcombine.low %v24502_v24, %v24588_v34 }
 0x56c   :  { %v20023_v55 = vpack.i.b16 %v14939_v52, %v15074_v53  ;;  %v15659_v58 = vcombine.low %v20018_v14, %v20019_v25  ;;  %v16030_v27 = vrot.slane %v16016_v46, %v21575_v2  ;;  %v15680_v39 = vrot.slane %v15658_v41, %v21575_v2 }
 0x56d   :  { %v15722_v1 = vcombine.low %v20020_v19, %v20021_v47  ;;  %v15689_v5 = vcombine.high %v15666_v7, %v15673_v50  ;;  %v15688_v29 = vcombine.low %v15666_v7, %v15673_v50  ;;  %v16023_v28 = vrot.slane %v16015_v51, %v21575_v2 }
 0x56e   :  { %v15723_v48 = vcombine.low %v20022_v56, %v20023_v55  ;;  %v15687_v12 = vrot.slane %v15659_v58, %v21575_v2  ;;  %v16032_v62 = vcombine.low %v16030_v27, %v24610_v44  ;;  %v16090_v24 = vcombine.low %v24652_v36, %v24465_v37 }
 0x56f   :  { %v15730_v61 = vrot.slane %v15722_v1, %v21575_v2  ;;  %v15705_v34 = vrot.slane %v15689_v5, %v21575_v2  ;;  %v16031_v33 = vcombine.low %v16023_v28, %v24616_v20  ;;  %v15698_v31 = vrot.slane %v15688_v29, %v21575_v2 }
 0x570   :  { %v15737_v57 = vrot.slane %v15723_v48, %v21575_v2  ;;  %v15691_v63 = vcombine.high %v15680_v39, %v15687_v12  ;;  %v15690_v49 = vcombine.low %v15680_v39, %v15687_v12  ;;  %16119 = vrot.lane.b32.xlu1 %v16032_v62, %s20688_s0  ;;  %v16089_v52 = vcombine.low %v24665_v13, %v24468_v30 }
 0x571   :  { %16117 = vrot.lane.b32.xlu0 %v16031_v33, %s20688_s0  ;;  %v16097_v9 = vcombine.low %v24616_v20, %v24551_v15  ;;  %v16086_v22 = vcombine.low %v24619_v16, %v24642_v45  ;;  %v16095_v14 = vcombine.low %v24616_v20, %v16023_v28  ;;  %v16085_v30 = vcombine.low %v24636_v6, %v24656_v3 }
 0x572   :  { %v15719_v43 = vrot.slane %v15691_v63, %v21575_v2  ;;  %v15712_v40 = vrot.slane %v15690_v49, %v21575_v2  ;;  %v15739_v17 = vcombine.high %v15730_v61, %v15737_v57  ;;  %v16092_v15 = vcombine.low %v24472_v54, %v24522_v35 }
 0x573   :  { %v15738_v50 = vcombine.low %v15730_v61, %v15737_v57  ;;  %v16091_v20 = vcombine.low %v24475_v38, %v24527_v23  ;;  %v16088_v32 = vcombine.low %v24652_v36, %v24642_v45  ;;  %v16087_v19 = vcombine.low %v24665_v13, %v24656_v3 }
 0x574   :  { %v15721_v37 = vcombine.low %v15705_v34, %v15719_v43  ;;  %v15720_v0 = vcombine.low %v15698_v31, %v15712_v40  ;;  %16139 = vrot.lane.b32.xlu1 %v16090_v24, %s20688_s0  ;;  %v15753_v10 = vrot.slane %v15739_v17, %v21575_v2  ;;  %v16098_v35 = vcombine.low %v24610_v44, %v24535_v26 }
 0x575   :  { %16137 = vrot.lane.b32.xlu0 %v16089_v52, %s20688_s0  ;;  %v15746_v53 = vrot.slane %v15738_v50, %v21575_v2  ;;  %v16094_v23 = vcombine.low %v24472_v54, %v24607_v59  ;;  %v16093_v45 = vcombine.low %v24475_v38, %v24613_v42  ;;  %v16096_v36 = vcombine.low %v24610_v44, %v16030_v27  ;;  %v18203_v27 = vld [vmem:[#allocation5 + $0x8] sm:$0x1] }
 0x576   :  { %20047 = vmatprep.mubr.msk.bf16.mxu0 %vm682_vm4, %v15721_v37  ;;  %v16100_v26 = vcombine.low %v24530_v4, %v24619_v16  ;;  %v16099_v54 = vcombine.low %v24556_v8, %v24636_v6  ;;  %vm18200_vm15 = vcmask 647168   ;;  %vm18640_vm8 = vcmask 1042434  }
 0x577   :  { %16308 = vmatmul.mubr.bf16.gmra.mxu0 %v15720_v0  ;;  %vm24838_vm2 = vmand %vm18200_vm15, %vm18201_vm1  ;;  %vm18649_vm0 = vcmask 1045509   ;;  %vm18887_vm15 = vcmask 752640   ;;  %vm19160_vm1 = vcmask 982016  }
 0x578   :  { %20048 = vmatprep.mubr.msk.bf16.mxu0 %vm682_vm4, %v15753_v10  ;;  %16131 = vrot.lane.b32.xlu1 %v16086_v22, %s20688_s0 }
 0x579   :  { %16129 = vrot.lane.b32.xlu0 %v16085_v30, %s20688_s0 }
 0x57c   :  { %16143 = vrot.lane.b32.xlu1 %v16092_v15, %s20688_s0 }
 0x57d   :  { %16141 = vrot.lane.b32.xlu0 %v16091_v20, %s20688_s0 }
 0x57f   :  { %16316 = vmatmul.mubr.bf16.gmra.mxu0 %v15746_v53 }
 0x580   :  { %16135 = vrot.lane.b32.xlu1 %v16088_v32, %s20688_s0 }
 0x581   :  { %16133 = vrot.lane.b32.xlu0 %v16087_v19, %s20688_s0 }
 0x584   :  { %16155 = vrot.lane.b32.xlu1 %v16098_v35, %s20688_s0 }
 0x585   :  { %16153 = vrot.lane.b32.xlu0 %v16097_v9, %s20688_s0 }
 0x588   :  { %16147 = vrot.lane.b32.xlu1 %v16094_v23, %s20688_s0 }
 0x589   :  { %16145 = vrot.lane.b32.xlu0 %v16093_v45, %s20688_s0 }
 0x58c   :  { %16151 = vrot.lane.b32.xlu1 %v16096_v36, %s20688_s0 }
 0x58d   :  { %16149 = vrot.lane.b32.xlu0 %v16095_v14, %s20688_s0 }
 0x590   :  { %16159 = vrot.lane.b32.xlu1 %v16100_v26, %s20688_s0 }
 0x591   :  { %16157 = vrot.lane.b32.xlu0 %v16099_v54, %s20688_s0 }
 0x598   :  { %v16108_v38 = vpop.permute.xlu1 %16107  ;;  %v16106_v59 = vpop.permute.xlu0 %16105 }
 0x599   :  { %v16163_v44 = vsel %vm16161_vm3, %v16106_v59, %v16108_v38 }
 0x59a   :  { %v16262_v42 = vadd.f32 %v24731_v60, %v16163_v44 }
 0x59c   :  { %v16438_v3 = vcombine.high %v16262_v42, %v16262_v42  ;;  %v16445_v13 = vrot.slane %v16262_v42, %v21575_v2 }
 0x59e   :  { %v16452_v4 = vrot.slane %v16438_v3, %v21575_v2  ;;  %v16453_v16 = vcombine.high %v16445_v13, %v16445_v13  ;;  %v16461_v25 = vrot.slane %v16445_v13, %v21575_v2 }
 0x5a0   :  { %v16454_v8 = vcombine.high %v16452_v4, %v16452_v4  ;;  %v16475_v6 = vrot.slane %v16453_v16, %v21575_v2  ;;  %v17277_v41 = vrot.slane %v16461_v25, %v21575_v2  ;;  %v16468_v46 = vrot.slane %v16452_v4, %v21575_v2 }
 0x5a1   :  { %v16483_v58 = vcombine.high %v16461_v25, %v16461_v25 }
 0x5a2   :  { %v16112_v47 = vpop.permute.xlu1 %16111  ;;  %v16485_v7 = vcombine.high %v16475_v6, %v16475_v6  ;;  %v17284_v56 = vrot.slane %v17277_v41, %v21575_v2  ;;  %v16482_v55 = vrot.slane %v16454_v8, %v21575_v2  ;;  %v16484_v39 = vcombine.high %v16468_v46, %v16468_v46 }
 0x5a3   :  { %v16110_v60 = vpop.permute.xlu0 %16109  ;;  %v17285_v63 = vcombine.low %v16475_v6, %v16483_v58 }
 0x5a4   :  { %v16164_v5 = vsel %vm16161_vm3, %v16110_v60, %v16112_v47  ;;  %v20257_v48 = vpack.c.bf16 %v17284_v56, %v17284_v56  ;;  %v17286_v12 = vcombine.low %v16485_v7, %v16468_v46  ;;  %v16486_v49 = vcombine.high %v16482_v55, %v16482_v55 }
 0x5a5   :  { %v16265_v51 = vadd.f32 %v24748_v18, %v16164_v5  ;;  %v17287_v24 = vcombine.low %v16482_v55, %v16484_v39  ;;  %v17295_v33 = vrot.slane %v17285_v63, %v21575_v2 }
 0x5a6   :  { %v18204_v29 = vsel %vm24838_vm2, %v20257_v48, %v18203_v27  ;;  %v16124_v57 = vpop.permute.xlu1 %16123  ;;  %v17302_v34 = vrot.slane %v17286_v12, %v21575_v2 }
 0x5a7   :  { %v16494_v62 = vrot.slane %v16265_v51, %v21575_v2  ;;  %v16122_v28 = vpop.permute.xlu0 %16121  ;;  %18205 = vst [vmem:[#allocation5 + $0x8] sm:$0x1] %v18204_v29  ;;  %v17309_v40 = vrot.slane %v17287_v24, %v21575_v2  ;;  %v16487_v54 = vcombine.high %v16265_v51, %v16265_v51 }
 0x5a8   :  { %v24848_v61 = vsel %vm16161_vm3, %v16122_v28, %v16124_v57  ;;  %v17317_v31 = vcombine.low %v17295_v33, %v17302_v34 }
 0x5a9   :  { %v24852_v18 = vrot.slane %v16494_v62, %v21575_v2  ;;  %v16502_v3 = vcombine.high %v16494_v62, %v16494_v62  ;;  %v16501_v6 = vrot.slane %v16487_v54, %v21575_v2 }
 0x5aa   :  { %v17325_v9 = vrot.slane %v17317_v31, %v21575_v2 }
 0x5ab   :  { %v17288_v43 = vcombine.low %v16486_v49, %v24852_v18  ;;  %v16524_v58 = vrot.slane %v16502_v3, %v21575_v2  ;;  %v16517_v31 = vrot.slane %v16501_v6, %v21575_v2 }
 0x5ad   :  { %v17316_v17 = vrot.slane %v17288_v43, %v21575_v2  ;;  %v16503_v43 = vcombine.high %v16501_v6, %v16501_v6 }
 0x5af   :  { %v17318_v52 = vcombine.low %v17309_v40, %v17316_v17  ;;  %v16534_v17 = vcombine.high %v16524_v58, %v16524_v58 }
 0x5b1   :  { %v17332_v37 = vrot.slane %v17318_v52, %v21575_v2 }
 0x5b3   :  { %v17333_v14 = vcombine.low %v17325_v9, %v17332_v37 }
 0x5b4   :  { %v16116_v0 = vpop.permute.xlu1 %16115  ;;  %v16114_v22 = vpop.permute.xlu0 %16113 }
 0x5b5   :  { %v20258_v10 = vpack.c.bf16 %v17333_v14, %v17333_v14  ;;  %v16165_v37 = vsel %vm16161_vm3, %v16114_v22, %v16116_v0 }
 0x5b7   :  { %18206 = vst.msk [vmem:[#allocation5 + $0xc] sm:$0xf] %vm18197_vm6, %v20258_v10 }
 0x5b8   :  { %v16128_v30 = vpop.permute.xlu1 %16127  ;;  %v16126_v15 = vpop.permute.xlu0 %16125 }
 0x5b9   :  { %v24862_v50 = vsel %vm16161_vm3, %v16126_v15, %v16128_v30  ;;  %v16532_v30 = vcombine.high %v24852_v18, %v24852_v18 }
 0x5bb   :  { %v17334_v54 = vcombine.low %v16524_v58, %v16532_v30 }
 0x5bc   :  { %v16104_v20 = vpop.permute.xlu1 %16103 }
 0x5bd   :  { %v16102_v32 = vpop.permute.xlu0 %16101 }
 0x5be   :  { %v16162_v53 = vsel %vm16161_vm3, %v16102_v32, %v16104_v20  ;;  %v16531_v20 = vrot.slane %v16503_v43, %v21575_v2  ;;  %v16533_v32 = vcombine.high %v16517_v31, %v16517_v31 }
 0x5bf   :  { %v16254_v19 = vadd.f32 %v24671_v21, %v16162_v53  ;;  %v16257_v35 = vadd.f32 %v24711_v11, %v16162_v53 }
 0x5c0   :  { %v17336_v22 = vcombine.low %v16531_v20, %v16533_v32 }
 0x5c1   :  { %v16340_v23 = vcombine.high %v16254_v19, %v16254_v19  ;;  %v16347_v45 = vrot.slane %v16254_v19, %v21575_v2  ;;  %v16389_v36 = vcombine.high %v16257_v35, %v16257_v35  ;;  %v16396_v26 = vrot.slane %v16257_v35, %v21575_v2 }
 0x5c2   :  { %v17335_v35 = vcombine.low %v16534_v17, %v16517_v31 }
 0x5c3   :  { %v16354_v38 = vrot.slane %v16340_v23, %v21575_v2  ;;  %v16355_v59 = vcombine.high %v16347_v45, %v16347_v45  ;;  %v16403_v44 = vrot.slane %v16389_v36, %v21575_v2  ;;  %v16404_v42 = vcombine.high %v16396_v26, %v16396_v26 }
 0x5c4   :  { %v16363_v4 = vrot.slane %v16347_v45, %v21575_v2  ;;  %v16412_v25 = vrot.slane %v16396_v26, %v21575_v2  ;;  %v17351_v18 = vrot.slane %v17335_v35, %v21575_v2 }
 0x5c5   :  { %v16356_v13 = vcombine.high %v16354_v38, %v16354_v38  ;;  %v16377_v21 = vrot.slane %v16355_v59, %v21575_v2  ;;  %v16405_v11 = vcombine.high %v16403_v44, %v16403_v44  ;;  %v16370_v16 = vrot.slane %v16354_v38, %v21575_v2 }
 0x5c6   :  { %v16426_v8 = vrot.slane %v16404_v42, %v21575_v2  ;;  %v16419_v60 = vrot.slane %v16403_v44, %v21575_v2  ;;  %v16535_v59 = vcombine.high %v16531_v20, %v16531_v20 }
 0x5c7   :  { %v16384_v41 = vrot.slane %v16356_v13, %v21575_v2  ;;  %v17173_v47 = vcombine.low %v16363_v4, %v16377_v21  ;;  %v20049_v46 = vcombine.high %v16363_v4, %v16377_v21  ;;  %v16433_v7 = vrot.slane %v16405_v11, %v21575_v2 }
 0x5c8   :  { %v17222_v56 = vcombine.low %v16412_v25, %v16426_v8  ;;  %v20051_v55 = vcombine.high %v16412_v25, %v16426_v8  ;;  %v17344_v13 = vrot.slane %v17334_v54, %v21575_v2  ;;  %v17358_v25 = vrot.slane %v17336_v22, %v21575_v2 }
 0x5c9   :  { %v17175_v27 = vcombine.low %v16370_v16, %v16384_v41  ;;  %v20050_v5 = vcombine.high %v16370_v16, %v16384_v41  ;;  %v17183_v48 = vrot.slane %v17173_v47, %v21575_v2  ;;  %v17190_v51 = vrot.slane %v20049_v46, %v21575_v2  ;;  %v20602_v41 = vld [vmem:[#allocation5 + $0xc] ss:$0 sps:$4 sm:$0x44]  }
 0x5ca   :  { %v17224_v39 = vcombine.low %v16419_v60, %v16433_v7  ;;  %v20052_v12 = vcombine.high %v16419_v60, %v16433_v7  ;;  %v17232_v29 = vrot.slane %v17222_v56, %v21575_v2  ;;  %v17239_v62 = vrot.slane %v20051_v55, %v21575_v2 }
 0x5cb   :  { %v17197_v57 = vrot.slane %v17175_v27, %v21575_v2  ;;  %v17204_v28 = vrot.slane %v20050_v5, %v21575_v2  ;;  %v17205_v63 = vcombine.low %v17183_v48, %v17190_v51  ;;  %v17366_v16 = vcombine.low %v17344_v13, %v17351_v18  ;;  %v18208_v5 = vld [vmem:[#allocation5 + $0x14] sm:$0x1] }
 0x5cc   :  { %v17246_v49 = vrot.slane %v17224_v39, %v21575_v2  ;;  %v17253_v24 = vrot.slane %v20052_v12, %v21575_v2  ;;  %v17254_v34 = vcombine.low %v17232_v29, %v17239_v62  ;;  %v18306_v62 = vrot.slane %v20602_v41, 2 }
 0x5cd   :  { %v17206_v33 = vcombine.low %v17197_v57, %v17204_v28  ;;  %v17213_v52 = vrot.slane %v17205_v63, %v21575_v2  ;;  %v17374_v55 = vrot.slane %v17366_v16, %v21575_v2 }
 0x5ce   :  { %v17255_v40 = vcombine.low %v17246_v49, %v17253_v24  ;;  %v17262_v14 = vrot.slane %v17254_v34, %v21575_v2 }
 0x5cf   :  { %v17220_v9 = vrot.slane %v17206_v33, %v21575_v2 }
 0x5d0   :  { %v17269_v10 = vrot.slane %v17255_v40, %v21575_v2  ;;  %v16269_v53 = vpop.f32.mrf.mxu0 }
 0x5d1   :  { %v17221_v15 = vcombine.low %v17213_v52, %v17220_v9  ;;  %v16270_v23 = vadd.f32 %v16269_v53, %v16165_v37 }
 0x5d2   :  { %v17270_v19 = vcombine.low %v17262_v14, %v17269_v10  ;;  %v16271_v36 = vpop.f32.mrf.mxu0 }
 0x5d3   :  { %v20255_v45 = vpack.c.bf16 %v17221_v15, %v17221_v15  ;;  %v16543_v0 = vrot.slane %v16270_v23, %v21575_v2  ;;  %v16536_v11 = vcombine.high %v16270_v23, %v16270_v23 }
 0x5d4   :  { %v20256_v26 = vpack.c.bf16 %v17270_v19, %v17270_v19  ;;  %v16272_v38 = vpop.f32.mrf.mxu0 }
 0x5d5   :  { %18198 = vst.msk [vmem:[#allocation5] sm:$0xf] %vm18197_vm6, %v20255_v45  ;;  %v16551_v44 = vcombine.high %v16543_v0, %v16543_v0  ;;  %v16559_v42 = vrot.slane %v16543_v0, %v21575_v2  ;;  %v16550_v60 = vrot.slane %v16536_v11, %v21575_v2 }
 0x5d6   :  { %18199 = vst.msk [vmem:[#allocation5 + $0x4] sm:$0xf] %vm18197_vm6, %v20256_v26  ;;  %v16274_v3 = vpop.f32.mrf.mxu0 }
 0x5d7   :  { %v16573_v4 = vrot.slane %v16551_v44, %v21575_v2  ;;  %v17337_v21 = vcombine.low %v16535_v59, %v16559_v42  ;;  %v16552_v12 = vcombine.high %v16550_v60, %v16550_v60  ;;  %v16566_v34 = vrot.slane %v16550_v60, %v21575_v2 }
 0x5d9   :  { %v17365_v8 = vrot.slane %v17337_v21, %v21575_v2  ;;  %v17389_v6 = vrot.slane %v16573_v4, %v21575_v2  ;;  %v16580_v49 = vrot.slane %v16552_v12, %v21575_v2  ;;  %v20053_v9 = vcombine.high %v16559_v42, %v16573_v4 }
 0x5db   :  { %v17367_v46 = vcombine.low %v17358_v25, %v17365_v8  ;;  %v17396_v7 = vrot.slane %v17389_v6, %v21575_v2  ;;  %v17398_v31 = vcombine.low %v16566_v34, %v16580_v49  ;;  %v20054_v10 = vcombine.high %v16566_v34, %v16580_v49 }
 0x5dc   :  { %v20599_v47 = vld [vmem:[#allocation5] ss:$0 sps:$4 sm:$0x44]   ;;  %v17407_v19 = vrot.slane %v20053_v9, %v21575_v2 }
 0x5dd   :  { %v20600_v56 = vld [vmem:[#allocation5 + $0x4] ss:$0 sps:$4 sm:$0x44]   ;;  %v18305_v58 = vrot.slane %v20599_v47, 2  ;;  %v17381_v27 = vrot.slane %v17367_v46, %v21575_v2  ;;  %v20260_v48 = vpack.c.bf16 %v17396_v7, %v17396_v7  ;;  %v17414_v30 = vrot.slane %v17398_v31, %v21575_v2 }
 0x5de   :  { %v18393_v51 = vrot.slane %v20600_v56, 2  ;;  %v20601_v28 = vld [vmem:[#allocation5 + $0x4] ss:$0 sps:$4 sm:$0x11]   ;;  %v17421_v23 = vrot.slane %v20054_v10, %v21575_v2 }
 0x5df   :  { %18313 = vrot.lane.b32.xlu1 %v18305_v58, %s20684_s11  ;;  %v17382_v39 = vcombine.low %v17374_v55, %v17381_v27  ;;  %v18209_v29 = vsel %vm24838_vm2, %v20260_v48, %v18208_v5  ;;  %v17429_v45 = vcombine.low %v17407_v19, %v17414_v30  ;;  %v18213_v30 = vld [vmem:[#allocation5 + $0x20] sm:$0x1] }
 0x5e0   :  { %18401 = vrot.lane.b32.xlu0 %v18393_v51, %s20689_s3  ;;  %18210 = vst [vmem:[#allocation5 + $0x14] sm:$0x1] %v18209_v29 }
 0x5e1   :  { %v20259_v57 = vpack.c.bf16 %v17382_v39, %v17382_v39  ;;  %v17437_v0 = vrot.slane %v17429_v45, %v21575_v2 }
 0x5e2   :  { %v16120_v63 = vpop.permute.xlu1 %16119 }
 0x5e3   :  { %18207 = vst.msk [vmem:[#allocation5 + $0x10] sm:$0xf] %vm18197_vm6, %v20259_v57  ;;  %18353 = vrot.lane.b32.xlu1 %v20601_v28, %s20680_s20  ;;  %v16118_v24 = vpop.permute.xlu0 %16117 }
 0x5e4   :  { %18315 = vrot.lane.b32.xlu0 %v18306_v62, %s20684_s11  ;;  %v16166_v33 = vsel %vm16161_vm3, %v16118_v24, %v16120_v63 }
 0x5e5   :  { %v16273_v43 = vadd.f32 %v16272_v38, %v16166_v33 }
 0x5e6   :  { %v24935_v18 = vpop.permute.xlu1 %16139 }
 0x5e7   :  { %v16585_v40 = vcombine.high %v16273_v43, %v16273_v43  ;;  %v16592_v17 = vrot.slane %v16273_v43, %v21575_v2  ;;  %v24937_v59 = vpop.permute.xlu0 %16137 }
 0x5e9   :  { %v16600_v37 = vcombine.high %v16592_v17, %v16592_v17  ;;  %v16599_v15 = vrot.slane %v16585_v40, %v21575_v2  ;;  %v16608_v20 = vrot.slane %v16592_v17, %v21575_v2 }
 0x5ea   :  { %v20603_v52 = vld [vmem:[#allocation5 + $0x10] ss:$0 sps:$4 sm:$0x11]   ;;  %v16132_v6 = vpop.permute.xlu1 %16131 }
 0x5eb   :  { %v20604_v14 = vld [vmem:[#allocation5 + $0x10] ss:$0 sps:$4 sm:$0x44]   ;;  %18355 = vrot.lane.b32.xlu1 %v20603_v52, %s20680_s20  ;;  %v16622_v32 = vrot.slane %v16600_v37, %v21575_v2  ;;  %v16601_v36 = vcombine.high %v16599_v15, %v16599_v15  ;;  %v16615_v44 = vrot.slane %v16599_v15, %v21575_v2  ;;  %v16130_v41 = vpop.permute.xlu0 %16129 }
 0x5ec   :  { %v18394_v53 = vrot.slane %v20604_v14, 2  ;;  %v16169_v5 = vsel %vm16161_vm3, %v16130_v41, %v16132_v6  ;;  %v20634_v41 = vld [vmem:[%s25477_s5 + $0x30] sm:$0xff]  }
 0x5ed   :  { %v17400_v35 = vcombine.low %v16608_v20, %v16622_v32  ;;  %v16629_v22 = vrot.slane %v16601_v36, %v21575_v2  ;;  %v20055_v11 = vcombine.high %v16608_v20, %v16622_v32  ;;  %v20631_v36 = vld [vmem:[%s25477_s5 + $0x78] sm:$0xff]  }
 0x5ee   :  { %18403 = vrot.lane.b32.xlu0 %v18394_v53, %s20689_s3  ;;  %v24954_v34 = vpop.permute.xlu1 %16143  ;;  %20279 = vmatprep.subr.bf16.mxu1 %v20631_v36 }
 0x5ef   :  { %v17428_v26 = vrot.slane %v17400_v35, %v21575_v2  ;;  %v17447_v3 = vcombine.low %v16615_v44, %v16629_v22  ;;  %v20056_v47 = vcombine.high %v16615_v44, %v16629_v22  ;;  %v17456_v58 = vrot.slane %v20055_v11, %v21575_v2  ;;  %v24956_v33 = vpop.permute.xlu0 %16141  ;;  %v20633_v11 = vld [vmem:[%s25477_s5 + $0x70] sm:$0xff]  }
 0x5f1   :  { %v17430_v54 = vcombine.low %v17421_v23, %v17428_v26  ;;  %v17463_v46 = vrot.slane %v17447_v3, %v21575_v2  ;;  %v17470_v29 = vrot.slane %v20056_v47, %v21575_v2 }
 0x5f3   :  { %v17444_v38 = vrot.slane %v17430_v54, %v21575_v2  ;;  %v17478_v62 = vcombine.low %v17456_v58, %v17463_v46 }
 0x5f5   :  { %v17445_v42 = vcombine.low %v17437_v0, %v17444_v38  ;;  %v20632_v38 = vld [vmem:[%s25477_s5 + $0x38] sm:$0xff]   ;;  %v17486_v44 = vrot.slane %v17478_v62, %v21575_v2 }
 0x5f6   :  { %20280 = vmatpush3.bf16.msra.mxu1 %v20632_v38 }
 0x5f7   :  { %v20261_v13 = vpack.c.bf16 %v17445_v42, %v17445_v42  ;;  %20281 = vmatprep.subr.bf16.mxu1 %v20633_v11 }
 0x5f9   :  { %v16277_v4 = vpop.f32.mrf.mxu0  ;;  %18211 = vst.msk [vmem:[#allocation5 + $0x18] sm:$0xf] %vm18197_vm6, %v20261_v13 }
 0x5fa   :  { %v16278_v21 = vadd.f32 %v16277_v4, %v24848_v61  ;;  %v16136_v4 = vpop.permute.xlu1 %16135  ;;  %20282 = vmatpush3.bf16.msra.mxu1 %v20634_v41 }
 0x5fb   :  { %v16279_v16 = vpop.f32.mrf.mxu0 }
 0x5fc   :  { %v16634_v25 = vcombine.high %v16278_v21, %v16278_v21  ;;  %v16641_v8 = vrot.slane %v16278_v21, %v21575_v2  ;;  %v16134_v21 = vpop.permute.xlu0 %16133 }
 0x5fd   :  { %v16280_v7 = vpop.f32.mrf.mxu0 }
 0x5fe   :  { %v16648_v60 = vrot.slane %v16634_v25, %v21575_v2  ;;  %v16649_v56 = vcombine.high %v16641_v8, %v16641_v8  ;;  %v16657_v55 = vrot.slane %v16641_v8, %v21575_v2  ;;  %v16281_v61 = vadd.f32 %v16280_v7, %v24862_v50 }
 0x5ff   :  { %v16282_v27 = vpop.f32.mrf.mxu0 }
 0x600   :  { %v16650_v48 = vcombine.high %v16648_v60, %v16648_v60  ;;  %v16664_v51 = vrot.slane %v16648_v60, %v21575_v2  ;;  %v16671_v39 = vrot.slane %v16649_v56, %v21575_v2  ;;  %v16679_v12 = vcombine.high %v16657_v55, %v16657_v55  ;;  %v20605_v53 = vld [vmem:[#allocation5 + $0x18] ss:$0 sps:$4 sm:$0x44]  }
 0x601   :  { %v16683_v57 = vcombine.high %v16281_v61, %v16281_v61  ;;  %v16690_v28 = vrot.slane %v16281_v61, %v21575_v2  ;;  %v16170_v61 = vsel %vm16161_vm3, %v16134_v21, %v16136_v4  ;;  %v18307_v58 = vrot.slane %v20605_v53, 2 }
 0x602   :  { %v16678_v63 = vrot.slane %v16650_v48, %v21575_v2  ;;  %v16680_v50 = vcombine.high %v16664_v51, %v16664_v51  ;;  %v16681_v49 = vcombine.high %v16671_v39, %v16671_v39  ;;  %v17449_v24 = vcombine.low %v16657_v55, %v16671_v39 }
 0x603   :  { %v17501_v43 = vrot.slane %v16679_v12, %v21575_v2  ;;  %v16697_v31 = vrot.slane %v16683_v57, %v21575_v2  ;;  %v16698_v40 = vcombine.high %v16690_v28, %v16690_v28  ;;  %v16706_v17 = vrot.slane %v16690_v28, %v21575_v2  ;;  %18317 = vrot.lane.b32.xlu0 %v18307_v58, %s20684_s11  ;;  %v16154_v58 = vpop.permute.xlu0 %16153 }
 0x604   :  { %v17477_v52 = vrot.slane %v17449_v24, %v21575_v2  ;;  %v17509_v9 = vcombine.low %v16681_v49, %v16664_v51  ;;  %v17510_v37 = vcombine.low %v16678_v63, %v16680_v50  ;;  %v16682_v14 = vcombine.high %v16678_v63, %v16678_v63 }
 0x605   :  { %v17508_v10 = vrot.slane %v17501_v43, %v21575_v2  ;;  %v16699_v15 = vcombine.high %v16697_v31, %v16697_v31  ;;  %v16713_v20 = vrot.slane %v16697_v31, %v21575_v2  ;;  %v16720_v32 = vrot.slane %v16698_v40, %v21575_v2 }
 0x606   :  { %v17479_v19 = vcombine.low %v17470_v29, %v17477_v52  ;;  %v17519_v35 = vrot.slane %v17509_v9, %v21575_v2  ;;  %v17526_v23 = vrot.slane %v17510_v37, %v21575_v2  ;;  %v16728_v45 = vcombine.high %v16706_v17, %v16706_v17 }
 0x607   :  { %v20263_v26 = vpack.c.bf16 %v17508_v10, %v17508_v10  ;;  %v16727_v54 = vrot.slane %v16699_v15, %v21575_v2  ;;  %v16729_v0 = vcombine.high %v16713_v20, %v16713_v20  ;;  %v16730_v22 = vcombine.high %v16720_v32, %v16720_v32 }
 0x608   :  { %v17493_v42 = vrot.slane %v17479_v19, %v21575_v2  ;;  %v17511_v3 = vcombine.low %v16682_v14, %v16706_v17  ;;  %v17512_v13 = vcombine.low %v16720_v32, %v16728_v45  ;;  %v17541_v46 = vcombine.low %v17519_v35, %v17526_v23 }
 0x609   :  { %v18214_v16 = vsel %vm24838_vm2, %v20263_v26, %v18213_v30  ;;  %v17558_v25 = vcombine.low %v16730_v22, %v16713_v20  ;;  %v17559_v8 = vcombine.low %v16727_v54, %v16729_v0  ;;  %v16731_v28 = vcombine.high %v16727_v54, %v16727_v54 }
 0x60a   :  { %v16285_v6 = vpop.f32.mrf.mxu0  ;;  %v17494_v47 = vcombine.low %v17486_v44, %v17493_v42  ;;  %18215 = vst [vmem:[#allocation5 + $0x20] sm:$0x1] %v18214_v16  ;;  %v17533_v7 = vrot.slane %v17511_v3, %v21575_v2  ;;  %v17540_v60 = vrot.slane %v17512_v13, %v21575_v2  ;;  %v17549_v57 = vrot.slane %v17541_v46, %v21575_v2  ;;  %v18218_v42 = vld [vmem:[#allocation5 + $0x2c] sm:$0x1] }
 0x60b   :  { %v16286_v56 = vadd.f32 %v16285_v6, %v16169_v5  ;;  %v17568_v51 = vrot.slane %v17558_v25, %v21575_v2  ;;  %v17575_v39 = vrot.slane %v17559_v8, %v21575_v2  ;;  %v20635_v8 = vld [vmem:[%s25477_s5 + $0x68] sm:$0xff]  }
 0x60c   :  { %v16287_v55 = vpop.f32.mrf.mxu0  ;;  %v20262_v27 = vpack.c.bf16 %v17494_v47, %v17494_v47  ;;  %v17542_v48 = vcombine.low %v17533_v7, %v17540_v60  ;;  %v20636_v6 = vld [vmem:[%s25477_s5 + $0x28] sm:$0xff]   ;;  %20283 = vmatprep.subr.bf16.mxu1 %v20635_v8 }
 0x60d   :  { %v16732_v12 = vcombine.high %v16286_v56, %v16286_v56  ;;  %v16739_v29 = vrot.slane %v16286_v56, %v21575_v2  ;;  %v17590_v52 = vcombine.low %v17568_v51, %v17575_v39  ;;  %20284 = vmatpush3.bf16.msra.mxu1 %v20636_v6 }
 0x60e   :  { %v16288_v62 = vpop.f32.mrf.mxu0  ;;  %18212 = vst.msk [vmem:[#allocation5 + $0x1c] sm:$0xf] %vm18197_vm6, %v20262_v27  ;;  %v17556_v5 = vrot.slane %v17542_v48, %v21575_v2 }
 0x60f   :  { %v16289_v63 = vadd.f32 %v16288_v62, %v16170_v61  ;;  %v16746_v50 = vrot.slane %v16732_v12, %v21575_v2  ;;  %v16747_v49 = vcombine.high %v16739_v29, %v16739_v29  ;;  %v16755_v24 = vrot.slane %v16739_v29, %v21575_v2  ;;  %v16156_v61 = vpop.permute.xlu1 %16155 }
 0x610   :  { %v16290_v43 = vpop.f32.mrf.mxu0  ;;  %v17557_v31 = vcombine.low %v17549_v57, %v17556_v5  ;;  %v17598_v41 = vrot.slane %v17590_v52, %v21575_v2 }
 0x611   :  { %v16781_v40 = vcombine.high %v16289_v63, %v16289_v63  ;;  %v16788_v17 = vrot.slane %v16289_v63, %v21575_v2  ;;  %v16748_v9 = vcombine.high %v16746_v50, %v16746_v50  ;;  %v16769_v37 = vrot.slane %v16747_v49, %v21575_v2 }
 0x612   :  { %v16777_v14 = vcombine.high %v16755_v24, %v16755_v24  ;;  %v20264_v10 = vpack.c.bf16 %v17557_v31, %v17557_v31  ;;  %v17560_v30 = vcombine.low %v16731_v28, %v16755_v24  ;;  %v16762_v32 = vrot.slane %v16746_v50, %v21575_v2  ;;  %v16146_v31 = vpop.permute.xlu0 %16145 }
 0x613   :  { %v16795_v15 = vrot.slane %v16781_v40, %v21575_v2  ;;  %v16796_v20 = vcombine.high %v16788_v17, %v16788_v17  ;;  %v16776_v53 = vrot.slane %v16748_v9, %v21575_v2  ;;  %v16779_v19 = vcombine.high %v16769_v37, %v16769_v37  ;;  %v16148_v43 = vpop.permute.xlu1 %16147 }
 0x614   :  { %v17561_v35 = vcombine.low %v16769_v37, %v16777_v14  ;;  %18216 = vst.msk [vmem:[#allocation5 + $0x24] sm:$0xf] %vm18197_vm6, %v20264_v10  ;;  %v17582_v23 = vrot.slane %v17560_v30, %v21575_v2  ;;  %v16804_v36 = vrot.slane %v16788_v17, %v21575_v2  ;;  %v16171_v24 = vsel %vm16161_vm3, %v24937_v59, %v24935_v18 }
 0x615   :  { %v16797_v45 = vcombine.high %v16795_v15, %v16795_v15  ;;  %v16818_v26 = vrot.slane %v16796_v20, %v21575_v2  ;;  %v17613_v0 = vrot.slane %v16779_v19, %v21575_v2  ;;  %v17621_v22 = vcombine.low %v16762_v32, %v16776_v53  ;;  %v20606_v44 = vld [vmem:[#allocation5 + $0x1c] ss:$0 sps:$4 sm:$0x11]  }
 0x616   :  { %v17589_v54 = vrot.slane %v17561_v35, %v21575_v2  ;;  %v20057_v38 = vcombine.high %v16762_v32, %v16776_v53  ;;  %v20607_v4 = vld [vmem:[#allocation5 + $0x1c] ss:$0 sps:$4 sm:$0x44]   ;;  %18357 = vrot.lane.b32.xlu1 %v20606_v44, %s20680_s20  ;;  %v16811_v48 = vrot.slane %v16795_v15, %v21575_v2  ;;  %v16172_v18 = vsel %vm16161_vm3, %v24956_v33, %v24954_v34  ;;  %v16150_v35 = vpop.permute.xlu0 %16149 }
 0x617   :  { %v17623_v3 = vcombine.low %v16804_v36, %v16818_v26  ;;  %v20058_v13 = vcombine.high %v16804_v36, %v16818_v26  ;;  %v17620_v11 = vrot.slane %v17613_v0, %v21575_v2  ;;  %v17631_v16 = vrot.slane %v17621_v22, %v21575_v2  ;;  %v16152_v19 = vpop.permute.xlu1 %16151 }
 0x618   :  { %v17591_v21 = vcombine.low %v17582_v23, %v17589_v54  ;;  %v17638_v25 = vrot.slane %v20057_v38, %v21575_v2  ;;  %v16825_v47 = vrot.slane %v16797_v45, %v21575_v2  ;;  %v18395_v27 = vrot.slane %v20607_v4, 2 }
 0x619   :  { %v17645_v46 = vrot.slane %v17623_v3, %v21575_v2  ;;  %v17652_v7 = vrot.slane %v20058_v13, %v21575_v2  ;;  %v20266_v55 = vpack.c.bf16 %v17620_v11, %v17620_v11  ;;  %v16173_v36 = vsel %vm16161_vm3, %v16146_v31, %v16148_v43 }
 0x61a   :  { %v17605_v60 = vrot.slane %v17591_v21, %v21575_v2  ;;  %v17653_v56 = vcombine.low %v17631_v16, %v17638_v25  ;;  %18405 = vrot.lane.b32.xlu1 %v18395_v27, %s20689_s3  ;;  %v17670_v5 = vcombine.low %v16811_v48, %v16825_v47  ;;  %v20059_v28 = vcombine.high %v16811_v48, %v16825_v47 }
 0x61b   :  { %v17654_v51 = vcombine.low %v17645_v46, %v17652_v7  ;;  %v18219_v12 = vsel %vm24838_vm2, %v20266_v55, %v18218_v42  ;;  %v20608_v29 = vld [vmem:[#allocation5 + $0x24] ss:$0 sps:$4 sm:$0x44]   ;;  %v25044_v54 = vsel %vm16161_vm3, %v16154_v58, %v16156_v61  ;;  %v16174_v13 = vsel %vm16161_vm3, %v16150_v35, %v16152_v19 }
 0x61c   :  { %v17606_v39 = vcombine.low %v17598_v41, %v17605_v60  ;;  %v17661_v62 = vrot.slane %v17653_v56, %v21575_v2  ;;  %18220 = vst [vmem:[#allocation5 + $0x2c] sm:$0x1] %v18219_v12  ;;  %v18308_v50 = vrot.slane %v20608_v29, 2  ;;  %v17680_v40 = vrot.slane %v17670_v5, %v21575_v2  ;;  %v18223_v12 = vld [vmem:[#allocation5 + $0x38] sm:$0x1]  ;;  %v16160_v5 = vpop.permute.xlu1 %16159 }
 0x61d   :  { %v17668_v57 = vrot.slane %v17654_v51, %v21575_v2  ;;  %v17687_v17 = vrot.slane %v20059_v28, %v21575_v2  ;;  %v16158_v28 = vpop.permute.xlu0 %16157 }
 0x61e   :  { %v20265_v63 = vpack.c.bf16 %v17606_v39, %v17606_v39  ;;  %18319 = vrot.lane.b32.xlu0 %v18308_v50, %s20684_s11  ;;  %v20638_v50 = vld [vmem:[%s25477_s5 + $0x20] sm:$0xff]  }
 0x61f   :  { %v17669_v49 = vcombine.low %v17661_v62, %v17668_v57  ;;  %v17702_v30 = vcombine.low %v17680_v40, %v17687_v17 }
 0x620   :  { %18217 = vst.msk [vmem:[#allocation5 + $0x28] sm:$0xf] %vm18197_vm6, %v20265_v63  ;;  %v16293_v9 = vpop.f32.mrf.mxu0  ;;  %v20637_v63 = vld [vmem:[%s25477_s5 + $0x60] sm:$0xff]  }
 0x621   :  { %v20267_v52 = vpack.c.bf16 %v17669_v49, %v17669_v49  ;;  %v16294_v37 = vadd.f32 %v16293_v9, %v16171_v24  ;;  %v17710_v44 = vrot.slane %v17702_v30, %v21575_v2  ;;  %20285 = vmatprep.subr.bf16.mxu1 %v20637_v63  ;;  %v25075_v30 = vsel %vm16161_vm3, %v16158_v28, %v16160_v5  ;;  %v18228_v28 = vld [vmem:[#allocation5 + $0x44] sm:$0x1] }
 0x622   :  { %v16295_v14 = vpop.f32.mrf.mxu0  ;;  %20286 = vmatpush3.bf16.msra.mxu1 %v20638_v50  ;;  %vm18655_vm3 = vcmask 1047559  }
 0x623   :  { %18221 = vst.msk [vmem:[#allocation5 + $0x30] sm:$0xf] %vm18197_vm6, %v20267_v52  ;;  %v16830_v59 = vcombine.high %v16294_v37, %v16294_v37  ;;  %v16837_v10 = vrot.slane %v16294_v37, %v21575_v2 }
 0x624   :  { %v16296_v15 = vpop.f32.mrf.mxu0 }
 0x625   :  { %v16844_v20 = vrot.slane %v16830_v59, %v21575_v2  ;;  %v16845_v32 = vcombine.high %v16837_v10, %v16837_v10  ;;  %v16297_v53 = vadd.f32 %v16296_v15, %v16172_v18  ;;  %v16853_v23 = vrot.slane %v16837_v10, %v21575_v2 }
 0x626   :  { %v16298_v45 = vpop.f32.mrf.mxu0 }
 0x627   :  { %v20609_v26 = vld [vmem:[#allocation5 + $0x28] ss:$0 sps:$4 sm:$0x44]   ;;  %v16846_v34 = vcombine.high %v16844_v20, %v16844_v20  ;;  %v16860_v33 = vrot.slane %v16844_v20, %v21575_v2  ;;  %v16867_v0 = vrot.slane %v16845_v32, %v21575_v2  ;;  %v16879_v22 = vcombine.high %v16297_v53, %v16297_v53 }
 0x628   :  { %v20610_v38 = vld [vmem:[#allocation5 + $0x28] ss:$0 sps:$4 sm:$0x11]   ;;  %v16886_v42 = vrot.slane %v16297_v53, %v21575_v2  ;;  %v16301_v3 = vpop.f32.mrf.mxu0  ;;  %v18396_v4 = vrot.slane %v20609_v26, 2 }
 0x629   :  { %v16874_v21 = vrot.slane %v16846_v34, %v21575_v2  ;;  %v16876_v11 = vcombine.high %v16860_v33, %v16860_v33  ;;  %v17672_v16 = vcombine.low %v16853_v23, %v16867_v0  ;;  %v20060_v25 = vcombine.high %v16853_v23, %v16867_v0  ;;  %18359 = vrot.lane.b32.xlu0 %v20610_v38, %s20680_s20 }
 0x62a   :  { %v17725_v8 = vrot.slane %v16860_v33, %v21575_v2  ;;  %v16893_v6 = vrot.slane %v16879_v22, %v21575_v2  ;;  %v16894_v41 = vcombine.high %v16886_v42, %v16886_v42  ;;  %v16902_v47 = vrot.slane %v16886_v42, %v21575_v2  ;;  %v16303_v46 = vpop.f32.mrf.mxu0  ;;  %18407 = vrot.lane.b32.xlu1 %v18396_v4, %s20689_s3  ;;  %v20611_v14 = vld [vmem:[#allocation5 + $0x30] ss:$0 sps:$4 sm:$0x44]  }
 0x62b   :  { %v17694_v7 = vrot.slane %v17672_v16, %v21575_v2  ;;  %v17701_v60 = vrot.slane %v20060_v25, %v21575_v2  ;;  %v17733_v56 = vcombine.low %v16874_v21, %v16876_v11  ;;  %v16878_v55 = vcombine.high %v16874_v21, %v16874_v21 }
 0x62c   :  { %v17732_v61 = vrot.slane %v17725_v8, %v21575_v2  ;;  %v16895_v58 = vcombine.high %v16893_v6, %v16893_v6  ;;  %v16909_v27 = vrot.slane %v16893_v6, %v21575_v2  ;;  %v16916_v48 = vrot.slane %v16894_v41, %v21575_v2  ;;  %v16304_v51 = vpop.f32.mrf.mxu0 }
 0x62d   :  { %v17703_v39 = vcombine.low %v17694_v7, %v17701_v60  ;;  %v16924_v29 = vcombine.high %v16902_v47, %v16902_v47  ;;  %v17734_v62 = vcombine.low %v16878_v55, %v16902_v47  ;;  %v17743_v57 = vrot.slane %v17733_v56, %v21575_v2 }
 0x62e   :  { %v20269_v49 = vpack.c.bf16 %v17732_v61, %v17732_v61  ;;  %v16923_v24 = vrot.slane %v16895_v58, %v21575_v2  ;;  %v16925_v43 = vcombine.high %v16909_v27, %v16909_v27  ;;  %v16926_v31 = vcombine.high %v16916_v48, %v16916_v48  ;;  %v16306_v40 = vpop.f32.mrf.mxu0 }
 0x62f   :  { %v17717_v17 = vrot.slane %v17703_v39, %v21575_v2  ;;  %v17735_v52 = vcombine.low %v16916_v48, %v16924_v29  ;;  %v17750_v9 = vrot.slane %v17734_v62, %v21575_v2  ;;  %v16302_v37 = vadd.f32 %v16301_v3, %v16173_v36 }
 0x630   :  { %v18224_v18 = vsel %vm24838_vm2, %v20269_v49, %v18223_v12  ;;  %v17736_v59 = vcombine.low %v16926_v31, %v16909_v27  ;;  %v17782_v10 = vcombine.low %v16923_v24, %v16925_v43  ;;  %v16927_v32 = vcombine.high %v16923_v24, %v16923_v24 }
 0x631   :  { %v17718_v15 = vcombine.low %v17710_v44, %v17717_v17  ;;  %18225 = vst [vmem:[#allocation5 + $0x38] sm:$0x1] %v18224_v18  ;;  %v17765_v20 = vcombine.low %v17743_v57, %v17750_v9  ;;  %v16928_v53 = vcombine.high %v16302_v37, %v16302_v37  ;;  %v17757_v19 = vrot.slane %v17735_v52, %v21575_v2 }
 0x632   :  { %v17764_v35 = vrot.slane %v17736_v59, %v21575_v2  ;;  %v16935_v23 = vrot.slane %v16302_v37, %v21575_v2  ;;  %v16305_v45 = vadd.f32 %v16304_v51, %v16174_v13  ;;  %v17792_v34 = vrot.slane %v17782_v10, %v21575_v2 }
 0x633   :  { %v20268_v36 = vpack.c.bf16 %v17718_v15, %v17718_v15  ;;  %v16942_v26 = vrot.slane %v16928_v53, %v21575_v2  ;;  %v18309_v33 = vrot.slane %v20611_v14, 2  ;;  %v17773_v42 = vrot.slane %v17765_v20, %v21575_v2 }
 0x634   :  { %v17766_v0 = vcombine.low %v17757_v19, %v17764_v35  ;;  %v16943_v22 = vcombine.high %v16935_v23, %v16935_v23  ;;  %v16951_v38 = vrot.slane %v16935_v23, %v21575_v2  ;;  %v16977_v44 = vcombine.high %v16305_v45, %v16305_v45 }
 0x635   :  { %18222 = vst.msk [vmem:[#allocation5 + $0x34] sm:$0xf] %vm18197_vm6, %v20268_v36  ;;  %v16944_v3 = vcombine.high %v16942_v26, %v16942_v26  ;;  %v16958_v4 = vrot.slane %v16942_v26, %v21575_v2  ;;  %v16984_v13 = vrot.slane %v16305_v45, %v21575_v2  ;;  %18321 = vrot.lane.b32.xlu0 %v18309_v33, %s20684_s11 }
 0x636   :  { %v17780_v21 = vrot.slane %v17766_v0, %v21575_v2  ;;  %v16965_v11 = vrot.slane %v16943_v22, %v21575_v2  ;;  %v16973_v16 = vcombine.high %v16951_v38, %v16951_v38  ;;  %v17783_v25 = vcombine.low %v16927_v32, %v16951_v38 }
 0x637   :  { %v16972_v8 = vrot.slane %v16944_v3, %v21575_v2  ;;  %v16991_v6 = vrot.slane %v16977_v44, %v21575_v2  ;;  %v16992_v41 = vcombine.high %v16984_v13, %v16984_v13  ;;  %v17000_v47 = vrot.slane %v16984_v13, %v21575_v2  ;;  %v16309_v46 = vpop.f32.mrf.mxu0 }
 0x638   :  { %v17781_v7 = vcombine.low %v17773_v42, %v17780_v21  ;;  %v16975_v60 = vcombine.high %v16965_v11, %v16965_v11  ;;  %v17784_v56 = vcombine.low %v16965_v11, %v16973_v16  ;;  %v17799_v55 = vrot.slane %v17783_v25, %v21575_v2 }
 0x639   :  { %v17837_v61 = vrot.slane %v16972_v8, %v21575_v2  ;;  %v20061_v58 = vcombine.high %v16958_v4, %v16972_v8  ;;  %v16993_v27 = vcombine.high %v16991_v6, %v16991_v6  ;;  %v17007_v48 = vrot.slane %v16991_v6, %v21575_v2  ;;  %v16311_v51 = vpop.f32.mrf.mxu0 }
 0x63a   :  { %v20270_v39 = vpack.c.bf16 %v17781_v7, %v17781_v7  ;;  %v17785_v12 = vcombine.low %v16975_v60, %v16958_v4  ;;  %v17806_v29 = vrot.slane %v17784_v56, %v21575_v2  ;;  %v17814_v62 = vcombine.low %v17792_v34, %v17799_v55 }
 0x63b   :  { %v17844_v57 = vrot.slane %v17837_v61, %v21575_v2  ;;  %v17855_v5 = vrot.slane %v20061_v58, %v21575_v2  ;;  %v17014_v63 = vrot.slane %v16992_v41, %v21575_v2  ;;  %v17021_v50 = vrot.slane %v16993_v27, %v21575_v2  ;;  %v16312_v49 = vpop.f32.mrf.mxu0 }
 0x63c   :  { %18226 = vst.msk [vmem:[#allocation5 + $0x3c] sm:$0xf] %vm18197_vm6, %v20270_v39  ;;  %v17813_v24 = vrot.slane %v17785_v12, %v21575_v2  ;;  %v17822_v43 = vrot.slane %v17814_v62, %v21575_v2  ;;  %v16310_v31 = vadd.f32 %v16309_v46, %v25044_v54  ;;  %v16313_v40 = vadd.f32 %v16312_v49, %v25075_v30  ;;  %v20612_v17 = vld [vmem:[#allocation5 + $0x34] ss:$0 sps:$4 sm:$0x11]  }
 0x63d   :  { %v20272_v52 = vpack.c.bf16 %v17844_v57, %v17844_v57  ;;  %v17846_v9 = vcombine.low %v17000_v47, %v17014_v63  ;;  %v20062_v37 = vcombine.high %v17000_v47, %v17014_v63  ;;  %v17848_v14 = vcombine.low %v17007_v48, %v17021_v50  ;;  %v16314_v18 = vpop.f32.mrf.mxu0  ;;  %18361 = vrot.lane.b32.xlu1 %v20612_v17, %s20680_s20  ;;  %v20639_v63 = vld [vmem:[%s25477_s5 + $0x58] sm:$0xff]   ;;  %v18233_v49 = vld [vmem:[#allocation5 + $0x50] sm:$0x1] }
 0x63e   :  { %v17815_v59 = vcombine.low %v17806_v29, %v17813_v24  ;;  %v20063_v10 = vcombine.high %v17007_v48, %v17021_v50  ;;  %v17026_v15 = vcombine.high %v16310_v31, %v16310_v31  ;;  %v17033_v20 = vrot.slane %v16310_v31, %v21575_v2  ;;  %v20640_v50 = vld [vmem:[%s25477_s5 + $0x18] sm:$0xff]   ;;  %20287 = vmatprep.subr.bf16.mxu1 %v20639_v63 }
 0x63f   :  { %v18229_v32 = vsel %vm24838_vm2, %v20272_v52, %v18228_v28  ;;  %v17862_v54 = vrot.slane %v17846_v9, %v21575_v2  ;;  %v17869_v53 = vrot.slane %v20062_v37, %v21575_v2  ;;  %v17876_v19 = vrot.slane %v17848_v14, %v21575_v2  ;;  %v16317_v35 = vpop.f32.mrf.mxu0  ;;  %v20613_v37 = vld [vmem:[#allocation5 + $0x34] ss:$0 sps:$4 sm:$0x44]   ;;  %20288 = vmatpush3.bf16.msra.mxu1 %v20640_v50 }
 0x640   :  { %v17829_v23 = vrot.slane %v17815_v59, %v21575_v2  ;;  %18230 = vst [vmem:[#allocation5 + $0x44] sm:$0x1] %v18229_v32  ;;  %v17904_v45 = vrot.slane %v20063_v10, %v21575_v2  ;;  %v17040_v36 = vrot.slane %v17026_v15, %v21575_v2  ;;  %v17041_v26 = vcombine.high %v17033_v20, %v17033_v20 }
 0x641   :  { %v17877_v34 = vcombine.low %v17855_v5, %v17862_v54  ;;  %v17878_v33 = vcombine.low %v17869_v53, %v17876_v19  ;;  %v17049_v0 = vrot.slane %v17033_v20, %v21575_v2  ;;  %v17075_v22 = vcombine.high %v16313_v40, %v16313_v40  ;;  %v16319_v38 = vpop.f32.mrf.mxu0 }
 0x642   :  { %v17830_v44 = vcombine.low %v17822_v43, %v17829_v23  ;;  %v17042_v42 = vcombine.high %v17040_v36, %v17040_v36  ;;  %v17056_v3 = vrot.slane %v17040_v36, %v21575_v2  ;;  %v17063_v4 = vrot.slane %v17041_v26, %v21575_v2 }
 0x643   :  { %v17885_v13 = vrot.slane %v17877_v34, %v21575_v2  ;;  %v17892_v21 = vrot.slane %v17878_v33, %v21575_v2  ;;  %v17082_v11 = vrot.slane %v16313_v40, %v21575_v2  ;;  %v17089_v16 = vrot.slane %v17075_v22, %v21575_v2  ;;  %v16320_v25 = vpop.f32.mrf.mxu0  ;;  %v20614_v53 = vld [vmem:[#allocation5 + $0x3c] ss:$0 sps:$4 sm:$0x44]   ;;  %v20642_v22 = vld [vmem:[%s25477_s5 + $0x10] sm:$0xff]  }
 0x644   :  { %v20271_v8 = vpack.c.bf16 %v17830_v44, %v17830_v44  ;;  %v17070_v6 = vrot.slane %v17042_v42, %v21575_v2  ;;  %v17072_v41 = vcombine.high %v17056_v3, %v17056_v3  ;;  %v17895_v47 = vcombine.low %v17049_v0, %v17063_v4 }
 0x645   :  { %v17893_v46 = vcombine.low %v17885_v13, %v17892_v21  ;;  %v20064_v7 = vcombine.high %v17049_v0, %v17063_v4  ;;  %v17090_v60 = vcombine.high %v17082_v11, %v17082_v11  ;;  %v17091_v56 = vcombine.high %v17089_v16, %v17089_v16  ;;  %v16321_v55 = vpop.f32.mrf.mxu0 }
 0x646   :  { %18227 = vst.msk [vmem:[#allocation5 + $0x40] sm:$0xf] %vm18197_vm6, %v20271_v8  ;;  %v17897_v61 = vcombine.low %v17056_v3, %v17070_v6  ;;  %v17911_v58 = vrot.slane %v17895_v47, %v21575_v2  ;;  %v17949_v27 = vrot.slane %v17072_v41, %v21575_v2  ;;  %v17074_v48 = vcombine.high %v17070_v6, %v17070_v6  ;;  %v20643_v41 = vld [vmem:[%s25477_s5 + $0x48] sm:$0xff]  }
 0x647   :  { %v20273_v51 = vpack.c.bf16 %v17893_v46, %v17893_v46  ;;  %v17918_v39 = vrot.slane %v20064_v7, %v21575_v2  ;;  %v17098_v12 = vrot.slane %v17082_v11, %v21575_v2  ;;  %v17105_v29 = vrot.slane %v17089_v16, %v21575_v2  ;;  %v20644_v47 = vld [vmem:[%s25477_s5 + $0x8] sm:$0xff]  }
 0x648   :  { %v17925_v62 = vrot.slane %v17897_v61, %v21575_v2  ;;  %v17926_v57 = vcombine.low %v17904_v45, %v17911_v58  ;;  %v17956_v5 = vrot.slane %v17949_v27, %v21575_v2  ;;  %v17112_v28 = vrot.slane %v17090_v60, %v21575_v2 }
 0x649   :  { %18231 = vst.msk [vmem:[#allocation5 + $0x48] sm:$0xf] %vm18197_vm6, %v20273_v51  ;;  %v17119_v24 = vrot.slane %v17091_v56, %v21575_v2  ;;  %v17120_v43 = vcombine.high %v17098_v12, %v17098_v12  ;;  %v17121_v31 = vcombine.high %v17105_v29, %v17105_v29  ;;  %v17957_v40 = vcombine.low %v17074_v48, %v17098_v12 }
 0x64a   :  { %v17927_v17 = vcombine.low %v17918_v39, %v17925_v62  ;;  %v20275_v52 = vpack.c.bf16 %v17956_v5, %v17956_v5  ;;  %v17122_v9 = vcombine.high %v17112_v28, %v17112_v28  ;;  %v16318_v10 = vadd.f32 %v16317_v35, %v25075_v30  ;;  %v20641_v30 = vld [vmem:[%s25477_s5 + $0x50] sm:$0xff]  }
 0x64b   :  { %v17958_v14 = vcombine.low %v17112_v28, %v17120_v43  ;;  %v17960_v18 = vcombine.low %v17119_v24, %v17121_v31  ;;  %v17967_v59 = vrot.slane %v17957_v40, %v21575_v2  ;;  %v17934_v15 = vrot.slane %v17926_v57, %v21575_v2  ;;  %20289 = vmatprep.subr.bf16.mxu1 %v20641_v30  ;;  %v20624_v30 = vld [vmem:[#allocation5 + $0x20] ss:$0 sps:$4 sm:$0x11]  }
 0x64c   :  { %v17941_v20 = vrot.slane %v17927_v17, %v21575_v2  ;;  %v18234_v32 = vsel %vm24838_vm2, %v20275_v52, %v18233_v49  ;;  %v17959_v54 = vcombine.low %v17122_v9, %v17105_v29  ;;  %v17124_v45 = vcombine.high %v16318_v10, %v16318_v10  ;;  %20290 = vmatpush3.bf16.msra.mxu1 %v20642_v22  ;;  %v18238_v17 = vld [vmem:[#allocation5 + $0x5c] sm:$0x1] }
 0x64d   :  { %18235 = vst [vmem:[#allocation5 + $0x50] sm:$0x1] %v18234_v32  ;;  %v17974_v19 = vrot.slane %v17958_v14, %v21575_v2  ;;  %v17988_v23 = vrot.slane %v17960_v18, %v21575_v2  ;;  %v17131_v36 = vrot.slane %v16318_v10, %v21575_v2  ;;  %v20615_v26 = vld [vmem:[#allocation5 + $0x40] ss:$0 sps:$4 sm:$0x11]   ;;  %v17123_v33 = vcombine.high %v17119_v24, %v17119_v24 }
 0x64e   :  { %v17942_v35 = vcombine.low %v17934_v15, %v17941_v20  ;;  %v17981_v34 = vrot.slane %v17959_v54, %v21575_v2  ;;  %v18397_v0 = vrot.slane %v20613_v37, 2  ;;  %v17138_v44 = vrot.slane %v17124_v45, %v21575_v2  ;;  %18363 = vrot.lane.b32.xlu1 %v20615_v26, %s20680_s20  ;;  %v20616_v4 = vld [vmem:[#allocation5 + $0x40] ss:$0 sps:$4 sm:$0x44]   ;;  %20291 = vmatprep.subr.bf16.mxu1 %v20643_v41 }
 0x64f   :  { %v17989_v38 = vcombine.low %v17967_v59, %v17974_v19  ;;  %v17139_v42 = vcombine.high %v17131_v36, %v17131_v36  ;;  %v17147_v3 = vrot.slane %v17131_v36, %v21575_v2  ;;  %v18310_v11 = vrot.slane %v20614_v53, 2  ;;  %v20645_v59 = vld [vmem:[%s25477_s5 + $0x40] sm:$0xff]   ;;  %v20623_v19 = vld [vmem:[#allocation5 + $0x14] ss:$0 sps:$4 sm:$0x11]  }
 0x650   :  { %v20274_v13 = vpack.c.bf16 %v17942_v35, %v17942_v35  ;;  %v17990_v21 = vcombine.low %v17981_v34, %v17988_v23  ;;  %18409 = vrot.lane.b32.xlu0 %v18397_v0, %s20689_s3  ;;  %v17140_v25 = vcombine.high %v17138_v44, %v17138_v44  ;;  %v17154_v8 = vrot.slane %v17138_v44, %v21575_v2  ;;  %v20617_v55 = vld [vmem:[#allocation5 + $0x48] ss:$0 sps:$4 sm:$0x44]   ;;  %v20646_v10 = vld [vmem:[%s25477_s5] sm:$0xff]  }
 0x651   :  { %v17997_v16 = vrot.slane %v17989_v38, %v21575_v2  ;;  %v17161_v6 = vrot.slane %v17139_v42, %v21575_v2  ;;  %v17169_v7 = vcombine.high %v17147_v3, %v17147_v3  ;;  %v18006_v60 = vcombine.low %v17123_v33, %v17147_v3  ;;  %20292 = vmatpush3.bf16.msra.mxu1 %v20644_v47  ;;  %v20625_v26 = vld [vmem:[#allocation5 + $0x8] ss:$0 sps:$4 sm:$0x11]   ;;  %v20627_v35 = vld [vmem:[#allocation5 + $0x38] ss:$0 sps:$4 sm:$0x11]   ;;  %v18314_v47 = vpop.permute.xlu1 %18313 }
 0x652   :  { %18232 = vst.msk [vmem:[#allocation5 + $0x4c] sm:$0xf] %vm18197_vm6, %v20274_v13  ;;  %v18004_v46 = vrot.slane %v17990_v21, %v21575_v2  ;;  %v18398_v56 = vrot.slane %v20616_v4, 2  ;;  %v17168_v61 = vrot.slane %v17140_v25, %v21575_v2  ;;  %v17170_v58 = vcombine.high %v17154_v8, %v17154_v8  ;;  %20293 = vmatprep.subr.bf16.mxu1 %v20645_v59  ;;  %v20626_v34 = vld [vmem:[#allocation5 + $0x2c] ss:$0 sps:$4 sm:$0x11]   ;;  %v25224_v41 = vpop.permute.xlu0 %18401 }
 0x653   :  { %v17171_v27 = vcombine.high %v17161_v6, %v17161_v6  ;;  %v18007_v51 = vcombine.low %v17161_v6, %v17169_v7  ;;  %v18016_v39 = vrot.slane %v18006_v60, %v21575_v2  ;;  %v18311_v28 = vrot.slane %v20617_v55, 2  ;;  %v20628_v0 = vld [vmem:[#allocation5 + $0x44] ss:$0 sps:$4 sm:$0x11]   ;;  %v20657_v42 = vld [vmem:[%s25478_s6 + $0x38] ss:$0 sps:$4 sm:$0xff]  }
 0x654   :  { %v18005_v48 = vcombine.low %v17997_v16, %v18004_v46  ;;  %18323 = vrot.lane.b32.xlu0 %v18310_v11, %s20684_s11  ;;  %18411 = vrot.lane.b32.xlu1 %v18398_v56, %s20689_s3  ;;  %v17172_v12 = vcombine.high %v17168_v61, %v17168_v61  ;;  %v18009_v62 = vcombine.low %v17168_v61, %v17170_v58  ;;  %v25506_v53 = vmov 0   ;;  %v20629_v33 = vld [vmem:[#allocation5 + $0x50] ss:$0 sps:$4 sm:$0x11]  }
 0x655   :  { %v18008_v29 = vcombine.low %v17171_v27, %v17154_v8  ;;  %v18023_v5 = vrot.slane %v18007_v51, %v21575_v2  ;;  %20294 = vmatpush3.bf16.msra.mxu1 %v20646_v10  ;;  %v20656_v38 = vld [vmem:[%s25474_s8 + $0x1] ss:$0 sps:$4 sm:$0x33]   ;;  %v20690_v44 = vmov 0.0   ;;  %v19165_v4 = vsel %vm2270_vm7, %v20657_v42, 0  ;;  %v20658_v13 = vld [vmem:[%s25478_s6 + $0x30] sm:$0xff]   ;;  %v18354_v7 = vpop.permute.xlu1 %18353 }
 0x656   :  { %v20276_v57 = vpack.c.bf16 %v18005_v48, %v18005_v48  ;;  %v18037_v50 = vrot.slane %v18009_v62, %v21575_v2  ;;  %v18061_v49 = vrot.slane %v17172_v12, %v21575_v2  ;;  %18934 = vmatprep.subr.bf16.mxu1 %v25506_v53  ;;  %20317 = vmatprep.subr.bf16.mxu0 %v20690_v44  ;;  %v18316_v46 = vpop.permute.xlu0 %18315  ;;  %vm18497_vm7 = vcmask 916480   ;;  %v18244_v10 = vld [vmem:[#allocation5 + $0x24] sm:$0x1]  ;;  %v18247_v42 = vld [vmem:[#allocation5 + $0x48] sm:$0x1] }
 0x657   :  { %v18030_v63 = vrot.slane %v18008_v29, %v21575_v2  ;;  %v18038_v24 = vcombine.low %v18016_v39, %v18023_v5  ;;  %v18864_v3 = vrot.slane %v20656_v38, %v21575_v2  ;;  %20318 = vmatpush3.bf16.msra.mxu0 %v19165_v4 }
 0x658   :  { %18236 = vst.msk [vmem:[#allocation5 + $0x54] sm:$0xf] %vm18197_vm6, %v20276_v57  ;;  %18325 = vrot.lane.b32.xlu1 %v18311_v28, %s20684_s11  ;;  %v18068_v31 = vrot.slane %v18061_v49, %v21575_v2  ;;  %20319 = vmatprep.subr.bf16.mxu0 %v20690_v44 }
 0x659   :  { %v18039_v43 = vcombine.low %v18030_v63, %v18037_v50  ;;  %v20618_v40 = vld [vmem:[#allocation5 + $0x4c] ss:$0 sps:$4 sm:$0x11]   ;;  %v18046_v52 = vrot.slane %v18038_v24, %v21575_v2  ;;  %v18865_v21 = vcombine.low %v18864_v3, %v18864_v3  ;;  %v18866_v11 = vcombine.high %v18864_v3, %v18864_v3 }
 0x65a   :  { %v20278_v37 = vpack.c.bf16 %v18068_v31, %v18068_v31  ;;  %18365 = vrot.lane.b32.xlu0 %v20618_v40, %s20680_s20  ;;  %v20621_v54 = vld [vmem:[#allocation5 + $0x4c] ss:$0 sps:$4 sm:$0x44]   ;;  %v18482_v24 = vsel %vm682_vm4, %v18314_v47, %v18354_v7 }
 0x65b   :  { %v18053_v9 = vrot.slane %v18039_v43, %v21575_v2  ;;  %v18399_v1 = vrot.slane %v20621_v54, 2  ;;  %v18873_v16 = vrot.slane %v18865_v21, %v21575_v2  ;;  %v18880_v25 = vrot.slane %v18866_v11, %v21575_v2  ;;  %20320 = vmatpush3.bf16.msra.mxu0 %v20658_v13  ;;  %v18242_v43 = vld [vmem:[#allocation5 + $0xc] sm:$0x1] }
 0x65c   :  { %v18239_v18 = vsel %vm24838_vm2, %v20278_v37, %v18238_v17  ;;  %20321 = vmatprep.subr.bf16.mxu0 %v20690_v44  ;;  %v18241_v17 = vld [vmem:[#allocation5] sm:$0x1]  ;;  %v18243_v37 = vld [vmem:[#allocation5 + $0x18] sm:$0x1] }
 0x65d   :  { %v18054_v14 = vcombine.low %v18046_v52, %v18053_v9  ;;  %18240 = vst [vmem:[#allocation5 + $0x5c] sm:$0x1] %v18239_v18  ;;  %v18881_v8 = vcombine.low %v18873_v16, %v18873_v16  ;;  %v18882_v6 = vcombine.low %v18880_v25, %v18880_v25  ;;  %v18356_v56 = vpop.permute.xlu1 %18355  ;;  %v18462_v52 = vsel %vm8806_vm14, %v18242_v43, %v18316_v46 }
 0x65e   :  { %v18484_v5 = vsel %vm682_vm4, %v18316_v46, %v18356_v56  ;;  %v18459_v18 = vsel %vm8806_vm14, %v18241_v17, %v18314_v47 }
 0x65f   :  { %v20277_v15 = vpack.c.bf16 %v18054_v14, %v18054_v14  ;;  %v20619_v20 = vld [vmem:[#allocation5 + $0x54] ss:$0 sps:$4 sm:$0x44]  }
 0x660   :  { %v18312_v32 = vrot.slane %v20619_v20, 2  ;;  %v25226_v60 = vpop.permute.xlu0 %18403  ;;  %v18248_v11 = vld [vmem:[#allocation5 + $0x54] sm:$0x1] }
 0x661   :  { %18237 = vst.msk [vmem:[#allocation5 + $0x58] sm:$0xf] %vm18197_vm6, %v20277_v15  ;;  %v18501_v63 = vsel %vm18497_vm7, %v18484_v5, %v25226_v60 }
 0x662   :  { %18327 = vrot.lane.b32.xlu0 %v18312_v32, %s20684_s11  ;;  %v18609_v9 = vunpack.c.l.b16 %v18501_v63  ;;  %v18499_v32 = vsel %vm18497_vm7, %v18482_v24, %v25224_v41 }
 0x664   :  { %v20630_v22 = vld [vmem:[#allocation5 + $0x5c] ss:$0 sps:$4 sm:$0x11]  }
 0x666   :  { %18413 = vrot.lane.b32.xlu0 %v18399_v1, %s20689_s3  ;;  %v18245_v1 = vld [vmem:[#allocation5 + $0x30] sm:$0x1] }
 0x668   :  { %v20620_v23 = vld [vmem:[#allocation5 + $0x58] ss:$0 sps:$4 sm:$0x11]  }
 0x669   :  { %v20622_v45 = vld [vmem:[#allocation5 + $0x58] ss:$0 sps:$4 sm:$0x44]   ;;  %18367 = vrot.lane.b32.xlu1 %v20620_v23, %s20680_s20  ;;  %s20694_s20 = smov 16  }
 0x66a   :  { %18443 = vrot.lane.b32.xlu0 %v20623_v19, %s20678_s10  ;;  %v18400_v36 = vrot.slane %v20622_v45, 2 }
 0x66d   :  { %18415 = vrot.lane.b32.xlu1 %v18400_v36, %s20689_s3  ;;  %v18608_v36 = vunpack.c.l.b16 %v18462_v52 }
 0x66e   :  { %18441 = vrot.lane.b32.xlu0 %v20625_v26, %s20678_s10 }
 0x66f   :  { %v18636_v46 = vrot.slane %v18608_v36, 7 }
 0x671   :  { %18445 = vrot.lane.b32.xlu1 %v20624_v30, %s20678_s10 }
 0x672   :  { %18449 = vrot.lane.b32.xlu0 %v20627_v35, %s20678_s10  ;;  %v18246_v35 = vld [vmem:[#allocation5 + $0x3c] sm:$0x1] }
 0x675   :  { %18447 = vrot.lane.b32.xlu1 %v20626_v34, %s20678_s10  ;;  %v18318_v55 = vpop.permute.xlu0 %18317 }
 0x676   :  { %18453 = vrot.lane.b32.xlu0 %v20629_v33, %s20678_s10  ;;  %v18465_v59 = vsel %vm8806_vm14, %v18243_v37, %v18318_v55  ;;  %v18657_v33 = vrot.slane %v18609_v9, 7 }
 0x679   :  { %18451 = vrot.lane.b32.xlu1 %v20628_v0, %s20678_s10  ;;  %v18612_v0 = vunpack.c.l.b16 %v18465_v59 }
 0x67d   :  { %18455 = vrot.lane.b32.xlu1 %v20630_v22, %s20678_s10  ;;  %s20691_s10 = smov 92  }
 0x67e   :  { %18883 = vrot.lane.b32.xlu0 %v18881_v8, %s20691_s10 }
 0x681   :  { %18885 = vrot.lane.b32.xlu1 %v18882_v6, %s20691_s10 }
 0x688   :  { %v18358_v61 = vpop.permute.xlu1 %18357 }
 0x689   :  { %v18486_v31 = vsel %vm682_vm4, %v18318_v55, %v18358_v61  ;;  %v18605_v61 = vunpack.c.l.b16 %v18499_v32 }
 0x68c   :  { %v25228_v27 = vpop.permute.xlu1 %18405 }
 0x68d   :  { %v18503_v14 = vsel %vm18497_vm7, %v18486_v31, %v25228_v27 }
 0x68e   :  { %v18613_v26 = vunpack.c.l.b16 %v18503_v14 }
 0x690   :  { %v18320_v58 = vpop.permute.xlu0 %18319  ;;  %v18659_v7 = vrot.slane %v18613_v26, 6 }
 0x691   :  { %v18468_v54 = vsel %vm8806_vm14, %v18244_v10, %v18320_v58 }
 0x692   :  { %v18616_v3 = vunpack.c.l.b16 %v18468_v54 }
 0x69b   :  { %v18360_v48 = vpop.permute.xlu0 %18359 }
 0x69c   :  { %v25230_v51 = vpop.permute.xlu1 %18407  ;;  %v18488_v49 = vsel %vm682_vm4, %v18320_v58, %v18360_v48  ;;  %v18639_v58 = vrot.slane %v18612_v0, 6 }
 0x69d   :  { %v18505_v15 = vsel %vm18497_vm7, %v18488_v49, %v25230_v51  ;;  %v18658_v49 = vsel %vm18637_vm9, %v18657_v33, %v18605_v61  ;;  %v20648_v61 = vld [vmem:[%s25477_s5 + $0xb0] sm:$0xff]  }
 0x69e   :  { %v18617_v22 = vunpack.c.l.b16 %v18505_v15 }
 0x6a0   :  { %v18661_v48 = vrot.slane %v18617_v22, 5 }
 0x6a7   :  { %v18322_v39 = vpop.permute.xlu0 %18321 }
 0x6a8   :  { %v18471_v30 = vsel %vm8806_vm14, %v18245_v1, %v18322_v39 }
 0x6a9   :  { %v18620_v25 = vunpack.c.l.b16 %v18471_v30 }
 0x6ab   :  { %v18645_v24 = vrot.slane %v18620_v25, 4 }
 0x6af   :  { %v18362_v12 = vpop.permute.xlu1 %18361 }
 0x6b0   :  { %v18490_v40 = vsel %vm682_vm4, %v18322_v39, %v18362_v12 }
 0x6c0   :  { %v18364_v62 = vpop.permute.xlu1 %18363 }
 0x6c2   :  { %v25232_v29 = vpop.permute.xlu0 %18409 }
 0x6c3   :  { %v18507_v19 = vsel %vm18497_vm7, %v18490_v40, %v25232_v29  ;;  %v18660_v40 = vsel %vm18640_vm8, %v18659_v7, %v18658_v49 }
 0x6c4   :  { %v18621_v4 = vunpack.c.l.b16 %v18507_v19  ;;  %v18662_v37 = vsel %vm18643_vm11, %v18661_v48, %v18660_v40 }
 0x6c6   :  { %v18324_v57 = vpop.permute.xlu0 %18323  ;;  %v25235_v28 = vpop.permute.xlu1 %18411  ;;  %v18663_v5 = vrot.slane %v18621_v4, 4 }
 0x6c7   :  { %v18492_v23 = vsel %vm682_vm4, %v18324_v57, %v18364_v62  ;;  %v18474_v38 = vsel %vm8806_vm14, %v18246_v35, %v18324_v57  ;;  %v18604_v62 = vunpack.c.l.b16 %v18459_v18  ;;  %v18642_v57 = vrot.slane %v18616_v3, 5 }
 0x6c8   :  { %v18509_v34 = vsel %vm18497_vm7, %v18492_v23, %v25235_v28  ;;  %v18624_v56 = vunpack.c.l.b16 %v18474_v38  ;;  %v18664_v15 = vsel %vm18646_vm13, %v18663_v5, %v18662_v37 }
 0x6c9   :  { %v18625_v8 = vunpack.c.l.b16 %v18509_v34  ;;  %v18638_v31 = vsel %vm18637_vm9, %v18636_v46, %v18604_v62 }
 0x6ca   :  { %v18326_v45 = vpop.permute.xlu1 %18325  ;;  %v18648_v17 = vrot.slane %v18624_v56, 3  ;;  %v18641_v9 = vsel %vm18640_vm8, %v18639_v58, %v18638_v31 }
 0x6cb   :  { %v18477_v13 = vsel %vm8806_vm14, %v18247_v42, %v18326_v45  ;;  %v18665_v43 = vrot.slane %v18625_v8, 3  ;;  %v18644_v10 = vsel %vm18643_vm11, %v18642_v57, %v18641_v9 }
 0x6cc   :  { %v18366_v50 = vpop.permute.xlu0 %18365  ;;  %v18628_v39 = vunpack.c.l.b16 %v18477_v13  ;;  %v18647_v19 = vsel %vm18646_vm13, %v18645_v24, %v18644_v10 }
 0x6cd   :  { %v18494_v21 = vsel %vm682_vm4, %v18326_v45, %v18366_v50  ;;  %v18666_v23 = vsel %vm18649_vm0, %v18665_v43, %v18664_v15  ;;  %v18650_v36 = vsel %vm18649_vm0, %v18648_v17, %v18647_v19 }
 0x6ce   :  { %v18651_v14 = vrot.slane %v18628_v39, 2 }
 0x6d4   :  { %v18328_v20 = vpop.permute.xlu0 %18327 }
 0x6d5   :  { %v18480_v6 = vsel %vm8806_vm14, %v18248_v11, %v18328_v20  ;;  %vm18652_vm14 = vcmask 1046534  }
 0x6d6   :  { %v18632_v63 = vunpack.c.l.b16 %v18480_v6  ;;  %v18653_v30 = vsel %vm18652_vm14, %v18651_v14, %v18650_v36 }
 0x6d8   :  { %v25262_v16 = vpop.permute.xlu0 %18413  ;;  %v18654_v32 = vrot.slane %v18632_v63, 1  ;;  %v20649_v63 = vld [vmem:[%s25477_s5 + $0xa8] sm:$0xff]  }
 0x6d9   :  { %v18511_v47 = vsel %vm18497_vm7, %v18494_v21, %v25262_v16  ;;  %v20647_v21 = vld [vmem:[%s25477_s5 + $0xb8] sm:$0xff]  }
 0x6da   :  { %v18629_v55 = vunpack.c.l.b16 %v18511_v47  ;;  %v18656_v33 = vsel %vm18655_vm3, %v18654_v32, %v18653_v30  ;;  %v20651_v32 = vld [vmem:[%s25477_s5 + $0x98] sm:$0xff]  }
 0x6db   :  { %v18368_v12 = vpop.permute.xlu1 %18367  ;;  %v18699_v11 = vpack.c.b16 %v18656_v33, %v18656_v33 }
 0x6dc   :  { %v18444_v50 = vpop.permute.xlu0 %18443  ;;  %v18667_v52 = vrot.slane %v18629_v55, 2  ;;  %v18496_v18 = vsel %vm682_vm4, %v18328_v20, %v18368_v12  ;;  %vm18890_vm4 = vcmask 130048  }
 0x6dd   :  { %v18611_v20 = vunpack.c.l.b16 %v18444_v50  ;;  %v18517_v49 = vsel %vm723_vm5, %v25226_v60, %v18444_v50  ;;  %v20650_v60 = vld [vmem:[%s25477_s5 + $0xa0] sm:$0xff]  }
 0x6de   :  { %v18668_v26 = vsel %vm18652_vm14, %v18667_v52, %v18666_v23  ;;  %v18610_v37 = vunpack.c.l.b16 %v18517_v49 }
 0x6df   :  { %v25273_v59 = vpop.permute.xlu1 %18415  ;;  %v18685_v4 = vrot.slane %v18611_v20, 7  ;;  %v20652_v20 = vld [vmem:[%s25477_s5 + $0x90] sm:$0xff]  }
 0x6e0   :  { %v18513_v54 = vsel %vm18497_vm7, %v18496_v18, %v25273_v59  ;;  %v18442_v1 = vpop.permute.xlu0 %18441  ;;  %v18671_v15 = vrot.slane %v18610_v37, 7 }
 0x6e1   :  { %v18633_v45 = vunpack.c.l.b16 %v18513_v54  ;;  %v18607_v22 = vunpack.c.l.b16 %v18442_v1  ;;  %v18515_v17 = vsel %vm723_vm5, %v25224_v41, %v18442_v1 }
 0x6e3   :  { %v18669_v35 = vrot.slane %v18633_v45, 1  ;;  %v18446_v34 = vpop.permute.xlu1 %18445  ;;  %v18686_v6 = vsel %vm18637_vm9, %v18685_v4, %v18607_v22 }
 0x6e4   :  { %v18615_v0 = vunpack.c.l.b16 %v18446_v34  ;;  %v18450_v38 = vpop.permute.xlu0 %18449  ;;  %v18519_v43 = vsel %vm723_vm5, %v25228_v27, %v18446_v34  ;;  %v18606_v27 = vunpack.c.l.b16 %v18515_v17 }
 0x6e5   :  { %v18670_v42 = vsel %vm18655_vm3, %v18669_v35, %v18668_v26  ;;  %v18623_v3 = vunpack.c.l.b16 %v18450_v38  ;;  %v18614_v50 = vunpack.c.l.b16 %v18519_v43  ;;  %v18523_v41 = vsel %vm723_vm5, %v25232_v29, %v18450_v38 }
 0x6e6   :  { %v18700_v13 = vpack.c.b16 %v18670_v42, %v18670_v42  ;;  %v18687_v25 = vrot.slane %v18615_v0, 6  ;;  %v18622_v1 = vunpack.c.l.b16 %v18523_v41  ;;  %v18672_v29 = vsel %vm18637_vm9, %v18671_v15, %v18606_v27 }
 0x6e7   :  { %v18448_v8 = vpop.permute.xlu1 %18447  ;;  %v18691_v7 = vrot.slane %v18623_v3, 4  ;;  %v18673_v54 = vrot.slane %v18614_v50, 6  ;;  %v20654_v3 = vld [vmem:[%s25477_s5 + $0x80] sm:$0xff]  }
 0x6e8   :  { %v18619_v47 = vunpack.c.l.b16 %v18448_v8  ;;  %18926 = vmatprep.mubr.bf16.mxu1 %v18700_v13  ;;  %v18454_v46 = vpop.permute.xlu0 %18453  ;;  %v18688_v58 = vsel %vm18640_vm8, %v18687_v25, %v18686_v6  ;;  %v18521_v52 = vsel %vm723_vm5, %v25230_v51, %v18448_v8  ;;  %v18677_v30 = vrot.slane %v18622_v1, 4  ;;  %v20655_v13 = vld [vmem:[%s25477_s5 + $0xc0] sm:$0xff]   ;;  %v20659_v25 = vld [vmem:[%s25478_s6 + $0x28] sm:$0xff]   ;;  %v20662_v6 = vld [vmem:[%s25478_s6 + $0x10] sm:$0xff]  }
 0x6e9   :  { %18927 = vmatmul.mubr.bf16.vlgmr.msra.gmra.mxu1 %v18699_v11  ;;  %v18631_v56 = vunpack.c.l.b16 %v18454_v46  ;;  %v18618_v18 = vunpack.c.l.b16 %v18521_v52  ;;  %v18527_v36 = vsel %vm723_vm5, %v25262_v16, %v18454_v46  ;;  %v18674_v26 = vsel %vm18640_vm8, %v18673_v54, %v18672_v29  ;;  %v20653_v16 = vld [vmem:[%s25477_s5 + $0x88] sm:$0xff]   ;;  %20322 = vmatpush3.bf16.msra.mxu0 %v20659_v25  ;;  %v20660_v8 = vld [vmem:[%s25478_s6 + $0x20] sm:$0xff]  }
 0x6ea   :  { %v18689_v55 = vrot.slane %v18619_v47, 5  ;;  %18935 = vmatpush1.bf16.msra.mxu1 %v20647_v21  ;;  %v18630_v35 = vunpack.c.l.b16 %v18527_v36  ;;  %20323 = vmatprep.subr.bf16.mxu0 %v20690_v44  ;;  %v20663_v47 = vld [vmem:[%s25478_s6 + $0x8] sm:$0xff]   ;;  %v20664_v46 = vld [vmem:[%s25478_s6] sm:$0xff]  }
 0x6eb   :  { %v18452_v48 = vpop.permute.xlu1 %18451  ;;  %18936 = vmatprep.subr.bf16.mxu1 %v25506_v53  ;;  %v18695_v57 = vrot.slane %v18631_v56, 2  ;;  %v18675_v23 = vrot.slane %v18618_v18, 5 }
 0x6ec   :  { %v18690_v39 = vsel %vm18643_vm11, %v18689_v55, %v18688_v58  ;;  %v18627_v12 = vunpack.c.l.b16 %v18452_v48  ;;  %v18525_v19 = vsel %vm723_vm5, %v25235_v28, %v18452_v48  ;;  %v18681_v38 = vrot.slane %v18630_v35, 2 }
 0x6ed   :  { %v18692_v62 = vsel %vm18646_vm13, %v18691_v7, %v18690_v39  ;;  %v18626_v45 = vunpack.c.l.b16 %v18525_v19  ;;  %v18676_v28 = vsel %vm18643_vm11, %v18675_v23, %v18674_v26  ;;  %20324 = vmatpush3.bf16.msra.mxu0 %v20660_v8  ;;  %v20665_v7 = vld [vmem:[%s25474_s8 + $0x2] ss:$0 sps:$4 sm:$0x11]  }
 0x6ee   :  { %v18693_v5 = vrot.slane %v18627_v12, 3  ;;  %18937 = vmatpush1.bf16.msra.mxu1 %v20648_v61  ;;  %v18678_v0 = vsel %vm18646_vm13, %v18677_v30, %v18676_v28  ;;  %20325 = vmatprep.subr.bf16.mxu0 %v20690_v44  ;;  %v19147_v56 = vrot.slane %v20665_v7, %v21575_v2 }
 0x6ef   :  { %v18456_v24 = vpop.permute.xlu1 %18455  ;;  %18938 = vmatprep.subr.bf16.mxu1 %v25506_v53  ;;  %v18679_v33 = vrot.slane %v18626_v45, 3 }
 0x6f0   :  { %v18694_v31 = vsel %vm18649_vm0, %v18693_v5, %v18692_v62  ;;  %v18635_v40 = vunpack.c.l.b16 %v18456_v24  ;;  %v18529_v34 = vsel %vm723_vm5, %v25273_v59, %v18456_v24  ;;  %vm20692_vm5 = vmmov 0   ;;  %v18884_v5 = vpop.permute.xlu0 %18883 }
 0x6f1   :  { %v18696_v9 = vsel %vm18652_vm14, %v18695_v57, %v18694_v31  ;;  %v18634_v22 = vunpack.c.l.b16 %v18529_v34  ;;  %v18680_v42 = vsel %vm18649_vm0, %v18679_v33, %v18678_v0  ;;  %20333 = vmatprep.mubr.msk.bf16.mxu0 %vm20692_vm5, %v20690_v44  ;;  %v19148_v55 = vcombine.low %v19147_v56, %v19147_v56 }
 0x6f2   :  { %v18697_v14 = vrot.slane %v18635_v40, 1  ;;  %18939 = vmatpush1.bf16.msra.mxu1 %v20649_v63  ;;  %v18682_v4 = vsel %vm18652_vm14, %v18681_v38, %v18680_v42 }
 0x6f3   :  { %18940 = vmatprep.subr.bf16.mxu1 %v25506_v53  ;;  %v18683_v59 = vrot.slane %v18634_v22, 1  ;;  %v19155_v61 = vrot.slane %v19148_v55, %v21575_v2  ;;  %v18886_v57 = vpop.permute.xlu1 %18885 }
 0x6f4   :  { %v18698_v51 = vsel %vm18655_vm3, %v18697_v14, %v18696_v9  ;;  %v18888_v49 = vsel %vm18887_vm15, %v18884_v5, %v18886_v57  ;;  %v20666_v57 = vld [vmem:[%s25479_s7 + $0x28] ss:$0 sps:$4 sm:$0x33]  }
 0x6f5   :  { %v18702_v10 = vpack.c.b16 %v18698_v51, %v18698_v51  ;;  %v18684_v21 = vsel %vm18655_vm3, %v18683_v59, %v18682_v4  ;;  %v19156_v58 = vcombine.low %v19155_v61, %v19155_v61  ;;  %v19393_v5 = vsel %vm2276_vm10, %v20666_v57, 0 }
 0x6f6   :  { %18941 = vmatpush1.bf16.msra.mxu1 %v20650_v60  ;;  %v18701_v11 = vpack.c.b16 %v18684_v21, %v18684_v21 }
 0x6f7   :  { %20146 = vmatprep.mubr.msk.bf16.mxu1 %vm18890_vm4, %v18702_v10  ;;  %18942 = vmatprep.subr.bf16.mxu1 %v25506_v53 }
 0x6f8   :  { %19157 = vrot.lane.b32.xlu0 %v19156_v58, %s20693_s28 }
 0x6fa   :  { %18943 = vmatpush1.bf16.msra.mxu1 %v20651_v32 }
 0x6fb   :  { %18944 = vmatprep.subr.bf16.mxu1 %v25506_v53 }
 0x6fe   :  { %18945 = vmatpush1.bf16.msra.mxu1 %v20652_v20 }
 0x6ff   :  { %18946 = vmatprep.subr.bf16.mxu1 %v25506_v53 }
 0x702   :  { %18947 = vmatpush1.bf16.msra.mxu1 %v20653_v16 }
 0x703   :  { %18948 = vmatprep.subr.bf16.mxu1 %v25506_v53 }
 0x706   :  { %18949 = vmatpush1.bf16.msra.mxu1 %v20654_v3 }
 0x707   :  { %18964 = vmatprep.subr.bf16.mxu1 %v25506_v53  ;;  %v20661_v53 = vld [vmem:[%s25478_s6 + $0x18] sm:$0xff]  }
 0x708   :  { %20326 = vmatpush3.bf16.msra.mxu0 %v20661_v53 }
 0x709   :  { %20327 = vmatprep.subr.bf16.mxu0 %v20690_v44 }
 0x70a   :  { %18965 = vmatpush2.bf16.msra.mxu1 %v20655_v13 }
 0x70b   :  { %20337 = vmatprep.subr.bf16.mxu1 %v20690_v44 }
 0x70c   :  { %20328 = vmatpush3.bf16.msra.mxu0 %v20662_v6 }
 0x70d   :  { %18967 = vmatmul.mubr.bf16.vlgmr.msra.gmra.mxu1 %v18701_v11  ;;  %20329 = vmatprep.subr.bf16.mxu0 %v20690_v44 }
 0x70e   :  { %20349 = vmatprep.mubr.msk.bf16.mxu1 %vm20692_vm5, %v20690_v44  ;;  %20338 = vmatpush3.bf16.msra.mxu1 %v19393_v5 }
 0x70f   :  { %20339 = vmatprep.subr.bf16.mxu1 %v20690_v44 }
 0x710   :  { %20330 = vmatpush3.bf16.msra.mxu0 %v20663_v47 }
 0x711   :  { %20331 = vmatprep.subr.bf16.mxu0 %v20690_v44 }
 0x714   :  { %20332 = vmatpush3.bf16.msra.mxu0 %v20664_v46 }
 0x7a9   :  { %v20295_v48 = vpop.f32.mrf.mxu1 }
 0x7ab   :  { %v20296_v39 = vpop.f32.mrf.mxu1 }
 0x7ac   :  { %v20297_v63 = vadd.f32 %v20296_v39, %v20295_v48 }
 0x7ad   :  { %v20298_v12 = vpop.f32.mrf.mxu1 }
 0x7ae   :  { %v18929_v24 = vadd.f32 %v20297_v63, %v18888_v49  ;;  %v20667_v63 = vld [vmem:[%s25479_s7 + $0x20] sm:$0xff]   ;;  %v20668_v49 = vld [vmem:[%s25479_s7 + $0x18] sm:$0xff]  }
 0x7af   :  { %v20299_v62 = vpop.f32.mrf.mxu1  ;;  %20340 = vmatpush3.bf16.msra.mxu1 %v20667_v63 }
 0x7b0   :  { %20341 = vmatprep.subr.bf16.mxu1 %v20690_v44 }
 0x7b3   :  { %20342 = vmatpush3.bf16.msra.mxu1 %v20668_v49 }
 0x7b4   :  { %20343 = vmatprep.subr.bf16.mxu1 %v20690_v44 }
 0x7cd   :  { %v18968_v43 = vpop.f32.mrf.mxu1 }
 0x7ce   :  { %v18969_v31 = vadd.f32 %v18968_v43, %v18929_v24  ;;  %v20669_v24 = vld [vmem:[%s25479_s7 + $0x10] sm:$0xff]   ;;  %v20670_v43 = vld [vmem:[%s25479_s7 + $0x8] sm:$0xff]  }
 0x7cf   :  { %v18970_v40 = vpop.f32.mrf.mxu1  ;;  %20344 = vmatpush3.bf16.msra.mxu1 %v20669_v24 }
 0x7d0   :  { %v18975_v17 = vcombine.high %v18969_v31, %v18969_v31  ;;  %v18982_v52 = vrot.slane %v18969_v31, %v21575_v2  ;;  %20345 = vmatprep.subr.bf16.mxu1 %v20690_v44  ;;  %v20671_v31 = vld [vmem:[%s25479_s7] sm:$0xff]  }
 0x7d1   :  { %v18971_v9 = vpop.f32.mrf.mxu1  ;;  %v20672_v40 = vld [vmem:[%s25474_s8 + $0x2] ss:$0 sps:$4 sm:$0x33]  }
 0x7d2   :  { %v18989_v37 = vrot.slane %v18975_v17, %v21575_v2  ;;  %v18990_v14 = vcombine.high %v18982_v52, %v18982_v52  ;;  %v18998_v60 = vrot.slane %v18982_v52, %v21575_v2  ;;  %v19364_v17 = vrot.slane %v20672_v40, %v21575_v2 }
 0x7d3   :  { %v18972_v50 = vpop.f32.mrf.mxu1  ;;  %20346 = vmatpush3.bf16.msra.mxu1 %v20670_v43 }
 0x7d4   :  { %v18991_v27 = vcombine.high %v18989_v37, %v18989_v37  ;;  %v19005_v18 = vrot.slane %v18989_v37, %v21575_v2  ;;  %v19012_v41 = vrot.slane %v18990_v14, %v21575_v2  ;;  %v19020_v51 = vcombine.high %v18998_v60, %v18998_v60  ;;  %20347 = vmatprep.subr.bf16.mxu1 %v20690_v44 }
 0x7d5   :  { %v19032_v10 = vmax.f32 %v18998_v60, 0.0  ;;  %v19366_v52 = vcombine.high %v19364_v17, %v19364_v17  ;;  %v19365_v9 = vcombine.low %v19364_v17, %v19364_v17 }
 0x7d6   :  { %v19019_v15 = vrot.slane %v18991_v27, %v21575_v2  ;;  %v19021_v32 = vcombine.high %v19005_v18, %v19005_v18  ;;  %v19022_v54 = vcombine.high %v19012_v41, %v19012_v41  ;;  %v19033_v1 = vmax.f32 %v19012_v41, 0.0  ;;  %v19158_v27 = vpop.permute.xlu0 %19157 }
 0x7d7   :  { %v19034_v19 = vmax.f32 %v19020_v51, 0.0  ;;  %v19036_v29 = vmax.f32 %v19005_v18, 0.0  ;;  %v19040_v26 = vpack.c.bf16 %v19032_v10, %v19032_v10  ;;  %20348 = vmatpush3.bf16.msra.mxu1 %v20671_v31  ;;  %v19380_v37 = vrot.slane %v19366_v52, %v21575_v2 }
 0x7d8   :  { %v19023_v23 = vcombine.high %v19019_v15, %v19019_v15  ;;  %v19035_v45 = vmax.f32 %v19022_v54, 0.0  ;;  %v19037_v36 = vmax.f32 %v19019_v15, 0.0  ;;  %v19038_v20 = vmax.f32 %v19021_v32, 0.0 }
 0x7d9   :  { %v19041_v30 = vpack.c.bf16 %v19033_v1, %v19033_v1  ;;  %v19042_v28 = vpack.c.bf16 %v19034_v19, %v19034_v19  ;;  %v19044_v35 = vpack.c.bf16 %v19036_v29, %v19036_v29  ;;  %v19071_v4 = vunpack.c.l.b16 %v19040_v26 }
 0x7da   :  { %v19039_v34 = vmax.f32 %v19023_v23, 0.0  ;;  %v19043_v33 = vpack.c.bf16 %v19035_v45, %v19035_v45  ;;  %v19045_v16 = vpack.c.bf16 %v19037_v36, %v19037_v36  ;;  %v19046_v0 = vpack.c.bf16 %v19038_v20, %v19038_v20 }
 0x7db   :  { %v19072_v22 = vunpack.c.l.b16 %v19041_v30  ;;  %v19073_v38 = vunpack.c.l.b16 %v19042_v28  ;;  %v19075_v59 = vunpack.c.l.b16 %v19044_v35  ;;  %v19373_v14 = vrot.slane %v19365_v9, %v21575_v2 }
 0x7dc   :  { %v19047_v42 = vpack.c.bf16 %v19039_v34, %v19039_v34  ;;  %v19074_v3 = vunpack.c.l.b16 %v19043_v33  ;;  %v19076_v13 = vunpack.c.l.b16 %v19045_v16  ;;  %v19077_v25 = vunpack.c.l.b16 %v19046_v0 }
 0x7dd   :  { %v19079_v21 = vrot.slane %v19072_v22, 7  ;;  %v19081_v11 = vrot.slane %v19073_v38, 6  ;;  %v19085_v46 = vrot.slane %v19075_v59, 4  ;;  %v19382_v60 = vcombine.low %v19380_v37, %v19380_v37 }
 0x7de   :  { %v19083_v8 = vrot.slane %v19074_v3, 5  ;;  %v19078_v53 = vunpack.c.l.b16 %v19047_v42  ;;  %v19087_v56 = vrot.slane %v19076_v13, 3  ;;  %v19089_v61 = vrot.slane %v19077_v25, 2 }
 0x7df   :  { %v19080_v6 = vsel %vm18637_vm9, %v19079_v21, %v19071_v4  ;;  %v19381_v50 = vcombine.low %v19373_v14, %v19373_v14  ;;  %19385 = vrot.lane.b32.xlu0 %v19382_v60, %s20694_s20 }
 0x7e0   :  { %v19082_v47 = vsel %vm18640_vm8, %v19081_v11, %v19080_v6  ;;  %v19091_v48 = vrot.slane %v19078_v53, 1 }
 0x7e1   :  { %v19084_v7 = vsel %vm18643_vm11, %v19083_v8, %v19082_v47  ;;  %19383 = vrot.lane.b32.xlu1 %v19381_v50, %s20694_s20 }
 0x7e2   :  { %v19086_v55 = vsel %vm18646_vm13, %v19085_v46, %v19084_v7 }
 0x7e3   :  { %v19088_v58 = vsel %vm18649_vm0, %v19087_v56, %v19086_v55 }
 0x7e4   :  { %v19090_v39 = vsel %vm18652_vm14, %v19089_v61, %v19088_v58 }
 0x7e5   :  { %v19092_v12 = vsel %vm18655_vm3, %v19091_v48, %v19090_v39 }
 0x7e6   :  { %v19093_v62 = vpack.c.b16 %v19092_v12, %v19092_v12 }
 0x7e8   :  { %20334 = vmatmul.mubr.msk.bf16.vlgmr.msra.gmra.mxu0 %vm19160_vm1, %v19093_v62 }
 0x851   :  { %v19386_v37 = vpop.permute.xlu0 %19385 }
 0x853   :  { %v19384_v9 = vpop.permute.xlu1 %19383 }
 0x854   :  { %v19387_v14 = vsel %vm18890_vm4, %v19384_v9, %v19386_v37 }
 0x8a8   :  { %v19201_v44 = vpop.f32.mrf.mxu0 }
 0x8a9   :  { %v19202_v18 = vadd.f32 %v19201_v44, %v19158_v27 }
 0x8aa   :  { %v20335_v41 = vpop.f32.mrf.mxu0 }
 0x8ab   :  { %v19208_v51 = vcombine.high %v19202_v18, %v19202_v18  ;;  %v19215_v10 = vrot.slane %v19202_v18, %v21575_v2 }
 0x8ac   :  { %v19204_v15 = vpop.f32.mrf.mxu0 }
 0x8ad   :  { %v19222_v32 = vrot.slane %v19208_v51, %v21575_v2  ;;  %v19223_v54 = vcombine.high %v19215_v10, %v19215_v10  ;;  %v19231_v1 = vrot.slane %v19215_v10, %v21575_v2 }
 0x8ae   :  { %v20336_v19 = vpop.f32.mrf.mxu0 }
 0x8af   :  { %v19224_v29 = vcombine.high %v19222_v32, %v19222_v32  ;;  %v19238_v23 = vrot.slane %v19222_v32, %v21575_v2  ;;  %v19245_v45 = vrot.slane %v19223_v54, %v21575_v2  ;;  %v19253_v36 = vcombine.high %v19231_v1, %v19231_v1 }
 0x8b0   :  { %v19265_v20 = vmax.f32 %v19231_v1, 0.0 }
 0x8b1   :  { %v19252_v26 = vrot.slane %v19224_v29, %v21575_v2  ;;  %v19254_v30 = vcombine.high %v19238_v23, %v19238_v23  ;;  %v19255_v28 = vcombine.high %v19245_v45, %v19245_v45  ;;  %v19266_v35 = vmax.f32 %v19245_v45, 0.0 }
 0x8b2   :  { %v19267_v34 = vmax.f32 %v19253_v36, 0.0  ;;  %v19269_v33 = vmax.f32 %v19238_v23, 0.0  ;;  %v19273_v42 = vpack.c.bf16 %v19265_v20, %v19265_v20 }
 0x8b3   :  { %v19256_v16 = vcombine.high %v19252_v26, %v19252_v26  ;;  %v19268_v0 = vmax.f32 %v19255_v28, 0.0  ;;  %v19270_v22 = vmax.f32 %v19252_v26, 0.0  ;;  %v19271_v38 = vmax.f32 %v19254_v30, 0.0 }
 0x8b4   :  { %v19274_v3 = vpack.c.bf16 %v19266_v35, %v19266_v35  ;;  %v19275_v59 = vpack.c.bf16 %v19267_v34, %v19267_v34  ;;  %v19277_v4 = vpack.c.bf16 %v19269_v33, %v19269_v33  ;;  %v19300_v7 = vunpack.c.l.b16 %v19273_v42 }
 0x8b5   :  { %v19272_v13 = vmax.f32 %v19256_v16, 0.0  ;;  %v19276_v21 = vpack.c.bf16 %v19268_v0, %v19268_v0  ;;  %v19278_v11 = vpack.c.bf16 %v19270_v22, %v19270_v22  ;;  %v19279_v25 = vpack.c.bf16 %v19271_v38, %v19271_v38 }
 0x8b6   :  { %v19301_v8 = vunpack.c.l.b16 %v19274_v3  ;;  %v19302_v53 = vunpack.c.l.b16 %v19275_v59  ;;  %v19304_v46 = vunpack.c.l.b16 %v19277_v4 }
 0x8b7   :  { %v19280_v6 = vpack.c.bf16 %v19272_v13, %v19272_v13  ;;  %v19303_v47 = vunpack.c.l.b16 %v19276_v21  ;;  %v19305_v56 = vunpack.c.l.b16 %v19278_v11  ;;  %v19306_v58 = vunpack.c.l.b16 %v19279_v25 }
 0x8b8   :  { %v19308_v55 = vrot.slane %v19301_v8, 7  ;;  %v19310_v61 = vrot.slane %v19302_v53, 6  ;;  %v19314_v57 = vrot.slane %v19304_v46, 4 }
 0x8b9   :  { %v19312_v48 = vrot.slane %v19303_v47, 5  ;;  %v19307_v39 = vunpack.c.l.b16 %v19280_v6  ;;  %v19316_v63 = vrot.slane %v19305_v56, 3  ;;  %v19318_v24 = vrot.slane %v19306_v58, 2 }
 0x8ba   :  { %v19309_v12 = vsel %vm18637_vm9, %v19308_v55, %v19300_v7 }
 0x8bb   :  { %v19311_v62 = vsel %vm18640_vm8, %v19310_v61, %v19309_v12  ;;  %v19320_v31 = vrot.slane %v19307_v39, 1 }
 0x8bc   :  { %v19313_v5 = vsel %vm18643_vm11, %v19312_v48, %v19311_v62 }
 0x8bd   :  { %v19315_v49 = vsel %vm18646_vm13, %v19314_v57, %v19313_v5 }
 0x8be   :  { %v19317_v43 = vsel %vm18649_vm0, %v19316_v63, %v19315_v49 }
 0x8bf   :  { %v19319_v40 = vsel %vm18652_vm14, %v19318_v24, %v19317_v43 }
 0x8c0   :  { %v19321_v17 = vsel %vm18655_vm3, %v19320_v31, %v19319_v40 }
 0x8c1   :  { %v19322_v52 = vpack.c.b16 %v19321_v17, %v19321_v17 }
 0x8c3   :  { %20350 = vmatmul.mubr.msk.bf16.vlgmr.msra.gmra.mxu1 %vm8692_vm12, %v19322_v52 }
 0x983   :  { %v19429_v60 = vpop.f32.mrf.mxu1 }
 0x984   :  { %v19430_v50 = vadd.f32 %v19429_v60, %v19387_v14 }
 0x985   :  { %v20351_v27 = vpop.f32.mrf.mxu1 }
 0x986   :  { %v19436_v44 = vcombine.high %v19430_v50, %v19430_v50  ;;  %v19443_v18 = vrot.slane %v19430_v50, %v21575_v2 }
 0x987   :  { %v19432_v41 = vpop.f32.mrf.mxu1 }
 0x988   :  { %v19450_v51 = vrot.slane %v19436_v44, %v21575_v2  ;;  %v19451_v10 = vcombine.high %v19443_v18, %v19443_v18  ;;  %v19459_v15 = vrot.slane %v19443_v18, %v21575_v2  ;;  %20163 = vst.sshfl [vmem:[%s25480_s9] sm:$0x1 pattern:$0x73625140] %v19443_v18 }
 0x989   :  { %v20352_v32 = vpop.f32.mrf.mxu1 }
 0x98a   :  { %v19452_v54 = vcombine.high %v19450_v51, %v19450_v51  ;;  %v19466_v1 = vrot.slane %v19450_v51, %v21575_v2  ;;  %v19473_v19 = vrot.slane %v19451_v10, %v21575_v2  ;;  %v19481_v29 = vcombine.high %v19459_v15, %v19459_v15  ;;  %20164 = vst.sshfl [vmem:[%s25480_s9 + $0x1] sm:$0x1 pattern:$0x73625140] %v19451_v10 }
 0x98b   :  { %20165 = vst.sshfl [vmem:[%s25480_s9 + $0x4] sm:$0x1 pattern:$0x73625140] %v19450_v51 }
 0x98c   :  { %v19480_v23 = vrot.slane %v19452_v54, %v21575_v2  ;;  %v19482_v45 = vcombine.high %v19466_v1, %v19466_v1  ;;  %v19483_v36 = vcombine.high %v19473_v19, %v19473_v19  ;;  %19495 = vst [vmem:[%s25480_s9 + $0x2] sm:$0x1] %v19481_v29  ;;  %20166 = vst.sshfl [vmem:[%s25480_s9 + $0x5] sm:$0x1 pattern:$0x73625140] %v19452_v54 }
 0x98e   :  { %v19484_v20 = vcombine.high %v19480_v23, %v19480_v23  ;;  %19496 = vst [vmem:[%s25480_s9 + $0x3] sm:$0x1] %v19483_v36  ;;  %19499 = vst [vmem:[%s25480_s9 + $0x6] sm:$0x1] %v19482_v45 }
 0x990   :  { %19500 = vst [vmem:[%s25480_s9 + $0x7] sm:$0x1] %v19484_v20 }

</bundles_post_ra>
